<compile_context>
chip_gen: v6e
topology: v6e:2x2x1
jax: 0.10.0
libtpu: 0.0.40
codegen_flags: <defaults>
</compile_context>

<pallas_src>
import functools

import jax
import jax.numpy as jnp
from jax.experimental import pallas as pl
from jax.experimental.pallas import tpu as pltpu


_VMEM_LIMIT = 48 * 1024 * 1024   # explicit scoped-VMEM cap (safe on v7x 64 MiB)


def _time_chunk(t, max_chunk=32):
    """Largest chunk <= max_chunk that divides t and is 8-aligned (or == t)."""
    for tc in range(min(t, max_chunk), 0, -1):
        if t % tc == 0 and (tc == t or tc % 8 == 0):
            return tc
    return t


# ----------------------------------------------------------------------------
# Tiled fused linear:  y = act(x @ W + b)     (W arrives pre-cast to bf16)
# ----------------------------------------------------------------------------
def _linear_kernel(x_ref, w_ref, b_ref, o_ref, *, activation):
    y = jnp.dot(x_ref[...].astype(jnp.bfloat16), w_ref[...],
                preferred_element_type=jnp.float32)
    y = y + b_ref[...]
    if activation == "tanh":
        y = jnp.tanh(y)
    o_ref[...] = y.astype(o_ref.dtype)


def pallas_linear(x, w_bf, b, activation=None, *, out_dtype=jnp.float32,
                  tm=1024, tn=512):
    """y = activation(x @ w + b); x:(N,Din), w_bf:(Din,Dout) bf16, b:(Dout,)."""
    n, din = x.shape
    dout = w_bf.shape[1]
    tm = min(n, tm)
    tn = min(dout, tn)
    grid = (pl.cdiv(n, tm), pl.cdiv(dout, tn))
    return pl.pallas_call(
        functools.partial(_linear_kernel, activation=activation),
        out_shape=jax.ShapeDtypeStruct((n, dout), out_dtype),
        grid=grid,
        in_specs=[
            pl.BlockSpec((tm, din), lambda i, j: (i, 0)),
            pl.BlockSpec((din, tn), lambda i, j: (0, j)),
            pl.BlockSpec((1, tn), lambda i, j: (0, j)),
        ],
        out_specs=pl.BlockSpec((tm, tn), lambda i, j: (i, j)),
        compiler_params=pltpu.CompilerParams(
            dimension_semantics=("parallel", "parallel"),
            vmem_limit_bytes=_VMEM_LIMIT,
        ),
    )(x, w_bf, b.reshape(1, dout))


# ----------------------------------------------------------------------------
# Fused dual projection for the BiLSTM input: x is read ONCE from HBM and both
# gate projections (fw & bw) are produced, emitted in bf16.
# ----------------------------------------------------------------------------
def _dual_linear_kernel(x_ref, wf_ref, wb_ref, bf_ref, bb_ref, of_ref, ob_ref):
    x = x_ref[...].astype(jnp.bfloat16)
    yf = jnp.dot(x, wf_ref[...], preferred_element_type=jnp.float32) + bf_ref[...]
    yb = jnp.dot(x, wb_ref[...], preferred_element_type=jnp.float32) + bb_ref[...]
    of_ref[...] = yf.astype(of_ref.dtype)
    ob_ref[...] = yb.astype(ob_ref.dtype)


def pallas_dual_linear(x, wf_bf, wb_bf, bf, bb, *, out_dtype=jnp.bfloat16,
                       tm=1024):
    n, din = x.shape
    dout = wf_bf.shape[1]
    tm = min(n, tm)
    grid = (pl.cdiv(n, tm),)
    return pl.pallas_call(
        _dual_linear_kernel,
        out_shape=(jax.ShapeDtypeStruct((n, dout), out_dtype),
                   jax.ShapeDtypeStruct((n, dout), out_dtype)),
        grid=grid,
        in_specs=[
            pl.BlockSpec((tm, din), lambda i: (i, 0)),
            pl.BlockSpec((din, dout), lambda i: (0, 0)),
            pl.BlockSpec((din, dout), lambda i: (0, 0)),
            pl.BlockSpec((1, dout), lambda i: (0, 0)),
            pl.BlockSpec((1, dout), lambda i: (0, 0)),
        ],
        out_specs=(pl.BlockSpec((tm, dout), lambda i: (i, 0)),
                   pl.BlockSpec((tm, dout), lambda i: (i, 0))),
        compiler_params=pltpu.CompilerParams(
            dimension_semantics=("parallel",),
            vmem_limit_bytes=_VMEM_LIMIT,
        ),
    )(x, wf_bf, wb_bf, bf.reshape(1, dout), bb.reshape(1, dout))


# ----------------------------------------------------------------------------
# Fused two-layer head:  y = (tanh(sum_i x_i @ W_i + b1)) @ W2 + b2
# Intermediate "hid" stays in a f32 VMEM scratch (no HBM round trip, no concat).
# ----------------------------------------------------------------------------
def _fused_head_kernel(*refs, n_in):
    xs = refs[:n_in]
    ws = refs[n_in:2 * n_in]
    b1_ref, w2_ref, b2_ref, o_ref, hid_scr = refs[2 * n_in:]

    # NOTE: hid_scr is only valid because the j (output-column) grid axis is
    # the innermost SEQUENTIAL ("arbitrary") axis: hid is recomputed at j == 0
    # for every row tile i and reused for j > 0.  Do not reorder the grid or
    # mark j "parallel".
    @pl.when(pl.program_id(1) == 0)
    def _():
        h = jnp.dot(xs[0][...].astype(jnp.bfloat16), ws[0][...],
                    preferred_element_type=jnp.float32)
        for x_ref, w_ref in zip(xs[1:], ws[1:]):
            h = h + jnp.dot(x_ref[...].astype(jnp.bfloat16), w_ref[...],
                            preferred_element_type=jnp.float32)
        hid_scr[...] = jnp.tanh(h + b1_ref[...])

    y = jnp.dot(hid_scr[...].astype(jnp.bfloat16), w2_ref[...],
                preferred_element_type=jnp.float32) + b2_ref[...]
    o_ref[...] = y.astype(o_ref.dtype)


def pallas_fused_head(parts, b1, w2_bf, b2, *, tm=1024, tn=512):
    """parts: list of (x_i:(N,D_i) f32, w_i:(D_i,H1) bf16).  Returns (N,Dout)."""
    xs = [p[0] for p in parts]
    ws = [p[1] for p in parts]
    n = xs[0].shape[0]
    h1, dout = w2_bf.shape
    tm = min(n, tm)
    tn = min(dout, tn)
    n_in = len(xs)
    grid = (pl.cdiv(n, tm), pl.cdiv(dout, tn))

    in_specs = [pl.BlockSpec((tm, x.shape[1]), lambda i, j: (i, 0)) for x in xs]
    in_specs += [pl.BlockSpec((w.shape[0], h1), lambda i, j: (0, 0)) for w in ws]
    in_specs += [
        pl.BlockSpec((1, h1), lambda i, j: (0, 0)),
        pl.BlockSpec((h1, tn), lambda i, j: (0, j)),
        pl.BlockSpec((1, tn), lambda i, j: (0, j)),
    ]
    return pl.pallas_call(
        functools.partial(_fused_head_kernel, n_in=n_in),
        out_shape=jax.ShapeDtypeStruct((n, dout), jnp.float32),
        grid=grid,
        in_specs=in_specs,
        out_specs=pl.BlockSpec((tm, tn), lambda i, j: (i, j)),
        scratch_shapes=[pltpu.VMEM((tm, h1), jnp.float32)],
        compiler_params=pltpu.CompilerParams(
            dimension_semantics=("parallel", "arbitrary"),
            vmem_limit_bytes=_VMEM_LIMIT,
        ),
    )(*xs, *ws, b1.reshape(1, h1), w2_bf, b2.reshape(1, dout))


# ----------------------------------------------------------------------------
# LSTM recurrences (time-chunked)
# ----------------------------------------------------------------------------
def _lstm_step(x, h, c, whh_bf):
    """x: (B,4H) f32 pre-projected gates; h,c: (B,H) f32; whh_bf: (H,4H) bf16."""
    hdim = h.shape[-1]
    # TODO(synk): for large H, reorder the gate columns to a lane-aligned
    #             layout so the four slices below are free.
    gates = x + jnp.dot(h.astype(jnp.bfloat16), whh_bf,
                        preferred_element_type=jnp.float32)
    i = jax.nn.sigmoid(gates[:, 0 * hdim:1 * hdim])
    f = jax.nn.sigmoid(gates[:, 1 * hdim:2 * hdim])
    g = jnp.tanh(gates[:, 2 * hdim:3 * hdim])
    o = jax.nn.sigmoid(gates[:, 3 * hdim:4 * hdim])
    c_new = f * c + i * g
    h_new = o * jnp.tanh(c_new)
    return h_new, c_new


def _bilstm_kernel(xf_ref, xb_ref, whf_ref, whb_ref, hf_out, hb_out,
                   hf_scr, cf_scr, hb_scr, cb_scr, *, tc):
    @pl.when(pl.program_id(0) == 0)
    def _():
        for s in (hf_scr, cf_scr, hb_scr, cb_scr):
            s[...] = jnp.zeros_like(s)

    whf = whf_ref[...]
    whb = whb_ref[...]
    hf, cf = hf_scr[...], cf_scr[...]
    hb, cb = hb_scr[...], cb_scr[...]
    # Statically unrolled chunk walk (tc <= 32); backward direction walks its
    # chunk in reverse local-time order, so outputs land in forward time order.
    for s in range(tc):
        hf, cf = _lstm_step(xf_ref[:, s, :].astype(jnp.float32), hf, cf, whf)
        hb, cb = _lstm_step(xb_ref[:, tc - 1 - s, :].astype(jnp.float32),
                            hb, cb, whb)
        hf_out[:, s, :] = hf.astype(hf_out.dtype)
        hb_out[:, tc - 1 - s, :] = hb.astype(hb_out.dtype)
    hf_scr[...] = hf
    cf_scr[...] = cf
    hb_scr[...] = hb
    cb_scr[...] = cb


def pallas_bilstm(xproj_f, xproj_b, whh_f_bf, whh_b_bf, *, max_chunk=32):
    """Fused bidirectional LSTM recurrence, batch-major in/out.

    xproj_f/xproj_b: (B, T, 4H) bf16 precomputed x@W_ih + b (forward order).
    Backward direction is time-reversed purely via index_maps + reversed chunk
    walk; both outputs land in forward time order: (B, T, H) f32 each.
    """
    B, T, H4 = xproj_f.shape
    H = H4 // 4
    tc = _time_chunk(T, max_chunk)
    nc = T // tc
    fwd = lambda c: (0, c, 0)
    bwd = lambda c: (0, nc - 1 - c, 0)
    return pl.pallas_call(
        functools.partial(_bilstm_kernel, tc=tc),
        out_shape=(jax.ShapeDtypeStruct((B, T, H), jnp.float32),
                   jax.ShapeDtypeStruct((B, T, H), jnp.float32)),
        grid=(nc,),
        in_specs=[
            pl.BlockSpec((B, tc, H4), fwd),
            pl.BlockSpec((B, tc, H4), bwd),
            pl.BlockSpec((H, H4), lambda c: (0, 0)),
            pl.BlockSpec((H, H4), lambda c: (0, 0)),
        ],
        out_specs=(pl.BlockSpec((B, tc, H), fwd),
                   pl.BlockSpec((B, tc, H), bwd)),
        scratch_shapes=[pltpu.VMEM((B, H), jnp.float32)] * 4,
        compiler_params=pltpu.CompilerParams(
            dimension_semantics=("arbitrary",),
            vmem_limit_bytes=_VMEM_LIMIT,
        ),
    )(xproj_f, xproj_b, whh_f_bf, whh_b_bf)


def _char_lstm_kernel(xp_ref, whh_ref, hlast_ref, h_scr, c_scr, *, tc):
    g = pl.program_id(0)

    @pl.when(g == 0)
    def _():
        h_scr[...] = jnp.zeros_like(h_scr)
        c_scr[...] = jnp.zeros_like(c_scr)

    whh = whh_ref[...]
    h, c = h_scr[...], c_scr[...]
    for s in range(tc):
        h, c = _lstm_step(xp_ref[:, s, :].astype(jnp.float32), h, c, whh)
    h_scr[...] = h
    c_scr[...] = c

    @pl.when(g == pl.num_programs(0) - 1)
    def _():
        hlast_ref[...] = h.astype(hlast_ref.dtype)


def pallas_char_lstm(xproj, whh_bf, *, max_chunk=32):
    """Unidirectional LSTM over (N, L, 4H) bf16; returns final hidden (N, H)."""
    N, L, H4 = xproj.shape
    H = H4 // 4
    tc = _time_chunk(L, max_chunk)
    nl = L // tc
    return pl.pallas_call(
        functools.partial(_char_lstm_kernel, tc=tc),
        out_shape=jax.ShapeDtypeStruct((N, H), jnp.float32),
        grid=(nl,),
        in_specs=[
            pl.BlockSpec((N, tc, H4), lambda c: (0, c, 0)),
            pl.BlockSpec((H, H4), lambda c: (0, 0)),
        ],
        out_specs=pl.BlockSpec((N, H), lambda c: (0, 0)),
        scratch_shapes=[pltpu.VMEM((N, H), jnp.float32),
                        pltpu.VMEM((N, H), jnp.float32)],
        compiler_params=pltpu.CompilerParams(
            dimension_semantics=("arbitrary",),
            vmem_limit_bytes=_VMEM_LIMIT,
        ),
    )(xproj, whh_bf)


# ----------------------------------------------------------------------------
# Parameter construction (deterministic, synthetic)
# ----------------------------------------------------------------------------
def init_params(key, *, V_word, V_char, D_word, D_char, hidden_dim,
                lm_hidden_dim, lm_vocab_size):
    Hw = D_word // 2          # per-direction hidden of bidirectional word RNN
    Hc = D_char               # hidden of unidirectional char RNN
    keys = jax.random.split(key, 24)
    k = iter(keys)

    def w(shape):
        return jax.random.normal(next(k), shape, dtype=jnp.float32) * 0.1

    return {
        "word_emb": w((V_word, D_word)),
        "char_emb": w((V_char, D_char)),
        # bidirectional word LSTM (fw/bw), PyTorch gate order i,f,g,o
        "w_ih_f": w((D_word, 4 * Hw)), "w_hh_f": w((Hw, 4 * Hw)),
        "b_f": w((4 * Hw,)),
        "w_ih_b": w((D_word, 4 * Hw)), "w_hh_b": w((Hw, 4 * Hw)),
        "b_b": w((4 * Hw,)),
        # unidirectional char LSTM
        "cw_ih": w((D_char, 4 * Hc)), "cw_hh": w((Hc, 4 * Hc)),
        "cb": w((4 * Hc,)),
        # dense stack
        "hl_w": w((D_word + D_char, hidden_dim)), "hl_b": w((hidden_dim,)),
        "cls_w": w((hidden_dim, 2)), "cls_b": w((2,)),
        "fw_lm_w": w((Hw + D_char, lm_hidden_dim)), "fw_lm_b": w((lm_hidden_dim,)),
        "bw_lm_w": w((Hw + D_char, lm_hidden_dim)), "bw_lm_b": w((lm_hidden_dim,)),
        "fw_sm_w": w((lm_hidden_dim, lm_vocab_size)), "fw_sm_b": w((lm_vocab_size,)),
        "bw_sm_w": w((lm_hidden_dim, lm_vocab_size)), "bw_sm_b": w((lm_vocab_size,)),
    }


# ----------------------------------------------------------------------------
# SLNER forward (zero wrapper-side transposes; everything batch-major)
# ----------------------------------------------------------------------------
def slner_forward(params, batchinput, batchlength, batchextradata):
    # TODO(synk): batchlength / batchlength_char (pack_padded_sequence) ignored.
    batchinput_char, batchlength_char = batchextradata
    B, T = batchinput.shape

    # TODO(synk): in production these bf16 weight copies would be prepared once
    #             outside jit; here it is a single small cast per call.
    bf16 = lambda a: a.astype(jnp.bfloat16)

    # ---- word embedding ----
    wemb = params["word_emb"][batchinput]                # (B, T, D) f32
    D = wemb.shape[-1]
    H = D // 2

    # ---- fused word-LSTM input projections (x read once, bf16 outputs) ----
    x_flat = wemb.reshape(B * T, D)                      # rows b*T + t
    xproj_f, xproj_b = pallas_dual_linear(
        x_flat, bf16(params["w_ih_f"]), bf16(params["w_ih_b"]),
        params["b_f"], params["b_b"])                    # (B*T, 4H) bf16 each
    xproj_f = xproj_f.reshape(B, T, 4 * H)
    xproj_b = xproj_b.reshape(B, T, 4 * H)

    # ---- bidirectional word LSTM (fused fw+bw, time-chunked, flip-free) ----
    h_f, h_b = pallas_bilstm(xproj_f, xproj_b,
                             bf16(params["w_hh_f"]), bf16(params["w_hh_b"]))
    h_f_bt = h_f.reshape(B * T, H)                       # pure reshapes, no copy
    h_b_bt = h_b.reshape(B * T, H)

    # ---- char embedding + char LSTM (final hidden per token only) ----
    _, _, Lc = batchinput_char.shape
    cemb = params["char_emb"][batchinput_char]           # (B, T, Lc, C) f32
    C = cemb.shape[-1]
    cproj = pallas_linear(cemb.reshape(B * T * Lc, C), bf16(params["cw_ih"]),
                          params["cb"], out_dtype=jnp.bfloat16)
    cproj = cproj.reshape(B * T, Lc, 4 * C)
    # TODO(synk): uses hidden at the padded end; the true module indexes by
    #             batchlength_char via pack_padded_sequence.
    charout = pallas_char_lstm(cproj, bf16(params["cw_hh"]))   # (B*T, C) f32

    # ---- fused dense heads (no concats, no HBM intermediates) ----
    hl_w = params["hl_w"]                                # (2H + C, hidden)
    hidden_dim = hl_w.shape[1]
    # Pad 2-class projection to 128 lanes for unmasked stores; slice after.
    cls_w_p = bf16(jnp.pad(params["cls_w"], ((0, 0), (0, 128 - 2))))
    cls_b_p = jnp.pad(params["cls_b"], (0, 128 - 2))
    logits_p = pallas_fused_head(
        [(h_f_bt, bf16(hl_w[:H])), (h_b_bt, bf16(hl_w[H:2 * H])),
         (charout, bf16(hl_w[2 * H:]))],
        params["hl_b"], cls_w_p, cls_b_p)                # (B*T, 128)
    logits = logits_p[:, :2].reshape(B, T, 2)

    fw_w = params["fw_lm_w"]                             # (H + C, lm_hidden)
    lm_fw = pallas_fused_head(
        [(h_f_bt, bf16(fw_w[:H])), (charout, bf16(fw_w[H:]))],
        params["fw_lm_b"], bf16(params["fw_sm_w"]),
        params["fw_sm_b"]).reshape(B, T, -1)

    bw_w = params["bw_lm_w"]
    lm_bw = pallas_fused_head(
        [(h_b_bt, bf16(bw_w[:H])), (charout, bf16(bw_w[H:]))],
        params["bw_lm_b"], bf16(params["bw_sm_w"]),
        params["bw_sm_b"]).reshape(B, T, -1)

    return logits, (lm_fw, lm_bw)


# ----------------------------------------------------------------------------
# Demo
# ----------------------------------------------------------------------------
if __name__ == "__main__":
    key = jax.random.PRNGKey(0)
    kp, kw, kc = jax.random.split(key, 3)

    # small synthetic config (args analogue)
    B, T, Lc = 2, 8, 6
    V_word, V_char = 64, 32
    D_word, D_char = 32, 16          # word_embed_dim, char_embed_dim
    hidden_dim, lm_hidden_dim = 32, 32
    lm_vocab_size = V_word           # self.lm_vocab_size clamps to vocab size

    params = init_params(
        kp, V_word=V_word, V_char=V_char, D_word=D_word, D_char=D_char,
        hidden_dim=hidden_dim, lm_hidden_dim=lm_hidden_dim,
        lm_vocab_size=lm_vocab_size)

    batchinput = jax.random.randint(kw, (B, T), 0, V_word, dtype=jnp.int32)
    batchlength = jnp.full((B,), T, dtype=jnp.int32)
    batchinput_char = jax.random.randint(kc, (B, T, Lc), 0, V_char,
                                         dtype=jnp.int32)
    batchlength_char = jnp.full((B, T), Lc, dtype=jnp.int32)

    fwd = jax.jit(slner_forward)
    logits, (lm_fw, lm_bw) = fwd(
        params, batchinput, batchlength, (batchinput_char, batchlength_char))
    jax.block_until_ready((logits, lm_fw, lm_bw))

    assert logits.shape == (B, T, 2)
    assert lm_fw.shape == (B, T, lm_vocab_size)
    assert lm_bw.shape == (B, T, lm_vocab_size)
    print("KERNEL_OK")
</pallas_src>

<mosaic_0001>
module attributes {stable_mosaic.version = 11 : i64} {
  func.func @_dual_linear_kernel(%arg0: i32, %arg1: memref<16x32xf32, #tpu.memory_space<vmem>>, %arg2: memref<32x64xbf16, #tpu.memory_space<vmem>>, %arg3: memref<32x64xbf16, #tpu.memory_space<vmem>>, %arg4: memref<1x64xf32, #tpu.memory_space<vmem>>, %arg5: memref<1x64xf32, #tpu.memory_space<vmem>>, %arg6: memref<16x64xbf16, #tpu.memory_space<vmem>>, %arg7: memref<16x64xbf16, #tpu.memory_space<vmem>>) attributes {dimension_semantics = [#tpu.dimension_semantics<parallel>], iteration_bounds = array<i64: 1>, scalar_prefetch = 0 : i64, scratch_operands = 0 : i64, tpu.core_type = #tpu.core_type<tc>, window_params = [{transform_indices = @transform_0, window_bounds = array<i64: 16, 32>}, {pipeline_mode = #tpu.pipeline_mode<synchronous>, transform_indices = @transform_1, window_bounds = array<i64: 32, 64>}, {pipeline_mode = #tpu.pipeline_mode<synchronous>, transform_indices = @transform_2, window_bounds = array<i64: 32, 64>}, {pipeline_mode = #tpu.pipeline_mode<synchronous>, transform_indices = @transform_3, window_bounds = array<i64: 1, 64>}, {pipeline_mode = #tpu.pipeline_mode<synchronous>, transform_indices = @transform_4, window_bounds = array<i64: 1, 64>}, {transform_indices = @transform_5, window_bounds = array<i64: 16, 64>}, {transform_indices = @transform_6, window_bounds = array<i64: 16, 64>}]} {
    %c0 = arith.constant 0 : index
    %c0_0 = arith.constant 0 : index
    %0 = vector.load %arg1[%c0, %c0_0] : memref<16x32xf32, #tpu.memory_space<vmem>>, vector<16x32xf32>
    %1 = arith.truncf %0 : vector<16x32xf32> to vector<16x32xbf16>
    %c0_1 = arith.constant 0 : index
    %c0_2 = arith.constant 0 : index
    %2 = vector.load %arg2[%c0_1, %c0_2] : memref<32x64xbf16, #tpu.memory_space<vmem>>, vector<32x64xbf16>
    %cst = arith.constant dense<0.000000e+00> : vector<16x64xf32>
    %3 = tpu.matmul %1, %2, %cst {dimension_numbers = #tpu.dot_dimension_numbers<[1], [0], [0], [1], [0, 0, 1, 1], [], []>} : vector<16x32xbf16>, vector<32x64xbf16>, vector<16x64xf32> -> vector<16x64xf32>
    %c0_3 = arith.constant 0 : index
    %c0_4 = arith.constant 0 : index
    %4 = vector.load %arg4[%c0_3, %c0_4] : memref<1x64xf32, #tpu.memory_space<vmem>>, vector<1x64xf32>
    %5 = vector.broadcast %4 : vector<1x64xf32> to vector<16x64xf32>
    %6 = arith.addf %3, %5 : vector<16x64xf32>
    %c0_5 = arith.constant 0 : index
    %c0_6 = arith.constant 0 : index
    %7 = vector.load %arg3[%c0_5, %c0_6] : memref<32x64xbf16, #tpu.memory_space<vmem>>, vector<32x64xbf16>
    %cst_7 = arith.constant dense<0.000000e+00> : vector<16x64xf32>
    %8 = tpu.matmul %1, %7, %cst_7 {dimension_numbers = #tpu.dot_dimension_numbers<[1], [0], [0], [1], [0, 0, 1, 1], [], []>} : vector<16x32xbf16>, vector<32x64xbf16>, vector<16x64xf32> -> vector<16x64xf32>
    %c0_8 = arith.constant 0 : index
    %c0_9 = arith.constant 0 : index
    %9 = vector.load %arg5[%c0_8, %c0_9] : memref<1x64xf32, #tpu.memory_space<vmem>>, vector<1x64xf32>
    %10 = vector.broadcast %9 : vector<1x64xf32> to vector<16x64xf32>
    %11 = arith.addf %8, %10 : vector<16x64xf32>
    %12 = arith.truncf %6 : vector<16x64xf32> to vector<16x64xbf16>
    %c0_10 = arith.constant 0 : index
    %c0_11 = arith.constant 0 : index
    %13 = vector.load %arg6[%c0_10, %c0_11] : memref<16x64xbf16, #tpu.memory_space<vmem>>, vector<16x64xbf16>
    tpu.vector_store %arg6[%c0_10, %c0_11], %12 {strides = array<i32>} : memref<16x64xbf16, #tpu.memory_space<vmem>>, vector<16x64xbf16>,
    %14 = arith.truncf %11 : vector<16x64xf32> to vector<16x64xbf16>
    %c0_12 = arith.constant 0 : index
    %c0_13 = arith.constant 0 : index
    %15 = vector.load %arg7[%c0_12, %c0_13] : memref<16x64xbf16, #tpu.memory_space<vmem>>, vector<16x64xbf16>
    tpu.vector_store %arg7[%c0_12, %c0_13], %14 {strides = array<i32>} : memref<16x64xbf16, #tpu.memory_space<vmem>>, vector<16x64xbf16>,
    return
  }
  func.func @transform_0(%arg0: i32) -> (i32, i32) {
    %c0_i32 = arith.constant 0 : i32
    %c0_i32_0 = arith.constant 0 : i32
    return %arg0, %c0_i32 : i32, i32
  }
  func.func @transform_1(%arg0: i32) -> (i32, i32) {
    %c0_i32 = arith.constant 0 : i32
    %c0_i32_0 = arith.constant 0 : i32
    %c0_i32_1 = arith.constant 0 : i32
    return %c0_i32, %c0_i32_0 : i32, i32
  }
  func.func @transform_2(%arg0: i32) -> (i32, i32) {
    %c0_i32 = arith.constant 0 : i32
    %c0_i32_0 = arith.constant 0 : i32
    %c0_i32_1 = arith.constant 0 : i32
    return %c0_i32, %c0_i32_0 : i32, i32
  }
  func.func @transform_3(%arg0: i32) -> (i32, i32) {
    %c0_i32 = arith.constant 0 : i32
    %c0_i32_0 = arith.constant 0 : i32
    %c0_i32_1 = arith.constant 0 : i32
    return %c0_i32, %c0_i32_0 : i32, i32
  }
  func.func @transform_4(%arg0: i32) -> (i32, i32) {
    %c0_i32 = arith.constant 0 : i32
    %c0_i32_0 = arith.constant 0 : i32
    %c0_i32_1 = arith.constant 0 : i32
    return %c0_i32, %c0_i32_0 : i32, i32
  }
  func.func @transform_5(%arg0: i32) -> (i32, i32) {
    %c0_i32 = arith.constant 0 : i32
    %c0_i32_0 = arith.constant 0 : i32
    return %arg0, %c0_i32 : i32, i32
  }
  func.func @transform_6(%arg0: i32) -> (i32, i32) {
    %c0_i32 = arith.constant 0 : i32
    %c0_i32_0 = arith.constant 0 : i32
    return %arg0, %c0_i32 : i32, i32
  }
}

module attributes {stable_mosaic.version = 11 : i64} {
  func.func @_bilstm_kernel(%arg0: i32, %arg1: memref<2x8x64xbf16, #tpu.memory_space<vmem>>, %arg2: memref<2x8x64xbf16, #tpu.memory_space<vmem>>, %arg3: memref<16x64xbf16, #tpu.memory_space<vmem>>, %arg4: memref<16x64xbf16, #tpu.memory_space<vmem>>, %arg5: memref<2x8x16xf32, #tpu.memory_space<vmem>>, %arg6: memref<2x8x16xf32, #tpu.memory_space<vmem>>, %arg7: memref<2x16xf32, #tpu.memory_space<vmem>>, %arg8: memref<2x16xf32, #tpu.memory_space<vmem>>, %arg9: memref<2x16xf32, #tpu.memory_space<vmem>>, %arg10: memref<2x16xf32, #tpu.memory_space<vmem>>) attributes {dimension_semantics = [#tpu.dimension_semantics<arbitrary>], iteration_bounds = array<i64: 1>, scalar_prefetch = 0 : i64, scratch_operands = 4 : i64, tpu.core_type = #tpu.core_type<tc>, window_params = [{transform_indices = @transform_0, window_bounds = array<i64: 2, 8, 64>}, {transform_indices = @transform_1, window_bounds = array<i64: 2, 8, 64>}, {pipeline_mode = #tpu.pipeline_mode<synchronous>, transform_indices = @transform_2, window_bounds = array<i64: 16, 64>}, {pipeline_mode = #tpu.pipeline_mode<synchronous>, transform_indices = @transform_3, window_bounds = array<i64: 16, 64>}, {transform_indices = @transform_4, window_bounds = array<i64: 2, 8, 16>}, {transform_indices = @transform_5, window_bounds = array<i64: 2, 8, 16>}]} {
    %c0_i32 = arith.constant 0 : i32
    %0 = arith.cmpi eq, %arg0, %c0_i32 : i32
    %1 = arith.extui %0 : i1 to i32
    %c0_i32_0 = arith.constant 0 : i32
    %2 = arith.cmpi ne, %1, %c0_i32_0 : i32
    scf.if %2 {
      %cst_172 = arith.constant 0.000000e+00 : f32
      %557 = vector.broadcast %cst_172 : f32 to vector<2x16xf32>
      %c0_173 = arith.constant 0 : index
      %c0_174 = arith.constant 0 : index
      %558 = vector.load %arg7[%c0_173, %c0_174] : memref<2x16xf32, #tpu.memory_space<vmem>>, vector<2x16xf32>
      tpu.vector_store %arg7[%c0_173, %c0_174], %557 {strides = array<i32>} : memref<2x16xf32, #tpu.memory_space<vmem>>, vector<2x16xf32>,
      %cst_175 = arith.constant 0.000000e+00 : f32
      %559 = vector.broadcast %cst_175 : f32 to vector<2x16xf32>
      %c0_176 = arith.constant 0 : index
      %c0_177 = arith.constant 0 : index
      %560 = vector.load %arg8[%c0_176, %c0_177] : memref<2x16xf32, #tpu.memory_space<vmem>>, vector<2x16xf32>
      tpu.vector_store %arg8[%c0_176, %c0_177], %559 {strides = array<i32>} : memref<2x16xf32, #tpu.memory_space<vmem>>, vector<2x16xf32>,
      %cst_178 = arith.constant 0.000000e+00 : f32
      %561 = vector.broadcast %cst_178 : f32 to vector<2x16xf32>
      %c0_179 = arith.constant 0 : index
      %c0_180 = arith.constant 0 : index
      %562 = vector.load %arg9[%c0_179, %c0_180] : memref<2x16xf32, #tpu.memory_space<vmem>>, vector<2x16xf32>
      tpu.vector_store %arg9[%c0_179, %c0_180], %561 {strides = array<i32>} : memref<2x16xf32, #tpu.memory_space<vmem>>, vector<2x16xf32>,
      %cst_181 = arith.constant 0.000000e+00 : f32
      %563 = vector.broadcast %cst_181 : f32 to vector<2x16xf32>
      %c0_182 = arith.constant 0 : index
      %c0_183 = arith.constant 0 : index
      %564 = vector.load %arg10[%c0_182, %c0_183] : memref<2x16xf32, #tpu.memory_space<vmem>>, vector<2x16xf32>
      tpu.vector_store %arg10[%c0_182, %c0_183], %563 {strides = array<i32>} : memref<2x16xf32, #tpu.memory_space<vmem>>, vector<2x16xf32>,
    } else {
    }
    %c0 = arith.constant 0 : index
    %c0_1 = arith.constant 0 : index
    %3 = vector.load %arg3[%c0, %c0_1] : memref<16x64xbf16, #tpu.memory_space<vmem>>, vector<16x64xbf16>
    %c0_2 = arith.constant 0 : index
    %c0_3 = arith.constant 0 : index
    %4 = vector.load %arg4[%c0_2, %c0_3] : memref<16x64xbf16, #tpu.memory_space<vmem>>, vector<16x64xbf16>
    %c0_4 = arith.constant 0 : index
    %c0_5 = arith.constant 0 : index
    %5 = vector.load %arg7[%c0_4, %c0_5] : memref<2x16xf32, #tpu.memory_space<vmem>>, vector<2x16xf32>
    %c0_6 = arith.constant 0 : index
    %c0_7 = arith.constant 0 : index
    %6 = vector.load %arg8[%c0_6, %c0_7] : memref<2x16xf32, #tpu.memory_space<vmem>>, vector<2x16xf32>
    %c0_8 = arith.constant 0 : index
    %c0_9 = arith.constant 0 : index
    %7 = vector.load %arg9[%c0_8, %c0_9] : memref<2x16xf32, #tpu.memory_space<vmem>>, vector<2x16xf32>
    %c0_10 = arith.constant 0 : index
    %c0_11 = arith.constant 0 : index
    %8 = vector.load %arg10[%c0_10, %c0_11] : memref<2x16xf32, #tpu.memory_space<vmem>>, vector<2x16xf32>
    %c0_12 = arith.constant 0 : index
    %c0_13 = arith.constant 0 : index
    %c0_14 = arith.constant 0 : index
    %9 = vector.load %arg1[%c0_12, %c0_13, %c0_14] : memref<2x8x64xbf16, #tpu.memory_space<vmem>>, vector<2x1x64xbf16>
    %10 = vector.shape_cast %9 : vector<2x1x64xbf16> to vector<2x64xbf16>
    %11 = arith.extf %10 : vector<2x64xbf16> to vector<2x64xf32>
    %12 = arith.truncf %5 : vector<2x16xf32> to vector<2x16xbf16>
    %cst = arith.constant dense<0.000000e+00> : vector<2x64xf32>
    %13 = tpu.matmul %12, %3, %cst {dimension_numbers = #tpu.dot_dimension_numbers<[1], [0], [0], [1], [0, 0, 1, 1], [], []>} : vector<2x16xbf16>, vector<16x64xbf16>, vector<2x64xf32> -> vector<2x64xf32>
    %14 = arith.addf %11, %13 : vector<2x64xf32>
    %15 = vector.extract_strided_slice %14 {offsets = [0, 0], sizes = [2, 16], strides = [1, 1]} : vector<2x64xf32> to vector<2x16xf32>
    %16 = arith.negf %15 : vector<2x16xf32>
    %17 = math.exp %16 : vector<2x16xf32>
    %cst_15 = arith.constant 1.000000e+00 : f32
    %18 = vector.broadcast %cst_15 : f32 to vector<2x16xf32>
    %19 = arith.addf %18, %17 : vector<2x16xf32>
    %20 = arith.divf %18, %19 : vector<2x16xf32>
    %21 = vector.extract_strided_slice %14 {offsets = [0, 16], sizes = [2, 16], strides = [1, 1]} : vector<2x64xf32> to vector<2x16xf32>
    %22 = arith.negf %21 : vector<2x16xf32>
    %23 = math.exp %22 : vector<2x16xf32>
    %cst_16 = arith.constant 1.000000e+00 : f32
    %24 = vector.broadcast %cst_16 : f32 to vector<2x16xf32>
    %25 = arith.addf %24, %23 : vector<2x16xf32>
    %26 = arith.divf %24, %25 : vector<2x16xf32>
    %27 = vector.extract_strided_slice %14 {offsets = [0, 32], sizes = [2, 16], strides = [1, 1]} : vector<2x64xf32> to vector<2x16xf32>
    %28 = math.tanh %27 : vector<2x16xf32>
    %29 = vector.extract_strided_slice %14 {offsets = [0, 48], sizes = [2, 16], strides = [1, 1]} : vector<2x64xf32> to vector<2x16xf32>
    %30 = arith.negf %29 : vector<2x16xf32>
    %31 = math.exp %30 : vector<2x16xf32>
    %cst_17 = arith.constant 1.000000e+00 : f32
    %32 = vector.broadcast %cst_17 : f32 to vector<2x16xf32>
    %33 = arith.addf %32, %31 : vector<2x16xf32>
    %34 = arith.divf %32, %33 : vector<2x16xf32>
    %35 = arith.mulf %26, %6 : vector<2x16xf32>
    %36 = arith.mulf %20, %28 : vector<2x16xf32>
    %37 = arith.addf %35, %36 : vector<2x16xf32>
    %38 = math.tanh %37 : vector<2x16xf32>
    %39 = arith.mulf %34, %38 : vector<2x16xf32>
    %c0_18 = arith.constant 0 : index
    %c7 = arith.constant 7 : index
    %c0_19 = arith.constant 0 : index
    %40 = vector.load %arg2[%c0_18, %c7, %c0_19] : memref<2x8x64xbf16, #tpu.memory_space<vmem>>, vector<2x1x64xbf16>
    %41 = vector.shape_cast %40 : vector<2x1x64xbf16> to vector<2x64xbf16>
    %42 = arith.extf %41 : vector<2x64xbf16> to vector<2x64xf32>
    %43 = arith.truncf %7 : vector<2x16xf32> to vector<2x16xbf16>
    %cst_20 = arith.constant dense<0.000000e+00> : vector<2x64xf32>
    %44 = tpu.matmul %43, %4, %cst_20 {dimension_numbers = #tpu.dot_dimension_numbers<[1], [0], [0], [1], [0, 0, 1, 1], [], []>} : vector<2x16xbf16>, vector<16x64xbf16>, vector<2x64xf32> -> vector<2x64xf32>
    %45 = arith.addf %42, %44 : vector<2x64xf32>
    %46 = vector.extract_strided_slice %45 {offsets = [0, 0], sizes = [2, 16], strides = [1, 1]} : vector<2x64xf32> to vector<2x16xf32>
    %47 = arith.negf %46 : vector<2x16xf32>
    %48 = math.exp %47 : vector<2x16xf32>
    %cst_21 = arith.constant 1.000000e+00 : f32
    %49 = vector.broadcast %cst_21 : f32 to vector<2x16xf32>
    %50 = arith.addf %49, %48 : vector<2x16xf32>
    %51 = arith.divf %49, %50 : vector<2x16xf32>
    %52 = vector.extract_strided_slice %45 {offsets = [0, 16], sizes = [2, 16], strides = [1, 1]} : vector<2x64xf32> to vector<2x16xf32>
    %53 = arith.negf %52 : vector<2x16xf32>
    %54 = math.exp %53 : vector<2x16xf32>
    %cst_22 = arith.constant 1.000000e+00 : f32
    %55 = vector.broadcast %cst_22 : f32 to vector<2x16xf32>
    %56 = arith.addf %55, %54 : vector<2x16xf32>
    %57 = arith.divf %55, %56 : vector<2x16xf32>
    %58 = vector.extract_strided_slice %45 {offsets = [0, 32], sizes = [2, 16], strides = [1, 1]} : vector<2x64xf32> to vector<2x16xf32>
    %59 = math.tanh %58 : vector<2x16xf32>
    %60 = vector.extract_strided_slice %45 {offsets = [0, 48], sizes = [2, 16], strides = [1, 1]} : vector<2x64xf32> to vector<2x16xf32>
    %61 = arith.negf %60 : vector<2x16xf32>
    %62 = math.exp %61 : vector<2x16xf32>
    %cst_23 = arith.constant 1.000000e+00 : f32
    %63 = vector.broadcast %cst_23 : f32 to vector<2x16xf32>
    %64 = arith.addf %63, %62 : vector<2x16xf32>
    %65 = arith.divf %63, %64 : vector<2x16xf32>
    %66 = arith.mulf %57, %8 : vector<2x16xf32>
    %67 = arith.mulf %51, %59 : vector<2x16xf32>
    %68 = arith.addf %66, %67 : vector<2x16xf32>
    %69 = math.tanh %68 : vector<2x16xf32>
    %70 = arith.mulf %65, %69 : vector<2x16xf32>
    %c0_24 = arith.constant 0 : index
    %c0_25 = arith.constant 0 : index
    %c0_26 = arith.constant 0 : index
    %71 = vector.load %arg5[%c0_24, %c0_25, %c0_26] : memref<2x8x16xf32, #tpu.memory_space<vmem>>, vector<2x1x16xf32>
    %72 = vector.shape_cast %71 : vector<2x1x16xf32> to vector<2x16xf32>
    %73 = vector.shape_cast %39 : vector<2x16xf32> to vector<2x1x16xf32>
    tpu.vector_store %arg5[%c0_24, %c0_25, %c0_26], %73 {strides = array<i32>} : memref<2x8x16xf32, #tpu.memory_space<vmem>>, vector<2x1x16xf32>,
    %c0_27 = arith.constant 0 : index
    %c7_28 = arith.constant 7 : index
    %c0_29 = arith.constant 0 : index
    %74 = vector.load %arg6[%c0_27, %c7_28, %c0_29] : memref<2x8x16xf32, #tpu.memory_space<vmem>>, vector<2x1x16xf32>
    %75 = vector.shape_cast %74 : vector<2x1x16xf32> to vector<2x16xf32>
    %76 = vector.shape_cast %70 : vector<2x16xf32> to vector<2x1x16xf32>
    tpu.vector_store %arg6[%c0_27, %c7_28, %c0_29], %76 {strides = array<i32>} : memref<2x8x16xf32, #tpu.memory_space<vmem>>, vector<2x1x16xf32>,
    %c0_30 = arith.constant 0 : index
    %c1 = arith.constant 1 : index
    %c0_31 = arith.constant 0 : index
    %77 = vector.load %arg1[%c0_30, %c1, %c0_31] : memref<2x8x64xbf16, #tpu.memory_space<vmem>>, vector<2x1x64xbf16>
    %78 = vector.shape_cast %77 : vector<2x1x64xbf16> to vector<2x64xbf16>
    %79 = arith.extf %78 : vector<2x64xbf16> to vector<2x64xf32>
    %80 = arith.truncf %39 : vector<2x16xf32> to vector<2x16xbf16>
    %cst_32 = arith.constant dense<0.000000e+00> : vector<2x64xf32>
    %81 = tpu.matmul %80, %3, %cst_32 {dimension_numbers = #tpu.dot_dimension_numbers<[1], [0], [0], [1], [0, 0, 1, 1], [], []>} : vector<2x16xbf16>, vector<16x64xbf16>, vector<2x64xf32> -> vector<2x64xf32>
    %82 = arith.addf %79, %81 : vector<2x64xf32>
    %83 = vector.extract_strided_slice %82 {offsets = [0, 0], sizes = [2, 16], strides = [1, 1]} : vector<2x64xf32> to vector<2x16xf32>
    %84 = arith.negf %83 : vector<2x16xf32>
    %85 = math.exp %84 : vector<2x16xf32>
    %cst_33 = arith.constant 1.000000e+00 : f32
    %86 = vector.broadcast %cst_33 : f32 to vector<2x16xf32>
    %87 = arith.addf %86, %85 : vector<2x16xf32>
    %88 = arith.divf %86, %87 : vector<2x16xf32>
    %89 = vector.extract_strided_slice %82 {offsets = [0, 16], sizes = [2, 16], strides = [1, 1]} : vector<2x64xf32> to vector<2x16xf32>
    %90 = arith.negf %89 : vector<2x16xf32>
    %91 = math.exp %90 : vector<2x16xf32>
    %cst_34 = arith.constant 1.000000e+00 : f32
    %92 = vector.broadcast %cst_34 : f32 to vector<2x16xf32>
    %93 = arith.addf %92, %91 : vector<2x16xf32>
    %94 = arith.divf %92, %93 : vector<2x16xf32>
    %95 = vector.extract_strided_slice %82 {offsets = [0, 32], sizes = [2, 16], strides = [1, 1]} : vector<2x64xf32> to vector<2x16xf32>
    %96 = math.tanh %95 : vector<2x16xf32>
    %97 = vector.extract_strided_slice %82 {offsets = [0, 48], sizes = [2, 16], strides = [1, 1]} : vector<2x64xf32> to vector<2x16xf32>
    %98 = arith.negf %97 : vector<2x16xf32>
    %99 = math.exp %98 : vector<2x16xf32>
    %cst_35 = arith.constant 1.000000e+00 : f32
    %100 = vector.broadcast %cst_35 : f32 to vector<2x16xf32>
    %101 = arith.addf %100, %99 : vector<2x16xf32>
    %102 = arith.divf %100, %101 : vector<2x16xf32>
    %103 = arith.mulf %94, %37 : vector<2x16xf32>
    %104 = arith.mulf %88, %96 : vector<2x16xf32>
    %105 = arith.addf %103, %104 : vector<2x16xf32>
    %106 = math.tanh %105 : vector<2x16xf32>
    %107 = arith.mulf %102, %106 : vector<2x16xf32>
    %c0_36 = arith.constant 0 : index
    %c6 = arith.constant 6 : index
    %c0_37 = arith.constant 0 : index
    %108 = vector.load %arg2[%c0_36, %c6, %c0_37] : memref<2x8x64xbf16, #tpu.memory_space<vmem>>, vector<2x1x64xbf16>
    %109 = vector.shape_cast %108 : vector<2x1x64xbf16> to vector<2x64xbf16>
    %110 = arith.extf %109 : vector<2x64xbf16> to vector<2x64xf32>
    %111 = arith.truncf %70 : vector<2x16xf32> to vector<2x16xbf16>
    %cst_38 = arith.constant dense<0.000000e+00> : vector<2x64xf32>
    %112 = tpu.matmul %111, %4, %cst_38 {dimension_numbers = #tpu.dot_dimension_numbers<[1], [0], [0], [1], [0, 0, 1, 1], [], []>} : vector<2x16xbf16>, vector<16x64xbf16>, vector<2x64xf32> -> vector<2x64xf32>
    %113 = arith.addf %110, %112 : vector<2x64xf32>
    %114 = vector.extract_strided_slice %113 {offsets = [0, 0], sizes = [2, 16], strides = [1, 1]} : vector<2x64xf32> to vector<2x16xf32>
    %115 = arith.negf %114 : vector<2x16xf32>
    %116 = math.exp %115 : vector<2x16xf32>
    %cst_39 = arith.constant 1.000000e+00 : f32
    %117 = vector.broadcast %cst_39 : f32 to vector<2x16xf32>
    %118 = arith.addf %117, %116 : vector<2x16xf32>
    %119 = arith.divf %117, %118 : vector<2x16xf32>
    %120 = vector.extract_strided_slice %113 {offsets = [0, 16], sizes = [2, 16], strides = [1, 1]} : vector<2x64xf32> to vector<2x16xf32>
    %121 = arith.negf %120 : vector<2x16xf32>
    %122 = math.exp %121 : vector<2x16xf32>
    %cst_40 = arith.constant 1.000000e+00 : f32
    %123 = vector.broadcast %cst_40 : f32 to vector<2x16xf32>
    %124 = arith.addf %123, %122 : vector<2x16xf32>
    %125 = arith.divf %123, %124 : vector<2x16xf32>
    %126 = vector.extract_strided_slice %113 {offsets = [0, 32], sizes = [2, 16], strides = [1, 1]} : vector<2x64xf32> to vector<2x16xf32>
    %127 = math.tanh %126 : vector<2x16xf32>
    %128 = vector.extract_strided_slice %113 {offsets = [0, 48], sizes = [2, 16], strides = [1, 1]} : vector<2x64xf32> to vector<2x16xf32>
    %129 = arith.negf %128 : vector<2x16xf32>
    %130 = math.exp %129 : vector<2x16xf32>
    %cst_41 = arith.constant 1.000000e+00 : f32
    %131 = vector.broadcast %cst_41 : f32 to vector<2x16xf32>
    %132 = arith.addf %131, %130 : vector<2x16xf32>
    %133 = arith.divf %131, %132 : vector<2x16xf32>
    %134 = arith.mulf %125, %68 : vector<2x16xf32>
    %135 = arith.mulf %119, %127 : vector<2x16xf32>
    %136 = arith.addf %134, %135 : vector<2x16xf32>
    %137 = math.tanh %136 : vector<2x16xf32>
    %138 = arith.mulf %133, %137 : vector<2x16xf32>
    %c0_42 = arith.constant 0 : index
    %c1_43 = arith.constant 1 : index
    %c0_44 = arith.constant 0 : index
    %139 = vector.load %arg5[%c0_42, %c1_43, %c0_44] : memref<2x8x16xf32, #tpu.memory_space<vmem>>, vector<2x1x16xf32>
    %140 = vector.shape_cast %139 : vector<2x1x16xf32> to vector<2x16xf32>
    %141 = vector.shape_cast %107 : vector<2x16xf32> to vector<2x1x16xf32>
    tpu.vector_store %arg5[%c0_42, %c1_43, %c0_44], %141 {strides = array<i32>} : memref<2x8x16xf32, #tpu.memory_space<vmem>>, vector<2x1x16xf32>,
    %c0_45 = arith.constant 0 : index
    %c6_46 = arith.constant 6 : index
    %c0_47 = arith.constant 0 : index
    %142 = vector.load %arg6[%c0_45, %c6_46, %c0_47] : memref<2x8x16xf32, #tpu.memory_space<vmem>>, vector<2x1x16xf32>
    %143 = vector.shape_cast %142 : vector<2x1x16xf32> to vector<2x16xf32>
    %144 = vector.shape_cast %138 : vector<2x16xf32> to vector<2x1x16xf32>
    tpu.vector_store %arg6[%c0_45, %c6_46, %c0_47], %144 {strides = array<i32>} : memref<2x8x16xf32, #tpu.memory_space<vmem>>, vector<2x1x16xf32>,
    %c0_48 = arith.constant 0 : index
    %c2 = arith.constant 2 : index
    %c0_49 = arith.constant 0 : index
    %145 = vector.load %arg1[%c0_48, %c2, %c0_49] : memref<2x8x64xbf16, #tpu.memory_space<vmem>>, vector<2x1x64xbf16>
    %146 = vector.shape_cast %145 : vector<2x1x64xbf16> to vector<2x64xbf16>
    %147 = arith.extf %146 : vector<2x64xbf16> to vector<2x64xf32>
    %148 = arith.truncf %107 : vector<2x16xf32> to vector<2x16xbf16>
    %cst_50 = arith.constant dense<0.000000e+00> : vector<2x64xf32>
    %149 = tpu.matmul %148, %3, %cst_50 {dimension_numbers = #tpu.dot_dimension_numbers<[1], [0], [0], [1], [0, 0, 1, 1], [], []>} : vector<2x16xbf16>, vector<16x64xbf16>, vector<2x64xf32> -> vector<2x64xf32>
    %150 = arith.addf %147, %149 : vector<2x64xf32>
    %151 = vector.extract_strided_slice %150 {offsets = [0, 0], sizes = [2, 16], strides = [1, 1]} : vector<2x64xf32> to vector<2x16xf32>
    %152 = arith.negf %151 : vector<2x16xf32>
    %153 = math.exp %152 : vector<2x16xf32>
    %cst_51 = arith.constant 1.000000e+00 : f32
    %154 = vector.broadcast %cst_51 : f32 to vector<2x16xf32>
    %155 = arith.addf %154, %153 : vector<2x16xf32>
    %156 = arith.divf %154, %155 : vector<2x16xf32>
    %157 = vector.extract_strided_slice %150 {offsets = [0, 16], sizes = [2, 16], strides = [1, 1]} : vector<2x64xf32> to vector<2x16xf32>
    %158 = arith.negf %157 : vector<2x16xf32>
    %159 = math.exp %158 : vector<2x16xf32>
    %cst_52 = arith.constant 1.000000e+00 : f32
    %160 = vector.broadcast %cst_52 : f32 to vector<2x16xf32>
    %161 = arith.addf %160, %159 : vector<2x16xf32>
    %162 = arith.divf %160, %161 : vector<2x16xf32>
    %163 = vector.extract_strided_slice %150 {offsets = [0, 32], sizes = [2, 16], strides = [1, 1]} : vector<2x64xf32> to vector<2x16xf32>
    %164 = math.tanh %163 : vector<2x16xf32>
    %165 = vector.extract_strided_slice %150 {offsets = [0, 48], sizes = [2, 16], strides = [1, 1]} : vector<2x64xf32> to vector<2x16xf32>
    %166 = arith.negf %165 : vector<2x16xf32>
    %167 = math.exp %166 : vector<2x16xf32>
    %cst_53 = arith.constant 1.000000e+00 : f32
    %168 = vector.broadcast %cst_53 : f32 to vector<2x16xf32>
    %169 = arith.addf %168, %167 : vector<2x16xf32>
    %170 = arith.divf %168, %169 : vector<2x16xf32>
    %171 = arith.mulf %162, %105 : vector<2x16xf32>
    %172 = arith.mulf %156, %164 : vector<2x16xf32>
    %173 = arith.addf %171, %172 : vector<2x16xf32>
    %174 = math.tanh %173 : vector<2x16xf32>
    %175 = arith.mulf %170, %174 : vector<2x16xf32>
    %c0_54 = arith.constant 0 : index
    %c5 = arith.constant 5 : index
    %c0_55 = arith.constant 0 : index
    %176 = vector.load %arg2[%c0_54, %c5, %c0_55] : memref<2x8x64xbf16, #tpu.memory_space<vmem>>, vector<2x1x64xbf16>
    %177 = vector.shape_cast %176 : vector<2x1x64xbf16> to vector<2x64xbf16>
    %178 = arith.extf %177 : vector<2x64xbf16> to vector<2x64xf32>
    %179 = arith.truncf %138 : vector<2x16xf32> to vector<2x16xbf16>
    %cst_56 = arith.constant dense<0.000000e+00> : vector<2x64xf32>
    %180 = tpu.matmul %179, %4, %cst_56 {dimension_numbers = #tpu.dot_dimension_numbers<[1], [0], [0], [1], [0, 0, 1, 1], [], []>} : vector<2x16xbf16>, vector<16x64xbf16>, vector<2x64xf32> -> vector<2x64xf32>
    %181 = arith.addf %178, %180 : vector<2x64xf32>
    %182 = vector.extract_strided_slice %181 {offsets = [0, 0], sizes = [2, 16], strides = [1, 1]} : vector<2x64xf32> to vector<2x16xf32>
    %183 = arith.negf %182 : vector<2x16xf32>
    %184 = math.exp %183 : vector<2x16xf32>
    %cst_57 = arith.constant 1.000000e+00 : f32
    %185 = vector.broadcast %cst_57 : f32 to vector<2x16xf32>
    %186 = arith.addf %185, %184 : vector<2x16xf32>
    %187 = arith.divf %185, %186 : vector<2x16xf32>
    %188 = vector.extract_strided_slice %181 {offsets = [0, 16], sizes = [2, 16], strides = [1, 1]} : vector<2x64xf32> to vector<2x16xf32>
    %189 = arith.negf %188 : vector<2x16xf32>
    %190 = math.exp %189 : vector<2x16xf32>
    %cst_58 = arith.constant 1.000000e+00 : f32
    %191 = vector.broadcast %cst_58 : f32 to vector<2x16xf32>
    %192 = arith.addf %191, %190 : vector<2x16xf32>
    %193 = arith.divf %191, %192 : vector<2x16xf32>
    %194 = vector.extract_strided_slice %181 {offsets = [0, 32], sizes = [2, 16], strides = [1, 1]} : vector<2x64xf32> to vector<2x16xf32>
    %195 = math.tanh %194 : vector<2x16xf32>
    %196 = vector.extract_strided_slice %181 {offsets = [0, 48], sizes = [2, 16], strides = [1, 1]} : vector<2x64xf32> to vector<2x16xf32>
    %197 = arith.negf %196 : vector<2x16xf32>
    %198 = math.exp %197 : vector<2x16xf32>
    %cst_59 = arith.constant 1.000000e+00 : f32
    %199 = vector.broadcast %cst_59 : f32 to vector<2x16xf32>
    %200 = arith.addf %199, %198 : vector<2x16xf32>
    %201 = arith.divf %199, %200 : vector<2x16xf32>
    %202 = arith.mulf %193, %136 : vector<2x16xf32>
    %203 = arith.mulf %187, %195 : vector<2x16xf32>
    %204 = arith.addf %202, %203 : vector<2x16xf32>
    %205 = math.tanh %204 : vector<2x16xf32>
    %206 = arith.mulf %201, %205 : vector<2x16xf32>
    %c0_60 = arith.constant 0 : index
    %c2_61 = arith.constant 2 : index
    %c0_62 = arith.constant 0 : index
    %207 = vector.load %arg5[%c0_60, %c2_61, %c0_62] : memref<2x8x16xf32, #tpu.memory_space<vmem>>, vector<2x1x16xf32>
    %208 = vector.shape_cast %207 : vector<2x1x16xf32> to vector<2x16xf32>
    %209 = vector.shape_cast %175 : vector<2x16xf32> to vector<2x1x16xf32>
    tpu.vector_store %arg5[%c0_60, %c2_61, %c0_62], %209 {strides = array<i32>} : memref<2x8x16xf32, #tpu.memory_space<vmem>>, vector<2x1x16xf32>,
    %c0_63 = arith.constant 0 : index
    %c5_64 = arith.constant 5 : index
    %c0_65 = arith.constant 0 : index
    %210 = vector.load %arg6[%c0_63, %c5_64, %c0_65] : memref<2x8x16xf32, #tpu.memory_space<vmem>>, vector<2x1x16xf32>
    %211 = vector.shape_cast %210 : vector<2x1x16xf32> to vector<2x16xf32>
    %212 = vector.shape_cast %206 : vector<2x16xf32> to vector<2x1x16xf32>
    tpu.vector_store %arg6[%c0_63, %c5_64, %c0_65], %212 {strides = array<i32>} : memref<2x8x16xf32, #tpu.memory_space<vmem>>, vector<2x1x16xf32>,
    %c0_66 = arith.constant 0 : index
    %c3 = arith.constant 3 : index
    %c0_67 = arith.constant 0 : index
    %213 = vector.load %arg1[%c0_66, %c3, %c0_67] : memref<2x8x64xbf16, #tpu.memory_space<vmem>>, vector<2x1x64xbf16>
    %214 = vector.shape_cast %213 : vector<2x1x64xbf16> to vector<2x64xbf16>
    %215 = arith.extf %214 : vector<2x64xbf16> to vector<2x64xf32>
    %216 = arith.truncf %175 : vector<2x16xf32> to vector<2x16xbf16>
    %cst_68 = arith.constant dense<0.000000e+00> : vector<2x64xf32>
    %217 = tpu.matmul %216, %3, %cst_68 {dimension_numbers = #tpu.dot_dimension_numbers<[1], [0], [0], [1], [0, 0, 1, 1], [], []>} : vector<2x16xbf16>, vector<16x64xbf16>, vector<2x64xf32> -> vector<2x64xf32>
    %218 = arith.addf %215, %217 : vector<2x64xf32>
    %219 = vector.extract_strided_slice %218 {offsets = [0, 0], sizes = [2, 16], strides = [1, 1]} : vector<2x64xf32> to vector<2x16xf32>
    %220 = arith.negf %219 : vector<2x16xf32>
    %221 = math.exp %220 : vector<2x16xf32>
    %cst_69 = arith.constant 1.000000e+00 : f32
    %222 = vector.broadcast %cst_69 : f32 to vector<2x16xf32>
    %223 = arith.addf %222, %221 : vector<2x16xf32>
    %224 = arith.divf %222, %223 : vector<2x16xf32>
    %225 = vector.extract_strided_slice %218 {offsets = [0, 16], sizes = [2, 16], strides = [1, 1]} : vector<2x64xf32> to vector<2x16xf32>
    %226 = arith.negf %225 : vector<2x16xf32>
    %227 = math.exp %226 : vector<2x16xf32>
    %cst_70 = arith.constant 1.000000e+00 : f32
    %228 = vector.broadcast %cst_70 : f32 to vector<2x16xf32>
    %229 = arith.addf %228, %227 : vector<2x16xf32>
    %230 = arith.divf %228, %229 : vector<2x16xf32>
    %231 = vector.extract_strided_slice %218 {offsets = [0, 32], sizes = [2, 16], strides = [1, 1]} : vector<2x64xf32> to vector<2x16xf32>
    %232 = math.tanh %231 : vector<2x16xf32>
    %233 = vector.extract_strided_slice %218 {offsets = [0, 48], sizes = [2, 16], strides = [1, 1]} : vector<2x64xf32> to vector<2x16xf32>
    %234 = arith.negf %233 : vector<2x16xf32>
    %235 = math.exp %234 : vector<2x16xf32>
    %cst_71 = arith.constant 1.000000e+00 : f32
    %236 = vector.broadcast %cst_71 : f32 to vector<2x16xf32>
    %237 = arith.addf %236, %235 : vector<2x16xf32>
    %238 = arith.divf %236, %237 : vector<2x16xf32>
    %239 = arith.mulf %230, %173 : vector<2x16xf32>
    %240 = arith.mulf %224, %232 : vector<2x16xf32>
    %241 = arith.addf %239, %240 : vector<2x16xf32>
    %242 = math.tanh %241 : vector<2x16xf32>
    %243 = arith.mulf %238, %242 : vector<2x16xf32>
    %c0_72 = arith.constant 0 : index
    %c4 = arith.constant 4 : index
    %c0_73 = arith.constant 0 : index
    %244 = vector.load %arg2[%c0_72, %c4, %c0_73] : memref<2x8x64xbf16, #tpu.memory_space<vmem>>, vector<2x1x64xbf16>
    %245 = vector.shape_cast %244 : vector<2x1x64xbf16> to vector<2x64xbf16>
    %246 = arith.extf %245 : vector<2x64xbf16> to vector<2x64xf32>
    %247 = arith.truncf %206 : vector<2x16xf32> to vector<2x16xbf16>
    %cst_74 = arith.constant dense<0.000000e+00> : vector<2x64xf32>
    %248 = tpu.matmul %247, %4, %cst_74 {dimension_numbers = #tpu.dot_dimension_numbers<[1], [0], [0], [1], [0, 0, 1, 1], [], []>} : vector<2x16xbf16>, vector<16x64xbf16>, vector<2x64xf32> -> vector<2x64xf32>
    %249 = arith.addf %246, %248 : vector<2x64xf32>
    %250 = vector.extract_strided_slice %249 {offsets = [0, 0], sizes = [2, 16], strides = [1, 1]} : vector<2x64xf32> to vector<2x16xf32>
    %251 = arith.negf %250 : vector<2x16xf32>
    %252 = math.exp %251 : vector<2x16xf32>
    %cst_75 = arith.constant 1.000000e+00 : f32
    %253 = vector.broadcast %cst_75 : f32 to vector<2x16xf32>
    %254 = arith.addf %253, %252 : vector<2x16xf32>
    %255 = arith.divf %253, %254 : vector<2x16xf32>
    %256 = vector.extract_strided_slice %249 {offsets = [0, 16], sizes = [2, 16], strides = [1, 1]} : vector<2x64xf32> to vector<2x16xf32>
    %257 = arith.negf %256 : vector<2x16xf32>
    %258 = math.exp %257 : vector<2x16xf32>
    %cst_76 = arith.constant 1.000000e+00 : f32
    %259 = vector.broadcast %cst_76 : f32 to vector<2x16xf32>
    %260 = arith.addf %259, %258 : vector<2x16xf32>
    %261 = arith.divf %259, %260 : vector<2x16xf32>
    %262 = vector.extract_strided_slice %249 {offsets = [0, 32], sizes = [2, 16], strides = [1, 1]} : vector<2x64xf32> to vector<2x16xf32>
    %263 = math.tanh %262 : vector<2x16xf32>
    %264 = vector.extract_strided_slice %249 {offsets = [0, 48], sizes = [2, 16], strides = [1, 1]} : vector<2x64xf32> to vector<2x16xf32>
    %265 = arith.negf %264 : vector<2x16xf32>
    %266 = math.exp %265 : vector<2x16xf32>
    %cst_77 = arith.constant 1.000000e+00 : f32
    %267 = vector.broadcast %cst_77 : f32 to vector<2x16xf32>
    %268 = arith.addf %267, %266 : vector<2x16xf32>
    %269 = arith.divf %267, %268 : vector<2x16xf32>
    %270 = arith.mulf %261, %204 : vector<2x16xf32>
    %271 = arith.mulf %255, %263 : vector<2x16xf32>
    %272 = arith.addf %270, %271 : vector<2x16xf32>
    %273 = math.tanh %272 : vector<2x16xf32>
    %274 = arith.mulf %269, %273 : vector<2x16xf32>
    %c0_78 = arith.constant 0 : index
    %c3_79 = arith.constant 3 : index
    %c0_80 = arith.constant 0 : index
    %275 = vector.load %arg5[%c0_78, %c3_79, %c0_80] : memref<2x8x16xf32, #tpu.memory_space<vmem>>, vector<2x1x16xf32>
    %276 = vector.shape_cast %275 : vector<2x1x16xf32> to vector<2x16xf32>
    %277 = vector.shape_cast %243 : vector<2x16xf32> to vector<2x1x16xf32>
    tpu.vector_store %arg5[%c0_78, %c3_79, %c0_80], %277 {strides = array<i32>} : memref<2x8x16xf32, #tpu.memory_space<vmem>>, vector<2x1x16xf32>,
    %c0_81 = arith.constant 0 : index
    %c4_82 = arith.constant 4 : index
    %c0_83 = arith.constant 0 : index
    %278 = vector.load %arg6[%c0_81, %c4_82, %c0_83] : memref<2x8x16xf32, #tpu.memory_space<vmem>>, vector<2x1x16xf32>
    %279 = vector.shape_cast %278 : vector<2x1x16xf32> to vector<2x16xf32>
    %280 = vector.shape_cast %274 : vector<2x16xf32> to vector<2x1x16xf32>
    tpu.vector_store %arg6[%c0_81, %c4_82, %c0_83], %280 {strides = array<i32>} : memref<2x8x16xf32, #tpu.memory_space<vmem>>, vector<2x1x16xf32>,
    %c0_84 = arith.constant 0 : index
    %c4_85 = arith.constant 4 : index
    %c0_86 = arith.constant 0 : index
    %281 = vector.load %arg1[%c0_84, %c4_85, %c0_86] : memref<2x8x64xbf16, #tpu.memory_space<vmem>>, vector<2x1x64xbf16>
    %282 = vector.shape_cast %281 : vector<2x1x64xbf16> to vector<2x64xbf16>
    %283 = arith.extf %282 : vector<2x64xbf16> to vector<2x64xf32>
    %284 = arith.truncf %243 : vector<2x16xf32> to vector<2x16xbf16>
    %cst_87 = arith.constant dense<0.000000e+00> : vector<2x64xf32>
    %285 = tpu.matmul %284, %3, %cst_87 {dimension_numbers = #tpu.dot_dimension_numbers<[1], [0], [0], [1], [0, 0, 1, 1], [], []>} : vector<2x16xbf16>, vector<16x64xbf16>, vector<2x64xf32> -> vector<2x64xf32>
    %286 = arith.addf %283, %285 : vector<2x64xf32>
    %287 = vector.extract_strided_slice %286 {offsets = [0, 0], sizes = [2, 16], strides = [1, 1]} : vector<2x64xf32> to vector<2x16xf32>
    %288 = arith.negf %287 : vector<2x16xf32>
    %289 = math.exp %288 : vector<2x16xf32>
    %cst_88 = arith.constant 1.000000e+00 : f32
    %290 = vector.broadcast %cst_88 : f32 to vector<2x16xf32>
    %291 = arith.addf %290, %289 : vector<2x16xf32>
    %292 = arith.divf %290, %291 : vector<2x16xf32>
    %293 = vector.extract_strided_slice %286 {offsets = [0, 16], sizes = [2, 16], strides = [1, 1]} : vector<2x64xf32> to vector<2x16xf32>
    %294 = arith.negf %293 : vector<2x16xf32>
    %295 = math.exp %294 : vector<2x16xf32>
    %cst_89 = arith.constant 1.000000e+00 : f32
    %296 = vector.broadcast %cst_89 : f32 to vector<2x16xf32>
    %297 = arith.addf %296, %295 : vector<2x16xf32>
    %298 = arith.divf %296, %297 : vector<2x16xf32>
    %299 = vector.extract_strided_slice %286 {offsets = [0, 32], sizes = [2, 16], strides = [1, 1]} : vector<2x64xf32> to vector<2x16xf32>
    %300 = math.tanh %299 : vector<2x16xf32>
    %301 = vector.extract_strided_slice %286 {offsets = [0, 48], sizes = [2, 16], strides = [1, 1]} : vector<2x64xf32> to vector<2x16xf32>
    %302 = arith.negf %301 : vector<2x16xf32>
    %303 = math.exp %302 : vector<2x16xf32>
    %cst_90 = arith.constant 1.000000e+00 : f32
    %304 = vector.broadcast %cst_90 : f32 to vector<2x16xf32>
    %305 = arith.addf %304, %303 : vector<2x16xf32>
    %306 = arith.divf %304, %305 : vector<2x16xf32>
    %307 = arith.mulf %298, %241 : vector<2x16xf32>
    %308 = arith.mulf %292, %300 : vector<2x16xf32>
    %309 = arith.addf %307, %308 : vector<2x16xf32>
    %310 = math.tanh %309 : vector<2x16xf32>
    %311 = arith.mulf %306, %310 : vector<2x16xf32>
    %c0_91 = arith.constant 0 : index
    %c3_92 = arith.constant 3 : index
    %c0_93 = arith.constant 0 : index
    %312 = vector.load %arg2[%c0_91, %c3_92, %c0_93] : memref<2x8x64xbf16, #tpu.memory_space<vmem>>, vector<2x1x64xbf16>
    %313 = vector.shape_cast %312 : vector<2x1x64xbf16> to vector<2x64xbf16>
    %314 = arith.extf %313 : vector<2x64xbf16> to vector<2x64xf32>
    %315 = arith.truncf %274 : vector<2x16xf32> to vector<2x16xbf16>
    %cst_94 = arith.constant dense<0.000000e+00> : vector<2x64xf32>
    %316 = tpu.matmul %315, %4, %cst_94 {dimension_numbers = #tpu.dot_dimension_numbers<[1], [0], [0], [1], [0, 0, 1, 1], [], []>} : vector<2x16xbf16>, vector<16x64xbf16>, vector<2x64xf32> -> vector<2x64xf32>
    %317 = arith.addf %314, %316 : vector<2x64xf32>
    %318 = vector.extract_strided_slice %317 {offsets = [0, 0], sizes = [2, 16], strides = [1, 1]} : vector<2x64xf32> to vector<2x16xf32>
    %319 = arith.negf %318 : vector<2x16xf32>
    %320 = math.exp %319 : vector<2x16xf32>
    %cst_95 = arith.constant 1.000000e+00 : f32
    %321 = vector.broadcast %cst_95 : f32 to vector<2x16xf32>
    %322 = arith.addf %321, %320 : vector<2x16xf32>
    %323 = arith.divf %321, %322 : vector<2x16xf32>
    %324 = vector.extract_strided_slice %317 {offsets = [0, 16], sizes = [2, 16], strides = [1, 1]} : vector<2x64xf32> to vector<2x16xf32>
    %325 = arith.negf %324 : vector<2x16xf32>
    %326 = math.exp %325 : vector<2x16xf32>
    %cst_96 = arith.constant 1.000000e+00 : f32
    %327 = vector.broadcast %cst_96 : f32 to vector<2x16xf32>
    %328 = arith.addf %327, %326 : vector<2x16xf32>
    %329 = arith.divf %327, %328 : vector<2x16xf32>
    %330 = vector.extract_strided_slice %317 {offsets = [0, 32], sizes = [2, 16], strides = [1, 1]} : vector<2x64xf32> to vector<2x16xf32>
    %331 = math.tanh %330 : vector<2x16xf32>
    %332 = vector.extract_strided_slice %317 {offsets = [0, 48], sizes = [2, 16], strides = [1, 1]} : vector<2x64xf32> to vector<2x16xf32>
    %333 = arith.negf %332 : vector<2x16xf32>
    %334 = math.exp %333 : vector<2x16xf32>
    %cst_97 = arith.constant 1.000000e+00 : f32
    %335 = vector.broadcast %cst_97 : f32 to vector<2x16xf32>
    %336 = arith.addf %335, %334 : vector<2x16xf32>
    %337 = arith.divf %335, %336 : vector<2x16xf32>
    %338 = arith.mulf %329, %272 : vector<2x16xf32>
    %339 = arith.mulf %323, %331 : vector<2x16xf32>
    %340 = arith.addf %338, %339 : vector<2x16xf32>
    %341 = math.tanh %340 : vector<2x16xf32>
    %342 = arith.mulf %337, %341 : vector<2x16xf32>
    %c0_98 = arith.constant 0 : index
    %c4_99 = arith.constant 4 : index
    %c0_100 = arith.constant 0 : index
    %343 = vector.load %arg5[%c0_98, %c4_99, %c0_100] : memref<2x8x16xf32, #tpu.memory_space<vmem>>, vector<2x1x16xf32>
    %344 = vector.shape_cast %343 : vector<2x1x16xf32> to vector<2x16xf32>
    %345 = vector.shape_cast %311 : vector<2x16xf32> to vector<2x1x16xf32>
    tpu.vector_store %arg5[%c0_98, %c4_99, %c0_100], %345 {strides = array<i32>} : memref<2x8x16xf32, #tpu.memory_space<vmem>>, vector<2x1x16xf32>,
    %c0_101 = arith.constant 0 : index
    %c3_102 = arith.constant 3 : index
    %c0_103 = arith.constant 0 : index
    %346 = vector.load %arg6[%c0_101, %c3_102, %c0_103] : memref<2x8x16xf32, #tpu.memory_space<vmem>>, vector<2x1x16xf32>
    %347 = vector.shape_cast %346 : vector<2x1x16xf32> to vector<2x16xf32>
    %348 = vector.shape_cast %342 : vector<2x16xf32> to vector<2x1x16xf32>
    tpu.vector_store %arg6[%c0_101, %c3_102, %c0_103], %348 {strides = array<i32>} : memref<2x8x16xf32, #tpu.memory_space<vmem>>, vector<2x1x16xf32>,
    %c0_104 = arith.constant 0 : index
    %c5_105 = arith.constant 5 : index
    %c0_106 = arith.constant 0 : index
    %349 = vector.load %arg1[%c0_104, %c5_105, %c0_106] : memref<2x8x64xbf16, #tpu.memory_space<vmem>>, vector<2x1x64xbf16>
    %350 = vector.shape_cast %349 : vector<2x1x64xbf16> to vector<2x64xbf16>
    %351 = arith.extf %350 : vector<2x64xbf16> to vector<2x64xf32>
    %352 = arith.truncf %311 : vector<2x16xf32> to vector<2x16xbf16>
    %cst_107 = arith.constant dense<0.000000e+00> : vector<2x64xf32>
    %353 = tpu.matmul %352, %3, %cst_107 {dimension_numbers = #tpu.dot_dimension_numbers<[1], [0], [0], [1], [0, 0, 1, 1], [], []>} : vector<2x16xbf16>, vector<16x64xbf16>, vector<2x64xf32> -> vector<2x64xf32>
    %354 = arith.addf %351, %353 : vector<2x64xf32>
    %355 = vector.extract_strided_slice %354 {offsets = [0, 0], sizes = [2, 16], strides = [1, 1]} : vector<2x64xf32> to vector<2x16xf32>
    %356 = arith.negf %355 : vector<2x16xf32>
    %357 = math.exp %356 : vector<2x16xf32>
    %cst_108 = arith.constant 1.000000e+00 : f32
    %358 = vector.broadcast %cst_108 : f32 to vector<2x16xf32>
    %359 = arith.addf %358, %357 : vector<2x16xf32>
    %360 = arith.divf %358, %359 : vector<2x16xf32>
    %361 = vector.extract_strided_slice %354 {offsets = [0, 16], sizes = [2, 16], strides = [1, 1]} : vector<2x64xf32> to vector<2x16xf32>
    %362 = arith.negf %361 : vector<2x16xf32>
    %363 = math.exp %362 : vector<2x16xf32>
    %cst_109 = arith.constant 1.000000e+00 : f32
    %364 = vector.broadcast %cst_109 : f32 to vector<2x16xf32>
    %365 = arith.addf %364, %363 : vector<2x16xf32>
    %366 = arith.divf %364, %365 : vector<2x16xf32>
    %367 = vector.extract_strided_slice %354 {offsets = [0, 32], sizes = [2, 16], strides = [1, 1]} : vector<2x64xf32> to vector<2x16xf32>
    %368 = math.tanh %367 : vector<2x16xf32>
    %369 = vector.extract_strided_slice %354 {offsets = [0, 48], sizes = [2, 16], strides = [1, 1]} : vector<2x64xf32> to vector<2x16xf32>
    %370 = arith.negf %369 : vector<2x16xf32>
    %371 = math.exp %370 : vector<2x16xf32>
    %cst_110 = arith.constant 1.000000e+00 : f32
    %372 = vector.broadcast %cst_110 : f32 to vector<2x16xf32>
    %373 = arith.addf %372, %371 : vector<2x16xf32>
    %374 = arith.divf %372, %373 : vector<2x16xf32>
    %375 = arith.mulf %366, %309 : vector<2x16xf32>
    %376 = arith.mulf %360, %368 : vector<2x16xf32>
    %377 = arith.addf %375, %376 : vector<2x16xf32>
    %378 = math.tanh %377 : vector<2x16xf32>
    %379 = arith.mulf %374, %378 : vector<2x16xf32>
    %c0_111 = arith.constant 0 : index
    %c2_112 = arith.constant 2 : index
    %c0_113 = arith.constant 0 : index
    %380 = vector.load %arg2[%c0_111, %c2_112, %c0_113] : memref<2x8x64xbf16, #tpu.memory_space<vmem>>, vector<2x1x64xbf16>
    %381 = vector.shape_cast %380 : vector<2x1x64xbf16> to vector<2x64xbf16>
    %382 = arith.extf %381 : vector<2x64xbf16> to vector<2x64xf32>
    %383 = arith.truncf %342 : vector<2x16xf32> to vector<2x16xbf16>
    %cst_114 = arith.constant dense<0.000000e+00> : vector<2x64xf32>
    %384 = tpu.matmul %383, %4, %cst_114 {dimension_numbers = #tpu.dot_dimension_numbers<[1], [0], [0], [1], [0, 0, 1, 1], [], []>} : vector<2x16xbf16>, vector<16x64xbf16>, vector<2x64xf32> -> vector<2x64xf32>
    %385 = arith.addf %382, %384 : vector<2x64xf32>
    %386 = vector.extract_strided_slice %385 {offsets = [0, 0], sizes = [2, 16], strides = [1, 1]} : vector<2x64xf32> to vector<2x16xf32>
    %387 = arith.negf %386 : vector<2x16xf32>
    %388 = math.exp %387 : vector<2x16xf32>
    %cst_115 = arith.constant 1.000000e+00 : f32
    %389 = vector.broadcast %cst_115 : f32 to vector<2x16xf32>
    %390 = arith.addf %389, %388 : vector<2x16xf32>
    %391 = arith.divf %389, %390 : vector<2x16xf32>
    %392 = vector.extract_strided_slice %385 {offsets = [0, 16], sizes = [2, 16], strides = [1, 1]} : vector<2x64xf32> to vector<2x16xf32>
    %393 = arith.negf %392 : vector<2x16xf32>
    %394 = math.exp %393 : vector<2x16xf32>
    %cst_116 = arith.constant 1.000000e+00 : f32
    %395 = vector.broadcast %cst_116 : f32 to vector<2x16xf32>
    %396 = arith.addf %395, %394 : vector<2x16xf32>
    %397 = arith.divf %395, %396 : vector<2x16xf32>
    %398 = vector.extract_strided_slice %385 {offsets = [0, 32], sizes = [2, 16], strides = [1, 1]} : vector<2x64xf32> to vector<2x16xf32>
    %399 = math.tanh %398 : vector<2x16xf32>
    %400 = vector.extract_strided_slice %385 {offsets = [0, 48], sizes = [2, 16], strides = [1, 1]} : vector<2x64xf32> to vector<2x16xf32>
    %401 = arith.negf %400 : vector<2x16xf32>
    %402 = math.exp %401 : vector<2x16xf32>
    %cst_117 = arith.constant 1.000000e+00 : f32
    %403 = vector.broadcast %cst_117 : f32 to vector<2x16xf32>
    %404 = arith.addf %403, %402 : vector<2x16xf32>
    %405 = arith.divf %403, %404 : vector<2x16xf32>
    %406 = arith.mulf %397, %340 : vector<2x16xf32>
    %407 = arith.mulf %391, %399 : vector<2x16xf32>
    %408 = arith.addf %406, %407 : vector<2x16xf32>
    %409 = math.tanh %408 : vector<2x16xf32>
    %410 = arith.mulf %405, %409 : vector<2x16xf32>
    %c0_118 = arith.constant 0 : index
    %c5_119 = arith.constant 5 : index
    %c0_120 = arith.constant 0 : index
    %411 = vector.load %arg5[%c0_118, %c5_119, %c0_120] : memref<2x8x16xf32, #tpu.memory_space<vmem>>, vector<2x1x16xf32>
    %412 = vector.shape_cast %411 : vector<2x1x16xf32> to vector<2x16xf32>
    %413 = vector.shape_cast %379 : vector<2x16xf32> to vector<2x1x16xf32>
    tpu.vector_store %arg5[%c0_118, %c5_119, %c0_120], %413 {strides = array<i32>} : memref<2x8x16xf32, #tpu.memory_space<vmem>>, vector<2x1x16xf32>,
    %c0_121 = arith.constant 0 : index
    %c2_122 = arith.constant 2 : index
    %c0_123 = arith.constant 0 : index
    %414 = vector.load %arg6[%c0_121, %c2_122, %c0_123] : memref<2x8x16xf32, #tpu.memory_space<vmem>>, vector<2x1x16xf32>
    %415 = vector.shape_cast %414 : vector<2x1x16xf32> to vector<2x16xf32>
    %416 = vector.shape_cast %410 : vector<2x16xf32> to vector<2x1x16xf32>
    tpu.vector_store %arg6[%c0_121, %c2_122, %c0_123], %416 {strides = array<i32>} : memref<2x8x16xf32, #tpu.memory_space<vmem>>, vector<2x1x16xf32>,
    %c0_124 = arith.constant 0 : index
    %c6_125 = arith.constant 6 : index
    %c0_126 = arith.constant 0 : index
    %417 = vector.load %arg1[%c0_124, %c6_125, %c0_126] : memref<2x8x64xbf16, #tpu.memory_space<vmem>>, vector<2x1x64xbf16>
    %418 = vector.shape_cast %417 : vector<2x1x64xbf16> to vector<2x64xbf16>
    %419 = arith.extf %418 : vector<2x64xbf16> to vector<2x64xf32>
    %420 = arith.truncf %379 : vector<2x16xf32> to vector<2x16xbf16>
    %cst_127 = arith.constant dense<0.000000e+00> : vector<2x64xf32>
    %421 = tpu.matmul %420, %3, %cst_127 {dimension_numbers = #tpu.dot_dimension_numbers<[1], [0], [0], [1], [0, 0, 1, 1], [], []>} : vector<2x16xbf16>, vector<16x64xbf16>, vector<2x64xf32> -> vector<2x64xf32>
    %422 = arith.addf %419, %421 : vector<2x64xf32>
    %423 = vector.extract_strided_slice %422 {offsets = [0, 0], sizes = [2, 16], strides = [1, 1]} : vector<2x64xf32> to vector<2x16xf32>
    %424 = arith.negf %423 : vector<2x16xf32>
    %425 = math.exp %424 : vector<2x16xf32>
    %cst_128 = arith.constant 1.000000e+00 : f32
    %426 = vector.broadcast %cst_128 : f32 to vector<2x16xf32>
    %427 = arith.addf %426, %425 : vector<2x16xf32>
    %428 = arith.divf %426, %427 : vector<2x16xf32>
    %429 = vector.extract_strided_slice %422 {offsets = [0, 16], sizes = [2, 16], strides = [1, 1]} : vector<2x64xf32> to vector<2x16xf32>
    %430 = arith.negf %429 : vector<2x16xf32>
    %431 = math.exp %430 : vector<2x16xf32>
    %cst_129 = arith.constant 1.000000e+00 : f32
    %432 = vector.broadcast %cst_129 : f32 to vector<2x16xf32>
    %433 = arith.addf %432, %431 : vector<2x16xf32>
    %434 = arith.divf %432, %433 : vector<2x16xf32>
    %435 = vector.extract_strided_slice %422 {offsets = [0, 32], sizes = [2, 16], strides = [1, 1]} : vector<2x64xf32> to vector<2x16xf32>
    %436 = math.tanh %435 : vector<2x16xf32>
    %437 = vector.extract_strided_slice %422 {offsets = [0, 48], sizes = [2, 16], strides = [1, 1]} : vector<2x64xf32> to vector<2x16xf32>
    %438 = arith.negf %437 : vector<2x16xf32>
    %439 = math.exp %438 : vector<2x16xf32>
    %cst_130 = arith.constant 1.000000e+00 : f32
    %440 = vector.broadcast %cst_130 : f32 to vector<2x16xf32>
    %441 = arith.addf %440, %439 : vector<2x16xf32>
    %442 = arith.divf %440, %441 : vector<2x16xf32>
    %443 = arith.mulf %434, %377 : vector<2x16xf32>
    %444 = arith.mulf %428, %436 : vector<2x16xf32>
    %445 = arith.addf %443, %444 : vector<2x16xf32>
    %446 = math.tanh %445 : vector<2x16xf32>
    %447 = arith.mulf %442, %446 : vector<2x16xf32>
    %c0_131 = arith.constant 0 : index
    %c1_132 = arith.constant 1 : index
    %c0_133 = arith.constant 0 : index
    %448 = vector.load %arg2[%c0_131, %c1_132, %c0_133] : memref<2x8x64xbf16, #tpu.memory_space<vmem>>, vector<2x1x64xbf16>
    %449 = vector.shape_cast %448 : vector<2x1x64xbf16> to vector<2x64xbf16>
    %450 = arith.extf %449 : vector<2x64xbf16> to vector<2x64xf32>
    %451 = arith.truncf %410 : vector<2x16xf32> to vector<2x16xbf16>
    %cst_134 = arith.constant dense<0.000000e+00> : vector<2x64xf32>
    %452 = tpu.matmul %451, %4, %cst_134 {dimension_numbers = #tpu.dot_dimension_numbers<[1], [0], [0], [1], [0, 0, 1, 1], [], []>} : vector<2x16xbf16>, vector<16x64xbf16>, vector<2x64xf32> -> vector<2x64xf32>
    %453 = arith.addf %450, %452 : vector<2x64xf32>
    %454 = vector.extract_strided_slice %453 {offsets = [0, 0], sizes = [2, 16], strides = [1, 1]} : vector<2x64xf32> to vector<2x16xf32>
    %455 = arith.negf %454 : vector<2x16xf32>
    %456 = math.exp %455 : vector<2x16xf32>
    %cst_135 = arith.constant 1.000000e+00 : f32
    %457 = vector.broadcast %cst_135 : f32 to vector<2x16xf32>
    %458 = arith.addf %457, %456 : vector<2x16xf32>
    %459 = arith.divf %457, %458 : vector<2x16xf32>
    %460 = vector.extract_strided_slice %453 {offsets = [0, 16], sizes = [2, 16], strides = [1, 1]} : vector<2x64xf32> to vector<2x16xf32>
    %461 = arith.negf %460 : vector<2x16xf32>
    %462 = math.exp %461 : vector<2x16xf32>
    %cst_136 = arith.constant 1.000000e+00 : f32
    %463 = vector.broadcast %cst_136 : f32 to vector<2x16xf32>
    %464 = arith.addf %463, %462 : vector<2x16xf32>
    %465 = arith.divf %463, %464 : vector<2x16xf32>
    %466 = vector.extract_strided_slice %453 {offsets = [0, 32], sizes = [2, 16], strides = [1, 1]} : vector<2x64xf32> to vector<2x16xf32>
    %467 = math.tanh %466 : vector<2x16xf32>
    %468 = vector.extract_strided_slice %453 {offsets = [0, 48], sizes = [2, 16], strides = [1, 1]} : vector<2x64xf32> to vector<2x16xf32>
    %469 = arith.negf %468 : vector<2x16xf32>
    %470 = math.exp %469 : vector<2x16xf32>
    %cst_137 = arith.constant 1.000000e+00 : f32
    %471 = vector.broadcast %cst_137 : f32 to vector<2x16xf32>
    %472 = arith.addf %471, %470 : vector<2x16xf32>
    %473 = arith.divf %471, %472 : vector<2x16xf32>
    %474 = arith.mulf %465, %408 : vector<2x16xf32>
    %475 = arith.mulf %459, %467 : vector<2x16xf32>
    %476 = arith.addf %474, %475 : vector<2x16xf32>
    %477 = math.tanh %476 : vector<2x16xf32>
    %478 = arith.mulf %473, %477 : vector<2x16xf32>
    %c0_138 = arith.constant 0 : index
    %c6_139 = arith.constant 6 : index
    %c0_140 = arith.constant 0 : index
    %479 = vector.load %arg5[%c0_138, %c6_139, %c0_140] : memref<2x8x16xf32, #tpu.memory_space<vmem>>, vector<2x1x16xf32>
    %480 = vector.shape_cast %479 : vector<2x1x16xf32> to vector<2x16xf32>
    %481 = vector.shape_cast %447 : vector<2x16xf32> to vector<2x1x16xf32>
    tpu.vector_store %arg5[%c0_138, %c6_139, %c0_140], %481 {strides = array<i32>} : memref<2x8x16xf32, #tpu.memory_space<vmem>>, vector<2x1x16xf32>,
    %c0_141 = arith.constant 0 : index
    %c1_142 = arith.constant 1 : index
    %c0_143 = arith.constant 0 : index
    %482 = vector.load %arg6[%c0_141, %c1_142, %c0_143] : memref<2x8x16xf32, #tpu.memory_space<vmem>>, vector<2x1x16xf32>
    %483 = vector.shape_cast %482 : vector<2x1x16xf32> to vector<2x16xf32>
    %484 = vector.shape_cast %478 : vector<2x16xf32> to vector<2x1x16xf32>
    tpu.vector_store %arg6[%c0_141, %c1_142, %c0_143], %484 {strides = array<i32>} : memref<2x8x16xf32, #tpu.memory_space<vmem>>, vector<2x1x16xf32>,
    %c0_144 = arith.constant 0 : index
    %c7_145 = arith.constant 7 : index
    %c0_146 = arith.constant 0 : index
    %485 = vector.load %arg1[%c0_144, %c7_145, %c0_146] : memref<2x8x64xbf16, #tpu.memory_space<vmem>>, vector<2x1x64xbf16>
    %486 = vector.shape_cast %485 : vector<2x1x64xbf16> to vector<2x64xbf16>
    %487 = arith.extf %486 : vector<2x64xbf16> to vector<2x64xf32>
    %488 = arith.truncf %447 : vector<2x16xf32> to vector<2x16xbf16>
    %cst_147 = arith.constant dense<0.000000e+00> : vector<2x64xf32>
    %489 = tpu.matmul %488, %3, %cst_147 {dimension_numbers = #tpu.dot_dimension_numbers<[1], [0], [0], [1], [0, 0, 1, 1], [], []>} : vector<2x16xbf16>, vector<16x64xbf16>, vector<2x64xf32> -> vector<2x64xf32>
    %490 = arith.addf %487, %489 : vector<2x64xf32>
    %491 = vector.extract_strided_slice %490 {offsets = [0, 0], sizes = [2, 16], strides = [1, 1]} : vector<2x64xf32> to vector<2x16xf32>
    %492 = arith.negf %491 : vector<2x16xf32>
    %493 = math.exp %492 : vector<2x16xf32>
    %cst_148 = arith.constant 1.000000e+00 : f32
    %494 = vector.broadcast %cst_148 : f32 to vector<2x16xf32>
    %495 = arith.addf %494, %493 : vector<2x16xf32>
    %496 = arith.divf %494, %495 : vector<2x16xf32>
    %497 = vector.extract_strided_slice %490 {offsets = [0, 16], sizes = [2, 16], strides = [1, 1]} : vector<2x64xf32> to vector<2x16xf32>
    %498 = arith.negf %497 : vector<2x16xf32>
    %499 = math.exp %498 : vector<2x16xf32>
    %cst_149 = arith.constant 1.000000e+00 : f32
    %500 = vector.broadcast %cst_149 : f32 to vector<2x16xf32>
    %501 = arith.addf %500, %499 : vector<2x16xf32>
    %502 = arith.divf %500, %501 : vector<2x16xf32>
    %503 = vector.extract_strided_slice %490 {offsets = [0, 32], sizes = [2, 16], strides = [1, 1]} : vector<2x64xf32> to vector<2x16xf32>
    %504 = math.tanh %503 : vector<2x16xf32>
    %505 = vector.extract_strided_slice %490 {offsets = [0, 48], sizes = [2, 16], strides = [1, 1]} : vector<2x64xf32> to vector<2x16xf32>
    %506 = arith.negf %505 : vector<2x16xf32>
    %507 = math.exp %506 : vector<2x16xf32>
    %cst_150 = arith.constant 1.000000e+00 : f32
    %508 = vector.broadcast %cst_150 : f32 to vector<2x16xf32>
    %509 = arith.addf %508, %507 : vector<2x16xf32>
    %510 = arith.divf %508, %509 : vector<2x16xf32>
    %511 = arith.mulf %502, %445 : vector<2x16xf32>
    %512 = arith.mulf %496, %504 : vector<2x16xf32>
    %513 = arith.addf %511, %512 : vector<2x16xf32>
    %514 = math.tanh %513 : vector<2x16xf32>
    %515 = arith.mulf %510, %514 : vector<2x16xf32>
    %c0_151 = arith.constant 0 : index
    %c0_152 = arith.constant 0 : index
    %c0_153 = arith.constant 0 : index
    %516 = vector.load %arg2[%c0_151, %c0_152, %c0_153] : memref<2x8x64xbf16, #tpu.memory_space<vmem>>, vector<2x1x64xbf16>
    %517 = vector.shape_cast %516 : vector<2x1x64xbf16> to vector<2x64xbf16>
    %518 = arith.extf %517 : vector<2x64xbf16> to vector<2x64xf32>
    %519 = arith.truncf %478 : vector<2x16xf32> to vector<2x16xbf16>
    %cst_154 = arith.constant dense<0.000000e+00> : vector<2x64xf32>
    %520 = tpu.matmul %519, %4, %cst_154 {dimension_numbers = #tpu.dot_dimension_numbers<[1], [0], [0], [1], [0, 0, 1, 1], [], []>} : vector<2x16xbf16>, vector<16x64xbf16>, vector<2x64xf32> -> vector<2x64xf32>
    %521 = arith.addf %518, %520 : vector<2x64xf32>
    %522 = vector.extract_strided_slice %521 {offsets = [0, 0], sizes = [2, 16], strides = [1, 1]} : vector<2x64xf32> to vector<2x16xf32>
    %523 = arith.negf %522 : vector<2x16xf32>
    %524 = math.exp %523 : vector<2x16xf32>
    %cst_155 = arith.constant 1.000000e+00 : f32
    %525 = vector.broadcast %cst_155 : f32 to vector<2x16xf32>
    %526 = arith.addf %525, %524 : vector<2x16xf32>
    %527 = arith.divf %525, %526 : vector<2x16xf32>
    %528 = vector.extract_strided_slice %521 {offsets = [0, 16], sizes = [2, 16], strides = [1, 1]} : vector<2x64xf32> to vector<2x16xf32>
    %529 = arith.negf %528 : vector<2x16xf32>
    %530 = math.exp %529 : vector<2x16xf32>
    %cst_156 = arith.constant 1.000000e+00 : f32
    %531 = vector.broadcast %cst_156 : f32 to vector<2x16xf32>
    %532 = arith.addf %531, %530 : vector<2x16xf32>
    %533 = arith.divf %531, %532 : vector<2x16xf32>
    %534 = vector.extract_strided_slice %521 {offsets = [0, 32], sizes = [2, 16], strides = [1, 1]} : vector<2x64xf32> to vector<2x16xf32>
    %535 = math.tanh %534 : vector<2x16xf32>
    %536 = vector.extract_strided_slice %521 {offsets = [0, 48], sizes = [2, 16], strides = [1, 1]} : vector<2x64xf32> to vector<2x16xf32>
    %537 = arith.negf %536 : vector<2x16xf32>
    %538 = math.exp %537 : vector<2x16xf32>
    %cst_157 = arith.constant 1.000000e+00 : f32
    %539 = vector.broadcast %cst_157 : f32 to vector<2x16xf32>
    %540 = arith.addf %539, %538 : vector<2x16xf32>
    %541 = arith.divf %539, %540 : vector<2x16xf32>
    %542 = arith.mulf %533, %476 : vector<2x16xf32>
    %543 = arith.mulf %527, %535 : vector<2x16xf32>
    %544 = arith.addf %542, %543 : vector<2x16xf32>
    %545 = math.tanh %544 : vector<2x16xf32>
    %546 = arith.mulf %541, %545 : vector<2x16xf32>
    %c0_158 = arith.constant 0 : index
    %c7_159 = arith.constant 7 : index
    %c0_160 = arith.constant 0 : index
    %547 = vector.load %arg5[%c0_158, %c7_159, %c0_160] : memref<2x8x16xf32, #tpu.memory_space<vmem>>, vector<2x1x16xf32>
    %548 = vector.shape_cast %547 : vector<2x1x16xf32> to vector<2x16xf32>
    %549 = vector.shape_cast %515 : vector<2x16xf32> to vector<2x1x16xf32>
    tpu.vector_store %arg5[%c0_158, %c7_159, %c0_160], %549 {strides = array<i32>} : memref<2x8x16xf32, #tpu.memory_space<vmem>>, vector<2x1x16xf32>,
    %c0_161 = arith.constant 0 : index
    %c0_162 = arith.constant 0 : index
    %c0_163 = arith.constant 0 : index
    %550 = vector.load %arg6[%c0_161, %c0_162, %c0_163] : memref<2x8x16xf32, #tpu.memory_space<vmem>>, vector<2x1x16xf32>
    %551 = vector.shape_cast %550 : vector<2x1x16xf32> to vector<2x16xf32>
    %552 = vector.shape_cast %546 : vector<2x16xf32> to vector<2x1x16xf32>
    tpu.vector_store %arg6[%c0_161, %c0_162, %c0_163], %552 {strides = array<i32>} : memref<2x8x16xf32, #tpu.memory_space<vmem>>, vector<2x1x16xf32>,
    %c0_164 = arith.constant 0 : index
    %c0_165 = arith.constant 0 : index
    %553 = vector.load %arg7[%c0_164, %c0_165] : memref<2x16xf32, #tpu.memory_space<vmem>>, vector<2x16xf32>
    tpu.vector_store %arg7[%c0_164, %c0_165], %515 {strides = array<i32>} : memref<2x16xf32, #tpu.memory_space<vmem>>, vector<2x16xf32>,
    %c0_166 = arith.constant 0 : index
    %c0_167 = arith.constant 0 : index
    %554 = vector.load %arg8[%c0_166, %c0_167] : memref<2x16xf32, #tpu.memory_space<vmem>>, vector<2x16xf32>
    tpu.vector_store %arg8[%c0_166, %c0_167], %513 {strides = array<i32>} : memref<2x16xf32, #tpu.memory_space<vmem>>, vector<2x16xf32>,
    %c0_168 = arith.constant 0 : index
    %c0_169 = arith.constant 0 : index
    %555 = vector.load %arg9[%c0_168, %c0_169] : memref<2x16xf32, #tpu.memory_space<vmem>>, vector<2x16xf32>
    tpu.vector_store %arg9[%c0_168, %c0_169], %546 {strides = array<i32>} : memref<2x16xf32, #tpu.memory_space<vmem>>, vector<2x16xf32>,
    %c0_170 = arith.constant 0 : index
    %c0_171 = arith.constant 0 : index
    %556 = vector.load %arg10[%c0_170, %c0_171] : memref<2x16xf32, #tpu.memory_space<vmem>>, vector<2x16xf32>
    tpu.vector_store %arg10[%c0_170, %c0_171], %544 {strides = array<i32>} : memref<2x16xf32, #tpu.memory_space<vmem>>, vector<2x16xf32>,
    return
  }
  func.func @transform_0(%arg0: i32) -> (i32, i32, i32) {
    %c0_i32 = arith.constant 0 : i32
    %c0_i32_0 = arith.constant 0 : i32
    %c0_i32_1 = arith.constant 0 : i32
    return %c0_i32, %arg0, %c0_i32_0 : i32, i32, i32
  }
  func.func @transform_1(%arg0: i32) -> (i32, i32, i32) {
    %c0_i32 = arith.constant 0 : i32
    %0 = arith.subi %c0_i32, %arg0 : i32
    %c0_i32_0 = arith.constant 0 : i32
    %c0_i32_1 = arith.constant 0 : i32
    %c0_i32_2 = arith.constant 0 : i32
    return %c0_i32_0, %0, %c0_i32_1 : i32, i32, i32
  }
  func.func @transform_2(%arg0: i32) -> (i32, i32) {
    %c0_i32 = arith.constant 0 : i32
    %c0_i32_0 = arith.constant 0 : i32
    %c0_i32_1 = arith.constant 0 : i32
    return %c0_i32, %c0_i32_0 : i32, i32
  }
  func.func @transform_3(%arg0: i32) -> (i32, i32) {
    %c0_i32 = arith.constant 0 : i32
    %c0_i32_0 = arith.constant 0 : i32
    %c0_i32_1 = arith.constant 0 : i32
    return %c0_i32, %c0_i32_0 : i32, i32
  }
  func.func @transform_4(%arg0: i32) -> (i32, i32, i32) {
    %c0_i32 = arith.constant 0 : i32
    %c0_i32_0 = arith.constant 0 : i32
    %c0_i32_1 = arith.constant 0 : i32
    return %c0_i32, %arg0, %c0_i32_0 : i32, i32, i32
  }
  func.func @transform_5(%arg0: i32) -> (i32, i32, i32) {
    %c0_i32 = arith.constant 0 : i32
    %0 = arith.subi %c0_i32, %arg0 : i32
    %c0_i32_0 = arith.constant 0 : i32
    %c0_i32_1 = arith.constant 0 : i32
    %c0_i32_2 = arith.constant 0 : i32
    return %c0_i32_0, %0, %c0_i32_1 : i32, i32, i32
  }
}

module attributes {stable_mosaic.version = 11 : i64} {
  func.func @_linear_kernel(%arg0: i32, %arg1: i32, %arg2: memref<96x16xf32, #tpu.memory_space<vmem>>, %arg3: memref<16x64xbf16, #tpu.memory_space<vmem>>, %arg4: memref<1x64xf32, #tpu.memory_space<vmem>>, %arg5: memref<96x64xbf16, #tpu.memory_space<vmem>>) attributes {dimension_semantics = [#tpu.dimension_semantics<parallel>, #tpu.dimension_semantics<parallel>], iteration_bounds = array<i64: 1, 1>, scalar_prefetch = 0 : i64, scratch_operands = 0 : i64, tpu.core_type = #tpu.core_type<tc>, window_params = [{transform_indices = @transform_0, window_bounds = array<i64: 96, 16>}, {transform_indices = @transform_1, window_bounds = array<i64: 16, 64>}, {transform_indices = @transform_2, window_bounds = array<i64: 1, 64>}, {transform_indices = @transform_3, window_bounds = array<i64: 96, 64>}]} {
    %c0 = arith.constant 0 : index
    %c0_0 = arith.constant 0 : index
    %0 = vector.load %arg2[%c0, %c0_0] : memref<96x16xf32, #tpu.memory_space<vmem>>, vector<96x16xf32>
    %1 = arith.truncf %0 : vector<96x16xf32> to vector<96x16xbf16>
    %c0_1 = arith.constant 0 : index
    %c0_2 = arith.constant 0 : index
    %2 = vector.load %arg3[%c0_1, %c0_2] : memref<16x64xbf16, #tpu.memory_space<vmem>>, vector<16x64xbf16>
    %cst = arith.constant dense<0.000000e+00> : vector<96x64xf32>
    %3 = tpu.matmul %1, %2, %cst {dimension_numbers = #tpu.dot_dimension_numbers<[1], [0], [0], [1], [0, 0, 1, 1], [], []>} : vector<96x16xbf16>, vector<16x64xbf16>, vector<96x64xf32> -> vector<96x64xf32>
    %c0_3 = arith.constant 0 : index
    %c0_4 = arith.constant 0 : index
    %4 = vector.load %arg4[%c0_3, %c0_4] : memref<1x64xf32, #tpu.memory_space<vmem>>, vector<1x64xf32>
    %5 = vector.broadcast %4 : vector<1x64xf32> to vector<96x64xf32>
    %6 = arith.addf %3, %5 : vector<96x64xf32>
    %7 = arith.truncf %6 : vector<96x64xf32> to vector<96x64xbf16>
    %c0_5 = arith.constant 0 : index
    %c0_6 = arith.constant 0 : index
    %8 = vector.load %arg5[%c0_5, %c0_6] : memref<96x64xbf16, #tpu.memory_space<vmem>>, vector<96x64xbf16>
    tpu.vector_store %arg5[%c0_5, %c0_6], %7 {strides = array<i32>} : memref<96x64xbf16, #tpu.memory_space<vmem>>, vector<96x64xbf16>,
    return
  }
  func.func @transform_0(%arg0: i32, %arg1: i32) -> (i32, i32) {
    %c0_i32 = arith.constant 0 : i32
    %c0_i32_0 = arith.constant 0 : i32
    return %arg0, %c0_i32 : i32, i32
  }
  func.func @transform_1(%arg0: i32, %arg1: i32) -> (i32, i32) {
    %c0_i32 = arith.constant 0 : i32
    %c0_i32_0 = arith.constant 0 : i32
    return %c0_i32, %arg1 : i32, i32
  }
  func.func @transform_2(%arg0: i32, %arg1: i32) -> (i32, i32) {
    %c0_i32 = arith.constant 0 : i32
    %c0_i32_0 = arith.constant 0 : i32
    return %c0_i32, %arg1 : i32, i32
  }
  func.func @transform_3(%arg0: i32, %arg1: i32) -> (i32, i32) {
    %c0_i32 = arith.constant 0 : i32
    return %arg0, %arg1 : i32, i32
  }
}

module attributes {stable_mosaic.version = 11 : i64} {
  func.func @_char_lstm_kernel(%arg0: i32, %arg1: memref<16x6x64xbf16, #tpu.memory_space<vmem>>, %arg2: memref<16x64xbf16, #tpu.memory_space<vmem>>, %arg3: memref<16x16xf32, #tpu.memory_space<vmem>>, %arg4: memref<16x16xf32, #tpu.memory_space<vmem>>, %arg5: memref<16x16xf32, #tpu.memory_space<vmem>>) attributes {dimension_semantics = [#tpu.dimension_semantics<arbitrary>], iteration_bounds = array<i64: 1>, scalar_prefetch = 0 : i64, scratch_operands = 2 : i64, tpu.core_type = #tpu.core_type<tc>, window_params = [{transform_indices = @transform_0, window_bounds = array<i64: 16, 6, 64>}, {pipeline_mode = #tpu.pipeline_mode<synchronous>, transform_indices = @transform_1, window_bounds = array<i64: 16, 64>}, {pipeline_mode = #tpu.pipeline_mode<synchronous>, transform_indices = @transform_2, window_bounds = array<i64: 16, 16>}]} {
    %c0_i32 = arith.constant 0 : i32
    %0 = arith.cmpi eq, %arg0, %c0_i32 : i32
    %1 = arith.extui %0 : i1 to i32
    %c0_i32_0 = arith.constant 0 : i32
    %2 = arith.cmpi ne, %1, %c0_i32_0 : i32
    scf.if %2 {
      %cst_48 = arith.constant 0.000000e+00 : f32
      %197 = vector.broadcast %cst_48 : f32 to vector<16x16xf32>
      %c0_49 = arith.constant 0 : index
      %c0_50 = arith.constant 0 : index
      %198 = vector.load %arg4[%c0_49, %c0_50] : memref<16x16xf32, #tpu.memory_space<vmem>>, vector<16x16xf32>
      tpu.vector_store %arg4[%c0_49, %c0_50], %197 {strides = array<i32>} : memref<16x16xf32, #tpu.memory_space<vmem>>, vector<16x16xf32>,
      %cst_51 = arith.constant 0.000000e+00 : f32
      %199 = vector.broadcast %cst_51 : f32 to vector<16x16xf32>
      %c0_52 = arith.constant 0 : index
      %c0_53 = arith.constant 0 : index
      %200 = vector.load %arg5[%c0_52, %c0_53] : memref<16x16xf32, #tpu.memory_space<vmem>>, vector<16x16xf32>
      tpu.vector_store %arg5[%c0_52, %c0_53], %199 {strides = array<i32>} : memref<16x16xf32, #tpu.memory_space<vmem>>, vector<16x16xf32>,
    } else {
    }
    %c0 = arith.constant 0 : index
    %c0_1 = arith.constant 0 : index
    %3 = vector.load %arg2[%c0, %c0_1] : memref<16x64xbf16, #tpu.memory_space<vmem>>, vector<16x64xbf16>
    %c0_2 = arith.constant 0 : index
    %c0_3 = arith.constant 0 : index
    %4 = vector.load %arg4[%c0_2, %c0_3] : memref<16x16xf32, #tpu.memory_space<vmem>>, vector<16x16xf32>
    %c0_4 = arith.constant 0 : index
    %c0_5 = arith.constant 0 : index
    %5 = vector.load %arg5[%c0_4, %c0_5] : memref<16x16xf32, #tpu.memory_space<vmem>>, vector<16x16xf32>
    %c0_6 = arith.constant 0 : index
    %c0_7 = arith.constant 0 : index
    %c0_8 = arith.constant 0 : index
    %6 = vector.load %arg1[%c0_6, %c0_7, %c0_8] : memref<16x6x64xbf16, #tpu.memory_space<vmem>>, vector<16x1x64xbf16>
    %7 = vector.shape_cast %6 : vector<16x1x64xbf16> to vector<16x64xbf16>
    %8 = arith.extf %7 : vector<16x64xbf16> to vector<16x64xf32>
    %9 = arith.truncf %4 : vector<16x16xf32> to vector<16x16xbf16>
    %cst = arith.constant dense<0.000000e+00> : vector<16x64xf32>
    %10 = tpu.matmul %9, %3, %cst {dimension_numbers = #tpu.dot_dimension_numbers<[1], [0], [0], [1], [0, 0, 1, 1], [], []>} : vector<16x16xbf16>, vector<16x64xbf16>, vector<16x64xf32> -> vector<16x64xf32>
    %11 = arith.addf %8, %10 : vector<16x64xf32>
    %12 = vector.extract_strided_slice %11 {offsets = [0, 0], sizes = [16, 16], strides = [1, 1]} : vector<16x64xf32> to vector<16x16xf32>
    %13 = arith.negf %12 : vector<16x16xf32>
    %14 = math.exp %13 : vector<16x16xf32>
    %cst_9 = arith.constant 1.000000e+00 : f32
    %15 = vector.broadcast %cst_9 : f32 to vector<16x16xf32>
    %16 = arith.addf %15, %14 : vector<16x16xf32>
    %17 = arith.divf %15, %16 : vector<16x16xf32>
    %18 = vector.extract_strided_slice %11 {offsets = [0, 16], sizes = [16, 16], strides = [1, 1]} : vector<16x64xf32> to vector<16x16xf32>
    %19 = arith.negf %18 : vector<16x16xf32>
    %20 = math.exp %19 : vector<16x16xf32>
    %cst_10 = arith.constant 1.000000e+00 : f32
    %21 = vector.broadcast %cst_10 : f32 to vector<16x16xf32>
    %22 = arith.addf %21, %20 : vector<16x16xf32>
    %23 = arith.divf %21, %22 : vector<16x16xf32>
    %24 = vector.extract_strided_slice %11 {offsets = [0, 32], sizes = [16, 16], strides = [1, 1]} : vector<16x64xf32> to vector<16x16xf32>
    %25 = math.tanh %24 : vector<16x16xf32>
    %26 = vector.extract_strided_slice %11 {offsets = [0, 48], sizes = [16, 16], strides = [1, 1]} : vector<16x64xf32> to vector<16x16xf32>
    %27 = arith.negf %26 : vector<16x16xf32>
    %28 = math.exp %27 : vector<16x16xf32>
    %cst_11 = arith.constant 1.000000e+00 : f32
    %29 = vector.broadcast %cst_11 : f32 to vector<16x16xf32>
    %30 = arith.addf %29, %28 : vector<16x16xf32>
    %31 = arith.divf %29, %30 : vector<16x16xf32>
    %32 = arith.mulf %23, %5 : vector<16x16xf32>
    %33 = arith.mulf %17, %25 : vector<16x16xf32>
    %34 = arith.addf %32, %33 : vector<16x16xf32>
    %35 = math.tanh %34 : vector<16x16xf32>
    %36 = arith.mulf %31, %35 : vector<16x16xf32>
    %c0_12 = arith.constant 0 : index
    %c1 = arith.constant 1 : index
    %c0_13 = arith.constant 0 : index
    %37 = vector.load %arg1[%c0_12, %c1, %c0_13] : memref<16x6x64xbf16, #tpu.memory_space<vmem>>, vector<16x1x64xbf16>
    %38 = vector.shape_cast %37 : vector<16x1x64xbf16> to vector<16x64xbf16>
    %39 = arith.extf %38 : vector<16x64xbf16> to vector<16x64xf32>
    %40 = arith.truncf %36 : vector<16x16xf32> to vector<16x16xbf16>
    %cst_14 = arith.constant dense<0.000000e+00> : vector<16x64xf32>
    %41 = tpu.matmul %40, %3, %cst_14 {dimension_numbers = #tpu.dot_dimension_numbers<[1], [0], [0], [1], [0, 0, 1, 1], [], []>} : vector<16x16xbf16>, vector<16x64xbf16>, vector<16x64xf32> -> vector<16x64xf32>
    %42 = arith.addf %39, %41 : vector<16x64xf32>
    %43 = vector.extract_strided_slice %42 {offsets = [0, 0], sizes = [16, 16], strides = [1, 1]} : vector<16x64xf32> to vector<16x16xf32>
    %44 = arith.negf %43 : vector<16x16xf32>
    %45 = math.exp %44 : vector<16x16xf32>
    %cst_15 = arith.constant 1.000000e+00 : f32
    %46 = vector.broadcast %cst_15 : f32 to vector<16x16xf32>
    %47 = arith.addf %46, %45 : vector<16x16xf32>
    %48 = arith.divf %46, %47 : vector<16x16xf32>
    %49 = vector.extract_strided_slice %42 {offsets = [0, 16], sizes = [16, 16], strides = [1, 1]} : vector<16x64xf32> to vector<16x16xf32>
    %50 = arith.negf %49 : vector<16x16xf32>
    %51 = math.exp %50 : vector<16x16xf32>
    %cst_16 = arith.constant 1.000000e+00 : f32
    %52 = vector.broadcast %cst_16 : f32 to vector<16x16xf32>
    %53 = arith.addf %52, %51 : vector<16x16xf32>
    %54 = arith.divf %52, %53 : vector<16x16xf32>
    %55 = vector.extract_strided_slice %42 {offsets = [0, 32], sizes = [16, 16], strides = [1, 1]} : vector<16x64xf32> to vector<16x16xf32>
    %56 = math.tanh %55 : vector<16x16xf32>
    %57 = vector.extract_strided_slice %42 {offsets = [0, 48], sizes = [16, 16], strides = [1, 1]} : vector<16x64xf32> to vector<16x16xf32>
    %58 = arith.negf %57 : vector<16x16xf32>
    %59 = math.exp %58 : vector<16x16xf32>
    %cst_17 = arith.constant 1.000000e+00 : f32
    %60 = vector.broadcast %cst_17 : f32 to vector<16x16xf32>
    %61 = arith.addf %60, %59 : vector<16x16xf32>
    %62 = arith.divf %60, %61 : vector<16x16xf32>
    %63 = arith.mulf %54, %34 : vector<16x16xf32>
    %64 = arith.mulf %48, %56 : vector<16x16xf32>
    %65 = arith.addf %63, %64 : vector<16x16xf32>
    %66 = math.tanh %65 : vector<16x16xf32>
    %67 = arith.mulf %62, %66 : vector<16x16xf32>
    %c0_18 = arith.constant 0 : index
    %c2 = arith.constant 2 : index
    %c0_19 = arith.constant 0 : index
    %68 = vector.load %arg1[%c0_18, %c2, %c0_19] : memref<16x6x64xbf16, #tpu.memory_space<vmem>>, vector<16x1x64xbf16>
    %69 = vector.shape_cast %68 : vector<16x1x64xbf16> to vector<16x64xbf16>
    %70 = arith.extf %69 : vector<16x64xbf16> to vector<16x64xf32>
    %71 = arith.truncf %67 : vector<16x16xf32> to vector<16x16xbf16>
    %cst_20 = arith.constant dense<0.000000e+00> : vector<16x64xf32>
    %72 = tpu.matmul %71, %3, %cst_20 {dimension_numbers = #tpu.dot_dimension_numbers<[1], [0], [0], [1], [0, 0, 1, 1], [], []>} : vector<16x16xbf16>, vector<16x64xbf16>, vector<16x64xf32> -> vector<16x64xf32>
    %73 = arith.addf %70, %72 : vector<16x64xf32>
    %74 = vector.extract_strided_slice %73 {offsets = [0, 0], sizes = [16, 16], strides = [1, 1]} : vector<16x64xf32> to vector<16x16xf32>
    %75 = arith.negf %74 : vector<16x16xf32>
    %76 = math.exp %75 : vector<16x16xf32>
    %cst_21 = arith.constant 1.000000e+00 : f32
    %77 = vector.broadcast %cst_21 : f32 to vector<16x16xf32>
    %78 = arith.addf %77, %76 : vector<16x16xf32>
    %79 = arith.divf %77, %78 : vector<16x16xf32>
    %80 = vector.extract_strided_slice %73 {offsets = [0, 16], sizes = [16, 16], strides = [1, 1]} : vector<16x64xf32> to vector<16x16xf32>
    %81 = arith.negf %80 : vector<16x16xf32>
    %82 = math.exp %81 : vector<16x16xf32>
    %cst_22 = arith.constant 1.000000e+00 : f32
    %83 = vector.broadcast %cst_22 : f32 to vector<16x16xf32>
    %84 = arith.addf %83, %82 : vector<16x16xf32>
    %85 = arith.divf %83, %84 : vector<16x16xf32>
    %86 = vector.extract_strided_slice %73 {offsets = [0, 32], sizes = [16, 16], strides = [1, 1]} : vector<16x64xf32> to vector<16x16xf32>
    %87 = math.tanh %86 : vector<16x16xf32>
    %88 = vector.extract_strided_slice %73 {offsets = [0, 48], sizes = [16, 16], strides = [1, 1]} : vector<16x64xf32> to vector<16x16xf32>
    %89 = arith.negf %88 : vector<16x16xf32>
    %90 = math.exp %89 : vector<16x16xf32>
    %cst_23 = arith.constant 1.000000e+00 : f32
    %91 = vector.broadcast %cst_23 : f32 to vector<16x16xf32>
    %92 = arith.addf %91, %90 : vector<16x16xf32>
    %93 = arith.divf %91, %92 : vector<16x16xf32>
    %94 = arith.mulf %85, %65 : vector<16x16xf32>
    %95 = arith.mulf %79, %87 : vector<16x16xf32>
    %96 = arith.addf %94, %95 : vector<16x16xf32>
    %97 = math.tanh %96 : vector<16x16xf32>
    %98 = arith.mulf %93, %97 : vector<16x16xf32>
    %c0_24 = arith.constant 0 : index
    %c3 = arith.constant 3 : index
    %c0_25 = arith.constant 0 : index
    %99 = vector.load %arg1[%c0_24, %c3, %c0_25] : memref<16x6x64xbf16, #tpu.memory_space<vmem>>, vector<16x1x64xbf16>
    %100 = vector.shape_cast %99 : vector<16x1x64xbf16> to vector<16x64xbf16>
    %101 = arith.extf %100 : vector<16x64xbf16> to vector<16x64xf32>
    %102 = arith.truncf %98 : vector<16x16xf32> to vector<16x16xbf16>
    %cst_26 = arith.constant dense<0.000000e+00> : vector<16x64xf32>
    %103 = tpu.matmul %102, %3, %cst_26 {dimension_numbers = #tpu.dot_dimension_numbers<[1], [0], [0], [1], [0, 0, 1, 1], [], []>} : vector<16x16xbf16>, vector<16x64xbf16>, vector<16x64xf32> -> vector<16x64xf32>
    %104 = arith.addf %101, %103 : vector<16x64xf32>
    %105 = vector.extract_strided_slice %104 {offsets = [0, 0], sizes = [16, 16], strides = [1, 1]} : vector<16x64xf32> to vector<16x16xf32>
    %106 = arith.negf %105 : vector<16x16xf32>
    %107 = math.exp %106 : vector<16x16xf32>
    %cst_27 = arith.constant 1.000000e+00 : f32
    %108 = vector.broadcast %cst_27 : f32 to vector<16x16xf32>
    %109 = arith.addf %108, %107 : vector<16x16xf32>
    %110 = arith.divf %108, %109 : vector<16x16xf32>
    %111 = vector.extract_strided_slice %104 {offsets = [0, 16], sizes = [16, 16], strides = [1, 1]} : vector<16x64xf32> to vector<16x16xf32>
    %112 = arith.negf %111 : vector<16x16xf32>
    %113 = math.exp %112 : vector<16x16xf32>
    %cst_28 = arith.constant 1.000000e+00 : f32
    %114 = vector.broadcast %cst_28 : f32 to vector<16x16xf32>
    %115 = arith.addf %114, %113 : vector<16x16xf32>
    %116 = arith.divf %114, %115 : vector<16x16xf32>
    %117 = vector.extract_strided_slice %104 {offsets = [0, 32], sizes = [16, 16], strides = [1, 1]} : vector<16x64xf32> to vector<16x16xf32>
    %118 = math.tanh %117 : vector<16x16xf32>
    %119 = vector.extract_strided_slice %104 {offsets = [0, 48], sizes = [16, 16], strides = [1, 1]} : vector<16x64xf32> to vector<16x16xf32>
    %120 = arith.negf %119 : vector<16x16xf32>
    %121 = math.exp %120 : vector<16x16xf32>
    %cst_29 = arith.constant 1.000000e+00 : f32
    %122 = vector.broadcast %cst_29 : f32 to vector<16x16xf32>
    %123 = arith.addf %122, %121 : vector<16x16xf32>
    %124 = arith.divf %122, %123 : vector<16x16xf32>
    %125 = arith.mulf %116, %96 : vector<16x16xf32>
    %126 = arith.mulf %110, %118 : vector<16x16xf32>
    %127 = arith.addf %125, %126 : vector<16x16xf32>
    %128 = math.tanh %127 : vector<16x16xf32>
    %129 = arith.mulf %124, %128 : vector<16x16xf32>
    %c0_30 = arith.constant 0 : index
    %c4 = arith.constant 4 : index
    %c0_31 = arith.constant 0 : index
    %130 = vector.load %arg1[%c0_30, %c4, %c0_31] : memref<16x6x64xbf16, #tpu.memory_space<vmem>>, vector<16x1x64xbf16>
    %131 = vector.shape_cast %130 : vector<16x1x64xbf16> to vector<16x64xbf16>
    %132 = arith.extf %131 : vector<16x64xbf16> to vector<16x64xf32>
    %133 = arith.truncf %129 : vector<16x16xf32> to vector<16x16xbf16>
    %cst_32 = arith.constant dense<0.000000e+00> : vector<16x64xf32>
    %134 = tpu.matmul %133, %3, %cst_32 {dimension_numbers = #tpu.dot_dimension_numbers<[1], [0], [0], [1], [0, 0, 1, 1], [], []>} : vector<16x16xbf16>, vector<16x64xbf16>, vector<16x64xf32> -> vector<16x64xf32>
    %135 = arith.addf %132, %134 : vector<16x64xf32>
    %136 = vector.extract_strided_slice %135 {offsets = [0, 0], sizes = [16, 16], strides = [1, 1]} : vector<16x64xf32> to vector<16x16xf32>
    %137 = arith.negf %136 : vector<16x16xf32>
    %138 = math.exp %137 : vector<16x16xf32>
    %cst_33 = arith.constant 1.000000e+00 : f32
    %139 = vector.broadcast %cst_33 : f32 to vector<16x16xf32>
    %140 = arith.addf %139, %138 : vector<16x16xf32>
    %141 = arith.divf %139, %140 : vector<16x16xf32>
    %142 = vector.extract_strided_slice %135 {offsets = [0, 16], sizes = [16, 16], strides = [1, 1]} : vector<16x64xf32> to vector<16x16xf32>
    %143 = arith.negf %142 : vector<16x16xf32>
    %144 = math.exp %143 : vector<16x16xf32>
    %cst_34 = arith.constant 1.000000e+00 : f32
    %145 = vector.broadcast %cst_34 : f32 to vector<16x16xf32>
    %146 = arith.addf %145, %144 : vector<16x16xf32>
    %147 = arith.divf %145, %146 : vector<16x16xf32>
    %148 = vector.extract_strided_slice %135 {offsets = [0, 32], sizes = [16, 16], strides = [1, 1]} : vector<16x64xf32> to vector<16x16xf32>
    %149 = math.tanh %148 : vector<16x16xf32>
    %150 = vector.extract_strided_slice %135 {offsets = [0, 48], sizes = [16, 16], strides = [1, 1]} : vector<16x64xf32> to vector<16x16xf32>
    %151 = arith.negf %150 : vector<16x16xf32>
    %152 = math.exp %151 : vector<16x16xf32>
    %cst_35 = arith.constant 1.000000e+00 : f32
    %153 = vector.broadcast %cst_35 : f32 to vector<16x16xf32>
    %154 = arith.addf %153, %152 : vector<16x16xf32>
    %155 = arith.divf %153, %154 : vector<16x16xf32>
    %156 = arith.mulf %147, %127 : vector<16x16xf32>
    %157 = arith.mulf %141, %149 : vector<16x16xf32>
    %158 = arith.addf %156, %157 : vector<16x16xf32>
    %159 = math.tanh %158 : vector<16x16xf32>
    %160 = arith.mulf %155, %159 : vector<16x16xf32>
    %c0_36 = arith.constant 0 : index
    %c5 = arith.constant 5 : index
    %c0_37 = arith.constant 0 : index
    %161 = vector.load %arg1[%c0_36, %c5, %c0_37] : memref<16x6x64xbf16, #tpu.memory_space<vmem>>, vector<16x1x64xbf16>
    %162 = vector.shape_cast %161 : vector<16x1x64xbf16> to vector<16x64xbf16>
    %163 = arith.extf %162 : vector<16x64xbf16> to vector<16x64xf32>
    %164 = arith.truncf %160 : vector<16x16xf32> to vector<16x16xbf16>
    %cst_38 = arith.constant dense<0.000000e+00> : vector<16x64xf32>
    %165 = tpu.matmul %164, %3, %cst_38 {dimension_numbers = #tpu.dot_dimension_numbers<[1], [0], [0], [1], [0, 0, 1, 1], [], []>} : vector<16x16xbf16>, vector<16x64xbf16>, vector<16x64xf32> -> vector<16x64xf32>
    %166 = arith.addf %163, %165 : vector<16x64xf32>
    %167 = vector.extract_strided_slice %166 {offsets = [0, 0], sizes = [16, 16], strides = [1, 1]} : vector<16x64xf32> to vector<16x16xf32>
    %168 = arith.negf %167 : vector<16x16xf32>
    %169 = math.exp %168 : vector<16x16xf32>
    %cst_39 = arith.constant 1.000000e+00 : f32
    %170 = vector.broadcast %cst_39 : f32 to vector<16x16xf32>
    %171 = arith.addf %170, %169 : vector<16x16xf32>
    %172 = arith.divf %170, %171 : vector<16x16xf32>
    %173 = vector.extract_strided_slice %166 {offsets = [0, 16], sizes = [16, 16], strides = [1, 1]} : vector<16x64xf32> to vector<16x16xf32>
    %174 = arith.negf %173 : vector<16x16xf32>
    %175 = math.exp %174 : vector<16x16xf32>
    %cst_40 = arith.constant 1.000000e+00 : f32
    %176 = vector.broadcast %cst_40 : f32 to vector<16x16xf32>
    %177 = arith.addf %176, %175 : vector<16x16xf32>
    %178 = arith.divf %176, %177 : vector<16x16xf32>
    %179 = vector.extract_strided_slice %166 {offsets = [0, 32], sizes = [16, 16], strides = [1, 1]} : vector<16x64xf32> to vector<16x16xf32>
    %180 = math.tanh %179 : vector<16x16xf32>
    %181 = vector.extract_strided_slice %166 {offsets = [0, 48], sizes = [16, 16], strides = [1, 1]} : vector<16x64xf32> to vector<16x16xf32>
    %182 = arith.negf %181 : vector<16x16xf32>
    %183 = math.exp %182 : vector<16x16xf32>
    %cst_41 = arith.constant 1.000000e+00 : f32
    %184 = vector.broadcast %cst_41 : f32 to vector<16x16xf32>
    %185 = arith.addf %184, %183 : vector<16x16xf32>
    %186 = arith.divf %184, %185 : vector<16x16xf32>
    %187 = arith.mulf %178, %158 : vector<16x16xf32>
    %188 = arith.mulf %172, %180 : vector<16x16xf32>
    %189 = arith.addf %187, %188 : vector<16x16xf32>
    %190 = math.tanh %189 : vector<16x16xf32>
    %191 = arith.mulf %186, %190 : vector<16x16xf32>
    %c0_42 = arith.constant 0 : index
    %c0_43 = arith.constant 0 : index
    %192 = vector.load %arg4[%c0_42, %c0_43] : memref<16x16xf32, #tpu.memory_space<vmem>>, vector<16x16xf32>
    tpu.vector_store %arg4[%c0_42, %c0_43], %191 {strides = array<i32>} : memref<16x16xf32, #tpu.memory_space<vmem>>, vector<16x16xf32>,
    %c0_44 = arith.constant 0 : index
    %c0_45 = arith.constant 0 : index
    %193 = vector.load %arg5[%c0_44, %c0_45] : memref<16x16xf32, #tpu.memory_space<vmem>>, vector<16x16xf32>
    tpu.vector_store %arg5[%c0_44, %c0_45], %189 {strides = array<i32>} : memref<16x16xf32, #tpu.memory_space<vmem>>, vector<16x16xf32>,
    %c0_i32_46 = arith.constant 0 : i32
    %194 = arith.cmpi eq, %arg0, %c0_i32_46 : i32
    %195 = arith.extui %194 : i1 to i32
    %c0_i32_47 = arith.constant 0 : i32
    %196 = arith.cmpi ne, %195, %c0_i32_47 : i32
    scf.if %196 {
      %c0_48 = arith.constant 0 : index
      %c0_49 = arith.constant 0 : index
      %197 = vector.load %arg3[%c0_48, %c0_49] : memref<16x16xf32, #tpu.memory_space<vmem>>, vector<16x16xf32>
      tpu.vector_store %arg3[%c0_48, %c0_49], %191 {strides = array<i32>} : memref<16x16xf32, #tpu.memory_space<vmem>>, vector<16x16xf32>,
    } else {
    }
    return
  }
  func.func @transform_0(%arg0: i32) -> (i32, i32, i32) {
    %c0_i32 = arith.constant 0 : i32
    %c0_i32_0 = arith.constant 0 : i32
    %c0_i32_1 = arith.constant 0 : i32
    return %c0_i32, %arg0, %c0_i32_0 : i32, i32, i32
  }
  func.func @transform_1(%arg0: i32) -> (i32, i32) {
    %c0_i32 = arith.constant 0 : i32
    %c0_i32_0 = arith.constant 0 : i32
    %c0_i32_1 = arith.constant 0 : i32
    return %c0_i32, %c0_i32_0 : i32, i32
  }
  func.func @transform_2(%arg0: i32) -> (i32, i32) {
    %c0_i32 = arith.constant 0 : i32
    %c0_i32_0 = arith.constant 0 : i32
    %c0_i32_1 = arith.constant 0 : i32
    return %c0_i32, %c0_i32_0 : i32, i32
  }
}

module attributes {stable_mosaic.version = 11 : i64} {
  func.func @_fused_head_kernel(%arg0: i32, %arg1: i32, %arg2: memref<16x16xf32, #tpu.memory_space<vmem>>, %arg3: memref<16x16xf32, #tpu.memory_space<vmem>>, %arg4: memref<16x16xf32, #tpu.memory_space<vmem>>, %arg5: memref<16x32xbf16, #tpu.memory_space<vmem>>, %arg6: memref<16x32xbf16, #tpu.memory_space<vmem>>, %arg7: memref<16x32xbf16, #tpu.memory_space<vmem>>, %arg8: memref<1x32xf32, #tpu.memory_space<vmem>>, %arg9: memref<32x128xbf16, #tpu.memory_space<vmem>>, %arg10: memref<1x128xf32, #tpu.memory_space<vmem>>, %arg11: memref<16x128xf32, #tpu.memory_space<vmem>>, %arg12: memref<16x32xf32, #tpu.memory_space<vmem>>) attributes {dimension_semantics = [#tpu.dimension_semantics<parallel>, #tpu.dimension_semantics<arbitrary>], iteration_bounds = array<i64: 1, 1>, scalar_prefetch = 0 : i64, scratch_operands = 1 : i64, tpu.core_type = #tpu.core_type<tc>, window_params = [{transform_indices = @transform_0, window_bounds = array<i64: 16, 16>}, {transform_indices = @transform_1, window_bounds = array<i64: 16, 16>}, {transform_indices = @transform_2, window_bounds = array<i64: 16, 16>}, {pipeline_mode = #tpu.pipeline_mode<synchronous>, transform_indices = @transform_3, window_bounds = array<i64: 16, 32>}, {pipeline_mode = #tpu.pipeline_mode<synchronous>, transform_indices = @transform_4, window_bounds = array<i64: 16, 32>}, {pipeline_mode = #tpu.pipeline_mode<synchronous>, transform_indices = @transform_5, window_bounds = array<i64: 16, 32>}, {pipeline_mode = #tpu.pipeline_mode<synchronous>, transform_indices = @transform_6, window_bounds = array<i64: 1, 32>}, {transform_indices = @transform_7, window_bounds = array<i64: 32, 128>}, {transform_indices = @transform_8, window_bounds = array<i64: 1, 128>}, {transform_indices = @transform_9, window_bounds = array<i64: 16, 128>}]} {
    %c0_i32 = arith.constant 0 : i32
    %0 = arith.cmpi eq, %arg1, %c0_i32 : i32
    %1 = arith.extui %0 : i1 to i32
    %c0_i32_0 = arith.constant 0 : i32
    %2 = arith.cmpi ne, %1, %c0_i32_0 : i32
    scf.if %2 {
      %c0_8 = arith.constant 0 : index
      %c0_9 = arith.constant 0 : index
      %11 = vector.load %arg2[%c0_8, %c0_9] : memref<16x16xf32, #tpu.memory_space<vmem>>, vector<16x16xf32>
      %12 = arith.truncf %11 : vector<16x16xf32> to vector<16x16xbf16>
      %c0_10 = arith.constant 0 : index
      %c0_11 = arith.constant 0 : index
      %13 = vector.load %arg5[%c0_10, %c0_11] : memref<16x32xbf16, #tpu.memory_space<vmem>>, vector<16x32xbf16>
      %cst_12 = arith.constant dense<0.000000e+00> : vector<16x32xf32>
      %14 = tpu.matmul %12, %13, %cst_12 {dimension_numbers = #tpu.dot_dimension_numbers<[1], [0], [0], [1], [0, 0, 1, 1], [], []>} : vector<16x16xbf16>, vector<16x32xbf16>, vector<16x32xf32> -> vector<16x32xf32>
      %c0_13 = arith.constant 0 : index
      %c0_14 = arith.constant 0 : index
      %15 = vector.load %arg3[%c0_13, %c0_14] : memref<16x16xf32, #tpu.memory_space<vmem>>, vector<16x16xf32>
      %16 = arith.truncf %15 : vector<16x16xf32> to vector<16x16xbf16>
      %c0_15 = arith.constant 0 : index
      %c0_16 = arith.constant 0 : index
      %17 = vector.load %arg6[%c0_15, %c0_16] : memref<16x32xbf16, #tpu.memory_space<vmem>>, vector<16x32xbf16>
      %cst_17 = arith.constant dense<0.000000e+00> : vector<16x32xf32>
      %18 = tpu.matmul %16, %17, %cst_17 {dimension_numbers = #tpu.dot_dimension_numbers<[1], [0], [0], [1], [0, 0, 1, 1], [], []>} : vector<16x16xbf16>, vector<16x32xbf16>, vector<16x32xf32> -> vector<16x32xf32>
      %19 = arith.addf %14, %18 : vector<16x32xf32>
      %c0_18 = arith.constant 0 : index
      %c0_19 = arith.constant 0 : index
      %20 = vector.load %arg4[%c0_18, %c0_19] : memref<16x16xf32, #tpu.memory_space<vmem>>, vector<16x16xf32>
      %21 = arith.truncf %20 : vector<16x16xf32> to vector<16x16xbf16>
      %c0_20 = arith.constant 0 : index
      %c0_21 = arith.constant 0 : index
      %22 = vector.load %arg7[%c0_20, %c0_21] : memref<16x32xbf16, #tpu.memory_space<vmem>>, vector<16x32xbf16>
      %cst_22 = arith.constant dense<0.000000e+00> : vector<16x32xf32>
      %23 = tpu.matmul %21, %22, %cst_22 {dimension_numbers = #tpu.dot_dimension_numbers<[1], [0], [0], [1], [0, 0, 1, 1], [], []>} : vector<16x16xbf16>, vector<16x32xbf16>, vector<16x32xf32> -> vector<16x32xf32>
      %24 = arith.addf %19, %23 : vector<16x32xf32>
      %c0_23 = arith.constant 0 : index
      %c0_24 = arith.constant 0 : index
      %25 = vector.load %arg8[%c0_23, %c0_24] : memref<1x32xf32, #tpu.memory_space<vmem>>, vector<1x32xf32>
      %26 = vector.broadcast %25 : vector<1x32xf32> to vector<16x32xf32>
      %27 = arith.addf %24, %26 : vector<16x32xf32>
      %28 = math.tanh %27 : vector<16x32xf32>
      %c0_25 = arith.constant 0 : index
      %c0_26 = arith.constant 0 : index
      %29 = vector.load %arg12[%c0_25, %c0_26] : memref<16x32xf32, #tpu.memory_space<vmem>>, vector<16x32xf32>
      tpu.vector_store %arg12[%c0_25, %c0_26], %28 {strides = array<i32>} : memref<16x32xf32, #tpu.memory_space<vmem>>, vector<16x32xf32>,
    } else {
    }
    %c0 = arith.constant 0 : index
    %c0_1 = arith.constant 0 : index
    %3 = vector.load %arg12[%c0, %c0_1] : memref<16x32xf32, #tpu.memory_space<vmem>>, vector<16x32xf32>
    %4 = arith.truncf %3 : vector<16x32xf32> to vector<16x32xbf16>
    %c0_2 = arith.constant 0 : index
    %c0_3 = arith.constant 0 : index
    %5 = vector.load %arg9[%c0_2, %c0_3] : memref<32x128xbf16, #tpu.memory_space<vmem>>, vector<32x128xbf16>
    %cst = arith.constant dense<0.000000e+00> : vector<16x128xf32>
    %6 = tpu.matmul %4, %5, %cst {dimension_numbers = #tpu.dot_dimension_numbers<[1], [0], [0], [1], [0, 0, 1, 1], [], []>} : vector<16x32xbf16>, vector<32x128xbf16>, vector<16x128xf32> -> vector<16x128xf32>
    %c0_4 = arith.constant 0 : index
    %c0_5 = arith.constant 0 : index
    %7 = vector.load %arg10[%c0_4, %c0_5] : memref<1x128xf32, #tpu.memory_space<vmem>>, vector<1x128xf32>
    %8 = vector.broadcast %7 : vector<1x128xf32> to vector<16x128xf32>
    %9 = arith.addf %6, %8 : vector<16x128xf32>
    %c0_6 = arith.constant 0 : index
    %c0_7 = arith.constant 0 : index
    %10 = vector.load %arg11[%c0_6, %c0_7] : memref<16x128xf32, #tpu.memory_space<vmem>>, vector<16x128xf32>
    tpu.vector_store %arg11[%c0_6, %c0_7], %9 {strides = array<i32>} : memref<16x128xf32, #tpu.memory_space<vmem>>, vector<16x128xf32>,
    return
  }
  func.func @transform_0(%arg0: i32, %arg1: i32) -> (i32, i32) {
    %c0_i32 = arith.constant 0 : i32
    %c0_i32_0 = arith.constant 0 : i32
    return %arg0, %c0_i32 : i32, i32
  }
  func.func @transform_1(%arg0: i32, %arg1: i32) -> (i32, i32) {
    %c0_i32 = arith.constant 0 : i32
    %c0_i32_0 = arith.constant 0 : i32
    return %arg0, %c0_i32 : i32, i32
  }
  func.func @transform_2(%arg0: i32, %arg1: i32) -> (i32, i32) {
    %c0_i32 = arith.constant 0 : i32
    %c0_i32_0 = arith.constant 0 : i32
    return %arg0, %c0_i32 : i32, i32
  }
  func.func @transform_3(%arg0: i32, %arg1: i32) -> (i32, i32) {
    %c0_i32 = arith.constant 0 : i32
    %c0_i32_0 = arith.constant 0 : i32
    %c0_i32_1 = arith.constant 0 : i32
    return %c0_i32, %c0_i32_0 : i32, i32
  }
  func.func @transform_4(%arg0: i32, %arg1: i32) -> (i32, i32) {
    %c0_i32 = arith.constant 0 : i32
    %c0_i32_0 = arith.constant 0 : i32
    %c0_i32_1 = arith.constant 0 : i32
    return %c0_i32, %c0_i32_0 : i32, i32
  }
  func.func @transform_5(%arg0: i32, %arg1: i32) -> (i32, i32) {
    %c0_i32 = arith.constant 0 : i32
    %c0_i32_0 = arith.constant 0 : i32
    %c0_i32_1 = arith.constant 0 : i32
    return %c0_i32, %c0_i32_0 : i32, i32
  }
  func.func @transform_6(%arg0: i32, %arg1: i32) -> (i32, i32) {
    %c0_i32 = arith.constant 0 : i32
    %c0_i32_0 = arith.constant 0 : i32
    %c0_i32_1 = arith.constant 0 : i32
    return %c0_i32, %c0_i32_0 : i32, i32
  }
  func.func @transform_7(%arg0: i32, %arg1: i32) -> (i32, i32) {
    %c0_i32 = arith.constant 0 : i32
    %c0_i32_0 = arith.constant 0 : i32
    return %c0_i32, %arg1 : i32, i32
  }
  func.func @transform_8(%arg0: i32, %arg1: i32) -> (i32, i32) {
    %c0_i32 = arith.constant 0 : i32
    %c0_i32_0 = arith.constant 0 : i32
    return %c0_i32, %arg1 : i32, i32
  }
  func.func @transform_9(%arg0: i32, %arg1: i32) -> (i32, i32) {
    %c0_i32 = arith.constant 0 : i32
    return %arg0, %arg1 : i32, i32
  }
}

module attributes {stable_mosaic.version = 11 : i64} {
  func.func @_fused_head_kernel(%arg0: i32, %arg1: i32, %arg2: memref<16x16xf32, #tpu.memory_space<vmem>>, %arg3: memref<16x16xf32, #tpu.memory_space<vmem>>, %arg4: memref<16x32xbf16, #tpu.memory_space<vmem>>, %arg5: memref<16x32xbf16, #tpu.memory_space<vmem>>, %arg6: memref<1x32xf32, #tpu.memory_space<vmem>>, %arg7: memref<32x64xbf16, #tpu.memory_space<vmem>>, %arg8: memref<1x64xf32, #tpu.memory_space<vmem>>, %arg9: memref<16x64xf32, #tpu.memory_space<vmem>>, %arg10: memref<16x32xf32, #tpu.memory_space<vmem>>) attributes {dimension_semantics = [#tpu.dimension_semantics<parallel>, #tpu.dimension_semantics<arbitrary>], iteration_bounds = array<i64: 1, 1>, scalar_prefetch = 0 : i64, scratch_operands = 1 : i64, tpu.core_type = #tpu.core_type<tc>, window_params = [{transform_indices = @transform_0, window_bounds = array<i64: 16, 16>}, {transform_indices = @transform_1, window_bounds = array<i64: 16, 16>}, {pipeline_mode = #tpu.pipeline_mode<synchronous>, transform_indices = @transform_2, window_bounds = array<i64: 16, 32>}, {pipeline_mode = #tpu.pipeline_mode<synchronous>, transform_indices = @transform_3, window_bounds = array<i64: 16, 32>}, {pipeline_mode = #tpu.pipeline_mode<synchronous>, transform_indices = @transform_4, window_bounds = array<i64: 1, 32>}, {transform_indices = @transform_5, window_bounds = array<i64: 32, 64>}, {transform_indices = @transform_6, window_bounds = array<i64: 1, 64>}, {transform_indices = @transform_7, window_bounds = array<i64: 16, 64>}]} {
    %c0_i32 = arith.constant 0 : i32
    %0 = arith.cmpi eq, %arg1, %c0_i32 : i32
    %1 = arith.extui %0 : i1 to i32
    %c0_i32_0 = arith.constant 0 : i32
    %2 = arith.cmpi ne, %1, %c0_i32_0 : i32
    scf.if %2 {
      %c0_8 = arith.constant 0 : index
      %c0_9 = arith.constant 0 : index
      %11 = vector.load %arg2[%c0_8, %c0_9] : memref<16x16xf32, #tpu.memory_space<vmem>>, vector<16x16xf32>
      %12 = arith.truncf %11 : vector<16x16xf32> to vector<16x16xbf16>
      %c0_10 = arith.constant 0 : index
      %c0_11 = arith.constant 0 : index
      %13 = vector.load %arg4[%c0_10, %c0_11] : memref<16x32xbf16, #tpu.memory_space<vmem>>, vector<16x32xbf16>
      %cst_12 = arith.constant dense<0.000000e+00> : vector<16x32xf32>
      %14 = tpu.matmul %12, %13, %cst_12 {dimension_numbers = #tpu.dot_dimension_numbers<[1], [0], [0], [1], [0, 0, 1, 1], [], []>} : vector<16x16xbf16>, vector<16x32xbf16>, vector<16x32xf32> -> vector<16x32xf32>
      %c0_13 = arith.constant 0 : index
      %c0_14 = arith.constant 0 : index
      %15 = vector.load %arg3[%c0_13, %c0_14] : memref<16x16xf32, #tpu.memory_space<vmem>>, vector<16x16xf32>
      %16 = arith.truncf %15 : vector<16x16xf32> to vector<16x16xbf16>
      %c0_15 = arith.constant 0 : index
      %c0_16 = arith.constant 0 : index
      %17 = vector.load %arg5[%c0_15, %c0_16] : memref<16x32xbf16, #tpu.memory_space<vmem>>, vector<16x32xbf16>
      %cst_17 = arith.constant dense<0.000000e+00> : vector<16x32xf32>
      %18 = tpu.matmul %16, %17, %cst_17 {dimension_numbers = #tpu.dot_dimension_numbers<[1], [0], [0], [1], [0, 0, 1, 1], [], []>} : vector<16x16xbf16>, vector<16x32xbf16>, vector<16x32xf32> -> vector<16x32xf32>
      %19 = arith.addf %14, %18 : vector<16x32xf32>
      %c0_18 = arith.constant 0 : index
      %c0_19 = arith.constant 0 : index
      %20 = vector.load %arg6[%c0_18, %c0_19] : memref<1x32xf32, #tpu.memory_space<vmem>>, vector<1x32xf32>
      %21 = vector.broadcast %20 : vector<1x32xf32> to vector<16x32xf32>
      %22 = arith.addf %19, %21 : vector<16x32xf32>
      %23 = math.tanh %22 : vector<16x32xf32>
      %c0_20 = arith.constant 0 : index
      %c0_21 = arith.constant 0 : index
      %24 = vector.load %arg10[%c0_20, %c0_21] : memref<16x32xf32, #tpu.memory_space<vmem>>, vector<16x32xf32>
      tpu.vector_store %arg10[%c0_20, %c0_21], %23 {strides = array<i32>} : memref<16x32xf32, #tpu.memory_space<vmem>>, vector<16x32xf32>,
    } else {
    }
    %c0 = arith.constant 0 : index
    %c0_1 = arith.constant 0 : index
    %3 = vector.load %arg10[%c0, %c0_1] : memref<16x32xf32, #tpu.memory_space<vmem>>, vector<16x32xf32>
    %4 = arith.truncf %3 : vector<16x32xf32> to vector<16x32xbf16>
    %c0_2 = arith.constant 0 : index
    %c0_3 = arith.constant 0 : index
    %5 = vector.load %arg7[%c0_2, %c0_3] : memref<32x64xbf16, #tpu.memory_space<vmem>>, vector<32x64xbf16>
    %cst = arith.constant dense<0.000000e+00> : vector<16x64xf32>
    %6 = tpu.matmul %4, %5, %cst {dimension_numbers = #tpu.dot_dimension_numbers<[1], [0], [0], [1], [0, 0, 1, 1], [], []>} : vector<16x32xbf16>, vector<32x64xbf16>, vector<16x64xf32> -> vector<16x64xf32>
    %c0_4 = arith.constant 0 : index
    %c0_5 = arith.constant 0 : index
    %7 = vector.load %arg8[%c0_4, %c0_5] : memref<1x64xf32, #tpu.memory_space<vmem>>, vector<1x64xf32>
    %8 = vector.broadcast %7 : vector<1x64xf32> to vector<16x64xf32>
    %9 = arith.addf %6, %8 : vector<16x64xf32>
    %c0_6 = arith.constant 0 : index
    %c0_7 = arith.constant 0 : index
    %10 = vector.load %arg9[%c0_6, %c0_7] : memref<16x64xf32, #tpu.memory_space<vmem>>, vector<16x64xf32>
    tpu.vector_store %arg9[%c0_6, %c0_7], %9 {strides = array<i32>} : memref<16x64xf32, #tpu.memory_space<vmem>>, vector<16x64xf32>,
    return
  }
  func.func @transform_0(%arg0: i32, %arg1: i32) -> (i32, i32) {
    %c0_i32 = arith.constant 0 : i32
    %c0_i32_0 = arith.constant 0 : i32
    return %arg0, %c0_i32 : i32, i32
  }
  func.func @transform_1(%arg0: i32, %arg1: i32) -> (i32, i32) {
    %c0_i32 = arith.constant 0 : i32
    %c0_i32_0 = arith.constant 0 : i32
    return %arg0, %c0_i32 : i32, i32
  }
  func.func @transform_2(%arg0: i32, %arg1: i32) -> (i32, i32) {
    %c0_i32 = arith.constant 0 : i32
    %c0_i32_0 = arith.constant 0 : i32
    %c0_i32_1 = arith.constant 0 : i32
    return %c0_i32, %c0_i32_0 : i32, i32
  }
  func.func @transform_3(%arg0: i32, %arg1: i32) -> (i32, i32) {
    %c0_i32 = arith.constant 0 : i32
    %c0_i32_0 = arith.constant 0 : i32
    %c0_i32_1 = arith.constant 0 : i32
    return %c0_i32, %c0_i32_0 : i32, i32
  }
  func.func @transform_4(%arg0: i32, %arg1: i32) -> (i32, i32) {
    %c0_i32 = arith.constant 0 : i32
    %c0_i32_0 = arith.constant 0 : i32
    %c0_i32_1 = arith.constant 0 : i32
    return %c0_i32, %c0_i32_0 : i32, i32
  }
  func.func @transform_5(%arg0: i32, %arg1: i32) -> (i32, i32) {
    %c0_i32 = arith.constant 0 : i32
    %c0_i32_0 = arith.constant 0 : i32
    return %c0_i32, %arg1 : i32, i32
  }
  func.func @transform_6(%arg0: i32, %arg1: i32) -> (i32, i32) {
    %c0_i32 = arith.constant 0 : i32
    %c0_i32_0 = arith.constant 0 : i32
    return %c0_i32, %arg1 : i32, i32
  }
  func.func @transform_7(%arg0: i32, %arg1: i32) -> (i32, i32) {
    %c0_i32 = arith.constant 0 : i32
    return %arg0, %arg1 : i32, i32
  }
}

</mosaic_0001>

<bundles_post_ra>
// kernel: slner_forward.7
= control target key start
LH: loop header
LB: loop body
LE: loop exit
PB: predicated region body
PF: predicated region fallthrough
CT: control target
= control target key end

     0   :  { %v231_v0 = vmov 0.0   ;;  %vm232_vm0 = vmmov 0   ;;  %vm49_vm1 = vcmask 261120   ;;  %vm166_vm2 = vcmask 519168   ;;  %s308_s1 = inlined_call_operand.vmem [shape: bf16[32,64], index: 1, kind: input, shape index: {}]   ;;  %s309_s2 = inlined_call_operand.vmem [shape: bf16[32,64], index: 2, kind: input, shape index: {}]   ;;  %s310_s0 = inlined_call_operand.vmem [shape: f32[16,32], index: 0, kind: input, shape index: {}]   ;;  %s311_s3 = inlined_call_operand.vmem [shape: f32[1,64], index: 3, kind: input, shape index: {}]   ;;  %s312_s4 = inlined_call_operand.vmem [shape: f32[1,64], index: 4, kind: input, shape index: {}]   ;;  %s313_s5 = inlined_call_operand.vmem [shape: bf16[16,64], index: 5, kind: output, shape index: {0}]   ;;  %s314_s6 = inlined_call_operand.vmem [shape: bf16[16,64], index: 6, kind: output, shape index: {1}]  }
   0x1   :  { %209 = vmatprep.subr.bf16.mxu0 %v231_v0  ;;  %217 = vmatprep.subr.bf16.mxu1 %v231_v0  ;;  %v227_v1 = vld [vmem:[%s308_s1 + $0x8] sm:$0xff]   ;;  %v229_v3 = vld [vmem:[%s308_s1] sm:$0xff]  }
   0x2   :  { %v228_v2 = vld [vmem:[%s309_s2 + $0x8] sm:$0xff]   ;;  %213 = vmatprep.mubr.msk.bf16.mxu0 %vm232_vm0, %v231_v0  ;;  %221 = vmatprep.mubr.msk.bf16.mxu1 %vm232_vm0, %v231_v0  ;;  %v230_v4 = vld [vmem:[%s309_s2] sm:$0xff]  }
   0x3   :  { %210 = vmatpush3.bf16.msra.mxu0 %v227_v1  ;;  %218 = vmatpush3.bf16.msra.mxu1 %v228_v2  ;;  %v23_v5 = vld [vmem:[%s310_s0] sm:$0xff]  ;;  %v24_v6 = vld [vmem:[%s310_s0 + $0x8] sm:$0xff] }
   0x4   :  { %211 = vmatprep.subr.bf16.mxu0 %v231_v0  ;;  %219 = vmatprep.subr.bf16.mxu1 %v231_v0  ;;  %v25_v7 = vpack.c.bf16 %v24_v6, %v23_v5  ;;  %v187_v8 = vld [vmem:[%s311_s3] ss:$0 sm:$0xff] }
   0x5   :  { %v191_v9 = vld [vmem:[%s312_s4] ss:$0 sm:$0xff] }
   0x7   :  { %212 = vmatpush3.bf16.msra.mxu0 %v229_v3  ;;  %220 = vmatpush3.bf16.msra.mxu1 %v230_v4 }
   0xa   :  { %214 = vmatmul.mubr.msk.bf16.vlgmr.msra.gmra.mxu0 %vm49_vm1, %v25_v7  ;;  %222 = vmatmul.mubr.msk.bf16.vlgmr.msra.gmra.mxu1 %vm49_vm1, %v25_v7 }
  0xca   :  { %v87_v10 = vpop.f32.mrf.mxu0  ;;  %v151_v12 = vpop.f32.mrf.mxu1 }
  0xcb   :  { %v88_v11 = vadd.f32 %v187_v8, %v87_v10  ;;  %v152_v13 = vadd.f32 %v191_v9, %v151_v12 }
  0xcc   :  { %v215_v14 = vpop.f32.mrf.mxu0  ;;  %v223_v16 = vpop.f32.mrf.mxu1 }
  0xcd   :  { %v199_v15 = vpack.c.bf16 %v88_v11, %v88_v11  ;;  %v201_v17 = vpack.c.bf16 %v152_v13, %v152_v13 }
  0xce   :  { %v90_v18 = vpop.f32.mrf.mxu0  ;;  %v154_v20 = vpop.f32.mrf.mxu1 }
  0xcf   :  { %167 = vst.msk [vmem:[%s313_s5] sm:$0xf] %vm166_vm2, %v199_v15  ;;  %v91_v19 = vadd.f32 %v187_v8, %v90_v18  ;;  %177 = vst.msk [vmem:[%s314_s6] sm:$0xf] %vm166_vm2, %v201_v17  ;;  %v155_v21 = vadd.f32 %v191_v9, %v154_v20 }
  0xd0   :  { %v216_v22 = vpop.f32.mrf.mxu0  ;;  %v224_v24 = vpop.f32.mrf.mxu1 }
  0xd1   :  { %v200_v23 = vpack.c.bf16 %v91_v19, %v91_v19  ;;  %v202_v25 = vpack.c.bf16 %v155_v21, %v155_v21 }
  0xd3   :  { %168 = vst.msk [vmem:[%s313_s5 + $0x4] sm:$0xf] %vm166_vm2, %v200_v23  ;;  %178 = vst.msk [vmem:[%s314_s6 + $0x4] sm:$0xf] %vm166_vm2, %v202_v25 }

// kernel: slner_forward.9
= control target key start
LH: loop header
LB: loop body
LE: loop exit
PB: predicated region body
PF: predicated region fallthrough
CT: control target
= control target key end

     0   :  { %vm48_vm0 = vcmask 130048   ;;  %vm196_vm1 = vcmask 519168   ;;  %s385_s1 = inlined_call_operand.vmem [shape: bf16[16,64], index: 1, kind: input, shape index: {}]   ;;  %s386_s0 = inlined_call_operand.vmem [shape: f32[96,16], index: 0, kind: input, shape index: {}]   ;;  %s387_s2 = inlined_call_operand.vmem [shape: f32[1,64], index: 2, kind: input, shape index: {}]   ;;  %s388_s3 = inlined_call_operand.vmem [shape: bf16[96,64], index: 3, kind: output, shape index: {}]  }
   0x1   :  { %v268_v0 = vld [vmem:[%s385_s1] sm:$0xff]   ;;  %v20_v2 = vld [vmem:[%s386_s0 + $0x28] sm:$0xff]  ;;  %v21_v3 = vld [vmem:[%s386_s0 + $0x30] sm:$0xff] }
   0x2   :  { %v19_v1 = vld [vmem:[%s386_s0 + $0x20] sm:$0xff]  ;;  %266 = vmatprep.subr.bf16.mxu1 %v268_v0  ;;  %252 = vmatprep.subr.bf16.mxu0 %v268_v0  ;;  %v22_v5 = vld [vmem:[%s386_s0 + $0x38] sm:$0xff]  ;;  %v16_v7 = vld [vmem:[%s386_s0 + $0x8] sm:$0xff] }
   0x3   :  { %v29_v4 = vpack.c.bf16 %v20_v2, %v19_v1  ;;  %v15_v6 = vld [vmem:[%s386_s0] sm:$0xff]  ;;  %267 = vmatpush3.bf16.msra.mxu1 %v268_v0  ;;  %253 = vmatpush3.bf16.msra.mxu0 %v268_v0  ;;  %v30_v8 = vpack.c.bf16 %v22_v5, %v21_v3  ;;  %v17_v10 = vld [vmem:[%s386_s0 + $0x10] sm:$0xff]  ;;  %v18_v11 = vld [vmem:[%s386_s0 + $0x18] sm:$0xff] }
   0x4   :  { %v27_v9 = vpack.c.bf16 %v16_v7, %v15_v6  ;;  %v23_v12 = vld [vmem:[%s386_s0 + $0x40] sm:$0xff]  ;;  %v28_v13 = vpack.c.bf16 %v18_v11, %v17_v10  ;;  %v24_v14 = vld [vmem:[%s386_s0 + $0x48] sm:$0xff]  ;;  %v25_v16 = vld [vmem:[%s386_s0 + $0x50] sm:$0xff] }
   0x5   :  { %258 = vmatprep.mubr.msk.bf16.mxu1 %vm48_vm0, %v29_v4  ;;  %v31_v15 = vpack.c.bf16 %v24_v14, %v23_v12  ;;  %v26_v17 = vld [vmem:[%s386_s0 + $0x58] sm:$0xff]  ;;  %v213_v19 = vld [vmem:[%s387_s2] ss:$0 sm:$0xff] }
   0x6   :  { %254 = vmatprep.mubr.msk.bf16.mxu0 %vm48_vm0, %v27_v9  ;;  %259 = vmatmul.mubr.msk.bf16.vlgmr.msra.gmra.mxu1 %vm48_vm0, %v30_v8  ;;  %v32_v18 = vpack.c.bf16 %v26_v17, %v25_v16 }
   0x7   :  { %255 = vmatmul.mubr.msk.bf16.vlgmr.msra.gmra.mxu0 %vm48_vm0, %v28_v13  ;;  %262 = vmatprep.mubr.msk.bf16.mxu1 %vm48_vm0, %v31_v15 }
   0xe   :  { %263 = vmatmul.mubr.msk.bf16.gmra.mxu1 %vm48_vm0, %v32_v18 }
  0xc6   :  { %v260_v20 = vpop.f32.mrf.mxu1 }
  0xc7   :  { %v256_v21 = vpop.f32.mrf.mxu0  ;;  %v126_v22 = vadd.f32 %v260_v20, %v213_v19 }
  0xc8   :  { %v110_v23 = vadd.f32 %v256_v21, %v213_v19  ;;  %v117_v24 = vpop.f32.mrf.mxu1 }
  0xc9   :  { %v101_v25 = vpop.f32.mrf.mxu0  ;;  %v239_v26 = vpack.c.bf16 %v126_v22, %v126_v22  ;;  %v118_v28 = vadd.f32 %v213_v19, %v117_v24 }
  0xca   :  { %v235_v27 = vpack.c.bf16 %v110_v23, %v110_v23  ;;  %v102_v29 = vadd.f32 %v213_v19, %v101_v25  ;;  %v261_v30 = vpop.f32.mrf.mxu1 }
  0xcb   :  { %v257_v31 = vpop.f32.mrf.mxu0  ;;  %203 = vst.msk [vmem:[%s388_s3 + $0x18] sm:$0xf] %vm196_vm1, %v239_v26  ;;  %v237_v32 = vpack.c.bf16 %v118_v28, %v118_v28  ;;  %v129_v34 = vadd.f32 %v261_v30, %v213_v19 }
  0xcc   :  { %199 = vst.msk [vmem:[%s388_s3 + $0x8] sm:$0xf] %vm196_vm1, %v235_v27  ;;  %v233_v33 = vpack.c.bf16 %v102_v29, %v102_v29  ;;  %v113_v35 = vadd.f32 %v257_v31, %v213_v19  ;;  %v120_v36 = vpop.f32.mrf.mxu1 }
  0xcd   :  { %v104_v37 = vpop.f32.mrf.mxu0  ;;  %201 = vst.msk [vmem:[%s388_s3 + $0x10] sm:$0xf] %vm196_vm1, %v237_v32  ;;  %v240_v38 = vpack.c.bf16 %v129_v34, %v129_v34  ;;  %v121_v40 = vadd.f32 %v213_v19, %v120_v36 }
  0xce   :  { %197 = vst.msk [vmem:[%s388_s3] sm:$0xf] %vm196_vm1, %v233_v33  ;;  %v236_v39 = vpack.c.bf16 %v113_v35, %v113_v35  ;;  %v105_v41 = vadd.f32 %v213_v19, %v104_v37  ;;  %v264_v42 = vpop.f32.mrf.mxu1 }
  0xcf   :  { %204 = vst.msk [vmem:[%s388_s3 + $0x1c] sm:$0xf] %vm196_vm1, %v240_v38  ;;  %v238_v43 = vpack.c.bf16 %v121_v40, %v121_v40  ;;  %v142_v45 = vadd.f32 %v264_v42, %v213_v19 }
  0xd0   :  { %200 = vst.msk [vmem:[%s388_s3 + $0xc] sm:$0xf] %vm196_vm1, %v236_v39  ;;  %v234_v44 = vpack.c.bf16 %v105_v41, %v105_v41  ;;  %v133_v46 = vpop.f32.mrf.mxu1 }
  0xd1   :  { %202 = vst.msk [vmem:[%s388_s3 + $0x14] sm:$0xf] %vm196_vm1, %v238_v43  ;;  %v243_v47 = vpack.c.bf16 %v142_v45, %v142_v45  ;;  %v134_v48 = vadd.f32 %v213_v19, %v133_v46 }
  0xd2   :  { %198 = vst.msk [vmem:[%s388_s3 + $0x4] sm:$0xf] %vm196_vm1, %v234_v44  ;;  %v265_v49 = vpop.f32.mrf.mxu1 }
  0xd3   :  { %207 = vst.msk [vmem:[%s388_s3 + $0x28] sm:$0xf] %vm196_vm1, %v243_v47  ;;  %v241_v50 = vpack.c.bf16 %v134_v48, %v134_v48  ;;  %v145_v51 = vadd.f32 %v265_v49, %v213_v19 }
  0xd4   :  { %v136_v52 = vpop.f32.mrf.mxu1 }
  0xd5   :  { %205 = vst.msk [vmem:[%s388_s3 + $0x20] sm:$0xf] %vm196_vm1, %v241_v50  ;;  %v244_v53 = vpack.c.bf16 %v145_v51, %v145_v51  ;;  %v137_v54 = vadd.f32 %v213_v19, %v136_v52 }
  0xd7   :  { %208 = vst.msk [vmem:[%s388_s3 + $0x2c] sm:$0xf] %vm196_vm1, %v244_v53  ;;  %v242_v55 = vpack.c.bf16 %v137_v54, %v137_v54 }
  0xd9   :  { %206 = vst.msk [vmem:[%s388_s3 + $0x24] sm:$0xf] %vm196_vm1, %v242_v55 }

// kernel: slner_forward.11
= control target key start
LH: loop header
LB: loop body
LE: loop exit
PB: predicated region body
PF: predicated region fallthrough
CT: control target
= control target key end

     0   :  { %v353_v0 = vmov 0.0   ;;  %vm354_vm0 = vmmov 0   ;;  %vm53_vm1 = vcmask 130048   ;;  %vm216_vm2 = vcmask 261120   ;;  %s457_s4 = inlined_call_operand.vmem [shape: bf16[16,32], index: 4, kind: input, shape index: {}]   ;;  %s458_s3 = inlined_call_operand.vmem [shape: bf16[16,32], index: 3, kind: input, shape index: {}]   ;;  %s459_s1 = inlined_call_operand.vmem [shape: f32[16,16], index: 1, kind: input, shape index: {}]   ;;  %s460_s0 = inlined_call_operand.vmem [shape: f32[16,16], index: 0, kind: input, shape index: {}]   ;;  %s461_s5 = inlined_call_operand.vmem [shape: bf16[16,32], index: 5, kind: input, shape index: {}]   ;;  %s462_s2 = inlined_call_operand.vmem [shape: f32[16,16], index: 2, kind: input, shape index: {}]   ;;  %s463_s7 = inlined_call_operand.vmem [shape: bf16[32,128], index: 7, kind: input, shape index: {}]   ;;  %s464_s6 = inlined_call_operand.vmem [shape: f32[1,32], index: 6, kind: input, shape index: {}]   ;;  %s465_s8 = inlined_call_operand.vmem [shape: f32[1,128], index: 8, kind: input, shape index: {}]   ;;  %s466_s9 = inlined_call_operand.vmem [shape: f32[16,128], index: 9, kind: output, shape index: {}]  }
   0x1   :  { %316 = vmatprep.subr.bf16.mxu0 %v353_v0  ;;  %322 = vmatprep.subr.bf16.mxu1 %v353_v0  ;;  %v344_v1 = vld [vmem:[%s457_s4] sm:$0xff]   ;;  %v43_v4 = vld [vmem:[%s459_s1 + $0x8] sm:$0xff] }
   0x2   :  { %v345_v2 = vld [vmem:[%s458_s3] sm:$0xff]   ;;  %318 = vmatprep.mubr.msk.bf16.mxu0 %vm354_vm0, %v353_v0  ;;  %324 = vmatprep.mubr.msk.bf16.mxu1 %vm354_vm0, %v353_v0  ;;  %v38_v7 = vld [vmem:[%s460_s0 + $0x8] sm:$0xff] }
   0x3   :  { %317 = vmatpush3.bf16.msra.mxu0 %v344_v1  ;;  %v42_v3 = vld [vmem:[%s459_s1] sm:$0xff]  ;;  %323 = vmatpush3.bf16.msra.mxu1 %v345_v2  ;;  %v149_v11 = vld [vmem:[%s462_s2 + $0x8] sm:$0xff] }
   0x4   :  { %v37_v5 = vld [vmem:[%s460_s0] sm:$0xff]  ;;  %v44_v6 = vpack.c.bf16 %v43_v4, %v42_v3  ;;  %328 = vmatprep.subr.bf16.mxu0 %v353_v0  ;;  %334 = vmatprep.subr.bf16.mxu1 %v353_v0  ;;  %v347_v13 = vld [vmem:[%s463_s7 + $0x8] sm:$0xff]  }
   0x5   :  { %v39_v8 = vpack.c.bf16 %v38_v7, %v37_v5  ;;  %v346_v9 = vld [vmem:[%s461_s5] sm:$0xff]  }
   0x6   :  { %319 = vmatmul.mubr.msk.bf16.vlgmr.msra.gmra.mxu0 %vm53_vm1, %v44_v6  ;;  %v148_v10 = vld [vmem:[%s462_s2] sm:$0xff] }
   0x7   :  { %325 = vmatmul.mubr.msk.bf16.vlgmr.msra.gmra.mxu1 %vm53_vm1, %v39_v8  ;;  %329 = vmatpush3.bf16.msra.mxu0 %v346_v9  ;;  %v150_v12 = vpack.c.bf16 %v149_v11, %v148_v10  ;;  %v348_v14 = vld [vmem:[%s463_s7] sm:$0xff]  }
   0x8   :  { %330 = vmatprep.mubr.msk.bf16.mxu0 %vm354_vm0, %v353_v0  ;;  %338 = vmatprep.mubr.msk.bf16.mxu1 %vm354_vm0, %v353_v0  ;;  %v302_v25 = vld [vmem:[%s464_s6] ss:$0 sm:$0xff] }
   0x9   :  { %335 = vmatpush3.bf16.msra.mxu1 %v347_v13  ;;  %v303_v39 = vld [vmem:[%s465_s8] ss:$0 sm:$0xff] }
   0xa   :  { %336 = vmatprep.subr.bf16.mxu1 %v353_v0 }
   0xd   :  { %337 = vmatpush3.bf16.msra.mxu1 %v348_v14 }
   0xe   :  { %331 = vmatmul.mubr.msk.bf16.vlgmr.msra.gmra.mxu0 %vm53_vm1, %v150_v12 }
  0xc6   :  { %v91_v15 = vpop.f32.mrf.mxu0 }
  0xc7   :  { %v141_v16 = vpop.f32.mrf.mxu1 }
  0xc8   :  { %v320_v17 = vpop.f32.mrf.mxu0  ;;  %v142_v22 = vadd.f32 %v141_v16, %v91_v15 }
  0xc9   :  { %v326_v18 = vpop.f32.mrf.mxu1 }
  0xca   :  { %v94_v19 = vpop.f32.mrf.mxu0 }
  0xcb   :  { %v144_v20 = vpop.f32.mrf.mxu1 }
  0xcc   :  { %v321_v21 = vpop.f32.mrf.mxu0  ;;  %v145_v28 = vadd.f32 %v144_v20, %v94_v19 }
  0xcd   :  { %v327_v23 = vpop.f32.mrf.mxu1 }
  0xce   :  { %v196_v24 = vpop.f32.mrf.mxu0 }
  0xcf   :  { %v203_v26 = vadd.f32 %v196_v24, %v142_v22 }
  0xd0   :  { %v332_v27 = vpop.f32.mrf.mxu0 }
  0xd1   :  { %v212_v29 = vadd.f32 %v302_v25, %v203_v26 }
  0xd2   :  { %v199_v30 = vpop.f32.mrf.mxu0 }
  0xd3   :  { %349 = vtanh.f32 %v212_v29  ;;  %v204_v31 = vadd.f32 %v199_v30, %v145_v28 }
  0xd4   :  { %v333_v32 = vpop.f32.mrf.mxu0 }
  0xd5   :  { %v213_v33 = vadd.f32 %v302_v25, %v204_v31 }
  0xd7   :  { %351 = vtanh.f32 %v213_v33 }
  0xe0   :  { %v350_v34 = vpop.eup %349 }
  0xe1   :  { %217 = vst.msk [vmem:[#allocation2] sm:$0xff] %vm216_vm2, %v350_v34 }
  0xe4   :  { %v352_v35 = vpop.eup %351 }
  0xe5   :  { %218 = vst.msk [vmem:[#allocation2 + $0x8] sm:$0xff] %vm216_vm2, %v352_v35 }
  0xe8   :  { %v219_v36 = vld [vmem:[#allocation2] sm:$0xff] }
  0xec   :  { %v220_v37 = vld [vmem:[#allocation2 + $0x8] sm:$0xff] }
  0xed   :  { %v221_v38 = vpack.c.bf16 %v220_v37, %v219_v36 }
  0xef   :  { %339 = vmatmul.mubr.msk.bf16.vlgmr.msra.gmra.mxu1 %vm216_vm2, %v221_v38 }
 0x1af   :  { %v283_v40 = vpop.f32.mrf.mxu1 }
 0x1b0   :  { %v284_v41 = vadd.f32 %v303_v39, %v283_v40 }
 0x1b1   :  { %v340_v42 = vpop.f32.mrf.mxu1 }
 0x1b2   :  { %290 = vst [vmem:[%s466_s9] sm:$0xff] %v284_v41 }
 0x1b3   :  { %v286_v43 = vpop.f32.mrf.mxu1 }
 0x1b4   :  { %v287_v44 = vadd.f32 %v303_v39, %v286_v43 }
 0x1b5   :  { %v341_v45 = vpop.f32.mrf.mxu1 }
 0x1b6   :  { %291 = vst [vmem:[%s466_s9 + $0x8] sm:$0xff] %v287_v44 }

// kernel: slner_forward.12
= control target key start
LH: loop header
LB: loop body
LE: loop exit
PB: predicated region body
PF: predicated region fallthrough
CT: control target
= control target key end

     0   :  { %v318_v1 = vmov 0.0   ;;  %vm319_vm0 = vmmov 0   ;;  %vm48_vm1 = vcmask 130048   ;;  %s396_s0 = inlined_call_operand.vmem [shape: f32[16,16], index: 0, kind: input, shape index: {}]   ;;  %s397_s1 = inlined_call_operand.vmem [shape: f32[16,16], index: 1, kind: input, shape index: {}]   ;;  %s398_s2 = inlined_call_operand.vmem [shape: bf16[16,32], index: 2, kind: input, shape index: {}]   ;;  %s399_s3 = inlined_call_operand.vmem [shape: bf16[16,32], index: 3, kind: input, shape index: {}]   ;;  %s400_s4 = inlined_call_operand.vmem [shape: f32[1,32], index: 4, kind: input, shape index: {}]   ;;  %s401_s5 = inlined_call_operand.vmem [shape: bf16[32,64], index: 5, kind: input, shape index: {}]   ;;  %s402_s6 = inlined_call_operand.vmem [shape: f32[1,64], index: 6, kind: input, shape index: {}]   ;;  %s403_s7 = inlined_call_operand.hbm [shape: f32[16,64], index: 7, kind: output, shape index: {}]  }
   0x1   :  { %v288_v0 = vld [vmem:[%s399_s3] sm:$0xff]   ;;  %263 = vmatprep.subr.bf16.mxu0 %v318_v1  ;;  %269 = vmatprep.subr.bf16.mxu1 %v318_v1  ;;  %v38_v4 = vld [vmem:[%s397_s1 + $0x8] sm:$0xff] }
   0x2   :  { %v289_v2 = vld [vmem:[%s398_s2] sm:$0xff]   ;;  %264 = vmatpush3.bf16.msra.mxu0 %v288_v0  ;;  %265 = vmatprep.mubr.msk.bf16.mxu0 %vm319_vm0, %v318_v1  ;;  %v33_v7 = vld [vmem:[%s396_s0 + $0x8] sm:$0xff] }
   0x3   :  { %v37_v3 = vld [vmem:[%s397_s1] sm:$0xff]  ;;  %270 = vmatpush3.bf16.msra.mxu1 %v289_v2  ;;  %271 = vmatprep.mubr.msk.bf16.mxu1 %vm319_vm0, %v318_v1 }
   0x4   :  { %v32_v5 = vld [vmem:[%s396_s0] sm:$0xff]  ;;  %v39_v6 = vpack.c.bf16 %v38_v4, %v37_v3  ;;  %275 = vmatprep.subr.bf16.mxu0 %v318_v1 }
   0x5   :  { %v34_v8 = vpack.c.bf16 %v33_v7, %v32_v5 }
   0x6   :  { %12 = vsyncpa [#allocation4], 0  ;;  %266 = vmatmul.mubr.msk.bf16.vlgmr.msra.gmra.mxu0 %vm48_vm1, %v39_v6  ;;  %v290_v9 = vld [vmem:[%s401_s5 + $0x8] sm:$0xff]   ;;  %v291_v10 = vld [vmem:[%s401_s5] sm:$0xff]   ;;  %vm154_vm2 = vcmask 261120   ;;  %vm228_vm3 = vcmask 523264  }
   0x7   :  { %272 = vmatmul.mubr.msk.bf16.vlgmr.msra.gmra.mxu1 %vm48_vm1, %v34_v8  ;;  %279 = vmatprep.mubr.msk.bf16.mxu0 %vm319_vm0, %v318_v1  ;;  %v251_v13 = vld [vmem:[%s400_s4] ss:$0 sm:$0xff]  ;;  %s320_s15 = smov [#allocation3]  }
   0x8   :  { %276 = vmatpush3.bf16.msra.mxu0 %v290_v9  ;;  %v252_v29 = vld [vmem:[%s402_s6] ss:$0 sm:$0xff]  ;;  %s236_s16 = sshll.u32 %s320_s15, 4  ;;  %s237_s16 = int_to_ptr.vmem [resolvable:$true] %s236_s16 }
   0x9   :  { %277 = vmatprep.subr.bf16.mxu0 %v318_v1  ;;  %s296_s17 = scalar_lea.vmem %s237_s16, 256  ;;  %p301_p1 = scmp.lt.s32.totalorder %s237_s16, %s237_s16 }
   0xa   :  { %p297_p0 = scmp.ne.s32.totalorder %s237_s16, %s296_s17  ;;  %p302_p2 = scmp.lt.s32.totalorder %s296_s17, %s296_s17 }
   0xc   :  { %278 = vmatpush3.bf16.msra.mxu0 %v291_v10  ;;  %p303_p3 = por %p302_p2, %p301_p1 }
   0xe   :  { %p304_p4 = pnand %p303_p3, %p297_p0 }
  0xc6   :  { %v86_v11 = vpop.f32.mrf.mxu0 }
  0xc7   :  { %v136_v12 = vpop.f32.mrf.mxu1 }
  0xc8   :  { %v137_v14 = vadd.f32 %v136_v12, %v86_v11  ;;  %v267_v15 = vpop.f32.mrf.mxu0 }
  0xc9   :  { %v273_v16 = vpop.f32.mrf.mxu1 }
  0xca   :  { %v150_v17 = vadd.f32 %v251_v13, %v137_v14  ;;  %v89_v18 = vpop.f32.mrf.mxu0 }
  0xcb   :  { %v139_v19 = vpop.f32.mrf.mxu1 }
  0xcc   :  { %292 = vtanh.f32 %v150_v17  ;;  %v140_v20 = vadd.f32 %v139_v19, %v89_v18  ;;  %v268_v21 = vpop.f32.mrf.mxu0 }
  0xcd   :  { %v274_v22 = vpop.f32.mrf.mxu1 }
  0xce   :  { %v151_v23 = vadd.f32 %v251_v13, %v140_v20 }
  0xd0   :  { %294 = vtanh.f32 %v151_v23 }
  0xd9   :  { %v293_v24 = vpop.eup %292 }
  0xda   :  { %155 = vst.msk [vmem:[#allocation2] sm:$0xff] %vm154_vm2, %v293_v24 }
  0xdd   :  { %v295_v25 = vpop.eup %294 }
  0xde   :  { %156 = vst.msk [vmem:[#allocation2 + $0x8] sm:$0xff] %vm154_vm2, %v295_v25 }
  0xe1   :  { %v157_v26 = vld [vmem:[#allocation2] sm:$0xff] }
  0xe5   :  { %v158_v27 = vld [vmem:[#allocation2 + $0x8] sm:$0xff] }
  0xe6   :  { %v159_v28 = vpack.c.bf16 %v158_v27, %v157_v26 }
  0xe8   :  { %280 = vmatmul.mubr.msk.bf16.vlgmr.msra.gmra.mxu0 %vm154_vm2, %v159_v28 }
 0x1a8   :  { %v221_v30 = vpop.f32.mrf.mxu0 }
 0x1a9   :  { %v222_v31 = vadd.f32 %v252_v29, %v221_v30 }
 0x1aa   :  { %v281_v32 = vpop.f32.mrf.mxu0 }
 0x1ab   :  { %229 = vst.msk [vmem:[#allocation3] sm:$0xff] %vm228_vm3, %v222_v31 }
 0x1ac   :  { %v224_v33 = vpop.f32.mrf.mxu0 }
 0x1ad   :  { %v225_v34 = vadd.f32 %v252_v29, %v224_v33 }
 0x1ae   :  { %v282_v35 = vpop.f32.mrf.mxu0 }
 0x1af   :  { %230 = vst.msk [vmem:[#allocation3 + $0x8] sm:$0xff] %vm228_vm3, %v225_v34 }
 0x1b0   :  { %307 = shalt.err (!%p304_p4)
}
 0x1b1   :  { %s321_s6 = smov 128   ;;  %s322_s18 = smov 8  }
 0x1b2   :  { %242 = dma.vmem_to_hbm [thread:$0]  %s237_s16, 256, %s403_s7, [#allocation4], %s321_s6, %s321_s6, %s322_s18  }
 0x1b3   :  { %316 = dma.done.wait [#allocation4], 256  }
 0x1b4   :  { %317 = vsyncadd [#allocation4], 4294967040 }
 0x1b5   :  { %246 = vsyncpa [#allocation4], 1 }

// kernel: slner_forward.8
= control target key start
LH: loop header
LB: loop body
LE: loop exit
PB: predicated region body
PF: predicated region fallthrough
CT: control target
= control target key end

     0   :  { %vm52_vm0 = vcmask 123904   ;;  %v2653_v0 = vmov 0.0   ;;  %vm2654_vm1 = vmmov 0   ;;  %vm76_vm2 = vcmask 130048   ;;  %s2655_s30 = smov 96   ;;  %s2656_s6 = smov 16   ;;  %s3474_s2 = inlined_call_operand.vmem [shape: bf16[16,64], index: 2, kind: input, shape index: {}]   ;;  %s3475_s3 = inlined_call_operand.vmem [shape: bf16[16,64], index: 3, kind: input, shape index: {}]   ;;  %s3476_s0 = inlined_call_operand.vmem [shape: bf16[2,8,64], index: 0, kind: input, shape index: {}]   ;;  %s3477_s1 = inlined_call_operand.vmem [shape: bf16[2,8,64], index: 1, kind: input, shape index: {}]   ;;  %s3478_s4 = inlined_call_operand.vmem [shape: f32[2,8,16], index: 4, kind: output, shape index: {0}]   ;;  %s3479_s5 = inlined_call_operand.vmem [shape: f32[2,8,16], index: 5, kind: output, shape index: {1}]  }
   0x1   :  { %2290 = vmatprep.subr.bf16.mxu0 %v2653_v0  ;;  %2296 = vmatprep.subr.bf16.mxu1 %v2653_v0  ;;  %v2695_v1 = vld [vmem:[%s3474_s2] sm:$0xff]   ;;  %53 = vst.msk [vmem:[#allocation2] sm:$0x3] %vm52_vm0, %v2653_v0  ;;  %54 = vst.msk [vmem:[#allocation3] sm:$0x3] %vm52_vm0, %v2653_v0  ;;  %s2657_s7 = smov 32  }
   0x2   :  { %55 = vst.msk [vmem:[#allocation4] sm:$0x3] %vm52_vm0, %v2653_v0  ;;  %56 = vst.msk [vmem:[#allocation5] sm:$0x3] %vm52_vm0, %v2653_v0  ;;  %v2708_v2 = vld [vmem:[%s3475_s3] sm:$0xff]   ;;  %2292 = vmatprep.mubr.msk.bf16.mxu0 %vm2654_vm1, %v2653_v0  ;;  %2298 = vmatprep.mubr.msk.bf16.mxu1 %vm2654_vm1, %v2653_v0  ;;  %vm333_vm3 = vcmask 1041409  }
   0x3   :  { %2291 = vmatpush3.bf16.msra.mxu0 %v2695_v1  ;;  %2297 = vmatpush3.bf16.msra.mxu1 %v2708_v2  ;;  %v66_v7 = vld [vmem:[%s3476_s0 + $0x4] sm:$0x1]  ;;  %v65_v8 = vld [vmem:[%s3476_s0] sm:$0x1]  ;;  %v182_v10 = vld [vmem:[%s3477_s1] sm:$0x8] }
   0x4   :  { %2302 = vmatprep.subr.bf16.mxu0 %v2653_v0  ;;  %2308 = vmatprep.subr.bf16.mxu1 %v2653_v0  ;;  %v68_v9 = vunpack.c.l.bf16 %v66_v7  ;;  %v67_v11 = vunpack.c.l.bf16 %v65_v8  ;;  %v184_v15 = vunpack.c.l.bf16 %v182_v10  ;;  %v183_v20 = vld [vmem:[%s3477_s1 + $0x4] sm:$0x8]  ;;  %s2658_s8 = smov 80   ;;  %vm308_vm4 = vcmask 122880  }
   0x5   :  { %v185_v24 = vunpack.c.l.bf16 %v183_v20  ;;  %vm319_vm5 = vcmask 130055   ;;  %vm569_vm6 = vcmask 123905   ;;  %vm580_vm7 = vcmask 129030  }
   0x6   :  { %vm830_vm8 = vcmask 124930   ;;  %vm841_vm9 = vcmask 128005   ;;  %vm1092_vm10 = vcmask 125955   ;;  %vm1103_vm11 = vcmask 126980  }
   0x8   :  { %v61_v3 = vld [vmem:[#allocation2] sm:$0x3]  ;;  %v62_v37 = vld [vmem:[#allocation3] sm:$0x3] }
   0x9   :  { %v63_v4 = vld [vmem:[#allocation4] sm:$0x3]  ;;  %v69_v5 = vpack.c.bf16 %v61_v3, %v61_v3  ;;  %v64_v32 = vld [vmem:[#allocation5] sm:$0x3]  ;;  %v141_v38 = vrot.slane %v62_v37, 1 }
   0xa   :  { %v186_v6 = vpack.c.bf16 %v63_v4, %v63_v4  ;;  %v259_v34 = vrot.slane %v64_v32, 2  ;;  %v258_v36 = vrot.slane %v64_v32, 1 }
   0xb   :  { %2293 = vmatmul.mubr.msk.bf16.vlgmr.msra.gmra.mxu0 %vm76_vm2, %v69_v5 }
   0xc   :  { %2299 = vmatmul.mubr.msk.bf16.vlgmr.msra.gmra.mxu1 %vm76_vm2, %v186_v6  ;;  %2303 = vmatpush3.bf16.msra.mxu0 %v2695_v1 }
   0xd   :  { %2309 = vmatpush3.bf16.msra.mxu1 %v2708_v2  ;;  %2310 = vmatprep.mubr.msk.bf16.mxu1 %vm2654_vm1, %v2653_v0 }
   0xe   :  { %2304 = vmatprep.mubr.msk.bf16.mxu0 %vm2654_vm1, %v2653_v0  ;;  %2320 = vmatprep.subr.bf16.mxu1 %v2653_v0 }
   0xf   :  { %2314 = vmatprep.subr.bf16.mxu0 %v2653_v0 }
  0xcb   :  { %v114_v12 = vpop.f32.mrf.mxu0 }
  0xcc   :  { %v230_v13 = vpop.f32.mrf.mxu1  ;;  %v121_v14 = vrot.slane %v114_v12, 1  ;;  %v124_v21 = vadd.f32 %v114_v12, %v67_v11 }
  0xcd   :  { %v237_v16 = vrot.slane %v230_v13, 1  ;;  %v2294_v17 = vpop.f32.mrf.mxu0  ;;  %v238_v25 = vrot.slane %v230_v13, 2 }
  0xce   :  { %v2300_v18 = vpop.f32.mrf.mxu1  ;;  %v125_v19 = vadd.f32 %v121_v14, %v68_v9  ;;  %v2210_v40 = vmul.f32 -1.442695, %v124_v21 }
  0xcf   :  { %v117_v22 = vpop.f32.mrf.mxu0  ;;  %v241_v26 = vadd.f32 %v237_v16, %v184_v15  ;;  %v242_v29 = vadd.f32 %v238_v25, %v185_v24 }
  0xd0   :  { %v233_v23 = vpop.f32.mrf.mxu1  ;;  %2395 = vtanh.f32 %v125_v19  ;;  %v2211_v42 = vmul.f32 -1.442695, %v125_v19 }
  0xd1   :  { %v2295_v27 = vpop.f32.mrf.mxu0  ;;  %2397 = vtanh.f32 %v124_v21  ;;  %v2214_v39 = vmul.f32 -1.442695, %v241_v26  ;;  %v2215_v41 = vmul.f32 -1.442695, %v242_v29 }
  0xd2   :  { %v2301_v28 = vpop.f32.mrf.mxu1  ;;  %2399 = vtanh.f32 %v241_v26 }
  0xd3   :  { %2401 = vtanh.f32 %v242_v29 }
  0xd4   :  { %2403 = vpow2.f32 %v2214_v39 }
  0xd5   :  { %2405 = vpow2.f32 %v2210_v40 }
  0xd6   :  { %2407 = vpow2.f32 %v2215_v41 }
  0xd7   :  { %2409 = vpow2.f32 %v2211_v42 }
  0xdd   :  { %v2396_v30 = vpop.eup %2395 }
  0xde   :  { %154 = vrot.lane.b32.xlu1 %v2396_v30, %s2655_s30  ;;  %v2398_v31 = vpop.eup %2397 }
  0xdf   :  { %v2400_v33 = vpop.eup %2399 }
  0xe0   :  { %270 = vrot.lane.b32.xlu0 %v2400_v33, %s2655_s30  ;;  %v2402_v35 = vpop.eup %2401 }
  0xe1   :  { %v2404_v43 = vpop.eup %2403 }
  0xe2   :  { %152 = vrot.lane.b32.xlu1 %v2398_v31, %s2655_s30  ;;  %v2406_v44 = vpop.eup %2405  ;;  %v249_v45 = vadd.f32 1.0, %v2404_v43 }
  0xe3   :  { %v2408_v46 = vpop.eup %2407  ;;  %v132_v47 = vadd.f32 1.0, %v2406_v44 }
  0xe4   :  { %272 = vrot.lane.b32.xlu0 %v2402_v35, %s2655_s30  ;;  %v250_v48 = vadd.f32 1.0, %v2408_v46  ;;  %2411 = vrcp.f32 %v249_v45  ;;  %v2410_v49 = vpop.eup %2409 }
  0xe5   :  { %2413 = vrcp.f32 %v132_v47  ;;  %v133_v50 = vadd.f32 1.0, %v2410_v49  ;;  %v441_v47 = vld [vmem:[%s3477_s1] sm:$0x8] }
  0xe6   :  { %262 = vrot.lane.b32.xlu1 %v259_v34, %s2656_s6  ;;  %2415 = vrcp.f32 %v250_v48  ;;  %v442_v48 = vld [vmem:[%s3477_s1 + $0x4] sm:$0x8]  ;;  %v443_v49 = vunpack.c.l.bf16 %v441_v47 }
  0xe7   :  { %2417 = vrcp.f32 %v133_v50  ;;  %v444_v50 = vunpack.c.l.bf16 %v442_v48 }
  0xe8   :  { %260 = vrot.lane.b32.xlu0 %v258_v36, %s2656_s6 }
  0xea   :  { %142 = vrot.lane.b32.xlu1 %v62_v37, %s2656_s6 }
  0xec   :  { %144 = vrot.lane.b32.xlu0 %v141_v38, %s2656_s6 }
  0xf1   :  { %v2412_v52 = vpop.eup %2411 }
  0xf2   :  { %v2414_v56 = vpop.eup %2413 }
  0xf3   :  { %v2416_v58 = vpop.eup %2415 }
  0xf4   :  { %v2418_v61 = vpop.eup %2417 }
 0x150   :  { %v155_v51 = vpop.permute.xlu1 %154 }
 0x151   :  { %v159_v62 = vmul.f32 %v2418_v61, %v155_v51 }
 0x152   :  { %v271_v53 = vpop.permute.xlu0 %270 }
 0x153   :  { %v276_v55 = vmul.f32 %v2412_v52, %v271_v53 }
 0x154   :  { %v153_v54 = vpop.permute.xlu1 %152 }
 0x155   :  { %280 = vrot.lane.b32.xlu1 %v276_v55, %s2656_s6  ;;  %v158_v57 = vmul.f32 %v2414_v56, %v153_v54  ;;  %v323_v55 = vld [vmem:[%s3476_s0 + $0x4] sm:$0x1] }
 0x156   :  { %v273_v59 = vpop.permute.xlu0 %272 }
 0x157   :  { %v277_v60 = vmul.f32 %v2416_v58, %v273_v59 }
 0x158   :  { %v263_v63 = vpop.permute.xlu1 %262 }
 0x159   :  { %282 = vrot.lane.b32.xlu0 %v277_v60, %s2656_s6  ;;  %162 = vrot.lane.b32.xlu1 %v158_v57, %s2656_s6  ;;  %v267_v9 = vmul.f32 %v2416_v58, %v263_v63  ;;  %v325_v60 = vunpack.c.l.bf16 %v323_v55 }
 0x15a   :  { %v261_v3 = vpop.permute.xlu0 %260 }
 0x15b   :  { %v266_v5 = vmul.f32 %v2412_v52, %v261_v3 }
 0x15c   :  { %v143_v4 = vpop.permute.xlu1 %142 }
 0x15d   :  { %164 = vrot.lane.b32.xlu0 %v159_v62, %s2656_s6  ;;  %v148_v10 = vmul.f32 %v2414_v56, %v143_v4 }
 0x15e   :  { %v145_v6 = vpop.permute.xlu0 %144 }
 0x15f   :  { %v149_v15 = vmul.f32 %v2418_v61, %v145_v6 }
 0x1c7   :  { %v281_v7 = vpop.permute.xlu1 %280 }
 0x1c8   :  { %v2752_v8 = vadd.f32 %v281_v7, %v266_v5 }
 0x1ca   :  { %2419 = vtanh.f32 %v2752_v8 }
 0x1cb   :  { %v283_v11 = vpop.permute.xlu0 %282  ;;  %v163_v12 = vpop.permute.xlu1 %162 }
 0x1cc   :  { %v2755_v13 = vadd.f32 %v283_v11, %v267_v9  ;;  %v2757_v14 = vadd.f32 %v163_v12, %v148_v10 }
 0x1ce   :  { %2421 = vtanh.f32 %v2755_v13 }
 0x1cf   :  { %v165_v16 = vpop.permute.xlu0 %164  ;;  %2423 = vtanh.f32 %v2757_v14 }
 0x1d0   :  { %v2760_v17 = vadd.f32 %v165_v16, %v149_v15 }
 0x1d2   :  { %2425 = vtanh.f32 %v2760_v17  ;;  %v404_v55 = vrot.slane %v2760_v17, 7 }
 0x1d7   :  { %v2420_v18 = vpop.eup %2419 }
 0x1d8   :  { %292 = vrot.lane.b32.xlu0 %v2420_v18, %s2657_s7 }
 0x1db   :  { %v2422_v19 = vpop.eup %2421 }
 0x1dc   :  { %294 = vrot.lane.b32.xlu1 %v2422_v19, %s2657_s7  ;;  %v2424_v20 = vpop.eup %2423 }
 0x1df   :  { %v2426_v21 = vpop.eup %2425 }
 0x1e0   :  { %176 = vrot.lane.b32.xlu0 %v2426_v21, %s2657_s7  ;;  %174 = vrot.lane.b32.xlu1 %v2424_v20, %s2657_s7 }
 0x24a   :  { %v293_v22 = vpop.permute.xlu0 %292 }
 0x24b   :  { %v2768_v23 = vmul.f32 %v2412_v52, %v293_v22  ;;  %v322_v52 = vld [vmem:[%s3476_s0] sm:$0x1] }
 0x24c   :  { %v324_v59 = vunpack.c.l.bf16 %v322_v52 }
 0x24d   :  { %v445_v24 = vpack.c.bf16 %v2768_v23, %v2768_v23 }
 0x24e   :  { %v295_v25 = vpop.permute.xlu1 %294 }
 0x24f   :  { %v2772_v26 = vmul.f32 %v2416_v58, %v295_v25  ;;  %v449_v27 = vunpack.c.l.b16 %v445_v24 }
 0x251   :  { %v446_v28 = vpack.c.bf16 %v2772_v26, %v2772_v26  ;;  %v451_v34 = vrot.slane %v449_v27, 7 }
 0x252   :  { %v177_v29 = vpop.permute.xlu0 %176  ;;  %v175_v30 = vpop.permute.xlu1 %174 }
 0x253   :  { %v450_v31 = vunpack.c.l.b16 %v446_v28  ;;  %v2776_v32 = vmul.f32 %v2418_v61, %v177_v29  ;;  %v2778_v33 = vmul.f32 %v2414_v56, %v175_v30 }
 0x255   :  { %v452_v35 = vrot.slane %v450_v31, 6  ;;  %v327_v36 = vpack.c.bf16 %v2776_v32, %v2776_v32  ;;  %v326_v37 = vpack.c.bf16 %v2778_v33, %v2778_v33 }
 0x257   :  { %v331_v38 = vunpack.c.l.b16 %v327_v36  ;;  %v453_v39 = vsel %vm333_vm3, %v452_v35, %v451_v34  ;;  %v330_v42 = vunpack.c.l.b16 %v326_v37 }
 0x258   :  { %v454_v40 = vpack.c.b16 %v453_v39, %v453_v39 }
 0x259   :  { %v332_v41 = vrot.slane %v331_v38, 7 }
 0x25a   :  { %455 = vrot.lane.b32.xlu0 %v454_v40, %s2658_s8 }
 0x25b   :  { %v334_v43 = vsel %vm333_vm3, %v332_v41, %v330_v42 }
 0x25c   :  { %v335_v44 = vpack.c.b16 %v334_v43, %v334_v43 }
 0x25e   :  { %336 = vrot.lane.b32.xlu1 %v335_v44, %s2658_s8 }
 0x2cc   :  { %v456_v45 = vpop.permute.xlu0 %455 }
 0x2cd   :  { %2311 = vmatmul.mubr.msk.bf16.vlgmr.msra.gmra.mxu1 %vm76_vm2, %v456_v45  ;;  %v523_v45 = vrot.slane %v2752_v8, 1 }
 0x2ce   :  { %2321 = vmatpush3.bf16.msra.mxu1 %v2708_v2  ;;  %2322 = vmatprep.mubr.msk.bf16.mxu1 %vm2654_vm1, %v2653_v0 }
 0x2cf   :  { %2332 = vmatprep.subr.bf16.mxu1 %v2653_v0 }
 0x2d0   :  { %v337_v46 = vpop.permute.xlu1 %336 }
 0x2d1   :  { %2305 = vmatmul.mubr.msk.bf16.vlgmr.msra.gmra.mxu0 %vm76_vm2, %v337_v46  ;;  %v524_v46 = vrot.slane %v2755_v13, 1 }
 0x2d2   :  { %2315 = vmatpush3.bf16.msra.mxu0 %v2695_v1  ;;  %2316 = vmatprep.mubr.msk.bf16.mxu0 %vm2654_vm1, %v2653_v0 }
 0x2d3   :  { %2326 = vmatprep.subr.bf16.mxu0 %v2653_v0 }
 0x38d   :  { %v494_v51 = vpop.f32.mrf.mxu1 }
 0x38e   :  { %v501_v53 = vrot.slane %v494_v51, 2  ;;  %v502_v54 = vrot.slane %v494_v51, 3 }
 0x38f   :  { %v2312_v56 = vpop.f32.mrf.mxu1 }
 0x390   :  { %v505_v57 = vadd.f32 %v501_v53, %v443_v49  ;;  %v506_v58 = vadd.f32 %v502_v54, %v444_v50  ;;  %v403_v50 = vrot.slane %v2757_v14, 7 }
 0x391   :  { %v375_v61 = vpop.f32.mrf.mxu0  ;;  %v497_v62 = vpop.f32.mrf.mxu1 }
 0x392   :  { %2427 = vtanh.f32 %v505_v57  ;;  %v382_v63 = vrot.slane %v375_v61, 7  ;;  %v386_v6 = vadd.f32 %v375_v61, %v325_v60  ;;  %v2220_v16 = vmul.f32 -1.442695, %v505_v57 }
 0x393   :  { %2429 = vtanh.f32 %v506_v58  ;;  %v2306_v3 = vpop.f32.mrf.mxu0  ;;  %v2313_v4 = vpop.f32.mrf.mxu1  ;;  %v2221_v18 = vmul.f32 -1.442695, %v506_v58 }
 0x394   :  { %v385_v5 = vadd.f32 %v382_v63, %v324_v59  ;;  %v2218_v20 = vmul.f32 -1.442695, %v386_v6 }
 0x395   :  { %v378_v7 = vpop.f32.mrf.mxu0 }
 0x396   :  { %2431 = vtanh.f32 %v385_v5  ;;  %v2217_v19 = vmul.f32 -1.442695, %v385_v5 }
 0x397   :  { %v2307_v9 = vpop.f32.mrf.mxu0  ;;  %2433 = vtanh.f32 %v386_v6 }
 0x398   :  { %2435 = vpow2.f32 %v2220_v16 }
 0x399   :  { %2437 = vpow2.f32 %v2221_v18 }
 0x39a   :  { %2439 = vpow2.f32 %v2217_v19 }
 0x39b   :  { %2441 = vpow2.f32 %v2218_v20 }
 0x39f   :  { %v2428_v10 = vpop.eup %2427 }
 0x3a0   :  { %v2430_v11 = vpop.eup %2429  ;;  %531 = vrot.lane.b32.xlu0 %v2428_v10, %s2655_s30 }
 0x3a1   :  { %533 = vrot.lane.b32.xlu1 %v2430_v11, %s2655_s30 }
 0x3a3   :  { %v2432_v12 = vpop.eup %2431 }
 0x3a4   :  { %411 = vrot.lane.b32.xlu0 %v2432_v12, %s2655_s30  ;;  %v2434_v15 = vpop.eup %2433 }
 0x3a5   :  { %413 = vrot.lane.b32.xlu1 %v2434_v15, %s2655_s30  ;;  %v2436_v21 = vpop.eup %2435 }
 0x3a6   :  { %v2438_v22 = vpop.eup %2437  ;;  %v513_v24 = vadd.f32 1.0, %v2436_v21 }
 0x3a7   :  { %v2440_v25 = vpop.eup %2439  ;;  %v514_v27 = vadd.f32 1.0, %v2438_v22 }
 0x3a8   :  { %v2442_v28 = vpop.eup %2441  ;;  %2443 = vrcp.f32 %v513_v24  ;;  %v393_v29 = vadd.f32 1.0, %v2440_v25 }
 0x3a9   :  { %2445 = vrcp.f32 %v514_v27  ;;  %v394_v30 = vadd.f32 1.0, %v2442_v28 }
 0x3aa   :  { %2447 = vrcp.f32 %v393_v29 }
 0x3ab   :  { %2449 = vrcp.f32 %v394_v30 }
 0x3b5   :  { %v2444_v31 = vpop.eup %2443 }
 0x3b6   :  { %v2446_v35 = vpop.eup %2445  ;;  %v527_v47 = vmul.f32 %v2444_v31, %v523_v45 }
 0x3b7   :  { %v2448_v39 = vpop.eup %2447  ;;  %v528_v49 = vmul.f32 %v2446_v35, %v524_v46 }
 0x3b8   :  { %v2450_v42 = vpop.eup %2449  ;;  %v407_v54 = vmul.f32 %v2448_v39, %v403_v50 }
 0x3b9   :  { %v408_v13 = vmul.f32 %v2450_v42, %v404_v55 }
 0x412   :  { %v532_v34 = vpop.permute.xlu0 %531 }
 0x413   :  { %v537_v36 = vmul.f32 %v2444_v31, %v532_v34  ;;  %v534_v37 = vpop.permute.xlu1 %533  ;;  %v703_v34 = vld [vmem:[%s3477_s1 + $0x4] sm:$0x4] }
 0x414   :  { %v538_v38 = vmul.f32 %v2446_v35, %v534_v37 }
 0x415   :  { %541 = vrot.lane.b32.xlu0 %v537_v36, %s2656_s6  ;;  %v705_v36 = vunpack.c.l.bf16 %v703_v34 }
 0x416   :  { %543 = vrot.lane.b32.xlu1 %v538_v38, %s2656_s6  ;;  %v412_v40 = vpop.permute.xlu0 %411  ;;  %v583_v38 = vld [vmem:[%s3476_s0] sm:$0x2] }
 0x417   :  { %v417_v41 = vmul.f32 %v2448_v39, %v412_v40  ;;  %v414_v43 = vpop.permute.xlu1 %413  ;;  %v585_v45 = vunpack.c.l.bf16 %v583_v38 }
 0x418   :  { %v418_v44 = vmul.f32 %v2450_v42, %v414_v43 }
 0x419   :  { %421 = vrot.lane.b32.xlu0 %v417_v41, %s2656_s6  ;;  %v584_v41 = vld [vmem:[%s3476_s0 + $0x4] sm:$0x2] }
 0x41a   :  { %423 = vrot.lane.b32.xlu1 %v418_v44, %s2656_s6  ;;  %v586_v46 = vunpack.c.l.bf16 %v584_v41 }
 0x487   :  { %v542_v48 = vpop.permute.xlu0 %541 }
 0x488   :  { %v2821_v51 = vadd.f32 %v542_v48, %v527_v47  ;;  %v544_v52 = vpop.permute.xlu1 %543 }
 0x489   :  { %v2823_v53 = vadd.f32 %v544_v52, %v528_v49 }
 0x48a   :  { %2451 = vtanh.f32 %v2821_v51 }
 0x48b   :  { %2453 = vtanh.f32 %v2823_v53  ;;  %v422_v8 = vpop.permute.xlu0 %421 }
 0x48c   :  { %v2828_v56 = vadd.f32 %v422_v8, %v407_v54  ;;  %v424_v57 = vpop.permute.xlu1 %423 }
 0x48d   :  { %v2831_v14 = vadd.f32 %v424_v57, %v408_v13 }
 0x48e   :  { %2455 = vtanh.f32 %v2828_v56  ;;  %v664_v41 = vrot.slane %v2828_v56, 7 }
 0x48f   :  { %2457 = vtanh.f32 %v2831_v14 }
 0x497   :  { %v2452_v58 = vpop.eup %2451 }
 0x498   :  { %v2454_v59 = vpop.eup %2453  ;;  %553 = vrot.lane.b32.xlu0 %v2452_v58, %s2657_s7 }
 0x499   :  { %555 = vrot.lane.b32.xlu1 %v2454_v59, %s2657_s7 }
 0x49b   :  { %v2456_v17 = vpop.eup %2455 }
 0x49c   :  { %433 = vrot.lane.b32.xlu0 %v2456_v17, %s2657_s7  ;;  %v2458_v60 = vpop.eup %2457 }
 0x49d   :  { %435 = vrot.lane.b32.xlu1 %v2458_v60, %s2657_s7 }
 0x50a   :  { %v554_v61 = vpop.permute.xlu0 %553 }
 0x50b   :  { %v2838_v62 = vmul.f32 %v2444_v31, %v554_v61  ;;  %v556_v63 = vpop.permute.xlu1 %555  ;;  %v702_v31 = vld [vmem:[%s3477_s1] sm:$0x4] }
 0x50c   :  { %v2840_v3 = vmul.f32 %v2446_v35, %v556_v63  ;;  %v704_v35 = vunpack.c.l.bf16 %v702_v31 }
 0x50d   :  { %v706_v4 = vpack.c.bf16 %v2838_v62, %v2838_v62 }
 0x50e   :  { %v707_v5 = vpack.c.bf16 %v2840_v3, %v2840_v3  ;;  %v434_v6 = vpop.permute.xlu0 %433 }
 0x50f   :  { %v710_v7 = vunpack.c.l.b16 %v706_v4  ;;  %v2846_v9 = vmul.f32 %v2448_v39, %v434_v6  ;;  %v436_v15 = vpop.permute.xlu1 %435 }
 0x510   :  { %v711_v10 = vunpack.c.l.b16 %v707_v5  ;;  %v2850_v18 = vmul.f32 %v2450_v42, %v436_v15 }
 0x511   :  { %v712_v11 = vrot.slane %v710_v7, 6  ;;  %v587_v12 = vpack.c.bf16 %v2846_v9, %v2846_v9 }
 0x512   :  { %v713_v16 = vrot.slane %v711_v10, 5  ;;  %v588_v20 = vpack.c.bf16 %v2850_v18, %v2850_v18 }
 0x513   :  { %v591_v19 = vunpack.c.l.b16 %v587_v12 }
 0x514   :  { %v714_v21 = vsel %vm333_vm3, %v713_v16, %v712_v11  ;;  %v592_v25 = vunpack.c.l.b16 %v588_v20 }
 0x515   :  { %v593_v22 = vrot.slane %v591_v19, 1  ;;  %v715_v24 = vpack.c.b16 %v714_v21, %v714_v21 }
 0x517   :  { %716 = vrot.lane.b32.xlu0 %v715_v24, %s2658_s8  ;;  %v594_v27 = vsel %vm333_vm3, %v592_v25, %v593_v22 }
 0x518   :  { %v595_v28 = vpack.c.b16 %v594_v27, %v594_v27 }
 0x51a   :  { %596 = vrot.lane.b32.xlu1 %v595_v28, %s2658_s8 }
 0x589   :  { %v717_v29 = vpop.permute.xlu0 %716 }
 0x58a   :  { %2323 = vmatmul.mubr.msk.bf16.vlgmr.msra.gmra.mxu1 %vm76_vm2, %v717_v29 }
 0x58b   :  { %2333 = vmatpush3.bf16.msra.mxu1 %v2708_v2  ;;  %2334 = vmatprep.mubr.msk.bf16.mxu1 %vm2654_vm1, %v2653_v0 }
 0x58c   :  { %2344 = vmatprep.subr.bf16.mxu1 %v2653_v0  ;;  %v597_v30 = vpop.permute.xlu1 %596 }
 0x58d   :  { %2317 = vmatmul.mubr.msk.bf16.vlgmr.msra.gmra.mxu0 %vm76_vm2, %v597_v30 }
 0x58e   :  { %2327 = vmatpush3.bf16.msra.mxu0 %v2695_v1  ;;  %2328 = vmatprep.mubr.msk.bf16.mxu0 %vm2654_vm1, %v2653_v0 }
 0x58f   :  { %2338 = vmatprep.subr.bf16.mxu0 %v2653_v0 }
 0x64a   :  { %v755_v37 = vpop.f32.mrf.mxu1 }
 0x64b   :  { %v762_v39 = vrot.slane %v755_v37, 3  ;;  %v763_v40 = vrot.slane %v755_v37, 4  ;;  %v785_v37 = vrot.slane %v2823_v53, 1 }
 0x64c   :  { %v2324_v42 = vpop.f32.mrf.mxu1 }
 0x64d   :  { %v766_v43 = vadd.f32 %v762_v39, %v704_v35  ;;  %v767_v44 = vadd.f32 %v763_v40, %v705_v36  ;;  %v635_v47 = vpop.f32.mrf.mxu0  ;;  %v784_v36 = vrot.slane %v2821_v51, 1 }
 0x64e   :  { %v758_v48 = vpop.f32.mrf.mxu1  ;;  %v642_v49 = vrot.slane %v635_v47, 6  ;;  %v643_v50 = vrot.slane %v635_v47, 7 }
 0x64f   :  { %2459 = vtanh.f32 %v766_v43  ;;  %v2318_v52 = vpop.f32.mrf.mxu0  ;;  %v2226_v61 = vmul.f32 -1.442695, %v766_v43  ;;  %v2227_v63 = vmul.f32 -1.442695, %v767_v44 }
 0x650   :  { %2461 = vtanh.f32 %v767_v44  ;;  %v2325_v54 = vpop.f32.mrf.mxu1  ;;  %v646_v55 = vadd.f32 %v642_v49, %v585_v45  ;;  %v647_v8 = vadd.f32 %v643_v50, %v586_v46  ;;  %v665_v44 = vrot.slane %v2831_v14, 7 }
 0x651   :  { %v638_v13 = vpop.f32.mrf.mxu0 }
 0x652   :  { %2463 = vtanh.f32 %v646_v55  ;;  %v2223_v4 = vmul.f32 -1.442695, %v646_v55  ;;  %v2224_v5 = vmul.f32 -1.442695, %v647_v8 }
 0x653   :  { %2465 = vtanh.f32 %v647_v8  ;;  %v2319_v57 = vpop.f32.mrf.mxu0 }
 0x654   :  { %2467 = vpow2.f32 %v2226_v61 }
 0x655   :  { %2469 = vpow2.f32 %v2227_v63 }
 0x656   :  { %2471 = vpow2.f32 %v2223_v4 }
 0x657   :  { %2473 = vpow2.f32 %v2224_v5 }
 0x65c   :  { %v2460_v58 = vpop.eup %2459 }
 0x65d   :  { %v2462_v59 = vpop.eup %2461  ;;  %792 = vrot.lane.b32.xlu0 %v2460_v58, %s2655_s30 }
 0x65e   :  { %794 = vrot.lane.b32.xlu1 %v2462_v59, %s2655_s30 }
 0x65f   :  { %v2464_v17 = vpop.eup %2463 }
 0x660   :  { %v2466_v60 = vpop.eup %2465 }
 0x661   :  { %672 = vrot.lane.b32.xlu0 %v2464_v17, %s2655_s30  ;;  %v2468_v6 = vpop.eup %2467 }
 0x662   :  { %674 = vrot.lane.b32.xlu1 %v2466_v60, %s2655_s30  ;;  %v2470_v7 = vpop.eup %2469  ;;  %v774_v10 = vadd.f32 1.0, %v2468_v6 }
 0x663   :  { %v2472_v11 = vpop.eup %2471  ;;  %v775_v12 = vadd.f32 1.0, %v2470_v7 }
 0x664   :  { %v2474_v15 = vpop.eup %2473  ;;  %2475 = vrcp.f32 %v774_v10  ;;  %v654_v16 = vadd.f32 1.0, %v2472_v11 }
 0x665   :  { %2477 = vrcp.f32 %v775_v12  ;;  %v655_v19 = vadd.f32 1.0, %v2474_v15 }
 0x666   :  { %2479 = vrcp.f32 %v654_v16 }
 0x667   :  { %2481 = vrcp.f32 %v655_v19 }
 0x671   :  { %v2476_v20 = vpop.eup %2475 }
 0x672   :  { %v2478_v22 = vpop.eup %2477  ;;  %v788_v38 = vmul.f32 %v2476_v20, %v784_v36 }
 0x673   :  { %v2480_v28 = vpop.eup %2479  ;;  %v789_v40 = vmul.f32 %v2478_v22, %v785_v37 }
 0x674   :  { %v2482_v30 = vpop.eup %2481  ;;  %v668_v46 = vmul.f32 %v2480_v28, %v664_v41 }
 0x675   :  { %v669_v47 = vmul.f32 %v2482_v30, %v665_v44 }
 0x6cf   :  { %v793_v21 = vpop.permute.xlu0 %792 }
 0x6d0   :  { %v798_v24 = vmul.f32 %v2476_v20, %v793_v21  ;;  %v795_v25 = vpop.permute.xlu1 %794 }
 0x6d1   :  { %v799_v27 = vmul.f32 %v2478_v22, %v795_v25 }
 0x6d2   :  { %802 = vrot.lane.b32.xlu0 %v798_v24, %s2656_s6 }
 0x6d3   :  { %804 = vrot.lane.b32.xlu1 %v799_v27, %s2656_s6  ;;  %v673_v29 = vpop.permute.xlu0 %672  ;;  %v964_v27 = vld [vmem:[%s3477_s1] sm:$0x4] }
 0x6d4   :  { %v678_v31 = vmul.f32 %v2480_v28, %v673_v29  ;;  %v675_v34 = vpop.permute.xlu1 %674 }
 0x6d5   :  { %v679_v35 = vmul.f32 %v2482_v30, %v675_v34 }
 0x6d6   :  { %682 = vrot.lane.b32.xlu0 %v678_v31, %s2656_s6 }
 0x6d7   :  { %684 = vrot.lane.b32.xlu1 %v679_v35, %s2656_s6  ;;  %v845_v35 = vld [vmem:[%s3476_s0 + $0x4] sm:$0x2] }
 0x744   :  { %v803_v39 = vpop.permute.xlu0 %802 }
 0x745   :  { %v2891_v42 = vadd.f32 %v803_v39, %v788_v38  ;;  %v805_v43 = vpop.permute.xlu1 %804 }
 0x746   :  { %v2894_v45 = vadd.f32 %v805_v43, %v789_v40  ;;  %v847_v40 = vunpack.c.l.bf16 %v845_v35 }
 0x747   :  { %2483 = vtanh.f32 %v2891_v42 }
 0x748   :  { %2485 = vtanh.f32 %v2894_v45  ;;  %v683_v51 = vpop.permute.xlu0 %682 }
 0x749   :  { %v2898_v53 = vadd.f32 %v683_v51, %v668_v46  ;;  %v685_v48 = vpop.permute.xlu1 %684 }
 0x74a   :  { %v2900_v49 = vadd.f32 %v685_v48, %v669_v47 }
 0x74b   :  { %2487 = vtanh.f32 %v2898_v53 }
 0x74c   :  { %2489 = vtanh.f32 %v2900_v49 }
 0x754   :  { %v2484_v56 = vpop.eup %2483 }
 0x755   :  { %v2486_v14 = vpop.eup %2485  ;;  %814 = vrot.lane.b32.xlu0 %v2484_v56, %s2657_s7 }
 0x756   :  { %816 = vrot.lane.b32.xlu1 %v2486_v14, %s2657_s7 }
 0x758   :  { %v2488_v50 = vpop.eup %2487 }
 0x759   :  { %v2490_v52 = vpop.eup %2489  ;;  %694 = vrot.lane.b32.xlu0 %v2488_v50, %s2657_s7 }
 0x75a   :  { %696 = vrot.lane.b32.xlu1 %v2490_v52, %s2657_s7 }
 0x7c7   :  { %v815_v54 = vpop.permute.xlu0 %814 }
 0x7c8   :  { %v2908_v55 = vmul.f32 %v2476_v20, %v815_v54  ;;  %v817_v8 = vpop.permute.xlu1 %816 }
 0x7c9   :  { %v2910_v13 = vmul.f32 %v2478_v22, %v817_v8 }
 0x7ca   :  { %v968_v57 = vpack.c.bf16 %v2908_v55, %v2908_v55 }
 0x7cb   :  { %v969_v58 = vpack.c.bf16 %v2910_v13, %v2910_v13  ;;  %v695_v59 = vpop.permute.xlu0 %694 }
 0x7cc   :  { %v972_v17 = vunpack.c.l.b16 %v968_v57  ;;  %v2916_v60 = vmul.f32 %v2480_v28, %v695_v59  ;;  %v697_v61 = vpop.permute.xlu1 %696  ;;  %v966_v28 = vunpack.c.l.bf16 %v964_v27 }
 0x7cd   :  { %v973_v63 = vunpack.c.l.b16 %v969_v58  ;;  %v2918_v4 = vmul.f32 %v2482_v30, %v697_v61 }
 0x7ce   :  { %v974_v5 = vrot.slane %v972_v17, 5  ;;  %v848_v6 = vpack.c.bf16 %v2916_v60, %v2916_v60 }
 0x7cf   :  { %v975_v7 = vrot.slane %v973_v63, 4  ;;  %v849_v10 = vpack.c.bf16 %v2918_v4, %v2918_v4 }
 0x7d0   :  { %v852_v11 = vunpack.c.l.b16 %v848_v6 }
 0x7d1   :  { %v853_v12 = vunpack.c.l.b16 %v849_v10  ;;  %v976_v15 = vsel %vm333_vm3, %v975_v7, %v974_v5 }
 0x7d2   :  { %v854_v16 = vrot.slane %v852_v11, 2  ;;  %v977_v19 = vpack.c.b16 %v976_v15, %v976_v15 }
 0x7d3   :  { %v855_v20 = vrot.slane %v853_v12, 1 }
 0x7d4   :  { %978 = vrot.lane.b32.xlu0 %v977_v19, %s2658_s8 }
 0x7d5   :  { %v856_v21 = vsel %vm333_vm3, %v855_v20, %v854_v16 }
 0x7d6   :  { %v857_v22 = vpack.c.b16 %v856_v21, %v856_v21 }
 0x7d8   :  { %858 = vrot.lane.b32.xlu1 %v857_v22, %s2658_s8 }
 0x846   :  { %v979_v24 = vpop.permute.xlu0 %978 }
 0x847   :  { %2335 = vmatmul.mubr.msk.bf16.vlgmr.msra.gmra.mxu1 %vm76_vm2, %v979_v24 }
 0x848   :  { %2345 = vmatpush3.bf16.msra.mxu1 %v2708_v2  ;;  %2346 = vmatprep.mubr.msk.bf16.mxu1 %vm2654_vm1, %v2653_v0  ;;  %v965_v2 = vld [vmem:[%s3477_s1 + $0x4] sm:$0x4] }
 0x849   :  { %2356 = vmatprep.subr.bf16.mxu1 %v2653_v0  ;;  %v967_v29 = vunpack.c.l.bf16 %v965_v2 }
 0x84a   :  { %v859_v25 = vpop.permute.xlu1 %858 }
 0x84b   :  { %2329 = vmatmul.mubr.msk.bf16.vlgmr.msra.gmra.mxu0 %vm76_vm2, %v859_v25 }
 0x84c   :  { %2339 = vmatpush3.bf16.msra.mxu0 %v2695_v1  ;;  %2340 = vmatprep.mubr.msk.bf16.mxu0 %vm2654_vm1, %v2653_v0  ;;  %v844_v1 = vld [vmem:[%s3476_s0] sm:$0x2] }
 0x84d   :  { %2350 = vmatprep.subr.bf16.mxu0 %v2653_v0  ;;  %v846_v39 = vunpack.c.l.bf16 %v844_v1  ;;  %v1046_v1 = vrot.slane %v2891_v42, 1 }
 0x907   :  { %v1017_v30 = vpop.f32.mrf.mxu1 }
 0x908   :  { %v1024_v31 = vrot.slane %v1017_v30, 4  ;;  %v1025_v34 = vrot.slane %v1017_v30, 5 }
 0x909   :  { %v2336_v36 = vpop.f32.mrf.mxu1 }
 0x90a   :  { %v1028_v37 = vadd.f32 %v1024_v31, %v966_v28  ;;  %v1029_v38 = vadd.f32 %v1025_v34, %v967_v29  ;;  %v1047_v31 = vrot.slane %v2894_v45, 1 }
 0x90b   :  { %v897_v41 = vpop.f32.mrf.mxu0  ;;  %v1020_v43 = vpop.f32.mrf.mxu1 }
 0x90c   :  { %2491 = vtanh.f32 %v1028_v37  ;;  %v904_v44 = vrot.slane %v897_v41, 5  ;;  %v905_v46 = vrot.slane %v897_v41, 6  ;;  %v2232_v58 = vmul.f32 -1.442695, %v1028_v37 }
 0x90d   :  { %2493 = vtanh.f32 %v1029_v38  ;;  %v2330_v51 = vpop.f32.mrf.mxu0  ;;  %v2337_v47 = vpop.f32.mrf.mxu1  ;;  %v2233_v59 = vmul.f32 -1.442695, %v1029_v38  ;;  %v926_v37 = vrot.slane %v2898_v53, 7 }
 0x90e   :  { %v908_v48 = vadd.f32 %v904_v44, %v846_v39  ;;  %v909_v56 = vadd.f32 %v905_v46, %v847_v40  ;;  %v927_v40 = vrot.slane %v2900_v49, 7 }
 0x90f   :  { %v900_v14 = vpop.f32.mrf.mxu0 }
 0x910   :  { %2495 = vtanh.f32 %v908_v48  ;;  %v2229_v17 = vmul.f32 -1.442695, %v908_v48  ;;  %v2230_v61 = vmul.f32 -1.442695, %v909_v56 }
 0x911   :  { %2497 = vtanh.f32 %v909_v56  ;;  %v2331_v50 = vpop.f32.mrf.mxu0 }
 0x912   :  { %2499 = vpow2.f32 %v2232_v58 }
 0x913   :  { %2501 = vpow2.f32 %v2233_v59 }
 0x914   :  { %2503 = vpow2.f32 %v2229_v17 }
 0x915   :  { %2505 = vpow2.f32 %v2230_v61 }
 0x919   :  { %v2492_v52 = vpop.eup %2491 }
 0x91a   :  { %v2494_v54 = vpop.eup %2493  ;;  %1054 = vrot.lane.b32.xlu0 %v2492_v52, %s2655_s30 }
 0x91b   :  { %1056 = vrot.lane.b32.xlu1 %v2494_v54, %s2655_s30 }
 0x91d   :  { %v2496_v8 = vpop.eup %2495 }
 0x91e   :  { %v2498_v57 = vpop.eup %2497  ;;  %934 = vrot.lane.b32.xlu0 %v2496_v8, %s2655_s30 }
 0x91f   :  { %936 = vrot.lane.b32.xlu1 %v2498_v57, %s2655_s30  ;;  %v2500_v63 = vpop.eup %2499 }
 0x920   :  { %v2502_v5 = vpop.eup %2501  ;;  %v1036_v6 = vadd.f32 1.0, %v2500_v63 }
 0x921   :  { %v2504_v7 = vpop.eup %2503  ;;  %v1037_v10 = vadd.f32 1.0, %v2502_v5 }
 0x922   :  { %v2506_v11 = vpop.eup %2505  ;;  %2507 = vrcp.f32 %v1036_v6  ;;  %v916_v12 = vadd.f32 1.0, %v2504_v7 }
 0x923   :  { %2509 = vrcp.f32 %v1037_v10  ;;  %v917_v15 = vadd.f32 1.0, %v2506_v11 }
 0x924   :  { %2511 = vrcp.f32 %v916_v12 }
 0x925   :  { %2513 = vrcp.f32 %v917_v15 }
 0x92f   :  { %v2508_v16 = vpop.eup %2507 }
 0x930   :  { %v2510_v20 = vpop.eup %2509  ;;  %v1050_v34 = vmul.f32 %v2508_v16, %v1046_v1 }
 0x931   :  { %v2512_v25 = vpop.eup %2511  ;;  %v1051_v36 = vmul.f32 %v2510_v20, %v1047_v31 }
 0x932   :  { %v2514_v2 = vpop.eup %2513  ;;  %v930_v43 = vmul.f32 %v2512_v25, %v926_v37  ;;  %v1107_v37 = vld [vmem:[%s3476_s0 + $0x4] sm:$0x4] }
 0x933   :  { %v931_v44 = vmul.f32 %v2514_v2, %v927_v40 }
 0x98c   :  { %v1055_v19 = vpop.permute.xlu0 %1054 }
 0x98d   :  { %v1060_v21 = vmul.f32 %v2508_v16, %v1055_v19  ;;  %v1057_v22 = vpop.permute.xlu1 %1056 }
 0x98e   :  { %v1061_v24 = vmul.f32 %v2510_v20, %v1057_v22 }
 0x98f   :  { %1064 = vrot.lane.b32.xlu0 %v1060_v21, %s2656_s6 }
 0x990   :  { %1066 = vrot.lane.b32.xlu1 %v1061_v24, %s2656_s6  ;;  %v935_v27 = vpop.permute.xlu0 %934 }
 0x991   :  { %v940_v28 = vmul.f32 %v2512_v25, %v935_v27  ;;  %v937_v29 = vpop.permute.xlu1 %936 }
 0x992   :  { %v941_v30 = vmul.f32 %v2514_v2, %v937_v29  ;;  %v1227_v29 = vld [vmem:[%s3477_s1 + $0x4] sm:$0x2] }
 0x993   :  { %944 = vrot.lane.b32.xlu0 %v940_v28, %s2656_s6  ;;  %v1226_v28 = vld [vmem:[%s3477_s1] sm:$0x2]  ;;  %v1229_v1 = vunpack.c.l.bf16 %v1227_v29 }
 0x994   :  { %946 = vrot.lane.b32.xlu1 %v941_v30, %s2656_s6  ;;  %v1228_v30 = vunpack.c.l.bf16 %v1226_v28 }
 0xa01   :  { %v1065_v35 = vpop.permute.xlu0 %1064 }
 0xa02   :  { %v2961_v38 = vadd.f32 %v1065_v35, %v1050_v34  ;;  %v1067_v39 = vpop.permute.xlu1 %1066  ;;  %v1106_v34 = vld [vmem:[%s3476_s0] sm:$0x4] }
 0xa03   :  { %v2964_v41 = vadd.f32 %v1067_v39, %v1051_v36 }
 0xa04   :  { %2515 = vtanh.f32 %v2961_v38 }
 0xa05   :  { %2517 = vtanh.f32 %v2964_v41  ;;  %v945_v42 = vpop.permute.xlu0 %944 }
 0xa06   :  { %v2968_v45 = vadd.f32 %v945_v42, %v930_v43  ;;  %v947_v46 = vpop.permute.xlu1 %946  ;;  %v1108_v42 = vunpack.c.l.bf16 %v1106_v34 }
 0xa07   :  { %v2970_v51 = vadd.f32 %v947_v46, %v931_v44  ;;  %v1109_v44 = vunpack.c.l.bf16 %v1107_v37 }
 0xa08   :  { %2519 = vtanh.f32 %v2968_v45 }
 0xa09   :  { %2521 = vtanh.f32 %v2970_v51 }
 0xa11   :  { %v2516_v53 = vpop.eup %2515 }
 0xa12   :  { %v2518_v49 = vpop.eup %2517  ;;  %1076 = vrot.lane.b32.xlu0 %v2516_v53, %s2657_s7 }
 0xa13   :  { %1078 = vrot.lane.b32.xlu1 %v2518_v49, %s2657_s7 }
 0xa15   :  { %v2520_v47 = vpop.eup %2519 }
 0xa16   :  { %v2522_v48 = vpop.eup %2521  ;;  %956 = vrot.lane.b32.xlu0 %v2520_v47, %s2657_s7 }
 0xa17   :  { %958 = vrot.lane.b32.xlu1 %v2522_v48, %s2657_s7 }
 0xa84   :  { %v1077_v56 = vpop.permute.xlu0 %1076 }
 0xa85   :  { %v2978_v14 = vmul.f32 %v2508_v16, %v1077_v56  ;;  %v1079_v50 = vpop.permute.xlu1 %1078 }
 0xa86   :  { %v2980_v52 = vmul.f32 %v2510_v20, %v1079_v50 }
 0xa87   :  { %v1230_v54 = vpack.c.bf16 %v2978_v14, %v2978_v14 }
 0xa88   :  { %v1231_v8 = vpack.c.bf16 %v2980_v52, %v2980_v52  ;;  %v957_v57 = vpop.permute.xlu0 %956 }
 0xa89   :  { %v1234_v58 = vunpack.c.l.b16 %v1230_v54  ;;  %v2986_v59 = vmul.f32 %v2512_v25, %v957_v57  ;;  %v959_v17 = vpop.permute.xlu1 %958  ;;  %v3002_v25 = vld [vmem:[%s3475_s3] sm:$0xff]  }
 0xa8a   :  { %v1235_v61 = vunpack.c.l.b16 %v1231_v8  ;;  %v2988_v63 = vmul.f32 %v2514_v2, %v959_v17  ;;  %v3012_v2 = vld [vmem:[%s3474_s2] sm:$0xff]  }
 0xa8b   :  { %v1236_v5 = vrot.slane %v1234_v58, 4  ;;  %v1110_v6 = vpack.c.bf16 %v2986_v59, %v2986_v59 }
 0xa8c   :  { %v1237_v7 = vrot.slane %v1235_v61, 3  ;;  %v1111_v10 = vpack.c.bf16 %v2988_v63, %v2988_v63 }
 0xa8d   :  { %v1114_v11 = vunpack.c.l.b16 %v1110_v6 }
 0xa8e   :  { %v1115_v12 = vunpack.c.l.b16 %v1111_v10  ;;  %v1238_v15 = vsel %vm333_vm3, %v1237_v7, %v1236_v5 }
 0xa8f   :  { %v1116_v16 = vrot.slane %v1114_v11, 3  ;;  %v1239_v19 = vpack.c.b16 %v1238_v15, %v1238_v15 }
 0xa90   :  { %v1117_v20 = vrot.slane %v1115_v12, 2 }
 0xa91   :  { %1240 = vrot.lane.b32.xlu0 %v1239_v19, %s2658_s8 }
 0xa92   :  { %v1118_v21 = vsel %vm333_vm3, %v1117_v20, %v1116_v16 }
 0xa93   :  { %v1119_v22 = vpack.c.b16 %v1118_v21, %v1118_v21 }
 0xa95   :  { %1120 = vrot.lane.b32.xlu1 %v1119_v22, %s2658_s8 }
 0xb03   :  { %v1241_v24 = vpop.permute.xlu0 %1240 }
 0xb04   :  { %2347 = vmatmul.mubr.msk.bf16.vlgmr.msra.gmra.mxu1 %vm76_vm2, %v1241_v24 }
 0xb05   :  { %2357 = vmatpush3.bf16.msra.mxu1 %v3002_v25  ;;  %2358 = vmatprep.mubr.msk.bf16.mxu1 %vm2654_vm1, %v2653_v0 }
 0xb06   :  { %2368 = vmatprep.subr.bf16.mxu1 %v2653_v0 }
 0xb07   :  { %v1121_v27 = vpop.permute.xlu1 %1120 }
 0xb08   :  { %2341 = vmatmul.mubr.msk.bf16.vlgmr.msra.gmra.mxu0 %vm76_vm2, %v1121_v27 }
 0xb09   :  { %2351 = vmatpush3.bf16.msra.mxu0 %v3012_v2  ;;  %2352 = vmatprep.mubr.msk.bf16.mxu0 %vm2654_vm1, %v2653_v0 }
 0xb0a   :  { %2362 = vmatprep.subr.bf16.mxu0 %v2653_v0 }
 0xbc4   :  { %v1279_v31 = vpop.f32.mrf.mxu1 }
 0xbc5   :  { %v1286_v35 = vrot.slane %v1279_v31, 5  ;;  %v1287_v36 = vrot.slane %v1279_v31, 6 }
 0xbc6   :  { %v2348_v39 = vpop.f32.mrf.mxu1 }
 0xbc7   :  { %v1290_v40 = vadd.f32 %v1286_v35, %v1228_v30  ;;  %v1291_v43 = vadd.f32 %v1287_v36, %v1229_v1 }
 0xbc8   :  { %v1159_v46 = vpop.f32.mrf.mxu0  ;;  %v1282_v53 = vpop.f32.mrf.mxu1 }
 0xbc9   :  { %2523 = vtanh.f32 %v1290_v40  ;;  %v1166_v49 = vrot.slane %v1159_v46, 4  ;;  %v1167_v47 = vrot.slane %v1159_v46, 5  ;;  %v2238_v6 = vmul.f32 -1.442695, %v1290_v40 }
 0xbca   :  { %2525 = vtanh.f32 %v1291_v43  ;;  %v2342_v48 = vpop.f32.mrf.mxu0  ;;  %v2349_v56 = vpop.f32.mrf.mxu1  ;;  %v2239_v7 = vmul.f32 -1.442695, %v1291_v43  ;;  %v1308_v43 = vrot.slane %v2961_v38, 1 }
 0xbcb   :  { %v1170_v50 = vadd.f32 %v1166_v49, %v1108_v42  ;;  %v1171_v54 = vadd.f32 %v1167_v47, %v1109_v44  ;;  %v1309_v42 = vrot.slane %v2964_v41, 1  ;;  %v1188_v49 = vrot.slane %v2968_v45, 7 }
 0xbcc   :  { %v1162_v8 = vpop.f32.mrf.mxu0  ;;  %v1189_v56 = vrot.slane %v2970_v51, 7 }
 0xbcd   :  { %2527 = vtanh.f32 %v1170_v50  ;;  %v2235_v10 = vmul.f32 -1.442695, %v1170_v50  ;;  %v2236_v11 = vmul.f32 -1.442695, %v1171_v54 }
 0xbce   :  { %2529 = vtanh.f32 %v1171_v54  ;;  %v2343_v57 = vpop.f32.mrf.mxu0 }
 0xbcf   :  { %2531 = vpow2.f32 %v2238_v6 }
 0xbd0   :  { %2533 = vpow2.f32 %v2239_v7 }
 0xbd1   :  { %2535 = vpow2.f32 %v2235_v10 }
 0xbd2   :  { %2537 = vpow2.f32 %v2236_v11 }
 0xbd6   :  { %v2524_v58 = vpop.eup %2523 }
 0xbd7   :  { %v2526_v17 = vpop.eup %2525  ;;  %1316 = vrot.lane.b32.xlu0 %v2524_v58, %s2655_s30 }
 0xbd8   :  { %1318 = vrot.lane.b32.xlu1 %v2526_v17, %s2655_s30 }
 0xbda   :  { %v2528_v61 = vpop.eup %2527 }
 0xbdb   :  { %v2530_v5 = vpop.eup %2529  ;;  %1196 = vrot.lane.b32.xlu0 %v2528_v61, %s2655_s30 }
 0xbdc   :  { %1198 = vrot.lane.b32.xlu1 %v2530_v5, %s2655_s30  ;;  %v2532_v12 = vpop.eup %2531 }
 0xbdd   :  { %v2534_v15 = vpop.eup %2533  ;;  %v1298_v16 = vadd.f32 1.0, %v2532_v12 }
 0xbde   :  { %v2536_v19 = vpop.eup %2535  ;;  %v1299_v20 = vadd.f32 1.0, %v2534_v15 }
 0xbdf   :  { %v2538_v21 = vpop.eup %2537  ;;  %2539 = vrcp.f32 %v1298_v16  ;;  %v1178_v22 = vadd.f32 1.0, %v2536_v19 }
 0xbe0   :  { %2541 = vrcp.f32 %v1299_v20  ;;  %v1179_v24 = vadd.f32 1.0, %v2538_v21 }
 0xbe1   :  { %2543 = vrcp.f32 %v1178_v22 }
 0xbe2   :  { %2545 = vrcp.f32 %v1179_v24 }
 0xbec   :  { %v2540_v27 = vpop.eup %2539 }
 0xbed   :  { %v2542_v29 = vpop.eup %2541  ;;  %v1312_v44 = vmul.f32 %v2540_v27, %v1308_v43 }
 0xbee   :  { %v2544_v34 = vpop.eup %2543  ;;  %v1313_v53 = vmul.f32 %v2542_v29, %v1309_v42  ;;  %v1486_v42 = vld [vmem:[%s3477_s1] sm:$0x2] }
 0xbef   :  { %v2546_v36 = vpop.eup %2545  ;;  %v1192_v54 = vmul.f32 %v2544_v34, %v1188_v49 }
 0xbf0   :  { %v1193_v8 = vmul.f32 %v2546_v36, %v1189_v56 }
 0xc49   :  { %v1317_v28 = vpop.permute.xlu0 %1316 }
 0xc4a   :  { %v1322_v30 = vmul.f32 %v2540_v27, %v1317_v28  ;;  %v1319_v1 = vpop.permute.xlu1 %1318 }
 0xc4b   :  { %v1323_v31 = vmul.f32 %v2542_v29, %v1319_v1 }
 0xc4c   :  { %1326 = vrot.lane.b32.xlu0 %v1322_v30, %s2656_s6 }
 0xc4d   :  { %1328 = vrot.lane.b32.xlu1 %v1323_v31, %s2656_s6  ;;  %v1197_v35 = vpop.permute.xlu0 %1196 }
 0xc4e   :  { %v1202_v37 = vmul.f32 %v2544_v34, %v1197_v35  ;;  %v1199_v39 = vpop.permute.xlu1 %1198 }
 0xc4f   :  { %v1203_v40 = vmul.f32 %v2546_v36, %v1199_v39 }
 0xc50   :  { %1206 = vrot.lane.b32.xlu0 %v1202_v37, %s2656_s6 }
 0xc51   :  { %1208 = vrot.lane.b32.xlu1 %v1203_v40, %s2656_s6 }
 0xcbe   :  { %v1327_v46 = vpop.permute.xlu0 %1326 }
 0xcbf   :  { %v3041_v47 = vadd.f32 %v1327_v46, %v1312_v44  ;;  %v1329_v48 = vpop.permute.xlu1 %1328  ;;  %v1487_v44 = vld [vmem:[%s3477_s1 + $0x4] sm:$0x2]  ;;  %v1488_v46 = vunpack.c.l.bf16 %v1486_v42 }
 0xcc0   :  { %v3044_v50 = vadd.f32 %v1329_v48, %v1313_v53  ;;  %v1489_v53 = vunpack.c.l.bf16 %v1487_v44  ;;  %v1366_v48 = vld [vmem:[%s3476_s0] sm:$0x4] }
 0xcc1   :  { %2547 = vtanh.f32 %v3041_v47 }
 0xcc2   :  { %2549 = vtanh.f32 %v3044_v50  ;;  %v1207_v38 = vpop.permute.xlu0 %1206 }
 0xcc3   :  { %v3048_v41 = vadd.f32 %v1207_v38, %v1192_v54  ;;  %v1209_v57 = vpop.permute.xlu1 %1208  ;;  %v1367_v38 = vld [vmem:[%s3476_s0 + $0x4] sm:$0x4] }
 0xcc4   :  { %v3050_v58 = vadd.f32 %v1209_v57, %v1193_v8 }
 0xcc5   :  { %2551 = vtanh.f32 %v3048_v41 }
 0xcc6   :  { %2553 = vtanh.f32 %v3050_v58 }
 0xcce   :  { %v2548_v45 = vpop.eup %2547 }
 0xccf   :  { %v2550_v51 = vpop.eup %2549  ;;  %1338 = vrot.lane.b32.xlu0 %v2548_v45, %s2657_s7 }
 0xcd0   :  { %1340 = vrot.lane.b32.xlu1 %v2550_v51, %s2657_s7  ;;  %v1368_v51 = vunpack.c.l.bf16 %v1366_v48 }
 0xcd2   :  { %v2552_v17 = vpop.eup %2551 }
 0xcd3   :  { %v2554_v61 = vpop.eup %2553  ;;  %1218 = vrot.lane.b32.xlu0 %v2552_v17, %s2657_s7  ;;  %v1369_v17 = vunpack.c.l.bf16 %v1367_v38 }
 0xcd4   :  { %1220 = vrot.lane.b32.xlu1 %v2554_v61, %s2657_s7 }
 0xd41   :  { %v1339_v5 = vpop.permute.xlu0 %1338 }
 0xd42   :  { %v3058_v6 = vmul.f32 %v2540_v27, %v1339_v5  ;;  %v1341_v7 = vpop.permute.xlu1 %1340 }
 0xd43   :  { %v3060_v10 = vmul.f32 %v2542_v29, %v1341_v7 }
 0xd44   :  { %v1490_v11 = vpack.c.bf16 %v3058_v6, %v3058_v6 }
 0xd45   :  { %v1491_v12 = vpack.c.bf16 %v3060_v10, %v3060_v10  ;;  %v1219_v15 = vpop.permute.xlu0 %1218 }
 0xd46   :  { %v1494_v16 = vunpack.c.l.b16 %v1490_v11  ;;  %v3066_v19 = vmul.f32 %v2544_v34, %v1219_v15  ;;  %v1221_v20 = vpop.permute.xlu1 %1220 }
 0xd47   :  { %v1495_v21 = vunpack.c.l.b16 %v1491_v12  ;;  %v3068_v22 = vmul.f32 %v2546_v36, %v1221_v20 }
 0xd48   :  { %v1496_v24 = vrot.slane %v1494_v16, 3  ;;  %v1370_v27 = vpack.c.bf16 %v3066_v19, %v3066_v19 }
 0xd49   :  { %v1497_v28 = vrot.slane %v1495_v21, 2  ;;  %v1371_v29 = vpack.c.bf16 %v3068_v22, %v3068_v22 }
 0xd4a   :  { %v1374_v30 = vunpack.c.l.b16 %v1370_v27 }
 0xd4b   :  { %v1375_v1 = vunpack.c.l.b16 %v1371_v29  ;;  %v1498_v31 = vsel %vm333_vm3, %v1497_v28, %v1496_v24 }
 0xd4c   :  { %v1376_v35 = vrot.slane %v1374_v30, 4  ;;  %v1499_v37 = vpack.c.b16 %v1498_v31, %v1498_v31 }
 0xd4d   :  { %v1377_v34 = vrot.slane %v1375_v1, 3 }
 0xd4e   :  { %1500 = vrot.lane.b32.xlu0 %v1499_v37, %s2658_s8 }
 0xd4f   :  { %v1378_v36 = vsel %vm333_vm3, %v1377_v34, %v1376_v35 }
 0xd50   :  { %v1379_v39 = vpack.c.b16 %v1378_v36, %v1378_v36 }
 0xd52   :  { %1380 = vrot.lane.b32.xlu1 %v1379_v39, %s2658_s8 }
 0xdc0   :  { %v1501_v40 = vpop.permute.xlu0 %1500 }
 0xdc1   :  { %2359 = vmatmul.mubr.msk.bf16.vlgmr.msra.gmra.mxu1 %vm76_vm2, %v1501_v40 }
 0xdc2   :  { %2369 = vmatpush3.bf16.msra.mxu1 %v3002_v25  ;;  %2370 = vmatprep.mubr.msk.bf16.mxu1 %vm2654_vm1, %v2653_v0 }
 0xdc3   :  { %2380 = vmatprep.subr.bf16.mxu1 %v2653_v0 }
 0xdc4   :  { %v1381_v43 = vpop.permute.xlu1 %1380 }
 0xdc5   :  { %2353 = vmatmul.mubr.msk.bf16.vlgmr.msra.gmra.mxu0 %vm76_vm2, %v1381_v43 }
 0xdc6   :  { %2363 = vmatpush3.bf16.msra.mxu0 %v3012_v2  ;;  %2364 = vmatprep.mubr.msk.bf16.mxu0 %vm2654_vm1, %v2653_v0 }
 0xdc7   :  { %2374 = vmatprep.subr.bf16.mxu0 %v2653_v0 }
 0xe81   :  { %v1539_v49 = vpop.f32.mrf.mxu1 }
 0xe82   :  { %v1546_v56 = vrot.slane %v1539_v49, 6  ;;  %v1547_v54 = vrot.slane %v1539_v49, 7 }
 0xe83   :  { %v2360_v8 = vpop.f32.mrf.mxu1 }
 0xe84   :  { %v1550_v57 = vadd.f32 %v1546_v56, %v1488_v46  ;;  %v1551_v45 = vadd.f32 %v1547_v54, %v1489_v53 }
 0xe85   :  { %v1419_v61 = vpop.f32.mrf.mxu0  ;;  %v1542_v5 = vpop.f32.mrf.mxu1 }
 0xe86   :  { %2555 = vtanh.f32 %v1550_v57  ;;  %v1426_v7 = vrot.slane %v1419_v61, 3  ;;  %v1427_v11 = vrot.slane %v1419_v61, 4  ;;  %v2244_v1 = vmul.f32 -1.442695, %v1550_v57 }
 0xe87   :  { %2557 = vtanh.f32 %v1551_v45  ;;  %v2354_v12 = vpop.f32.mrf.mxu0  ;;  %v2361_v15 = vpop.f32.mrf.mxu1  ;;  %v2245_v31 = vmul.f32 -1.442695, %v1551_v45  ;;  %v1568_v5 = vrot.slane %v3041_v47, 1 }
 0xe88   :  { %v1430_v16 = vadd.f32 %v1426_v7, %v1368_v51  ;;  %v1431_v20 = vadd.f32 %v1427_v11, %v1369_v17  ;;  %v1569_v7 = vrot.slane %v3044_v50, 1 }
 0xe89   :  { %v1422_v21 = vpop.f32.mrf.mxu0 }
 0xe8a   :  { %2559 = vtanh.f32 %v1430_v16  ;;  %v2241_v35 = vmul.f32 -1.442695, %v1430_v16  ;;  %v2242_v37 = vmul.f32 -1.442695, %v1431_v20  ;;  %v1448_v16 = vrot.slane %v3048_v41, 7 }
 0xe8b   :  { %2561 = vtanh.f32 %v1431_v20  ;;  %v2355_v24 = vpop.f32.mrf.mxu0 }
 0xe8c   :  { %2563 = vpow2.f32 %v2244_v1  ;;  %v1449_v24 = vrot.slane %v3050_v58, 7 }
 0xe8d   :  { %2565 = vpow2.f32 %v2245_v31 }
 0xe8e   :  { %2567 = vpow2.f32 %v2241_v35 }
 0xe8f   :  { %2569 = vpow2.f32 %v2242_v37 }
 0xe93   :  { %v2556_v27 = vpop.eup %2555 }
 0xe94   :  { %v2558_v28 = vpop.eup %2557  ;;  %1576 = vrot.lane.b32.xlu0 %v2556_v27, %s2655_s30 }
 0xe95   :  { %1578 = vrot.lane.b32.xlu1 %v2558_v28, %s2655_s30 }
 0xe97   :  { %v2560_v29 = vpop.eup %2559 }
 0xe98   :  { %v2562_v30 = vpop.eup %2561  ;;  %1456 = vrot.lane.b32.xlu0 %v2560_v29, %s2655_s30 }
 0xe99   :  { %1458 = vrot.lane.b32.xlu1 %v2562_v30, %s2655_s30  ;;  %v2564_v34 = vpop.eup %2563 }
 0xe9a   :  { %v2566_v36 = vpop.eup %2565  ;;  %v1558_v39 = vadd.f32 1.0, %v2564_v34 }
 0xe9b   :  { %v2568_v40 = vpop.eup %2567  ;;  %v1559_v43 = vadd.f32 1.0, %v2566_v36 }
 0xe9c   :  { %v2570_v42 = vpop.eup %2569  ;;  %2571 = vrcp.f32 %v1558_v39  ;;  %v1438_v44 = vadd.f32 1.0, %v2568_v40 }
 0xe9d   :  { %2573 = vrcp.f32 %v1559_v43  ;;  %v1439_v46 = vadd.f32 1.0, %v2570_v42 }
 0xe9e   :  { %2575 = vrcp.f32 %v1438_v44 }
 0xe9f   :  { %2577 = vrcp.f32 %v1439_v46 }
 0xea9   :  { %v2572_v53 = vpop.eup %2571 }
 0xeaa   :  { %v2574_v48 = vpop.eup %2573  ;;  %v1572_v11 = vmul.f32 %v2572_v53, %v1568_v5 }
 0xeab   :  { %v2576_v8 = vpop.eup %2575  ;;  %v1573_v15 = vmul.f32 %v2574_v48, %v1569_v7 }
 0xeac   :  { %v2578_v45 = vpop.eup %2577  ;;  %v1452_v28 = vmul.f32 %v2576_v8, %v1448_v16  ;;  %v1746_v16 = vld [vmem:[%s3477_s1] sm:$0x1] }
 0xead   :  { %v1453_v29 = vmul.f32 %v2578_v45, %v1449_v24 }
 0xf06   :  { %v1577_v49 = vpop.permute.xlu0 %1576 }
 0xf07   :  { %v1582_v56 = vmul.f32 %v2572_v53, %v1577_v49  ;;  %v1579_v54 = vpop.permute.xlu1 %1578 }
 0xf08   :  { %v1583_v38 = vmul.f32 %v2574_v48, %v1579_v54 }
 0xf09   :  { %1586 = vrot.lane.b32.xlu0 %v1582_v56, %s2656_s6 }
 0xf0a   :  { %1588 = vrot.lane.b32.xlu1 %v1583_v38, %s2656_s6  ;;  %v1457_v57 = vpop.permute.xlu0 %1456 }
 0xf0b   :  { %v1462_v51 = vmul.f32 %v2576_v8, %v1457_v57  ;;  %v1459_v17 = vpop.permute.xlu1 %1458 }
 0xf0c   :  { %v1463_v61 = vmul.f32 %v2578_v45, %v1459_v17 }
 0xf0d   :  { %1466 = vrot.lane.b32.xlu0 %v1462_v51, %s2656_s6 }
 0xf0e   :  { %1468 = vrot.lane.b32.xlu1 %v1463_v61, %s2656_s6 }
 0xf7b   :  { %v1587_v12 = vpop.permute.xlu0 %1586 }
 0xf7c   :  { %v3111_v20 = vadd.f32 %v1587_v12, %v1572_v11  ;;  %v1589_v21 = vpop.permute.xlu1 %1588 }
 0xf7d   :  { %v3114_v27 = vadd.f32 %v1589_v21, %v1573_v15  ;;  %v1748_v21 = vunpack.c.l.bf16 %v1746_v16 }
 0xf7e   :  { %2579 = vtanh.f32 %v3111_v20 }
 0xf7f   :  { %2581 = vtanh.f32 %v3114_v27  ;;  %v1467_v47 = vpop.permute.xlu0 %1466 }
 0xf80   :  { %v3118_v50 = vadd.f32 %v1467_v47, %v1452_v28  ;;  %v1469_v30 = vpop.permute.xlu1 %1468  ;;  %v1627_v28 = vld [vmem:[%s3476_s0 + $0x4] sm:$0x8] }
 0xf81   :  { %v3120_v1 = vadd.f32 %v1469_v30, %v1453_v29 }
 0xf82   :  { %2583 = vtanh.f32 %v3118_v50 }
 0xf83   :  { %2585 = vtanh.f32 %v3120_v1 }
 0xf8b   :  { %v2580_v41 = vpop.eup %2579 }
 0xf8c   :  { %v2582_v58 = vpop.eup %2581  ;;  %1598 = vrot.lane.b32.xlu0 %v2580_v41, %s2657_s7  ;;  %v1629_v41 = vunpack.c.l.bf16 %v1627_v28 }
 0xf8d   :  { %1600 = vrot.lane.b32.xlu1 %v2582_v58, %s2657_s7 }
 0xf8f   :  { %v2584_v31 = vpop.eup %2583 }
 0xf90   :  { %v2586_v35 = vpop.eup %2585  ;;  %1478 = vrot.lane.b32.xlu0 %v2584_v31, %s2657_s7 }
 0xf91   :  { %1480 = vrot.lane.b32.xlu1 %v2586_v35, %s2657_s7 }
 0xffe   :  { %v1599_v37 = vpop.permute.xlu0 %1598 }
 0xfff   :  { %v3128_v34 = vmul.f32 %v2572_v53, %v1599_v37  ;;  %v1601_v36 = vpop.permute.xlu1 %1600 }
0x1000   :  { %v3130_v39 = vmul.f32 %v2574_v48, %v1601_v36 }
0x1001   :  { %v1750_v40 = vpack.c.bf16 %v3128_v34, %v3128_v34 }
0x1002   :  { %v1751_v43 = vpack.c.bf16 %v3130_v39, %v3130_v39  ;;  %v1479_v42 = vpop.permute.xlu0 %1478 }
0x1003   :  { %v1754_v44 = vunpack.c.l.b16 %v1750_v40  ;;  %v3136_v46 = vmul.f32 %v2576_v8, %v1479_v42  ;;  %v1481_v49 = vpop.permute.xlu1 %1480 }
0x1004   :  { %v1755_v56 = vunpack.c.l.b16 %v1751_v43  ;;  %v3138_v54 = vmul.f32 %v2578_v45, %v1481_v49 }
0x1005   :  { %v1756_v38 = vrot.slane %v1754_v44, 2  ;;  %v1630_v53 = vpack.c.bf16 %v3136_v46, %v3136_v46 }
0x1006   :  { %v1757_v48 = vrot.slane %v1755_v56, 1  ;;  %v1631_v57 = vpack.c.bf16 %v3138_v54, %v3138_v54 }
0x1007   :  { %v1634_v51 = vunpack.c.l.b16 %v1630_v53 }
0x1008   :  { %v1635_v17 = vunpack.c.l.b16 %v1631_v57  ;;  %v1758_v61 = vsel %vm333_vm3, %v1757_v48, %v1756_v38 }
0x1009   :  { %v1636_v5 = vrot.slane %v1634_v51, 5  ;;  %v1759_v7 = vpack.c.b16 %v1758_v61, %v1758_v61 }
0x100a   :  { %v1637_v8 = vrot.slane %v1635_v17, 4 }
0x100b   :  { %1760 = vrot.lane.b32.xlu0 %v1759_v7, %s2658_s8 }
0x100c   :  { %v1638_v45 = vsel %vm333_vm3, %v1637_v8, %v1636_v5 }
0x100d   :  { %v1639_v11 = vpack.c.b16 %v1638_v45, %v1638_v45 }
0x100f   :  { %1640 = vrot.lane.b32.xlu1 %v1639_v11, %s2658_s8 }
0x107d   :  { %v1761_v12 = vpop.permute.xlu0 %1760 }
0x107e   :  { %2371 = vmatmul.mubr.msk.bf16.vlgmr.msra.gmra.mxu1 %vm76_vm2, %v1761_v12 }
0x107f   :  { %2381 = vmatpush3.bf16.msra.mxu1 %v3002_v25  ;;  %2382 = vmatprep.mubr.msk.bf16.mxu1 %vm2654_vm1, %v2653_v0  ;;  %v1626_v25 = vld [vmem:[%s3476_s0] sm:$0x8] }
0x1080   :  { %v1628_v30 = vunpack.c.l.bf16 %v1626_v25 }
0x1081   :  { %v1641_v15 = vpop.permute.xlu1 %1640 }
0x1082   :  { %2365 = vmatmul.mubr.msk.bf16.vlgmr.msra.gmra.mxu0 %vm76_vm2, %v1641_v15 }
0x1083   :  { %2375 = vmatpush3.bf16.msra.mxu0 %v3012_v2  ;;  %2376 = vmatprep.mubr.msk.bf16.mxu0 %vm2654_vm1, %v2653_v0  ;;  %v1747_v2 = vld [vmem:[%s3477_s1 + $0x4] sm:$0x1] }
0x1084   :  { %v1749_v35 = vunpack.c.l.bf16 %v1747_v2 }
0x113e   :  { %v1799_v24 = vpop.f32.mrf.mxu1 }
0x113f   :  { %v1806_v47 = vrot.slane %v1799_v24, 7  ;;  %v1810_v56 = vadd.f32 %v1799_v24, %v1749_v35 }
0x1140   :  { %v2372_v0 = vpop.f32.mrf.mxu1 }
0x1141   :  { %v1809_v29 = vadd.f32 %v1806_v47, %v1748_v21  ;;  %v2251_v7 = vmul.f32 -1.442695, %v1810_v56 }
0x1142   :  { %v1679_v58 = vpop.f32.mrf.mxu0  ;;  %v1802_v31 = vpop.f32.mrf.mxu1 }
0x1143   :  { %v1686_v37 = vrot.slane %v1679_v58, 2  ;;  %v1687_v36 = vrot.slane %v1679_v58, 3  ;;  %2587 = vtanh.f32 %v1809_v29  ;;  %v2250_v17 = vmul.f32 -1.442695, %v1809_v29 }
0x1144   :  { %v2366_v40 = vpop.f32.mrf.mxu0  ;;  %v2373_v43 = vpop.f32.mrf.mxu1 }
0x1145   :  { %v1690_v42 = vadd.f32 %v1686_v37, %v1628_v30  ;;  %v1691_v44 = vadd.f32 %v1687_v36, %v1629_v41  ;;  %v1827_v36 = vrot.slane %v3111_v20, 1  ;;  %v1708_v43 = vrot.slane %v3118_v50, 7 }
0x1146   :  { %v1682_v49 = vpop.f32.mrf.mxu0 }
0x1147   :  { %2589 = vtanh.f32 %v1690_v42  ;;  %v2247_v61 = vmul.f32 -1.442695, %v1690_v42  ;;  %v2248_v5 = vmul.f32 -1.442695, %v1691_v44 }
0x1148   :  { %2591 = vtanh.f32 %v1691_v44  ;;  %v2367_v38 = vpop.f32.mrf.mxu0  ;;  %v1709_v44 = vrot.slane %v3120_v1, 7 }
0x1149   :  { %2593 = vtanh.f32 %v1810_v56 }
0x114a   :  { %2595 = vpow2.f32 %v2250_v17 }
0x114b   :  { %2597 = vpow2.f32 %v2247_v61 }
0x114c   :  { %2599 = vpow2.f32 %v2248_v5 }
0x114d   :  { %2601 = vpow2.f32 %v2251_v7 }
0x1150   :  { %v2588_v53 = vpop.eup %2587 }
0x1151   :  { %1835 = vrot.lane.b32.xlu0 %v2588_v53, %s2655_s30 }
0x1154   :  { %v2590_v48 = vpop.eup %2589 }
0x1155   :  { %v2592_v57 = vpop.eup %2591  ;;  %1716 = vrot.lane.b32.xlu1 %v2590_v48, %s2655_s30  ;;  %v1828_v48 = vrot.slane %v3114_v27, 1 }
0x1156   :  { %1718 = vrot.lane.b32.xlu0 %v2592_v57, %s2655_s30  ;;  %v2594_v51 = vpop.eup %2593 }
0x1157   :  { %v2596_v8 = vpop.eup %2595 }
0x1158   :  { %v2598_v45 = vpop.eup %2597  ;;  %v1817_v11 = vadd.f32 1.0, %v2596_v8 }
0x1159   :  { %1837 = vrot.lane.b32.xlu1 %v2594_v51, %s2655_s30  ;;  %v2600_v12 = vpop.eup %2599  ;;  %v1698_v15 = vadd.f32 1.0, %v2598_v45 }
0x115a   :  { %v2602_v16 = vpop.eup %2601  ;;  %2603 = vrcp.f32 %v1817_v11  ;;  %v1699_v21 = vadd.f32 1.0, %v2600_v12 }
0x115b   :  { %v1818_v24 = vadd.f32 1.0, %v2602_v16  ;;  %2605 = vrcp.f32 %v1698_v15 }
0x115c   :  { %2607 = vrcp.f32 %v1699_v21 }
0x115d   :  { %2609 = vrcp.f32 %v1818_v24 }
0x1167   :  { %v2604_v25 = vpop.eup %2603 }
0x1168   :  { %v2606_v2 = vpop.eup %2605  ;;  %v1831_v40 = vmul.f32 %v2604_v25, %v1827_v36 }
0x1169   :  { %v2608_v29 = vpop.eup %2607  ;;  %v1712_v56 = vmul.f32 %v2606_v2, %v1708_v43 }
0x116a   :  { %v2610_v31 = vpop.eup %2609  ;;  %v1713_v38 = vmul.f32 %v2608_v29, %v1709_v44 }
0x116b   :  { %v1832_v20 = vmul.f32 %v2610_v31, %v1828_v48 }
0x11c3   :  { %v1836_v28 = vpop.permute.xlu0 %1835 }
0x11c4   :  { %v1841_v47 = vmul.f32 %v2604_v25, %v1836_v28 }
0x11c6   :  { %1845 = vrot.lane.b32.xlu0 %v1841_v47, %s2656_s6 }
0x11c7   :  { %v1717_v0 = vpop.permute.xlu1 %1716 }
0x11c8   :  { %v1719_v30 = vpop.permute.xlu0 %1718  ;;  %v1722_v41 = vmul.f32 %v2606_v2, %v1717_v0 }
0x11c9   :  { %v1723_v58 = vmul.f32 %v2608_v29, %v1719_v30 }
0x11ca   :  { %1726 = vrot.lane.b32.xlu1 %v1722_v41, %s2656_s6 }
0x11cb   :  { %1728 = vrot.lane.b32.xlu0 %v1723_v58, %s2656_s6  ;;  %v1838_v35 = vpop.permute.xlu1 %1837 }
0x11cc   :  { %v1842_v37 = vmul.f32 %v2610_v31, %v1838_v35 }
0x11ce   :  { %1847 = vrot.lane.b32.xlu1 %v1842_v37, %s2656_s6 }
0x1238   :  { %v1846_v42 = vpop.permute.xlu0 %1845 }
0x1239   :  { %v3179_v49 = vadd.f32 %v1846_v42, %v1831_v40 }
0x123b   :  { %2611 = vtanh.f32 %v3179_v49 }
0x123c   :  { %v1727_v53 = vpop.permute.xlu1 %1726 }
0x123d   :  { %v1729_v57 = vpop.permute.xlu0 %1728  ;;  %v3183_v51 = vadd.f32 %v1727_v53, %v1712_v56  ;;  %v1886_v56 = vld [vmem:[%s3476_s0 + $0x4] sm:$0x8] }
0x123e   :  { %v3185_v17 = vadd.f32 %v1729_v57, %v1713_v38  ;;  %v1885_v38 = vld [vmem:[%s3476_s0] sm:$0x8]  ;;  %v1888_v53 = vunpack.c.l.bf16 %v1886_v56  ;;  %v2006_v57 = vld [vmem:[%s3477_s1 + $0x4] sm:$0x1] }
0x123f   :  { %2613 = vtanh.f32 %v3183_v51 }
0x1240   :  { %2615 = vtanh.f32 %v3185_v17  ;;  %v1848_v50 = vpop.permute.xlu1 %1847 }
0x1241   :  { %v3189_v1 = vadd.f32 %v1848_v50, %v1832_v20 }
0x1243   :  { %2617 = vtanh.f32 %v3189_v1 }
0x1248   :  { %v2612_v61 = vpop.eup %2611 }
0x1249   :  { %1857 = vrot.lane.b32.xlu0 %v2612_v61, %s2657_s7  ;;  %v1887_v61 = vunpack.c.l.bf16 %v1885_v38 }
0x124c   :  { %v2614_v5 = vpop.eup %2613 }
0x124d   :  { %v2616_v27 = vpop.eup %2615  ;;  %1738 = vrot.lane.b32.xlu1 %v2614_v5, %s2657_s7 }
0x124e   :  { %1740 = vrot.lane.b32.xlu0 %v2616_v27, %s2657_s7 }
0x1250   :  { %v2618_v7 = vpop.eup %2617 }
0x1251   :  { %1859 = vrot.lane.b32.xlu1 %v2618_v7, %s2657_s7 }
0x12bb   :  { %v1858_v8 = vpop.permute.xlu0 %1857 }
0x12bc   :  { %v3196_v45 = vmul.f32 %v2604_v25, %v1858_v8  ;;  %v2008_v8 = vunpack.c.l.bf16 %v2006_v57 }
0x12be   :  { %v2009_v12 = vpack.c.bf16 %v3196_v45, %v3196_v45 }
0x12bf   :  { %v1739_v11 = vpop.permute.xlu1 %1738 }
0x12c0   :  { %v1741_v15 = vpop.permute.xlu0 %1740  ;;  %v3200_v16 = vmul.f32 %v2606_v2, %v1739_v11  ;;  %v2013_v0 = vunpack.c.l.b16 %v2009_v12 }
0x12c1   :  { %v3202_v21 = vmul.f32 %v2608_v29, %v1741_v15  ;;  %v2005_v15 = vld [vmem:[%s3477_s1] sm:$0x1] }
0x12c2   :  { %v1889_v24 = vpack.c.bf16 %v3200_v16, %v3200_v16  ;;  %v2015_v37 = vrot.slane %v2013_v0, 1 }
0x12c3   :  { %v1890_v28 = vpack.c.bf16 %v3202_v21, %v3202_v21  ;;  %v1860_v47 = vpop.permute.xlu1 %1859 }
0x12c4   :  { %v1893_v30 = vunpack.c.l.b16 %v1889_v24  ;;  %v3208_v25 = vmul.f32 %v2610_v31, %v1860_v47 }
0x12c5   :  { %v1894_v41 = vunpack.c.l.b16 %v1890_v28 }
0x12c6   :  { %v1895_v58 = vrot.slane %v1893_v30, 6  ;;  %v2010_v35 = vpack.c.bf16 %v3208_v25, %v3208_v25  ;;  %v2007_v30 = vunpack.c.l.bf16 %v2005_v15 }
0x12c7   :  { %v1896_v2 = vrot.slane %v1894_v41, 5 }
0x12c8   :  { %v2014_v29 = vunpack.c.l.b16 %v2010_v35 }
0x12c9   :  { %v1897_v36 = vsel %vm333_vm3, %v1896_v2, %v1895_v58 }
0x12ca   :  { %v2016_v40 = vsel %vm333_vm3, %v2014_v29, %v2015_v37  ;;  %v1898_v43 = vpack.c.b16 %v1897_v36, %v1897_v36 }
0x12cb   :  { %v2017_v42 = vpack.c.b16 %v2016_v40, %v2016_v40 }
0x12cc   :  { %1899 = vrot.lane.b32.xlu1 %v1898_v43, %s2658_s8 }
0x12cd   :  { %2018 = vrot.lane.b32.xlu0 %v2017_v42, %s2658_s8 }
0x133e   :  { %v1900_v31 = vpop.permute.xlu1 %1899 }
0x133f   :  { %2377 = vmatmul.mubr.msk.bf16.vlgmr.msra.gmra.mxu0 %vm76_vm2, %v1900_v31  ;;  %v2019_v44 = vpop.permute.xlu0 %2018 }
0x1340   :  { %2383 = vmatmul.mubr.msk.bf16.vlgmr.msra.gmra.mxu1 %vm76_vm2, %v2019_v44 }
0x13ff   :  { %v1938_v48 = vpop.f32.mrf.mxu0 }
0x1400   :  { %v1946_v20 = vrot.slane %v1938_v48, 2  ;;  %v2057_v50 = vpop.f32.mrf.mxu1  ;;  %v1945_v5 = vrot.slane %v1938_v48, 1 }
0x1401   :  { %v2378_v27 = vpop.f32.mrf.mxu0  ;;  %v2064_v11 = vrot.slane %v2057_v50, 1  ;;  %v2067_v35 = vadd.f32 %v2057_v50, %v2007_v30  ;;  %v1968_v30 = vrot.slane %v3185_v17, 7  ;;  %v2085_v17 = vrot.slane %v3179_v49, 1 }
0x1402   :  { %v1950_v7 = vadd.f32 %v1946_v20, %v1888_v53  ;;  %v2384_v12 = vpop.f32.mrf.mxu1  ;;  %v1949_v47 = vadd.f32 %v1945_v5, %v1887_v61 }
0x1403   :  { %v1941_v24 = vpop.f32.mrf.mxu0  ;;  %v2068_v41 = vadd.f32 %v2064_v11, %v2008_v8  ;;  %v2256_v31 = vmul.f32 -1.442695, %v2067_v35 }
0x1404   :  { %v2060_v28 = vpop.f32.mrf.mxu1  ;;  %2619 = vtanh.f32 %v1950_v7  ;;  %v2254_v40 = vmul.f32 -1.442695, %v1950_v7  ;;  %v2253_v43 = vmul.f32 -1.442695, %v1949_v47 }
0x1405   :  { %v2379_v0 = vpop.f32.mrf.mxu0  ;;  %2621 = vtanh.f32 %v1949_v47  ;;  %v2257_v42 = vmul.f32 -1.442695, %v2068_v41 }
0x1406   :  { %v2385_v58 = vpop.f32.mrf.mxu1  ;;  %2623 = vtanh.f32 %v2068_v41 }
0x1407   :  { %2625 = vtanh.f32 %v2067_v35  ;;  %v1967_v58 = vrot.slane %v3183_v51, 7 }
0x1408   :  { %2627 = vpow2.f32 %v2254_v40 }
0x1409   :  { %2629 = vpow2.f32 %v2253_v43 }
0x140a   :  { %2631 = vpow2.f32 %v2257_v42 }
0x140b   :  { %2633 = vpow2.f32 %v2256_v31 }
0x1411   :  { %v2620_v2 = vpop.eup %2619 }
0x1412   :  { %1977 = vrot.lane.b32.xlu1 %v2620_v2, %s2655_s30  ;;  %v2622_v37 = vpop.eup %2621 }
0x1413   :  { %v2624_v29 = vpop.eup %2623 }
0x1414   :  { %2095 = vrot.lane.b32.xlu0 %v2624_v29, %s2655_s30  ;;  %v2626_v36 = vpop.eup %2625 }
0x1415   :  { %v2628_v44 = vpop.eup %2627 }
0x1416   :  { %1975 = vrot.lane.b32.xlu1 %v2622_v37, %s2655_s30  ;;  %v1958_v56 = vadd.f32 1.0, %v2628_v44  ;;  %v2630_v38 = vpop.eup %2629 }
0x1417   :  { %v2632_v53 = vpop.eup %2631  ;;  %v1957_v48 = vadd.f32 1.0, %v2630_v38 }
0x1418   :  { %2093 = vrot.lane.b32.xlu0 %v2626_v36, %s2655_s30  ;;  %2635 = vrcp.f32 %v1958_v56  ;;  %v2076_v57 = vadd.f32 1.0, %v2632_v53  ;;  %v2634_v20 = vpop.eup %2633 }
0x1419   :  { %2637 = vrcp.f32 %v1957_v48  ;;  %v2075_v50 = vadd.f32 1.0, %v2634_v20 }
0x141a   :  { %2639 = vrcp.f32 %v2076_v57 }
0x141b   :  { %2641 = vrcp.f32 %v2075_v50 }
0x1425   :  { %v3234_v61 = vpop.eup %2635 }
0x1426   :  { %v3238_v7 = vpop.eup %2637 }
0x1427   :  { %v3240_v11 = vpop.eup %2639 }
0x1428   :  { %v3246_v28 = vpop.eup %2641 }
0x1429   :  { %v2089_v51 = vmul.f32 %v3246_v28, %v2085_v17 }
0x1484   :  { %v1978_v5 = vpop.permute.xlu1 %1977 }
0x1485   :  { %v1982_v27 = vmul.f32 %v3234_v61, %v1978_v5 }
0x1486   :  { %v2096_v12 = vpop.permute.xlu0 %2095 }
0x1487   :  { %1987 = vrot.lane.b32.xlu1 %v1982_v27, %s2656_s6  ;;  %v2100_v24 = vmul.f32 %v3240_v11, %v2096_v12 }
0x1488   :  { %v1976_v8 = vpop.permute.xlu1 %1975 }
0x1489   :  { %v1981_v15 = vmul.f32 %v3238_v7, %v1976_v8  ;;  %2105 = vrot.lane.b32.xlu0 %v2100_v24, %s2656_s6 }
0x148a   :  { %v2094_v47 = vpop.permute.xlu0 %2093 }
0x148b   :  { %1985 = vrot.lane.b32.xlu1 %v1981_v15, %s2656_s6  ;;  %v2099_v0 = vmul.f32 %v3246_v28, %v2094_v47 }
0x148d   :  { %2103 = vrot.lane.b32.xlu0 %v2099_v0, %s2656_s6 }
0x148f   :  { %304 = vrot.lane.b32.xlu1 %v2776_v32, %s2658_s8  ;;  %v1972_v32 = vmul.f32 %v3234_v61, %v1968_v30 }
0x1491   :  { %302 = vrot.lane.b32.xlu0 %v2778_v33, %s2658_s8  ;;  %v2086_v33 = vrot.slane %v3189_v1, 1 }
0x1493   :  { %315 = vrot.lane.b32.xlu1 %v2772_v26, %s2658_s8 }
0x1495   :  { %313 = vrot.lane.b32.xlu0 %v2768_v23, %s2658_s8  ;;  %v2090_v23 = vmul.f32 %v3240_v11, %v2086_v33 }
0x1497   :  { %565 = vrot.lane.b32.xlu1 %v2850_v18, %s2658_s8  ;;  %v1971_v18 = vmul.f32 %v3238_v7, %v1967_v58 }
0x1499   :  { %563 = vrot.lane.b32.xlu0 %v2846_v9, %s2658_s8 }
0x14f9   :  { %v1988_v41 = vpop.permute.xlu1 %1987 }
0x14fa   :  { %v3265_v26 = vadd.f32 %v1988_v41, %v1972_v32 }
0x14fb   :  { %v2106_v2 = vpop.permute.xlu0 %2105 }
0x14fc   :  { %2643 = vtanh.f32 %v3265_v26  ;;  %v2110_v37 = vadd.f32 %v2106_v2, %v2090_v23 }
0x14fd   :  { %v1986_v35 = vpop.permute.xlu1 %1985 }
0x14fe   :  { %v1991_v9 = vadd.f32 %v1986_v35, %v1971_v18  ;;  %v2169_v1 = vrot.slane %v2110_v37, 7 }
0x14ff   :  { %v2104_v36 = vpop.permute.xlu0 %2103 }
0x1500   :  { %2645 = vtanh.f32 %v1991_v9  ;;  %v2109_v40 = vadd.f32 %v2104_v36, %v2089_v51 }
0x1501   :  { %v305_v29 = vpop.permute.xlu1 %304 }
0x1502   :  { %310 = vst.msk [vmem:[%s3478_s4 + $0x8] sm:$0x1] %vm308_vm4, %v305_v29  ;;  %2647 = vtanh.f32 %v2109_v40  ;;  %v3278_v42 = vsel %vm333_vm3, %v2169_v1, %v2109_v40 }
0x1503   :  { %v303_v49 = vpop.permute.xlu0 %302  ;;  %2649 = vtanh.f32 %v2110_v37 }
0x1504   :  { %309 = vst.msk [vmem:[%s3478_s4] sm:$0x1] %vm308_vm4, %v303_v49 }
0x1505   :  { %v316_v43 = vpop.permute.xlu1 %315 }
0x1506   :  { %321 = vst.msk [vmem:[%s3479_s5 + $0x8] sm:$0x80] %vm319_vm5, %v316_v43 }
0x1507   :  { %v314_v56 = vpop.permute.xlu0 %313 }
0x1508   :  { %320 = vst.msk [vmem:[%s3479_s5] sm:$0x80] %vm319_vm5, %v314_v56 }
0x1509   :  { %v2644_v31 = vpop.eup %2643  ;;  %v566_v44 = vpop.permute.xlu1 %565 }
0x150a   :  { %571 = vst.msk [vmem:[%s3478_s4 + $0x8] sm:$0x2] %vm569_vm6, %v566_v44  ;;  %1999 = vrot.lane.b32.xlu1 %v2644_v31, %s2657_s7 }
0x150b   :  { %v564_v53 = vpop.permute.xlu0 %563 }
0x150c   :  { %570 = vst.msk [vmem:[%s3478_s4] sm:$0x2] %vm569_vm6, %v564_v53 }
0x150d   :  { %v2646_v38 = vpop.eup %2645 }
0x150e   :  { %1997 = vrot.lane.b32.xlu1 %v2646_v38, %s2657_s7 }
0x150f   :  { %v2648_v48 = vpop.eup %2647 }
0x1510   :  { %2115 = vrot.lane.b32.xlu0 %v2648_v48, %s2657_s7  ;;  %v2650_v57 = vpop.eup %2649 }
0x1512   :  { %576 = vrot.lane.b32.xlu1 %v2840_v3, %s2658_s8 }
0x1514   :  { %2117 = vrot.lane.b32.xlu0 %v2650_v57, %s2657_s7  ;;  %s2659_s7 = smov 112  }
0x1516   :  { %826 = vrot.lane.b32.xlu1 %v2918_v4, %s2658_s8 }
0x1518   :  { %574 = vrot.lane.b32.xlu0 %v2838_v62, %s2658_s8  ;;  %v2151_v62 = vrot.slane %v3265_v26, 7 }
0x151a   :  { %837 = vrot.lane.b32.xlu1 %v2910_v13, %s2658_s8 }
0x151c   :  { %824 = vrot.lane.b32.xlu0 %v2916_v60, %s2658_s8 }
0x151e   :  { %1088 = vrot.lane.b32.xlu1 %v2988_v63, %s2658_s8 }
0x1520   :  { %835 = vrot.lane.b32.xlu0 %v2908_v55, %s2658_s8 }
0x1522   :  { %1099 = vrot.lane.b32.xlu1 %v2980_v52, %s2658_s8 }
0x1524   :  { %1086 = vrot.lane.b32.xlu0 %v2986_v59, %s2658_s8 }
0x1526   :  { %1350 = vrot.lane.b32.xlu1 %v3068_v22, %s2658_s8 }
0x1528   :  { %1097 = vrot.lane.b32.xlu0 %v2978_v14, %s2658_s8 }
0x152a   :  { %1360 = vrot.lane.b32.xlu1 %v3060_v10, %s2658_s8 }
0x152c   :  { %1348 = vrot.lane.b32.xlu0 %v3066_v19, %s2658_s8 }
0x152e   :  { %1610 = vrot.lane.b32.xlu1 %v3138_v54, %s2658_s8 }
0x1530   :  { %1358 = vrot.lane.b32.xlu0 %v3058_v6, %s2658_s8 }
0x1532   :  { %1620 = vrot.lane.b32.xlu1 %v3130_v39, %s2658_s8 }
0x1534   :  { %1608 = vrot.lane.b32.xlu0 %v3136_v46, %s2658_s8 }
0x1536   :  { %1869 = vrot.lane.b32.xlu1 %v3202_v21, %s2658_s8 }
0x1538   :  { %1618 = vrot.lane.b32.xlu0 %v3128_v34, %s2658_s8 }
0x153a   :  { %1879 = vrot.lane.b32.xlu1 %v3208_v25, %s2658_s8 }
0x153c   :  { %1867 = vrot.lane.b32.xlu0 %v3200_v16, %s2658_s8 }
0x153e   :  { %2152 = vrot.lane.b32.xlu1 %v1991_v9, %s2659_s7 }
0x1540   :  { %1877 = vrot.lane.b32.xlu0 %v3196_v45, %s2658_s8 }
0x1544   :  { %2154 = vrot.lane.b32.xlu0 %v2151_v62, %s2659_s7 }
0x157c   :  { %v2000_v3 = vpop.permute.xlu1 %1999 }
0x157d   :  { %v2004_v55 = vmul.f32 %v3234_v61, %v2000_v3 }
0x157f   :  { %2127 = vrot.lane.b32.xlu1 %v2004_v55, %s2658_s8  ;;  %v2143_v34 = vrot.slane %v2004_v55, 7 }
0x1580   :  { %v1998_v13 = vpop.permute.xlu1 %1997 }
0x1581   :  { %v2003_v63 = vmul.f32 %v3238_v7, %v1998_v13 }
0x1582   :  { %v2116_v4 = vpop.permute.xlu0 %2115 }
0x1583   :  { %v2121_v14 = vmul.f32 %v3246_v28, %v2116_v4 }
0x1584   :  { %v577_v60 = vpop.permute.xlu1 %576 }
0x1585   :  { %582 = vst.msk [vmem:[%s3479_s5 + $0x8] sm:$0x40] %vm580_vm7, %v577_v60  ;;  %2135 = vrot.lane.b32.xlu0 %v2121_v14, %s2658_s8 }
0x1586   :  { %v2118_v59 = vpop.permute.xlu0 %2117 }
0x1587   :  { %v2122_v6 = vmul.f32 %v3240_v11, %v2118_v59 }
0x1588   :  { %v827_v52 = vpop.permute.xlu1 %826 }
0x1589   :  { %832 = vst.msk [vmem:[%s3478_s4 + $0x8] sm:$0x4] %vm830_vm8, %v827_v52  ;;  %v2160_v10 = vrot.slane %v2122_v6, 7  ;;  %2137 = vrot.lane.b32.xlu1 %v2122_v6, %s2658_s8  ;;  %2125 = vrot.lane.b32.xlu0 %v2003_v63, %s2658_s8 }
0x158a   :  { %v575_v22 = vpop.permute.xlu0 %574 }
0x158b   :  { %581 = vst.msk [vmem:[%s3479_s5] sm:$0x40] %vm580_vm7, %v575_v22  ;;  %v2161_v39 = vsel %vm333_vm3, %v2160_v10, %v2121_v14 }
0x158c   :  { %v838_v19 = vpop.permute.xlu1 %837 }
0x158d   :  { %843 = vst.msk [vmem:[%s3479_s5 + $0x8] sm:$0x20] %vm841_vm9, %v838_v19  ;;  %2162 = vrot.lane.b32.xlu1 %v2161_v39, %s2658_s8  ;;  %2144 = vrot.lane.b32.xlu0 %v2143_v34, %s2658_s8 }
0x158e   :  { %v825_v54 = vpop.permute.xlu0 %824 }
0x158f   :  { %831 = vst.msk [vmem:[%s3478_s4] sm:$0x4] %vm830_vm8, %v825_v54 }
0x1590   :  { %v1089_v46 = vpop.permute.xlu1 %1088 }
0x1591   :  { %1094 = vst.msk [vmem:[%s3478_s4 + $0x8] sm:$0x8] %vm1092_vm10, %v1089_v46  ;;  %2171 = vrot.lane.b32.xlu0 %v3278_v42, %s2659_s7 }
0x1592   :  { %v836_v16 = vpop.permute.xlu0 %835 }
0x1593   :  { %842 = vst.msk [vmem:[%s3479_s5] sm:$0x20] %vm841_vm9, %v836_v16 }
0x1594   :  { %v1100_v45 = vpop.permute.xlu1 %1099 }
0x1595   :  { %1105 = vst.msk [vmem:[%s3479_s5 + $0x8] sm:$0x10] %vm1103_vm11, %v1100_v45 }
0x1596   :  { %v1087_v25 = vpop.permute.xlu0 %1086 }
0x1597   :  { %1093 = vst.msk [vmem:[%s3478_s4] sm:$0x8] %vm1092_vm10, %v1087_v25 }
0x1598   :  { %v1351_v21 = vpop.permute.xlu1 %1350 }
0x1599   :  { %1355 = vst.msk [vmem:[%s3478_s4 + $0x8] sm:$0x10] %vm1103_vm11, %v1351_v21 }
0x159a   :  { %v1098_v50 = vpop.permute.xlu0 %1097 }
0x159b   :  { %1104 = vst.msk [vmem:[%s3479_s5] sm:$0x10] %vm1103_vm11, %v1098_v50 }
0x159c   :  { %v1361_v20 = vpop.permute.xlu1 %1360 }
0x159d   :  { %1365 = vst.msk [vmem:[%s3479_s5 + $0x8] sm:$0x8] %vm1092_vm10, %v1361_v20 }
0x159e   :  { %v1349_v5 = vpop.permute.xlu0 %1348 }
0x159f   :  { %1354 = vst.msk [vmem:[%s3478_s4] sm:$0x10] %vm1103_vm11, %v1349_v5 }
0x15a0   :  { %v1611_v61 = vpop.permute.xlu1 %1610 }
0x15a1   :  { %1615 = vst.msk [vmem:[%s3478_s4 + $0x8] sm:$0x20] %vm841_vm9, %v1611_v61 }
0x15a2   :  { %v1359_v7 = vpop.permute.xlu0 %1358 }
0x15a3   :  { %1364 = vst.msk [vmem:[%s3479_s5] sm:$0x8] %vm1092_vm10, %v1359_v7 }
0x15a4   :  { %v1621_v27 = vpop.permute.xlu1 %1620 }
0x15a5   :  { %1625 = vst.msk [vmem:[%s3479_s5 + $0x8] sm:$0x4] %vm830_vm8, %v1621_v27 }
0x15a6   :  { %v1609_v11 = vpop.permute.xlu0 %1608 }
0x15a7   :  { %1614 = vst.msk [vmem:[%s3478_s4] sm:$0x20] %vm841_vm9, %v1609_v11 }
0x15a8   :  { %v1870_v8 = vpop.permute.xlu1 %1869 }
0x15a9   :  { %1874 = vst.msk [vmem:[%s3478_s4 + $0x8] sm:$0x40] %vm580_vm7, %v1870_v8 }
0x15aa   :  { %v1619_v15 = vpop.permute.xlu0 %1618 }
0x15ab   :  { %1624 = vst.msk [vmem:[%s3479_s5] sm:$0x4] %vm830_vm8, %v1619_v15 }
0x15ac   :  { %v1880_v12 = vpop.permute.xlu1 %1879 }
0x15ad   :  { %1884 = vst.msk [vmem:[%s3479_s5 + $0x8] sm:$0x2] %vm569_vm6, %v1880_v12 }
0x15ae   :  { %v1868_v28 = vpop.permute.xlu0 %1867 }
0x15af   :  { %1873 = vst.msk [vmem:[%s3478_s4] sm:$0x40] %vm580_vm7, %v1868_v28 }
0x15b0   :  { %v2153_v24 = vpop.permute.xlu1 %2152 }
0x15b1   :  { %2158 = vst.msk [vmem:[#allocation3 - $0x7] sm:$0x80] %vm319_vm5, %v2153_v24 }
0x15b2   :  { %v1878_v47 = vpop.permute.xlu0 %1877 }
0x15b3   :  { %1883 = vst.msk [vmem:[%s3479_s5] sm:$0x2] %vm569_vm6, %v1878_v47 }
0x15b6   :  { %v2155_v0 = vpop.permute.xlu0 %2154 }
0x15b7   :  { %2159 = vst.msk [vmem:[#allocation3 + $0x1] sm:$0x1] %vm308_vm4, %v2155_v0 }
0x15f1   :  { %v2128_v30 = vpop.permute.xlu1 %2127 }
0x15f2   :  { %2132 = vst.msk [vmem:[%s3478_s4 + $0x8] sm:$0x80] %vm319_vm5, %v2128_v30 }
0x15f7   :  { %v2136_v32 = vpop.permute.xlu0 %2135 }
0x15f8   :  { %2141 = vst.msk [vmem:[%s3479_s5] sm:$0x1] %vm308_vm4, %v2136_v32 }
0x15fb   :  { %v2126_v41 = vpop.permute.xlu0 %2125  ;;  %v2138_v58 = vpop.permute.xlu1 %2137 }
0x15fc   :  { %2131 = vst.msk [vmem:[%s3478_s4] sm:$0x80] %vm319_vm5, %v2126_v41  ;;  %2147 = vst.msk [vmem:[#allocation2 - $0x7] sm:$0x80] %vm319_vm5, %v2126_v41 }
0x15fd   :  { %2142 = vst.msk [vmem:[%s3479_s5 + $0x8] sm:$0x1] %vm308_vm4, %v2138_v58 }
0x15ff   :  { %v2145_v26 = vpop.permute.xlu0 %2144  ;;  %v2163_v33 = vpop.permute.xlu1 %2162 }
0x1600   :  { %2148 = vst.msk [vmem:[#allocation2 + $0x1] sm:$0x1] %vm308_vm4, %v2145_v26 }
0x1601   :  { %2166 = vst.msk [vmem:[#allocation4] sm:$0x3] %vm52_vm0, %v2163_v33 }
0x1603   :  { %v2172_v18 = vpop.permute.xlu0 %2171 }
0x1604   :  { %2174 = vst.msk [vmem:[#allocation5] sm:$0x3] %vm52_vm0, %v2172_v18 }

// kernel: slner_forward.10
= control target key start
LH: loop header
LB: loop body
LE: loop exit
PB: predicated region body
PF: predicated region fallthrough
CT: control target
= control target key end

     0   :  { %vm16_vm0 = vcmask 130048   ;;  %v7030_v0 = vmov 0.0   ;;  %vm4745_vm1 = vmmov 0   ;;  %s4746_s21 = smov 96   ;;  %s4747_s10 = smov 16   ;;  %vm656_vm2 = vcmask 1041409   ;;  %s7011_s1 = inlined_call_operand.vmem [shape: bf16[16,64], index: 1, kind: input, shape index: {}]   ;;  %s7012_s0 = inlined_call_operand.vmem [shape: bf16[16,6,64], index: 0, kind: input, shape index: {}]   ;;  %s7013_s2 = inlined_call_operand.vmem [shape: f32[16,16], index: 2, kind: output, shape index: {}]  }
   0x1   :  { %3930 = vmatprep.subr.bf16.mxu0 %v7030_v0  ;;  %v3973_v1 = vld [vmem:[%s7011_s1] sm:$0xff]   ;;  %3932 = vmatprep.mubr.msk.bf16.mxu0 %vm4745_vm1, %v7030_v0  ;;  %17 = vst.msk [vmem:[#allocation2] sm:$0xff] %vm16_vm0, %v7030_v0  ;;  %18 = vst.msk [vmem:[#allocation2 + $0x8] sm:$0xff] %vm16_vm0, %v7030_v0  ;;  %v4804_v11 = vld [vmem:[%s7012_s0 + $0x10] sm:$0x1]  ;;  %s4748_s17 = smov 32  }
   0x2   :  { %19 = vst.msk [vmem:[#allocation3] sm:$0xff] %vm16_vm0, %v7030_v0  ;;  %20 = vst.msk [vmem:[#allocation3 + $0x8] sm:$0xff] %vm16_vm0, %v7030_v0  ;;  %3936 = vmatprep.subr.bf16.mxu1 %v7030_v0  ;;  %3938 = vmatprep.mubr.msk.bf16.mxu1 %vm4745_vm1, %v7030_v0  ;;  %v4792_v5 = vld [vmem:[%s7012_s0] sm:$0x1]  ;;  %v4797_v6 = vld [vmem:[%s7012_s0 + $0x4] sm:$0x1]  ;;  %v7025_v16 = vunpack.c.l.bf16 %v4804_v11 }
   0x3   :  { %3931 = vmatpush3.bf16.msra.mxu0 %v3973_v1  ;;  %3937 = vmatpush3.bf16.msra.mxu1 %v3973_v1  ;;  %v7027_v7 = vunpack.c.l.bf16 %v4792_v5  ;;  %v7029_v8 = vunpack.c.l.bf16 %v4797_v6  ;;  %v4821_v18 = vld [vmem:[%s7012_s0 + $0x14] sm:$0x1]  ;;  %v4832_v23 = vld [vmem:[%s7012_s0 + $0x18] sm:$0x1]  ;;  %v4849_v29 = vld [vmem:[%s7012_s0 + $0x20] sm:$0x1] }
   0x4   :  { %3942 = vmatprep.subr.bf16.mxu0 %v7030_v0  ;;  %3948 = vmatprep.subr.bf16.mxu1 %v7030_v0  ;;  %v7024_v20 = vunpack.c.l.bf16 %v4821_v18  ;;  %v7023_v24 = vunpack.c.l.bf16 %v4832_v23  ;;  %v7022_v31 = vunpack.c.l.bf16 %v4849_v29  ;;  %v4857_v32 = vld [vmem:[%s7012_s0 + $0x24] sm:$0x1]  ;;  %v4870_v37 = vld [vmem:[%s7012_s0 + $0x1c] sm:$0x1]  ;;  %v4888_v44 = vld [vmem:[%s7012_s0 + $0x8] sm:$0x1] }
   0x5   :  { %v7021_v34 = vunpack.c.l.bf16 %v4857_v32  ;;  %v7019_v39 = vunpack.c.l.bf16 %v4870_v37  ;;  %v7026_v45 = vunpack.c.l.bf16 %v4888_v44  ;;  %v4895_v47 = vld [vmem:[%s7012_s0 + $0xc] sm:$0x1]  ;;  %v4911_v54 = vld [vmem:[%s7012_s0 + $0x28] sm:$0x1]  ;;  %vm659_vm3 = vcmask 1042434   ;;  %s4749_s18 = smov 80  }
   0x6   :  { %v7028_v49 = vunpack.c.l.bf16 %v4895_v47  ;;  %v7020_v57 = vunpack.c.l.bf16 %v4911_v54  ;;  %v4922_v59 = vld [vmem:[%s7012_s0 + $0x2c] sm:$0x1]  ;;  %vm662_vm4 = vcmask 1043459   ;;  %vm665_vm5 = vcmask 1044484  }
   0x7   :  { %v7018_v61 = vunpack.c.l.bf16 %v4922_v59  ;;  %vm668_vm6 = vcmask 1045509   ;;  %vm671_vm7 = vcmask 1046534   ;;  %vm674_vm8 = vcmask 1047559  }
   0x8   :  { %v23_v2 = vld [vmem:[#allocation2] sm:$0xff]  ;;  %v24_v3 = vld [vmem:[#allocation2 + $0x8] sm:$0xff]  ;;  %vm3745_vm9 = vcmask 130053   ;;  %vm3748_vm10 = vcmask 126976  }
   0x9   :  { %v59_v4 = vpack.c.bf16 %v24_v3, %v23_v2  ;;  %v4914_v55 = vld [vmem:[#allocation3] sm:$0xff] }
   0xa   :  { %v273_v60 = vrot.slane %v4914_v55, 1  ;;  %v274_v2 = vrot.slane %v4914_v55, 2 }
   0xb   :  { %3933 = vmatmul.mubr.msk.bf16.vlgmr.msra.gmra.mxu0 %vm16_vm0, %v59_v4 }
   0xc   :  { %3943 = vmatpush3.bf16.msra.mxu0 %v3973_v1  ;;  %3944 = vmatprep.mubr.msk.bf16.mxu0 %vm4745_vm1, %v7030_v0  ;;  %v4935_v1 = vld [vmem:[%s7012_s0 + $0x30] sm:$0x1] }
   0xd   :  { %3954 = vmatprep.subr.bf16.mxu0 %v7030_v0  ;;  %v7017_v3 = vunpack.c.l.bf16 %v4935_v1 }
  0xcb   :  { %v104_v9 = vpop.f32.mrf.mxu0 }
  0xcc   :  { %v113_v10 = vrot.slane %v104_v9, 1  ;;  %v4808_v13 = vadd.f32 %v104_v9, %v7027_v7  ;;  %v116_v17 = vrot.slane %v104_v9, 4  ;;  %v117_v21 = vrot.slane %v104_v9, 5 }
  0xcd   :  { %v3934_v12 = vpop.f32.mrf.mxu0  ;;  %v118_v25 = vrot.slane %v104_v9, 6  ;;  %v119_v40 = vrot.slane %v104_v9, 7  ;;  %v114_v46 = vrot.slane %v104_v9, 2  ;;  %v115_v50 = vrot.slane %v104_v9, 3 }
  0xce   :  { %v4812_v14 = vadd.f32 %v113_v10, %v7029_v8  ;;  %3974 = vtanh.f32 %v4808_v13  ;;  %v4827_v22 = vadd.f32 %v116_v17, %v7025_v16  ;;  %v4837_v26 = vadd.f32 %v117_v21, %v7024_v20  ;;  %v4949_v12 = vld [vmem:[%s7012_s0 + $0x34] sm:$0x1]  ;;  %v4953_v17 = vld [vmem:[#allocation3 + $0x8] sm:$0xff] }
  0xcf   :  { %v4814_v15 = vpop.f32.mrf.mxu0  ;;  %v4842_v28 = vadd.f32 %v118_v25, %v7023_v24  ;;  %v4881_v43 = vadd.f32 %v119_v40, %v7019_v39  ;;  %v4900_v51 = vadd.f32 %v114_v46, %v7026_v45  ;;  %v4905_v53 = vadd.f32 %v115_v50, %v7028_v49 }
  0xd0   :  { %3976 = vtanh.f32 %v4812_v14  ;;  %v120_v35 = vrot.slane %v4814_v15, 1  ;;  %v4864_v36 = vadd.f32 %v4814_v15, %v7022_v31  ;;  %v121_v58 = vrot.slane %v4814_v15, 2 }
  0xd1   :  { %v3935_v19 = vpop.f32.mrf.mxu0  ;;  %3978 = vtanh.f32 %v4827_v22  ;;  %v122_v62 = vrot.slane %v4814_v15, 3  ;;  %v123_v4 = vrot.slane %v4814_v15, 4  ;;  %v124_v21 = vrot.slane %v4814_v15, 5 }
  0xd2   :  { %3980 = vtanh.f32 %v4837_v26  ;;  %v4875_v41 = vadd.f32 %v120_v35, %v7021_v34  ;;  %v4930_v63 = vadd.f32 %v121_v58, %v7020_v57  ;;  %v7016_v19 = vunpack.c.l.bf16 %v4949_v12 }
  0xd3   :  { %3982 = vtanh.f32 %v4842_v28  ;;  %v4943_v9 = vadd.f32 %v122_v62, %v7018_v61  ;;  %v4959_v25 = vadd.f32 %v123_v4, %v7017_v3  ;;  %v276_v46 = vrot.slane %v4914_v55, 4 }
  0xd4   :  { %3984 = vtanh.f32 %v4864_v36  ;;  %v4975_v40 = vadd.f32 %v124_v21, %v7016_v19  ;;  %v126_v50 = vrot.slane %v4814_v15, 7  ;;  %v277_v58 = vrot.slane %v4914_v55, 5 }
  0xd5   :  { %3986 = vtanh.f32 %v4875_v41  ;;  %v278_v62 = vrot.slane %v4914_v55, 6  ;;  %v279_v4 = vrot.slane %v4914_v55, 7 }
  0xd6   :  { %3988 = vtanh.f32 %v4881_v43 }
  0xd7   :  { %3990 = vtanh.f32 %v4900_v51 }
  0xd8   :  { %3992 = vtanh.f32 %v4905_v53 }
  0xd9   :  { %3994 = vtanh.f32 %v4930_v63 }
  0xda   :  { %3996 = vtanh.f32 %v4943_v9 }
  0xdb   :  { %v3975_v27 = vpop.eup %3974  ;;  %3998 = vtanh.f32 %v4959_v25 }
  0xdc   :  { %367 = vrot.lane.b32.xlu0 %v3975_v27, %s4746_s21  ;;  %4000 = vtanh.f32 %v4975_v40 }
  0xdd   :  { %v3977_v30 = vpop.eup %3976 }
  0xde   :  { %v3979_v33 = vpop.eup %3978 }
  0xdf   :  { %v3981_v38 = vpop.eup %3980 }
  0xe0   :  { %369 = vrot.lane.b32.xlu0 %v3977_v30, %s4746_s21  ;;  %v3983_v42 = vpop.eup %3982  ;;  %v4965_v30 = vld [vmem:[%s7012_s0 + $0x38] sm:$0x1] }
  0xe1   :  { %v3985_v48 = vpop.eup %3984  ;;  %v7015_v35 = vunpack.c.l.bf16 %v4965_v30 }
  0xe2   :  { %v3987_v52 = vpop.eup %3986 }
  0xe3   :  { %v3989_v56 = vpop.eup %3988 }
  0xe4   :  { %375 = vrot.lane.b32.xlu0 %v3979_v33, %s4746_s21  ;;  %v3991_v10 = vpop.eup %3990  ;;  %v280_v33 = vrot.slane %v4953_v17, 1 }
  0xe5   :  { %371 = vrot.lane.b32.xlu1 %v3991_v10, %s4746_s21  ;;  %v3993_v27 = vpop.eup %3992 }
  0xe8   :  { %377 = vrot.lane.b32.xlu0 %v3981_v38, %s4746_s21  ;;  %v125_v38 = vrot.slane %v4814_v15, 6 }
  0xe9   :  { %373 = vrot.lane.b32.xlu1 %v3993_v27, %s4746_s21 }
  0xec   :  { %379 = vrot.lane.b32.xlu0 %v3983_v42, %s4746_s21  ;;  %v4981_v42 = vld [vmem:[%s7012_s0 + $0x3c] sm:$0x1] }
  0xed   :  { %305 = vrot.lane.b32.xlu1 %v280_v33, %s4747_s10  ;;  %v281_v33 = vrot.slane %v4953_v17, 2 }
  0xf0   :  { %383 = vrot.lane.b32.xlu0 %v3985_v48, %s4746_s21  ;;  %v7014_v48 = vunpack.c.l.bf16 %v4981_v42 }
  0xf4   :  { %385 = vrot.lane.b32.xlu0 %v3987_v52, %s4746_s21  ;;  %v4991_v52 = vadd.f32 %v125_v38, %v7015_v35  ;;  %v3817_v38 = vmul.f32 -1.442695, %v4808_v13  ;;  %v284_v13 = vrot.slane %v4953_v17, 5 }
  0xf6   :  { %4002 = vtanh.f32 %v4991_v52 }
  0xf8   :  { %381 = vrot.lane.b32.xlu0 %v3989_v56, %s4746_s21  ;;  %v3995_v56 = vpop.eup %3994 }
  0xf9   :  { %387 = vrot.lane.b32.xlu1 %v3995_v56, %s4746_s21  ;;  %v3997_v15 = vpop.eup %3996  ;;  %v282_v56 = vrot.slane %v4953_v17, 3 }
  0xfc   :  { %289 = vrot.lane.b32.xlu0 %v273_v60, %s4747_s10  ;;  %v4999_v60 = vadd.f32 %v126_v50, %v7014_v48  ;;  %v3818_v50 = vmul.f32 -1.442695, %v4812_v14 }
  0xfd   :  { %389 = vrot.lane.b32.xlu1 %v3997_v15, %s4746_s21 }
  0xfe   :  { %4004 = vtanh.f32 %v4999_v60 }
  0xff   :  { %4006 = vpow2.f32 %v3817_v38 }
 0x100   :  { %291 = vrot.lane.b32.xlu0 %v274_v2, %s4747_s10  ;;  %v3999_v2 = vpop.eup %3998  ;;  %4008 = vpow2.f32 %v3818_v50  ;;  %v3819_v50 = vmul.f32 -1.442695, %v4900_v51  ;;  %v3825_v51 = vmul.f32 -1.442695, %v4864_v36 }
 0x101   :  { %391 = vrot.lane.b32.xlu1 %v3999_v2, %s4746_s21  ;;  %v4001_v10 = vpop.eup %4000  ;;  %v286_v2 = vrot.slane %v4953_v17, 7 }
 0x103   :  { %v4003_v21 = vpop.eup %4002 }
 0x104   :  { %287 = vrot.lane.b32.xlu0 %v4914_v55, %s4747_s10 }
 0x105   :  { %393 = vrot.lane.b32.xlu1 %v4001_v10, %s4746_s21 }
 0x108   :  { %303 = vrot.lane.b32.xlu0 %v4953_v17, %s4747_s10 }
 0x109   :  { %395 = vrot.lane.b32.xlu1 %v4003_v21, %s4746_s21 }
 0x10b   :  { %v4005_v27 = vpop.eup %4004 }
 0x10c   :  { %295 = vrot.lane.b32.xlu0 %v276_v46, %s4747_s10  ;;  %v275_v46 = vrot.slane %v4914_v55, 3  ;;  %v4007_v15 = vpop.eup %4006  ;;  %v285_v55 = vrot.slane %v4953_v17, 6 }
 0x10d   :  { %397 = vrot.lane.b32.xlu1 %v4005_v27, %s4746_s21  ;;  %v207_v14 = vadd.f32 1.0, %v4007_v15  ;;  %v3823_v15 = vmul.f32 -1.442695, %v4842_v28 }
 0x10f   :  { %4010 = vrcp.f32 %v207_v14 }
 0x110   :  { %297 = vrot.lane.b32.xlu0 %v277_v58, %s4747_s10  ;;  %v283_v58 = vrot.slane %v4953_v17, 4  ;;  %v3820_v17 = vmul.f32 -1.442695, %v4905_v53  ;;  %v3828_v53 = vmul.f32 -1.442695, %v4943_v9 }
 0x111   :  { %307 = vrot.lane.b32.xlu1 %v281_v33, %s4747_s10 }
 0x114   :  { %299 = vrot.lane.b32.xlu0 %v278_v62, %s4747_s10  ;;  %v4009_v62 = vpop.eup %4008 }
 0x115   :  { %293 = vrot.lane.b32.xlu1 %v275_v46, %s4747_s10 }
 0x118   :  { %301 = vrot.lane.b32.xlu0 %v279_v4, %s4747_s10  ;;  %v208_v4 = vadd.f32 1.0, %v4009_v62 }
 0x119   :  { %309 = vrot.lane.b32.xlu1 %v282_v56, %s4747_s10  ;;  %v3821_v56 = vmul.f32 -1.442695, %v4827_v22 }
 0x11a   :  { %4012 = vrcp.f32 %v208_v4 }
 0x11b   :  { %4014 = vpow2.f32 %v3819_v50 }
 0x11c   :  { %v5029_v10 = vpop.eup %4010  ;;  %4016 = vpow2.f32 %v3820_v17 }
 0x11d   :  { %311 = vrot.lane.b32.xlu1 %v283_v58, %s4747_s10  ;;  %v3826_v58 = vmul.f32 -1.442695, %v4875_v41  ;;  %4018 = vpow2.f32 %v3821_v56  ;;  %v3824_v41 = vmul.f32 -1.442695, %v4881_v43 }
 0x11f   :  { %4020 = vpow2.f32 %v3826_v58 }
 0x121   :  { %313 = vrot.lane.b32.xlu1 %v284_v13, %s4747_s10  ;;  %v3822_v13 = vmul.f32 -1.442695, %v4837_v26  ;;  %v3829_v26 = vmul.f32 -1.442695, %v4959_v25  ;;  %v3831_v25 = vmul.f32 -1.442695, %v4991_v52 }
 0x123   :  { %4022 = vpow2.f32 %v3822_v13 }
 0x124   :  { %4024 = vpow2.f32 %v3823_v15 }
 0x125   :  { %315 = vrot.lane.b32.xlu1 %v285_v55, %s4747_s10  ;;  %v3827_v55 = vmul.f32 -1.442695, %v4930_v63  ;;  %v3830_v63 = vmul.f32 -1.442695, %v4975_v40  ;;  %v3832_v40 = vmul.f32 -1.442695, %v4999_v60 }
 0x127   :  { %v5033_v33 = vpop.eup %4012  ;;  %4026 = vpow2.f32 %v3827_v55 }
 0x128   :  { %v4015_v22 = vpop.eup %4014  ;;  %4028 = vpow2.f32 %v3825_v51 }
 0x129   :  { %317 = vrot.lane.b32.xlu1 %v286_v2, %s4747_s10  ;;  %v4017_v62 = vpop.eup %4016  ;;  %4030 = vpow2.f32 %v3828_v53  ;;  %v209_v28 = vadd.f32 1.0, %v4015_v22 }
 0x12a   :  { %v4019_v2 = vpop.eup %4018  ;;  %4032 = vpow2.f32 %v3824_v41 }
 0x12b   :  { %4034 = vpow2.f32 %v3829_v26  ;;  %v211_v9 = vadd.f32 1.0, %v4019_v2 }
 0x12c   :  { %v4021_v4 = vpop.eup %4020  ;;  %4036 = vrcp.f32 %v209_v28 }
 0x12d   :  { %4038 = vpow2.f32 %v3830_v63 }
 0x14e   :  { %v368_v21 = vpop.permute.xlu0 %367 }
 0x14f   :  { %v415_v27 = vmul.f32 %v5029_v10, %v368_v21  ;;  %v210_v21 = vadd.f32 1.0, %v4017_v62 }
 0x151   :  { %447 = vrot.lane.b32.xlu0 %v415_v27, %s4747_s10  ;;  %v4023_v27 = vpop.eup %4022  ;;  %4040 = vrcp.f32 %v210_v21 }
 0x152   :  { %v370_v38 = vpop.permute.xlu0 %369  ;;  %v4025_v43 = vpop.eup %4024  ;;  %4042 = vrcp.f32 %v211_v9 }
 0x153   :  { %v416_v46 = vmul.f32 %v5033_v33, %v370_v38  ;;  %v216_v38 = vadd.f32 1.0, %v4021_v4  ;;  %v4027_v50 = vpop.eup %4026  ;;  %v213_v56 = vadd.f32 1.0, %v4025_v43 }
 0x154   :  { %v4029_v58 = vpop.eup %4028  ;;  %v217_v13 = vadd.f32 1.0, %v4027_v50 }
 0x155   :  { %449 = vrot.lane.b32.xlu0 %v416_v46, %s4747_s10  ;;  %v212_v46 = vadd.f32 1.0, %v4023_v27  ;;  %4044 = vrcp.f32 %v216_v38  ;;  %v4031_v15 = vpop.eup %4030  ;;  %v215_v51 = vadd.f32 1.0, %v4029_v58 }
 0x156   :  { %v376_v14 = vpop.permute.xlu0 %375  ;;  %v4033_v55 = vpop.eup %4032  ;;  %v218_v41 = vadd.f32 1.0, %v4031_v15 }
 0x157   :  { %4046 = vrcp.f32 %v212_v46  ;;  %v4035_v22 = vpop.eup %4034  ;;  %v372_v26 = vpop.permute.xlu1 %371  ;;  %v214_v62 = vadd.f32 1.0, %v4033_v55 }
 0x158   :  { %4048 = vpow2.f32 %v3831_v25  ;;  %v5051_v52 = vpop.eup %4036  ;;  %v219_v63 = vadd.f32 1.0, %v4035_v22 }
 0x159   :  { %4050 = vrcp.f32 %v213_v56  ;;  %v417_v28 = vmul.f32 %v5051_v52, %v372_v26  ;;  %v4039_v2 = vpop.eup %4038 }
 0x15a   :  { %v378_v36 = vpop.permute.xlu0 %377  ;;  %4052 = vpow2.f32 %v3832_v40  ;;  %v220_v25 = vadd.f32 1.0, %v4039_v2 }
 0x15b   :  { %4054 = vrcp.f32 %v217_v13  ;;  %451 = vrot.lane.b32.xlu0 %v417_v28, %s4747_s10  ;;  %v374_v21 = vpop.permute.xlu1 %373 }
 0x15c   :  { %4056 = vrcp.f32 %v215_v51 }
 0x15d   :  { %4058 = vrcp.f32 %v218_v41 }
 0x15e   :  { %v380_v17 = vpop.permute.xlu0 %379  ;;  %v5054_v60 = vpop.eup %4040  ;;  %4060 = vrcp.f32 %v214_v62 }
 0x15f   :  { %v5057_v4 = vpop.eup %4042  ;;  %v418_v9 = vmul.f32 %v5054_v60, %v374_v21  ;;  %4062 = vrcp.f32 %v219_v63  ;;  %v5068_v40 = vpop.permute.xlu1 %305 }
 0x160   :  { %v419_v38 = vmul.f32 %v5057_v4, %v376_v14  ;;  %4064 = vrcp.f32 %v220_v25 }
 0x161   :  { %453 = vrot.lane.b32.xlu1 %v418_v9, %s4747_s10 }
 0x162   :  { %v384_v53 = vpop.permute.xlu0 %383  ;;  %v5061_v43 = vpop.eup %4044  ;;  %455 = vrot.lane.b32.xlu0 %v419_v38, %s4747_s10 }
 0x164   :  { %v5063_v46 = vpop.eup %4046 }
 0x165   :  { %v4049_v56 = vpop.eup %4048  ;;  %v420_v58 = vmul.f32 %v5063_v46, %v378_v36 }
 0x166   :  { %v386_v27 = vpop.permute.xlu0 %385  ;;  %v5071_v13 = vpop.eup %4050  ;;  %v221_v15 = vadd.f32 1.0, %v4049_v56 }
 0x167   :  { %v424_v50 = vmul.f32 %v5061_v43, %v386_v27  ;;  %v4053_v14 = vpop.eup %4052  ;;  %457 = vrot.lane.b32.xlu0 %v420_v58, %s4747_s10  ;;  %v421_v41 = vmul.f32 %v5071_v13, %v380_v17 }
 0x168   :  { %v5075_v55 = vpop.eup %4054  ;;  %v222_v62 = vadd.f32 1.0, %v4053_v14  ;;  %4066 = vrcp.f32 %v221_v15 }
 0x169   :  { %465 = vrot.lane.b32.xlu1 %v424_v50, %s4747_s10  ;;  %v5079_v26 = vpop.eup %4056 }
 0x16a   :  { %v5083_v36 = vpop.eup %4058  ;;  %v382_v2 = vpop.permute.xlu0 %381  ;;  %v423_v21 = vmul.f32 %v5079_v26, %v384_v53  ;;  %4068 = vrcp.f32 %v222_v62 }
 0x16b   :  { %v388_v51 = vpop.permute.xlu1 %387  ;;  %459 = vrot.lane.b32.xlu0 %v421_v41, %s4747_s10  ;;  %v5087_v27 = vpop.eup %4060 }
 0x16c   :  { %v425_v22 = vmul.f32 %v5075_v55, %v388_v51  ;;  %v422_v17 = vmul.f32 %v5087_v27, %v382_v2  ;;  %v5092_v9 = vpop.eup %4062 }
 0x16d   :  { %v5097_v50 = vpop.eup %4064 }
 0x16e   :  { %467 = vrot.lane.b32.xlu1 %v425_v22, %s4747_s10  ;;  %v290_v58 = vpop.permute.xlu0 %289 }
 0x16f   :  { %v390_v28 = vpop.permute.xlu1 %389  ;;  %463 = vrot.lane.b32.xlu0 %v423_v21, %s4747_s10 }
 0x170   :  { %v426_v63 = vmul.f32 %v5083_v36, %v390_v28 }
 0x172   :  { %469 = vrot.lane.b32.xlu1 %v426_v63, %s4747_s10  ;;  %v292_v28 = vpop.permute.xlu0 %291 }
 0x173   :  { %v392_v38 = vpop.permute.xlu1 %391  ;;  %461 = vrot.lane.b32.xlu0 %v422_v17, %s4747_s10  ;;  %v337_v61 = vmul.f32 %v5051_v52, %v292_v28  ;;  %v344_v28 = vmul.f32 %v5061_v43, %v5068_v40 }
 0x174   :  { %v427_v25 = vmul.f32 %v5092_v9, %v392_v38 }
 0x175   :  { %v5101_v14 = vpop.eup %4066 }
 0x176   :  { %471 = vrot.lane.b32.xlu1 %v427_v25, %s4747_s10  ;;  %v288_v2 = vpop.permute.xlu0 %287 }
 0x177   :  { %v394_v53 = vpop.permute.xlu1 %393  ;;  %v5105_v22 = vpop.eup %4068 }
 0x178   :  { %v428_v56 = vmul.f32 %v5097_v50, %v394_v53  ;;  %v335_v53 = vmul.f32 %v5029_v10, %v288_v2 }
 0x17a   :  { %473 = vrot.lane.b32.xlu1 %v428_v56, %s4747_s10  ;;  %v304_v63 = vpop.permute.xlu0 %303 }
 0x17b   :  { %v396_v15 = vpop.permute.xlu1 %395  ;;  %v343_v16 = vmul.f32 %v5079_v26, %v304_v63 }
 0x17c   :  { %v429_v51 = vmul.f32 %v5101_v14, %v396_v15 }
 0x17e   :  { %475 = vrot.lane.b32.xlu1 %v429_v51, %s4747_s10  ;;  %v296_v21 = vpop.permute.xlu0 %295  ;;  %v336_v51 = vmul.f32 %v5033_v33, %v290_v58 }
 0x17f   :  { %v398_v41 = vpop.permute.xlu1 %397  ;;  %v339_v34 = vmul.f32 %v5057_v4, %v296_v21 }
 0x180   :  { %v430_v62 = vmul.f32 %v5105_v22, %v398_v41 }
 0x182   :  { %477 = vrot.lane.b32.xlu1 %v430_v62, %s4747_s10  ;;  %v298_v17 = vpop.permute.xlu0 %297 }
 0x183   :  { %v308_v62 = vpop.permute.xlu1 %307  ;;  %v340_v20 = vmul.f32 %v5063_v46, %v298_v17 }
 0x186   :  { %v300_v38 = vpop.permute.xlu0 %299 }
 0x187   :  { %v294_v35 = vpop.permute.xlu1 %293 }
 0x188   :  { %v338_v57 = vmul.f32 %v5054_v60, %v294_v35 }
 0x18a   :  { %v302_v25 = vpop.permute.xlu0 %301 }
 0x18b   :  { %v310_v2 = vpop.permute.xlu1 %309 }
 0x1c3   :  { %v448_v56 = vpop.permute.xlu0 %447 }
 0x1c4   :  { %v5110_v15 = vadd.f32 %v448_v56, %v335_v53  ;;  %v312_v53 = vpop.permute.xlu1 %311 }
 0x1c6   :  { %4070 = vtanh.f32 %v5110_v15 }
 0x1c7   :  { %v450_v48 = vpop.permute.xlu0 %449 }
 0x1c8   :  { %v5114_v41 = vadd.f32 %v450_v48, %v336_v51  ;;  %v314_v56 = vpop.permute.xlu1 %313 }
 0x1ca   :  { %4072 = vtanh.f32 %v5114_v41 }
 0x1cc   :  { %v316_v58 = vpop.permute.xlu1 %315 }
 0x1cd   :  { %v452_v48 = vpop.permute.xlu0 %451 }
 0x1ce   :  { %v5122_v51 = vadd.f32 %v452_v48, %v337_v61 }
 0x1d0   :  { %v5120_v39 = vpop.permute.xlu1 %317  ;;  %4074 = vtanh.f32 %v5122_v51 }
 0x1d3   :  { %v4071_v19 = vpop.eup %4070 }
 0x1d4   :  { %543 = vrot.lane.b32.xlu0 %v4071_v19, %s4748_s17  ;;  %v454_v19 = vpop.permute.xlu1 %453  ;;  %v456_v31 = vpop.permute.xlu0 %455 }
 0x1d5   :  { %v5127_v24 = vadd.f32 %v454_v19, %v338_v57  ;;  %v345_v57 = vmul.f32 %v5075_v55, %v308_v62 }
 0x1d7   :  { %v4073_v3 = vpop.eup %4072  ;;  %4076 = vtanh.f32 %v5127_v24 }
 0x1d8   :  { %545 = vrot.lane.b32.xlu0 %v4073_v3, %s4748_s17  ;;  %v5129_v3 = vadd.f32 %v456_v31, %v339_v34  ;;  %v341_v31 = vmul.f32 %v5071_v13, %v300_v38 }
 0x1d9   :  { %v458_v61 = vpop.permute.xlu0 %457 }
 0x1da   :  { %4078 = vtanh.f32 %v5129_v3  ;;  %v5136_v21 = vadd.f32 %v458_v61, %v340_v20  ;;  %v346_v20 = vmul.f32 %v5083_v36, %v310_v2 }
 0x1db   :  { %v466_v35 = vpop.permute.xlu1 %465 }
 0x1dc   :  { %v5138_v48 = vadd.f32 %v466_v35, %v344_v28  ;;  %4080 = vtanh.f32 %v5136_v21 }
 0x1dd   :  { %v460_v34 = vpop.permute.xlu0 %459  ;;  %v4075_v28 = vpop.eup %4074 }
 0x1de   :  { %4082 = vtanh.f32 %v5138_v48  ;;  %v5144_v17 = vadd.f32 %v460_v34, %v341_v31  ;;  %547 = vrot.lane.b32.xlu0 %v4075_v28, %s4748_s17  ;;  %v342_v31 = vmul.f32 %v5087_v27, %v302_v25 }
 0x1e0   :  { %v468_v40 = vpop.permute.xlu1 %467  ;;  %4084 = vtanh.f32 %v5144_v17 }
 0x1e1   :  { %v5146_v19 = vadd.f32 %v468_v40, %v345_v57  ;;  %v464_v62 = vpop.permute.xlu0 %463  ;;  %v347_v57 = vmul.f32 %v5092_v9, %v312_v53  ;;  %v348_v53 = vmul.f32 %v5097_v50, %v314_v56 }
 0x1e2   :  { %v5152_v61 = vadd.f32 %v464_v62, %v343_v16 }
 0x1e3   :  { %4086 = vtanh.f32 %v5146_v19 }
 0x1e4   :  { %v470_v38 = vpop.permute.xlu1 %469  ;;  %4088 = vtanh.f32 %v5152_v61  ;;  %v4077_v63 = vpop.eup %4076 }
 0x1e5   :  { %v5155_v35 = vadd.f32 %v470_v38, %v346_v20  ;;  %v462_v2 = vpop.permute.xlu0 %461  ;;  %549 = vrot.lane.b32.xlu1 %v4077_v63, %s4748_s17 }
 0x1e6   :  { %v5162_v16 = vadd.f32 %v462_v2, %v342_v31 }
 0x1e7   :  { %7084 = vst [vmem:[#allocation4_spill] sm:$0xff] %v5155_v35  ;;  %4090 = vtanh.f32 %v5155_v35  ;;  %v4079_v40 = vpop.eup %4078 }
 0x1e8   :  { %v472_v34 = vpop.permute.xlu1 %471  ;;  %7085 = vst [vmem:[#allocation5_spill] sm:$0xff] %v5162_v16  ;;  %551 = vrot.lane.b32.xlu0 %v4079_v40, %s4748_s17  ;;  %4092 = vtanh.f32 %v5162_v16 }
 0x1e9   :  { %v5164_v62 = vadd.f32 %v472_v34, %v347_v57  ;;  %v4081_v25 = vpop.eup %4080  ;;  %v349_v57 = vmul.f32 %v5101_v14, %v316_v58  ;;  %v350_v34 = vmul.f32 %v5105_v22, %v5120_v39 }
 0x1eb   :  { %7086 = vst [vmem:[#allocation6_spill] sm:$0xff] %v5164_v62  ;;  %4094 = vtanh.f32 %v5164_v62  ;;  %v4083_v28 = vpop.eup %4082 }
 0x1ec   :  { %v474_v20 = vpop.permute.xlu1 %473  ;;  %553 = vrot.lane.b32.xlu0 %v4081_v25, %s4748_s17  ;;  %561 = vrot.lane.b32.xlu1 %v4083_v28, %s4748_s17 }
 0x1ed   :  { %v5170_v38 = vadd.f32 %v474_v20, %v348_v53  ;;  %v4085_v31 = vpop.eup %4084 }
 0x1ef   :  { %7087 = vst [vmem:[#allocation7_spill] sm:$0xff] %v5170_v38  ;;  %4096 = vtanh.f32 %v5170_v38 }
 0x1f0   :  { %v476_v63 = vpop.permute.xlu1 %475  ;;  %v4087_v56 = vpop.eup %4086  ;;  %555 = vrot.lane.b32.xlu0 %v4085_v31, %s4748_s17 }
 0x1f1   :  { %v5176_v2 = vadd.f32 %v476_v63, %v349_v57  ;;  %563 = vrot.lane.b32.xlu1 %v4087_v56, %s4748_s17  ;;  %v4089_v40 = vpop.eup %4088 }
 0x1f3   :  { %7088 = vst [vmem:[#allocation8_spill] sm:$0xff] %v5176_v2  ;;  %4098 = vtanh.f32 %v5176_v2 }
 0x1f4   :  { %v478_v53 = vpop.permute.xlu1 %477  ;;  %v4091_v25 = vpop.eup %4090  ;;  %559 = vrot.lane.b32.xlu0 %v4089_v40, %s4748_s17 }
 0x1f5   :  { %v5183_v58 = vadd.f32 %v478_v53, %v350_v34  ;;  %565 = vrot.lane.b32.xlu1 %v4091_v25, %s4748_s17  ;;  %v4093_v20 = vpop.eup %4092 }
 0x1f7   :  { %7089 = vst [vmem:[#allocation9_spill] sm:$0xff] %v5183_v58  ;;  %4100 = vtanh.f32 %v5183_v58 }
 0x1f8   :  { %v4095_v28 = vpop.eup %4094  ;;  %557 = vrot.lane.b32.xlu0 %v4093_v20, %s4748_s17 }
 0x1f9   :  { %567 = vrot.lane.b32.xlu1 %v4095_v28, %s4748_s17 }
 0x1fc   :  { %v4097_v39 = vpop.eup %4096 }
 0x1fd   :  { %569 = vrot.lane.b32.xlu1 %v4097_v39, %s4748_s17 }
 0x200   :  { %v4099_v57 = vpop.eup %4098 }
 0x201   :  { %571 = vrot.lane.b32.xlu1 %v4099_v57, %s4748_s17 }
 0x204   :  { %v4101_v31 = vpop.eup %4100 }
 0x205   :  { %573 = vrot.lane.b32.xlu1 %v4101_v31, %s4748_s17 }
 0x246   :  { %v544_v63 = vpop.permute.xlu0 %543 }
 0x247   :  { %v591_v2 = vmul.f32 %v5029_v10, %v544_v63 }
 0x24a   :  { %v546_v56 = vpop.permute.xlu0 %545 }
 0x24b   :  { %v592_v28 = vmul.f32 %v5033_v33, %v546_v56 }
 0x24d   :  { %v608_v0 = vpack.c.bf16 %v592_v28, %v592_v28 }
 0x250   :  { %v548_v34 = vpop.permute.xlu0 %547 }
 0x251   :  { %v593_v39 = vmul.f32 %v5051_v52, %v548_v34 }
 0x253   :  { %v609_v35 = vpack.c.bf16 %v593_v39, %v593_v39 }
 0x257   :  { %v550_v40 = vpop.permute.xlu1 %549 }
 0x258   :  { %v594_v62 = vmul.f32 %v5054_v60, %v550_v40 }
 0x25a   :  { %v552_v53 = vpop.permute.xlu0 %551  ;;  %v610_v40 = vpack.c.bf16 %v594_v62, %v594_v62 }
 0x25b   :  { %v595_v16 = vmul.f32 %v5057_v4, %v552_v53 }
 0x25c   :  { %v642_v62 = vunpack.c.l.b16 %v610_v40 }
 0x25e   :  { %v554_v25 = vpop.permute.xlu0 %553  ;;  %v562_v45 = vpop.permute.xlu1 %561 }
 0x25f   :  { %v600_v57 = vmul.f32 %v5061_v43, %v562_v45  ;;  %v596_v45 = vmul.f32 %v5063_v46, %v554_v25  ;;  %v640_v43 = vunpack.c.l.b16 %v608_v0 }
 0x261   :  { %v616_v52 = vpack.c.bf16 %v600_v57, %v600_v57  ;;  %v612_v46 = vpack.c.bf16 %v596_v45, %v596_v45 }
 0x262   :  { %v556_v7 = vpop.permute.xlu0 %555 }
 0x263   :  { %v564_v20 = vpop.permute.xlu1 %563  ;;  %v648_v0 = vunpack.c.l.b16 %v616_v52  ;;  %v644_v39 = vunpack.c.l.b16 %v612_v46 }
 0x264   :  { %v601_v31 = vmul.f32 %v5075_v55, %v564_v20  ;;  %v597_v55 = vmul.f32 %v5071_v13, %v556_v7  ;;  %v655_v7 = vrot.slane %v640_v43, 7 }
 0x265   :  { %v676_v57 = vrot.slane %v648_v0, 7  ;;  %v667_v40 = vrot.slane %v644_v39, 3 }
 0x266   :  { %v560_v49 = vpop.permute.xlu0 %559  ;;  %v617_v63 = vpack.c.bf16 %v601_v31, %v601_v31 }
 0x267   :  { %v566_v8 = vpop.permute.xlu1 %565  ;;  %v599_v10 = vmul.f32 %v5079_v26, %v560_v49  ;;  %v613_v49 = vpack.c.bf16 %v597_v55, %v597_v55 }
 0x268   :  { %v602_v38 = vmul.f32 %v5083_v36, %v566_v8  ;;  %v607_v36 = vpack.c.bf16 %v591_v2, %v591_v2  ;;  %v649_v26 = vunpack.c.l.b16 %v617_v63 }
 0x269   :  { %v615_v13 = vpack.c.bf16 %v599_v10, %v599_v10  ;;  %v645_v45 = vunpack.c.l.b16 %v613_v49 }
 0x26a   :  { %v558_v33 = vpop.permute.xlu0 %557  ;;  %v618_v34 = vpack.c.bf16 %v602_v38, %v602_v38  ;;  %v639_v20 = vunpack.c.l.b16 %v607_v36  ;;  %v678_v43 = vrot.slane %v649_v26, 6 }
 0x26b   :  { %v568_v58 = vpop.permute.xlu1 %567  ;;  %v598_v60 = vmul.f32 %v5087_v27, %v558_v33  ;;  %v647_v52 = vunpack.c.l.b16 %v615_v13  ;;  %v670_v46 = vrot.slane %v645_v45, 2 }
 0x26c   :  { %v603_v56 = vmul.f32 %v5092_v9, %v568_v58  ;;  %v641_v9 = vunpack.c.l.b16 %v609_v35  ;;  %v611_v58 = vpack.c.bf16 %v595_v16, %v595_v16  ;;  %v650_v38 = vunpack.c.l.b16 %v618_v34 }
 0x26d   :  { %v614_v27 = vpack.c.bf16 %v598_v60, %v598_v60 }
 0x26e   :  { %v619_v53 = vpack.c.bf16 %v603_v56, %v603_v56  ;;  %v658_v35 = vrot.slane %v641_v9, 6  ;;  %v643_v28 = vunpack.c.l.b16 %v611_v58  ;;  %v657_v56 = vsel %vm656_vm2, %v655_v7, %v639_v20 }
 0x26f   :  { %v570_v8 = vpop.permute.xlu1 %569  ;;  %v646_v10 = vunpack.c.l.b16 %v614_v27  ;;  %v680_v63 = vrot.slane %v650_v38, 5  ;;  %v677_v9 = vsel %vm656_vm2, %v676_v57, %v647_v52  ;;  %v5228_v57 = vld [vmem:[%s7011_s1] sm:$0xff]  }
 0x270   :  { %v604_v4 = vmul.f32 %v5097_v50, %v570_v8  ;;  %v651_v16 = vunpack.c.l.b16 %v619_v53  ;;  %v660_v60 = vsel %vm659_vm3, %v658_v35, %v657_v56  ;;  %v664_v34 = vrot.slane %v643_v28, 4 }
 0x271   :  { %v679_v0 = vsel %vm659_vm3, %v678_v43, %v677_v9  ;;  %v673_v49 = vrot.slane %v646_v10, 1  ;;  %v7091_v10 = vunpack.c.l.bf16 %v4797_v6 }
 0x272   :  { %v620_v25 = vpack.c.bf16 %v604_v4, %v604_v4  ;;  %v682_v4 = vrot.slane %v651_v16, 4 }
 0x273   :  { %v572_v2 = vpop.permute.xlu1 %571 }
 0x274   :  { %v605_v50 = vmul.f32 %v5101_v14, %v572_v2  ;;  %v652_v31 = vunpack.c.l.b16 %v620_v25  ;;  %v661_v14 = vrot.slane %v642_v62, 5 }
 0x276   :  { %v621_v33 = vpack.c.bf16 %v605_v50, %v605_v50  ;;  %v684_v58 = vrot.slane %v652_v31, 3  ;;  %v663_v7 = vsel %vm662_vm4, %v661_v14, %v660_v60  ;;  %v7090_v31 = vmov 0.0  }
 0x277   :  { %v574_v55 = vpop.permute.xlu1 %573  ;;  %v666_v26 = vsel %vm665_vm5, %v664_v34, %v663_v7  ;;  %v7093_v60 = vunpack.c.l.bf16 %v4792_v5 }
 0x278   :  { %v653_v8 = vunpack.c.l.b16 %v621_v33  ;;  %v606_v36 = vmul.f32 %v5105_v22, %v574_v55  ;;  %v681_v22 = vsel %vm662_vm4, %v680_v63, %v679_v0  ;;  %v669_v20 = vsel %vm668_vm6, %v667_v40, %v666_v26 }
 0x279   :  { %v683_v2 = vsel %vm665_vm5, %v682_v4, %v681_v22  ;;  %v672_v50 = vsel %vm671_vm7, %v670_v46, %v669_v20  ;;  %v7094_v40 = vunpack.c.l.bf16 %v4888_v44  ;;  %v7098_v22 = vunpack.c.l.bf16 %v4849_v29 }
 0x27a   :  { %v622_v53 = vpack.c.bf16 %v606_v36, %v606_v36  ;;  %v686_v25 = vrot.slane %v653_v8, 2  ;;  %v685_v27 = vsel %vm668_vm6, %v684_v58, %v683_v2  ;;  %v675_v35 = vsel %vm674_vm8, %v673_v49, %v672_v50 }
 0x27b   :  { %v7092_v8 = vunpack.c.l.bf16 %v4895_v47  ;;  %v7095_v47 = vunpack.c.l.bf16 %v4804_v11  ;;  %v7099_v2 = vunpack.c.l.bf16 %v4857_v32 }
 0x27c   :  { %v654_v13 = vunpack.c.l.b16 %v622_v53  ;;  %v687_v62 = vsel %vm671_vm7, %v686_v25, %v685_v27  ;;  %v7096_v53 = vunpack.c.l.bf16 %v4821_v18  ;;  %v7097_v25 = vunpack.c.l.bf16 %v4832_v23 }
 0x27e   :  { %v688_v38 = vrot.slane %v654_v13, 1 }
 0x280   :  { %v689_v28 = vsel %vm674_vm8, %v688_v38, %v687_v62  ;;  %v7100_v38 = vunpack.c.l.bf16 %v4911_v54  ;;  %v7101_v62 = vunpack.c.l.bf16 %v4870_v37 }
 0x281   :  { %v690_v16 = vpack.c.b16 %v689_v28, %v675_v35  ;;  %v7102_v28 = vunpack.c.l.bf16 %v4922_v59 }
 0x283   :  { %691 = vrot.lane.b32.xlu0 %v690_v16, %s4749_s18 }
 0x2f5   :  { %v692_v39 = vpop.permute.xlu0 %691 }
 0x2f6   :  { %3939 = vmatmul.mubr.msk.bf16.vlgmr.msra.gmra.mxu1 %vm16_vm0, %v692_v39  ;;  %v7103_v39 = vunpack.c.l.bf16 %v4935_v1 }
 0x2f7   :  { %3949 = vmatpush3.bf16.msra.mxu1 %v5228_v57  ;;  %3950 = vmatprep.mubr.msk.bf16.mxu1 %vm4745_vm1, %v7090_v31 }
 0x2f8   :  { %3960 = vmatprep.subr.bf16.mxu1 %v7090_v31 }
 0x3b6   :  { %v730_v33 = vpop.f32.mrf.mxu1 }
 0x3b7   :  { %v741_v43 = vrot.slane %v730_v33, 2  ;;  %v739_v55 = vrot.slane %v730_v33, 7  ;;  %v5238_v63 = vadd.f32 %v730_v33, %v7091_v10  ;;  %v740_v14 = vrot.slane %v730_v33, 1 }
 0x3b8   :  { %v3940_v56 = vpop.f32.mrf.mxu1  ;;  %v742_v4 = vrot.slane %v730_v33, 3  ;;  %v743_v6 = vrot.slane %v730_v33, 4  ;;  %v744_v5 = vrot.slane %v730_v33, 5  ;;  %v745_v26 = vrot.slane %v730_v33, 6 }
 0x3b9   :  { %v5242_v36 = vadd.f32 %v741_v43, %v7092_v8  ;;  %v5246_v34 = vadd.f32 %v739_v55, %v7093_v60  ;;  %4102 = vtanh.f32 %v5238_v63  ;;  %v5252_v9 = vadd.f32 %v740_v14, %v7094_v40 }
 0x3ba   :  { %v5234_v45 = vpop.f32.mrf.mxu1  ;;  %v5257_v58 = vadd.f32 %v742_v4, %v7095_v47  ;;  %v5262_v46 = vadd.f32 %v743_v6, %v7096_v53  ;;  %v5268_v7 = vadd.f32 %v744_v5, %v7097_v25  ;;  %v5294_v35 = vadd.f32 %v745_v26, %v7101_v62 }
 0x3bb   :  { %4104 = vtanh.f32 %v5242_v36  ;;  %v746_v11 = vrot.slane %v5234_v45, 7  ;;  %v747_v18 = vrot.slane %v5234_v45, 1  ;;  %v5283_v20 = vadd.f32 %v5234_v45, %v7099_v2 }
 0x3bc   :  { %v3941_v52 = vpop.f32.mrf.mxu1  ;;  %4106 = vtanh.f32 %v5246_v34  ;;  %v748_v27 = vrot.slane %v5234_v45, 2  ;;  %v749_v32 = vrot.slane %v5234_v45, 3  ;;  %v750_v37 = vrot.slane %v5234_v45, 4 }
 0x3bd   :  { %4108 = vtanh.f32 %v5252_v9  ;;  %v5278_v13 = vadd.f32 %v746_v11, %v7098_v22  ;;  %v5289_v50 = vadd.f32 %v747_v18, %v7100_v38  ;;  %v751_v59 = vrot.slane %v5234_v45, 5 }
 0x3be   :  { %4110 = vtanh.f32 %v5257_v58  ;;  %v5301_v16 = vadd.f32 %v748_v27, %v7102_v28  ;;  %v5309_v33 = vadd.f32 %v749_v32, %v7103_v39  ;;  %v7104_v52 = vunpack.c.l.bf16 %v4949_v12 }
 0x3bf   :  { %4112 = vtanh.f32 %v5262_v46  ;;  %v752_v1 = vrot.slane %v5234_v45, 6  ;;  %v7105_v8 = vunpack.c.l.bf16 %v4965_v30  ;;  %v7106_v4 = vunpack.c.l.bf16 %v4981_v42 }
 0x3c0   :  { %4114 = vtanh.f32 %v5268_v7  ;;  %v5316_v43 = vadd.f32 %v750_v37, %v7104_v52  ;;  %v3835_v42 = vmul.f32 -1.442695, %v5238_v63  ;;  %v3837_v53 = vmul.f32 -1.442695, %v5242_v36 }
 0x3c1   :  { %4116 = vtanh.f32 %v5278_v13  ;;  %v5324_v14 = vadd.f32 %v751_v59, %v7105_v8  ;;  %v5331_v40 = vadd.f32 %v752_v1, %v7106_v4  ;;  %v3838_v25 = vmul.f32 -1.442695, %v5257_v58 }
 0x3c2   :  { %4118 = vtanh.f32 %v5283_v20  ;;  %v3839_v11 = vmul.f32 -1.442695, %v5262_v46  ;;  %v3840_v63 = vmul.f32 -1.442695, %v5268_v7  ;;  %v3843_v2 = vmul.f32 -1.442695, %v5283_v20 }
 0x3c3   :  { %4120 = vtanh.f32 %v5289_v50  ;;  %v3844_v27 = vmul.f32 -1.442695, %v5289_v50  ;;  %v3841_v7 = vmul.f32 -1.442695, %v5294_v35  ;;  %v3846_v32 = vmul.f32 -1.442695, %v5309_v33 }
 0x3c4   :  { %4122 = vtanh.f32 %v5294_v35  ;;  %v3848_v1 = vmul.f32 -1.442695, %v5324_v14 }
 0x3c5   :  { %4124 = vtanh.f32 %v5301_v16 }
 0x3c6   :  { %v4103_v0 = vpop.eup %4102  ;;  %4126 = vtanh.f32 %v5309_v33 }
 0x3c7   :  { %979 = vrot.lane.b32.xlu1 %v4103_v0, %s4746_s21  ;;  %4128 = vtanh.f32 %v5316_v43  ;;  %v3834_v0 = vmul.f32 -1.442695, %v5246_v34  ;;  %v3842_v34 = vmul.f32 -1.442695, %v5278_v13  ;;  %v3845_v13 = vmul.f32 -1.442695, %v5301_v16 }
 0x3c8   :  { %v4105_v44 = vpop.eup %4104  ;;  %4130 = vtanh.f32 %v5324_v14  ;;  %v3847_v16 = vmul.f32 -1.442695, %v5316_v43 }
 0x3c9   :  { %983 = vrot.lane.b32.xlu0 %v4105_v44, %s4746_s21  ;;  %v4107_v49 = vpop.eup %4106  ;;  %4132 = vtanh.f32 %v5331_v40  ;;  %v3836_v44 = vmul.f32 -1.442695, %v5252_v9 }
 0x3ca   :  { %v4109_v23 = vpop.eup %4108  ;;  %4134 = vpow2.f32 %v3835_v42 }
 0x3cb   :  { %977 = vrot.lane.b32.xlu1 %v4107_v49, %s4746_s21  ;;  %v4111_v29 = vpop.eup %4110  ;;  %4136 = vpow2.f32 %v3837_v53 }
 0x3cc   :  { %v4113_v54 = vpop.eup %4112  ;;  %4138 = vpow2.f32 %v3834_v0 }
 0x3cd   :  { %v4115_v56 = vpop.eup %4114  ;;  %4140 = vpow2.f32 %v3836_v44 }
 0x3ce   :  { %v4117_v55 = vpop.eup %4116  ;;  %4142 = vpow2.f32 %v3838_v25 }
 0x3cf   :  { %981 = vrot.lane.b32.xlu1 %v4109_v23, %s4746_s21  ;;  %v4119_v10 = vpop.eup %4118  ;;  %993 = vrot.lane.b32.xlu0 %v4117_v55, %s4746_s21  ;;  %4144 = vpow2.f32 %v3839_v11 }
 0x3d0   :  { %v4121_v60 = vpop.eup %4120  ;;  %4146 = vpow2.f32 %v3840_v63 }
 0x3d1   :  { %v4123_v12 = vpop.eup %4122 }
 0x3d2   :  { %v4125_v6 = vpop.eup %4124 }
 0x3d3   :  { %985 = vrot.lane.b32.xlu1 %v4111_v29, %s4746_s21  ;;  %997 = vrot.lane.b32.xlu0 %v4121_v60, %s4746_s21  ;;  %v4127_v30 = vpop.eup %4126 }
 0x3d4   :  { %v4129_v45 = vpop.eup %4128 }
 0x3d5   :  { %v4131_v47 = vpop.eup %4130 }
 0x3d6   :  { %v4133_v5 = vpop.eup %4132 }
 0x3d7   :  { %987 = vrot.lane.b32.xlu1 %v4113_v54, %s4746_s21  ;;  %999 = vrot.lane.b32.xlu0 %v4125_v6, %s4746_s21  ;;  %v4135_v49 = vpop.eup %4134 }
 0x3d8   :  { %v4137_v18 = vpop.eup %4136  ;;  %v834_v22 = vadd.f32 1.0, %v4135_v49 }
 0x3d9   :  { %v4139_v36 = vpop.eup %4138  ;;  %v836_v23 = vadd.f32 1.0, %v4137_v18 }
 0x3da   :  { %v4141_v26 = vpop.eup %4140  ;;  %v833_v9 = vadd.f32 1.0, %v4139_v36  ;;  %4148 = vrcp.f32 %v834_v22 }
 0x3db   :  { %989 = vrot.lane.b32.xlu1 %v4115_v56, %s4746_s21  ;;  %1001 = vrot.lane.b32.xlu0 %v4127_v30, %s4746_s21  ;;  %4150 = vrcp.f32 %v836_v23  ;;  %v835_v58 = vadd.f32 1.0, %v4141_v26  ;;  %v4143_v46 = vpop.eup %4142 }
 0x3dc   :  { %4152 = vpow2.f32 %v3842_v34  ;;  %v837_v38 = vadd.f32 1.0, %v4143_v46  ;;  %v4145_v29 = vpop.eup %4144 }
 0x3dd   :  { %4154 = vrcp.f32 %v833_v9  ;;  %v838_v62 = vadd.f32 1.0, %v4145_v29  ;;  %v4147_v20 = vpop.eup %4146 }
 0x3de   :  { %4156 = vpow2.f32 %v3843_v2  ;;  %v839_v37 = vadd.f32 1.0, %v4147_v20 }
 0x3df   :  { %995 = vrot.lane.b32.xlu1 %v4119_v10, %s4746_s21  ;;  %1003 = vrot.lane.b32.xlu0 %v4129_v45, %s4746_s21  ;;  %4158 = vrcp.f32 %v835_v58  ;;  %v3849_v45 = vmul.f32 -1.442695, %v5331_v40 }
 0x3e0   :  { %4160 = vpow2.f32 %v3844_v27 }
 0x3e1   :  { %4162 = vpow2.f32 %v3841_v7 }
 0x3e2   :  { %4164 = vrcp.f32 %v837_v38 }
 0x3e3   :  { %991 = vrot.lane.b32.xlu1 %v4123_v12, %s4746_s21  ;;  %1005 = vrot.lane.b32.xlu0 %v4131_v47, %s4746_s21  ;;  %4166 = vpow2.f32 %v3845_v13 }
 0x3e4   :  { %4168 = vrcp.f32 %v838_v62 }
 0x3e5   :  { %4170 = vpow2.f32 %v3846_v32 }
 0x3e6   :  { %4172 = vrcp.f32 %v839_v37 }
 0x3e7   :  { %1007 = vrot.lane.b32.xlu0 %v4133_v5, %s4746_s21  ;;  %v5353_v28 = vpop.eup %4148  ;;  %4174 = vpow2.f32 %v3847_v16 }
 0x3e8   :  { %v5356_v35 = vpop.eup %4150  ;;  %4176 = vpow2.f32 %v3848_v1 }
 0x3e9   :  { %v4153_v56 = vpop.eup %4152 }
 0x3ea   :  { %v5361_v52 = vpop.eup %4154  ;;  %v841_v60 = vadd.f32 1.0, %v4153_v56 }
 0x3eb   :  { %v4157_v55 = vpop.eup %4156 }
 0x3ec   :  { %v5366_v8 = vpop.eup %4158  ;;  %v842_v12 = vadd.f32 1.0, %v4157_v55  ;;  %4178 = vrcp.f32 %v841_v60 }
 0x3ed   :  { %v4161_v43 = vpop.eup %4160 }
 0x3ee   :  { %v4163_v6 = vpop.eup %4162  ;;  %v843_v5 = vadd.f32 1.0, %v4161_v43  ;;  %4180 = vrcp.f32 %v842_v12 }
 0x3ef   :  { %v5371_v47 = vpop.eup %4164  ;;  %v840_v42 = vadd.f32 1.0, %v4163_v6  ;;  %4182 = vpow2.f32 %v3849_v45 }
 0x3f0   :  { %v4167_v14 = vpop.eup %4166  ;;  %4184 = vrcp.f32 %v843_v5  ;;  %v914_v5 = vrot.slane %v5114_v41, 7  ;;  %v915_v41 = vrot.slane %v5122_v51, 7  ;;  %v918_v51 = vrot.slane %v5136_v21, 7 }
 0x3f1   :  { %v5375_v44 = vpop.eup %4168  ;;  %v844_v25 = vadd.f32 1.0, %v4167_v14  ;;  %4186 = vrcp.f32 %v840_v42  ;;  %v916_v14 = vrot.slane %v5127_v24, 7 }
 0x3f2   :  { %v4171_v40 = vpop.eup %4170  ;;  %v946_v42 = vmul.f32 %v5353_v28, %v914_v5 }
 0x3f3   :  { %v5379_v18 = vpop.eup %4172  ;;  %v845_v63 = vadd.f32 1.0, %v4171_v40  ;;  %4188 = vrcp.f32 %v844_v25  ;;  %v948_v40 = vmul.f32 %v5356_v35, %v916_v14 }
 0x3f4   :  { %v4175_v22 = vpop.eup %4174 }
 0x3f5   :  { %v4177_v34 = vpop.eup %4176  ;;  %v846_v26 = vadd.f32 1.0, %v4175_v22  ;;  %4190 = vrcp.f32 %v845_v63 }
 0x3f6   :  { %v847_v29 = vadd.f32 1.0, %v4177_v34 }
 0x3f7   :  { %4192 = vrcp.f32 %v846_v26 }
 0x3f8   :  { %4194 = vrcp.f32 %v847_v29  ;;  %v919_v29 = vrot.slane %v5144_v17, 7  ;;  %v922_v17 = vrot.slane %v5138_v48, 7 }
 0x3f9   :  { %v5384_v9 = vpop.eup %4178 }
 0x3fa   :  { %v951_v21 = vmul.f32 %v5379_v18, %v919_v29 }
 0x3fb   :  { %v5386_v58 = vpop.eup %4180 }
 0x3fc   :  { %v4183_v38 = vpop.eup %4182 }
 0x3fd   :  { %v5391_v13 = vpop.eup %4184  ;;  %v848_v37 = vadd.f32 1.0, %v4183_v38 }
 0x3fe   :  { %v5394_v20 = vpop.eup %4186 }
 0x3ff   :  { %4196 = vrcp.f32 %v848_v37 }
 0x439   :  { %v980_v54 = vpop.permute.xlu1 %979 }
 0x43a   :  { %v1026_v50 = vmul.f32 %v5353_v28, %v980_v54 }
 0x43b   :  { %v984_v39 = vpop.permute.xlu0 %983 }
 0x43c   :  { %v1028_v59 = vmul.f32 %v5356_v35, %v984_v39  ;;  %1059 = vrot.lane.b32.xlu1 %v1026_v50, %s4747_s10  ;;  %v5399_v39 = vpop.eup %4188 }
 0x43d   :  { %v978_v33 = vpop.permute.xlu1 %977 }
 0x43e   :  { %v1025_v10 = vmul.f32 %v5361_v52, %v978_v33  ;;  %1063 = vrot.lane.b32.xlu0 %v1028_v59, %s4747_s10  ;;  %v5404_v59 = vpop.eup %4190 }
 0x440   :  { %1057 = vrot.lane.b32.xlu1 %v1025_v10, %s4747_s10  ;;  %v5408_v10 = vpop.eup %4192 }
 0x441   :  { %v982_v4 = vpop.permute.xlu1 %981  ;;  %v994_v2 = vpop.permute.xlu0 %993 }
 0x442   :  { %v1027_v30 = vmul.f32 %v5366_v8, %v982_v4  ;;  %v1033_v46 = vmul.f32 %v5384_v9, %v994_v2  ;;  %v5412_v43 = vpop.eup %4194 }
 0x443   :  { %v5416_v6 = vpop.eup %4196 }
 0x444   :  { %1061 = vrot.lane.b32.xlu1 %v1027_v30, %s4747_s10  ;;  %1073 = vrot.lane.b32.xlu0 %v1033_v46, %s4747_s10 }
 0x445   :  { %v986_v53 = vpop.permute.xlu1 %985  ;;  %v998_v62 = vpop.permute.xlu0 %997 }
 0x446   :  { %v1029_v0 = vmul.f32 %v5371_v47, %v986_v53  ;;  %v1035_v32 = vmul.f32 %v5391_v13, %v998_v62 }
 0x448   :  { %1065 = vrot.lane.b32.xlu1 %v1029_v0, %s4747_s10  ;;  %1077 = vrot.lane.b32.xlu0 %v1035_v32, %s4747_s10  ;;  %v913_v0 = vrot.slane %v5110_v15, 7  ;;  %v947_v15 = vmul.f32 %v5366_v8, %v915_v41  ;;  %v7109_v41 = vld [vmem:[#allocation6_spill] sm:$0xff] }
 0x449   :  { %v988_v11 = vpop.permute.xlu1 %987  ;;  %v1000_v56 = vpop.permute.xlu0 %999 }
 0x44a   :  { %v1030_v49 = vmul.f32 %v5375_v44, %v988_v11  ;;  %v1036_v16 = vmul.f32 %v5399_v39, %v1000_v56  ;;  %v945_v63 = vmul.f32 %v5361_v52, %v913_v0 }
 0x44c   :  { %1067 = vrot.lane.b32.xlu1 %v1030_v49, %s4747_s10  ;;  %1079 = vrot.lane.b32.xlu0 %v1036_v16, %s4747_s10 }
 0x44d   :  { %v990_v36 = vpop.permute.xlu1 %989  ;;  %v1002_v33 = vpop.permute.xlu0 %1001 }
 0x44e   :  { %v1031_v23 = vmul.f32 %v5379_v18, %v990_v36  ;;  %v1037_v55 = vmul.f32 %v5404_v59, %v1002_v33 }
 0x450   :  { %1069 = vrot.lane.b32.xlu1 %v1031_v23, %s4747_s10  ;;  %1081 = vrot.lane.b32.xlu0 %v1037_v55, %s4747_s10  ;;  %v917_v23 = vrot.slane %v5129_v3, 7  ;;  %v954_v55 = vmul.f32 %v5386_v58, %v922_v17 }
 0x451   :  { %v996_v27 = vpop.permute.xlu1 %995  ;;  %v1004_v1 = vpop.permute.xlu0 %1003 }
 0x452   :  { %v1034_v7 = vmul.f32 %v5386_v58, %v996_v27  ;;  %v1038_v60 = vmul.f32 %v5408_v10, %v1004_v1  ;;  %v949_v26 = vmul.f32 %v5371_v47, %v917_v23  ;;  %v950_v27 = vmul.f32 %v5375_v44, %v918_v51  ;;  %v7110_v51 = vld [vmem:[#allocation7_spill] sm:$0xff] }
 0x453   :  { %v923_v1 = vrot.slane %v5146_v19, 7  ;;  %v7108_v19 = vld [vmem:[#allocation4_spill] sm:$0xff] }
 0x454   :  { %1075 = vrot.lane.b32.xlu1 %v1034_v7, %s4747_s10  ;;  %1083 = vrot.lane.b32.xlu0 %v1038_v60, %s4747_s10 }
 0x455   :  { %v992_v54 = vpop.permute.xlu1 %991  ;;  %v1006_v12 = vpop.permute.xlu0 %1005  ;;  %v955_v48 = vmul.f32 %v5391_v13, %v923_v1 }
 0x456   :  { %v1032_v50 = vmul.f32 %v5394_v20, %v992_v54  ;;  %v1039_v4 = vmul.f32 %v5412_v43, %v1006_v12 }
 0x458   :  { %1071 = vrot.lane.b32.xlu1 %v1032_v50, %s4747_s10  ;;  %1085 = vrot.lane.b32.xlu0 %v1039_v4, %s4747_s10  ;;  %v921_v50 = vrot.slane %v5152_v61, 7  ;;  %v7107_v61 = vld [vmem:[#allocation5_spill] sm:$0xff] }
 0x459   :  { %v1008_v30 = vpop.permute.xlu0 %1007  ;;  %v920_v4 = vrot.slane %v7107_v61, 7 }
 0x45a   :  { %v1040_v45 = vmul.f32 %v5416_v6, %v1008_v30  ;;  %v953_v56 = vmul.f32 %v5384_v9, %v921_v50 }
 0x45b   :  { %v952_v14 = vmul.f32 %v5394_v20, %v920_v4 }
 0x45c   :  { %1087 = vrot.lane.b32.xlu0 %v1040_v45, %s4747_s10 }
 0x4ae   :  { %v1060_v53 = vpop.permute.xlu1 %1059 }
 0x4af   :  { %v5424_v25 = vadd.f32 %v1060_v53, %v946_v42  ;;  %v924_v42 = vrot.slane %v7108_v19, 7 }
 0x4b0   :  { %v1064_v11 = vpop.permute.xlu0 %1063 }
 0x4b1   :  { %4198 = vtanh.f32 %v5424_v25  ;;  %v5428_v49 = vadd.f32 %v1064_v11, %v948_v40  ;;  %v956_v11 = vmul.f32 %v5399_v39, %v924_v42 }
 0x4b2   :  { %v1058_v22 = vpop.permute.xlu1 %1057 }
 0x4b3   :  { %4200 = vtanh.f32 %v5428_v49  ;;  %v5433_v24 = vadd.f32 %v1058_v22, %v945_v63 }
 0x4b5   :  { %4202 = vtanh.f32 %v5433_v24 }
 0x4b6   :  { %v1062_v36 = vpop.permute.xlu1 %1061  ;;  %v1074_v33 = vpop.permute.xlu0 %1073 }
 0x4b7   :  { %v5438_v34 = vadd.f32 %v1062_v36, %v947_v15  ;;  %v5463_v60 = vadd.f32 %v1074_v33, %v953_v56  ;;  %v925_v15 = vrot.slane %v7109_v41, 7 }
 0x4b9   :  { %4204 = vtanh.f32 %v5438_v34  ;;  %v957_v23 = vmul.f32 %v5404_v59, %v925_v15 }
 0x4ba   :  { %v1066_v2 = vpop.permute.xlu1 %1065  ;;  %v1078_v5 = vpop.permute.xlu0 %1077 }
 0x4bb   :  { %v5443_v46 = vadd.f32 %v1066_v2, %v949_v26  ;;  %v5474_v53 = vadd.f32 %v1078_v5, %v955_v48 }
 0x4bd   :  { %4206 = vtanh.f32 %v5443_v46 }
 0x4be   :  { %v4199_v7 = vpop.eup %4198  ;;  %v1068_v38 = vpop.permute.xlu1 %1067 }
 0x4bf   :  { %v5448_v3 = vadd.f32 %v1068_v38, %v950_v27  ;;  %1155 = vrot.lane.b32.xlu1 %v4199_v7, %s4748_s17  ;;  %v1080_v22 = vpop.permute.xlu0 %1079  ;;  %v926_v27 = vrot.slane %v7110_v51, 7 }
 0x4c0   :  { %v4201_v62 = vpop.eup %4200  ;;  %v5483_v36 = vadd.f32 %v1080_v22, %v956_v11 }
 0x4c1   :  { %4208 = vtanh.f32 %v5448_v3  ;;  %1159 = vrot.lane.b32.xlu0 %v4201_v62, %s4748_s17  ;;  %v958_v38 = vmul.f32 %v5408_v10, %v926_v27 }
 0x4c2   :  { %v4203_v32 = vpop.eup %4202  ;;  %v1070_v54 = vpop.permute.xlu1 %1069 }
 0x4c3   :  { %v5455_v37 = vadd.f32 %v1070_v54, %v951_v21  ;;  %1153 = vrot.lane.b32.xlu1 %v4203_v32, %s4748_s17  ;;  %v1082_v2 = vpop.permute.xlu0 %1081  ;;  %v7111_v32 = vld [vmem:[#allocation8_spill] sm:$0xff] }
 0x4c4   :  { %v5489_v7 = vadd.f32 %v1082_v2, %v957_v23  ;;  %v927_v54 = vrot.slane %v7111_v32, 7 }
 0x4c5   :  { %4210 = vtanh.f32 %v5455_v37 }
 0x4c6   :  { %v4205_v16 = vpop.eup %4204  ;;  %v1076_v12 = vpop.permute.xlu1 %1075  ;;  %4212 = vtanh.f32 %v5463_v60  ;;  %v959_v17 = vmul.f32 %v5412_v43, %v927_v54 }
 0x4c7   :  { %1157 = vrot.lane.b32.xlu1 %v4205_v16, %s4748_s17  ;;  %v5467_v30 = vadd.f32 %v1076_v12, %v954_v55  ;;  %v1084_v62 = vpop.permute.xlu0 %1083  ;;  %v7112_v55 = vld [vmem:[#allocation9_spill] sm:$0xff] }
 0x4c8   :  { %v5495_v50 = vadd.f32 %v1084_v62, %v958_v38  ;;  %v928_v1 = vrot.slane %v7112_v55, 7 }
 0x4c9   :  { %4214 = vtanh.f32 %v5467_v30 }
 0x4ca   :  { %v4207_v45 = vpop.eup %4206  ;;  %v1072_v0 = vpop.permute.xlu1 %1071  ;;  %4216 = vtanh.f32 %v5474_v53  ;;  %v960_v61 = vmul.f32 %v5416_v6, %v928_v1 }
 0x4cb   :  { %1161 = vrot.lane.b32.xlu1 %v4207_v45, %s4748_s17  ;;  %v5477_v40 = vadd.f32 %v1072_v0, %v952_v14  ;;  %v1086_v16 = vpop.permute.xlu0 %1085 }
 0x4cc   :  { %v5502_v12 = vadd.f32 %v1086_v16, %v959_v17 }
 0x4cd   :  { %4218 = vtanh.f32 %v5477_v40 }
 0x4ce   :  { %v4209_v63 = vpop.eup %4208  ;;  %4220 = vtanh.f32 %v5483_v36 }
 0x4cf   :  { %1163 = vrot.lane.b32.xlu1 %v4209_v63, %s4748_s17  ;;  %4222 = vtanh.f32 %v5489_v7  ;;  %v1088_v48 = vpop.permute.xlu0 %1087 }
 0x4d0   :  { %4224 = vtanh.f32 %v5495_v50  ;;  %v5508_v45 = vadd.f32 %v1088_v48, %v960_v61 }
 0x4d1   :  { %4226 = vtanh.f32 %v5502_v12 }
 0x4d2   :  { %v4211_v26 = vpop.eup %4210  ;;  %4228 = vtanh.f32 %v5508_v45 }
 0x4d3   :  { %1165 = vrot.lane.b32.xlu1 %v4211_v26, %s4748_s17  ;;  %v4213_v29 = vpop.eup %4212 }
 0x4d4   :  { %1169 = vrot.lane.b32.xlu0 %v4213_v29, %s4748_s17 }
 0x4d6   :  { %v4215_v21 = vpop.eup %4214 }
 0x4d7   :  { %1171 = vrot.lane.b32.xlu1 %v4215_v21, %s4748_s17  ;;  %v4217_v56 = vpop.eup %4216 }
 0x4d8   :  { %1173 = vrot.lane.b32.xlu0 %v4217_v56, %s4748_s17 }
 0x4da   :  { %v4219_v33 = vpop.eup %4218 }
 0x4db   :  { %1167 = vrot.lane.b32.xlu1 %v4219_v33, %s4748_s17  ;;  %v4221_v4 = vpop.eup %4220 }
 0x4dc   :  { %1175 = vrot.lane.b32.xlu0 %v4221_v4, %s4748_s17  ;;  %v4223_v5 = vpop.eup %4222 }
 0x4dd   :  { %v4225_v14 = vpop.eup %4224 }
 0x4de   :  { %v4227_v19 = vpop.eup %4226 }
 0x4df   :  { %v4229_v42 = vpop.eup %4228 }
 0x4e0   :  { %1177 = vrot.lane.b32.xlu0 %v4223_v5, %s4748_s17 }
 0x4e4   :  { %1179 = vrot.lane.b32.xlu0 %v4225_v14, %s4748_s17 }
 0x4e8   :  { %1181 = vrot.lane.b32.xlu0 %v4227_v19, %s4748_s17 }
 0x4ec   :  { %1183 = vrot.lane.b32.xlu0 %v4229_v42, %s4748_s17 }
 0x531   :  { %v1156_v0 = vpop.permute.xlu1 %1155 }
 0x532   :  { %v1202_v55 = vmul.f32 %v5353_v28, %v1156_v0 }
 0x533   :  { %v1160_v15 = vpop.permute.xlu0 %1159 }
 0x534   :  { %v1250_v19 = vpack.c.bf16 %v1202_v55, %v1202_v55 }
 0x535   :  { %v1154_v11 = vpop.permute.xlu1 %1153 }
 0x536   :  { %v1201_v21 = vmul.f32 %v5361_v52, %v1154_v11 }
 0x538   :  { %v1249_v1 = vpack.c.bf16 %v1201_v21, %v1201_v21  ;;  %v1282_v21 = vunpack.c.l.b16 %v1250_v19 }
 0x539   :  { %v1158_v63 = vpop.permute.xlu1 %1157 }
 0x53a   :  { %v1203_v56 = vmul.f32 %v5366_v8, %v1158_v63  ;;  %v1281_v42 = vunpack.c.l.b16 %v1249_v1 }
 0x53c   :  { %v1251_v48 = vpack.c.bf16 %v1203_v56, %v1203_v56 }
 0x53d   :  { %v1162_v22 = vpop.permute.xlu1 %1161 }
 0x53e   :  { %v1205_v5 = vmul.f32 %v5371_v47, %v1162_v22 }
 0x540   :  { %v1253_v22 = vpack.c.bf16 %v1205_v5, %v1205_v5 }
 0x541   :  { %v1164_v41 = vpop.permute.xlu1 %1163 }
 0x542   :  { %v1206_v8 = vmul.f32 %v5375_v44, %v1164_v41 }
 0x545   :  { %v1166_v23 = vpop.permute.xlu1 %1165 }
 0x546   :  { %v1170_v26 = vpop.permute.xlu0 %1169  ;;  %v1207_v28 = vmul.f32 %v5379_v18, %v1166_v23  ;;  %v1297_v18 = vrot.slane %v1281_v42, 1 }
 0x547   :  { %v1209_v51 = vmul.f32 %v5384_v9, %v1170_v26 }
 0x548   :  { %v1255_v41 = vpack.c.bf16 %v1207_v28, %v1207_v28 }
 0x549   :  { %v1172_v2 = vpop.permute.xlu1 %1171  ;;  %v1257_v62 = vpack.c.bf16 %v1209_v51, %v1209_v51  ;;  %v1254_v51 = vpack.c.bf16 %v1206_v8, %v1206_v8 }
 0x54a   :  { %v1174_v27 = vpop.permute.xlu0 %1173  ;;  %v1210_v38 = vmul.f32 %v5386_v58, %v1172_v2  ;;  %v1283_v2 = vunpack.c.l.b16 %v1251_v48  ;;  %v1287_v1 = vunpack.c.l.b16 %v1255_v41  ;;  %v5556_v41 = vld [vmem:[%s7012_s0 + $0x4] sm:$0x2] }
 0x54b   :  { %v1211_v29 = vmul.f32 %v5391_v13, %v1174_v27  ;;  %v1289_v33 = vunpack.c.l.b16 %v1257_v62  ;;  %v1204_v13 = vmul.f32 %v5356_v35, %v1160_v15 }
 0x54c   :  { %v1258_v17 = vpack.c.bf16 %v1210_v38, %v1210_v38  ;;  %v1307_v19 = vrot.slane %v1287_v1, 3 }
 0x54d   :  { %v1259_v16 = vpack.c.bf16 %v1211_v29, %v1211_v29  ;;  %v1311_v14 = vrot.slane %v1289_v33, 1  ;;  %v1252_v15 = vpack.c.bf16 %v1204_v13, %v1204_v13 }
 0x54e   :  { %v1176_v32 = vpop.permute.xlu0 %1175  ;;  %v1290_v4 = vunpack.c.l.b16 %v1258_v17  ;;  %v1286_v17 = vunpack.c.l.b16 %v1254_v51 }
 0x54f   :  { %v1212_v54 = vmul.f32 %v5399_v39, %v1176_v32  ;;  %v1291_v52 = vunpack.c.l.b16 %v1259_v16  ;;  %v1168_v39 = vpop.permute.xlu1 %1167  ;;  %v1284_v32 = vunpack.c.l.b16 %v1252_v15 }
 0x550   :  { %v1312_v26 = vsel %vm656_vm2, %v1290_v4, %v1311_v14  ;;  %v1208_v35 = vmul.f32 %v5394_v20, %v1168_v39  ;;  %v1285_v20 = vunpack.c.l.b16 %v1253_v22  ;;  %v1305_v39 = vrot.slane %v1286_v17, 4 }
 0x551   :  { %v1260_v61 = vpack.c.bf16 %v1212_v54, %v1212_v54  ;;  %v1313_v47 = vrot.slane %v1291_v52, 7  ;;  %v1299_v54 = vrot.slane %v1283_v2, 7  ;;  %v1301_v5 = vrot.slane %v1284_v32, 6 }
 0x552   :  { %v1178_v9 = vpop.permute.xlu0 %1177  ;;  %v1303_v48 = vrot.slane %v1285_v20, 5 }
 0x553   :  { %v1213_v58 = vmul.f32 %v5404_v59, %v1178_v9  ;;  %v1292_v63 = vunpack.c.l.b16 %v1260_v61  ;;  %v1314_v38 = vsel %vm659_vm3, %v1313_v47, %v1312_v26  ;;  %v1298_v61 = vsel %vm656_vm2, %v1282_v21, %v1297_v18  ;;  %v5576_v21 = vld [vmem:[%s7012_s0] sm:$0x2] }
 0x554   :  { %v7050_v17 = vunpack.c.l.bf16 %v5576_v21 }
 0x555   :  { %v1261_v11 = vpack.c.bf16 %v1213_v58, %v1213_v58  ;;  %v1315_v23 = vrot.slane %v1292_v63, 6 }
 0x556   :  { %v1180_v0 = vpop.permute.xlu0 %1179 }
 0x557   :  { %v1214_v59 = vmul.f32 %v5408_v10, %v1180_v0  ;;  %v1293_v44 = vunpack.c.l.b16 %v1261_v11  ;;  %v1256_v10 = vpack.c.bf16 %v1208_v35, %v1208_v35  ;;  %v1316_v16 = vsel %vm662_vm4, %v1315_v23, %v1314_v38  ;;  %v5561_v38 = vld [vmem:[%s7012_s0 + $0x8] sm:$0x2] }
 0x559   :  { %v1262_v27 = vpack.c.bf16 %v1214_v59, %v1214_v59  ;;  %v1317_v55 = vrot.slane %v1293_v44, 5  ;;  %v1288_v4 = vunpack.c.l.b16 %v1256_v10  ;;  %v7049_v10 = vunpack.c.l.bf16 %v5561_v38 }
 0x55a   :  { %v1182_v29 = vpop.permute.xlu0 %1181 }
 0x55b   :  { %v1215_v62 = vmul.f32 %v5412_v43, %v1182_v29  ;;  %v1294_v56 = vunpack.c.l.b16 %v1262_v27  ;;  %v1300_v43 = vsel %vm659_vm3, %v1299_v54, %v1298_v61  ;;  %v1318_v52 = vsel %vm665_vm5, %v1317_v55, %v1316_v16 }
 0x55c   :  { %v1302_v11 = vsel %vm662_vm4, %v1301_v5, %v1300_v43  ;;  %v1309_v0 = vrot.slane %v1288_v4, 2 }
 0x55d   :  { %v1263_v33 = vpack.c.bf16 %v1215_v62, %v1215_v62  ;;  %v1319_v14 = vrot.slane %v1294_v56, 4  ;;  %v1304_v59 = vsel %vm665_vm5, %v1303_v48, %v1302_v11  ;;  %v5570_v62 = vld [vmem:[%s7012_s0 + $0x10] sm:$0x2] }
 0x55e   :  { %v1184_v9 = vpop.permute.xlu0 %1183  ;;  %v7048_v32 = vunpack.c.l.bf16 %v5570_v62 }
 0x55f   :  { %v1295_v58 = vunpack.c.l.b16 %v1263_v33  ;;  %v1216_v13 = vmul.f32 %v5416_v6, %v1184_v9  ;;  %v1320_v28 = vsel %vm668_vm6, %v1319_v14, %v1318_v52  ;;  %v1306_v6 = vsel %vm668_vm6, %v1305_v39, %v1304_v59  ;;  %v5594_v33 = vld [vmem:[%s7012_s0 + $0xc] sm:$0x2]  ;;  %v5630_v39 = vld [vmem:[%s7012_s0 + $0x24] sm:$0x2]  ;;  %v5636_v14 = vld [vmem:[%s7012_s0 + $0x28] sm:$0x2] }
 0x560   :  { %v1308_v35 = vsel %vm671_vm7, %v1307_v19, %v1306_v6  ;;  %v7052_v1 = vunpack.c.l.bf16 %v5594_v33  ;;  %v7047_v19 = vunpack.c.l.bf16 %v5630_v39 }
 0x561   :  { %v1264_v8 = vpack.c.bf16 %v1216_v13, %v1216_v13  ;;  %v1321_v42 = vrot.slane %v1295_v58, 3  ;;  %v1310_v2 = vsel %vm674_vm8, %v1309_v0, %v1308_v35  ;;  %v5611_v58 = vld [vmem:[%s7012_s0 + $0x14] sm:$0x2]  ;;  %v7041_v0 = vunpack.c.l.bf16 %v5636_v14 }
 0x562   :  { %v7051_v4 = vunpack.c.l.bf16 %v5611_v58 }
 0x563   :  { %v1296_v63 = vunpack.c.l.b16 %v1264_v8  ;;  %v1322_v15 = vsel %vm671_vm7, %v1321_v42, %v1320_v28  ;;  %v5644_v28 = vld [vmem:[%s7012_s0 + $0x2c] sm:$0x2] }
 0x564   :  { %v7044_v59 = vunpack.c.l.bf16 %v5644_v28 }
 0x565   :  { %v1323_v26 = vrot.slane %v1296_v63, 2  ;;  %v5651_v63 = vld [vmem:[%s7012_s0 + $0x20] sm:$0x2] }
 0x567   :  { %v1324_v47 = vsel %vm674_vm8, %v1323_v26, %v1322_v15  ;;  %v5663_v15 = vld [vmem:[%s7012_s0 + $0x30] sm:$0x2] }
 0x568   :  { %v1325_v22 = vpack.c.b16 %v1324_v47, %v1310_v2  ;;  %v7039_v2 = vunpack.c.l.bf16 %v5651_v63 }
 0x56a   :  { %1326 = vrot.lane.b32.xlu1 %v1325_v22, %s4749_s18 }
 0x5dc   :  { %v1327_v51 = vpop.permute.xlu1 %1326 }
 0x5dd   :  { %3945 = vmatmul.mubr.msk.bf16.vlgmr.msra.gmra.mxu0 %vm16_vm0, %v1327_v51  ;;  %v5675_v51 = vld [vmem:[%s7012_s0 + $0x18] sm:$0x2] }
 0x5de   :  { %3955 = vmatpush3.bf16.msra.mxu0 %v5228_v57  ;;  %3956 = vmatprep.mubr.msk.bf16.mxu0 %vm4745_vm1, %v7090_v31  ;;  %v7053_v57 = vunpack.c.l.bf16 %v5556_v41 }
 0x69d   :  { %v5551_v27 = vpop.f32.mrf.mxu0 }
 0x69e   :  { %v1375_v18 = vrot.slane %v5551_v27, 7  ;;  %v1377_v54 = vrot.slane %v5551_v27, 2  ;;  %v1374_v56 = vrot.slane %v5551_v27, 6  ;;  %v5589_v16 = vadd.f32 %v5551_v27, %v7049_v10 }
 0x69f   :  { %v3946_v44 = vpop.f32.mrf.mxu0  ;;  %v1376_v9 = vrot.slane %v5551_v27, 1  ;;  %v1378_v13 = vrot.slane %v5551_v27, 3 }
 0x6a0   :  { %v5582_v20 = vadd.f32 %v1375_v18, %v7053_v57  ;;  %v5598_v55 = vadd.f32 %v1377_v54, %v7048_v32  ;;  %v5605_v61 = vadd.f32 %v1374_v56, %v7050_v17  ;;  %v7038_v44 = vunpack.c.l.bf16 %v5663_v15 }
 0x6a1   :  { %v5563_v29 = vpop.f32.mrf.mxu0  ;;  %v5618_v43 = vadd.f32 %v1376_v9, %v7052_v1  ;;  %v5623_v48 = vadd.f32 %v1378_v13, %v7051_v4  ;;  %v7040_v56 = vunpack.c.l.bf16 %v5675_v51  ;;  %v1379_v9 = vrot.slane %v5551_v27, 4  ;;  %v5690_v13 = vld [vmem:[%s7012_s0 + $0x34] sm:$0x2] }
 0x6a2   :  { %4230 = vtanh.f32 %v5582_v20  ;;  %v1382_v42 = vrot.slane %v5563_v29, 7  ;;  %v1383_v6 = vrot.slane %v5563_v29, 1  ;;  %v1381_v47 = vrot.slane %v5563_v29, 6 }
 0x6a3   :  { %v3947_v23 = vpop.f32.mrf.mxu0  ;;  %4232 = vtanh.f32 %v5589_v16  ;;  %v5670_v22 = vadd.f32 %v5563_v29, %v7041_v0  ;;  %v1384_v18 = vrot.slane %v5563_v29, 2  ;;  %v1387_v0 = vrot.slane %v5563_v29, 5 }
 0x6a4   :  { %4234 = vtanh.f32 %v5598_v55  ;;  %v5658_v26 = vadd.f32 %v1382_v42, %v7047_v19  ;;  %v5682_v23 = vadd.f32 %v1383_v6, %v7044_v59  ;;  %v1385_v42 = vrot.slane %v5563_v29, 3 }
 0x6a5   :  { %4236 = vtanh.f32 %v5605_v61 }
 0x6a6   :  { %4238 = vtanh.f32 %v5618_v43 }
 0x6a7   :  { %4240 = vtanh.f32 %v5623_v48 }
 0x6a8   :  { %4242 = vtanh.f32 %v5658_v26 }
 0x6a9   :  { %4244 = vtanh.f32 %v5670_v22 }
 0x6aa   :  { %4246 = vtanh.f32 %v5682_v23 }
 0x6af   :  { %v4231_v52 = vpop.eup %4230 }
 0x6b0   :  { %v4233_v5 = vpop.eup %4232  ;;  %1614 = vrot.lane.b32.xlu1 %v4231_v52, %s4746_s21  ;;  %v5694_v52 = vadd.f32 %v1381_v47, %v7039_v2  ;;  %v5714_v47 = vadd.f32 %v1379_v9, %v7040_v56  ;;  %v5737_v9 = vld [vmem:[%s7012_s0 + $0x3c] sm:$0x2] }
 0x6b1   :  { %1616 = vrot.lane.b32.xlu0 %v4233_v5, %s4746_s21  ;;  %v4235_v8 = vpop.eup %4234  ;;  %v5700_v5 = vld [vmem:[%s7012_s0 + $0x1c] sm:$0x2]  ;;  %v7046_v56 = vunpack.c.l.bf16 %v5737_v9 }
 0x6b2   :  { %v4237_v11 = vpop.eup %4236  ;;  %v7043_v6 = vunpack.c.l.bf16 %v5700_v5  ;;  %4248 = vtanh.f32 %v5694_v52 }
 0x6b3   :  { %v4239_v35 = vpop.eup %4238 }
 0x6b4   :  { %1620 = vrot.lane.b32.xlu1 %v4235_v8, %s4746_s21  ;;  %v4241_v54 = vpop.eup %4240  ;;  %v7042_v8 = vunpack.c.l.bf16 %v5690_v13 }
 0x6b5   :  { %1612 = vrot.lane.b32.xlu0 %v4237_v11, %s4746_s21  ;;  %v5707_v11 = vadd.f32 %v1384_v18, %v7038_v44  ;;  %v1386_v44 = vrot.slane %v5563_v29, 4 }
 0x6b6   :  { %v5726_v2 = vadd.f32 %v1385_v42, %v7042_v8  ;;  %v4243_v8 = vpop.eup %4242 }
 0x6b7   :  { %4250 = vtanh.f32 %v5707_v11 }
 0x6b8   :  { %4252 = vtanh.f32 %v5714_v47  ;;  %1630 = vrot.lane.b32.xlu1 %v4243_v8, %s4746_s21 }
 0x6b9   :  { %1618 = vrot.lane.b32.xlu0 %v4239_v35, %s4746_s21  ;;  %v1380_v35 = vrot.slane %v5551_v27, 5  ;;  %4254 = vtanh.f32 %v5726_v2 }
 0x6bb   :  { %v5731_v27 = vadd.f32 %v1380_v35, %v7043_v6  ;;  %v4245_v35 = vpop.eup %4244  ;;  %v5751_v6 = vadd.f32 %v1387_v0, %v7046_v56  ;;  %v3853_v56 = vmul.f32 -1.442695, %v5589_v16 }
 0x6bc   :  { %v4247_v29 = vpop.eup %4246 }
 0x6bd   :  { %1622 = vrot.lane.b32.xlu0 %v4241_v54, %s4746_s21  ;;  %v5719_v54 = vld [vmem:[%s7012_s0 + $0x38] sm:$0x2]  ;;  %4256 = vtanh.f32 %v5731_v27  ;;  %1634 = vrot.lane.b32.xlu1 %v4247_v29, %s4746_s21 }
 0x6be   :  { %v7045_v18 = vunpack.c.l.bf16 %v5719_v54 }
 0x6bf   :  { %v4249_v59 = vpop.eup %4248 }
 0x6c0   :  { %v5743_v42 = vadd.f32 %v1386_v44, %v7045_v18 }
 0x6c1   :  { %1632 = vrot.lane.b32.xlu0 %v4245_v35, %s4746_s21 }
 0x6c2   :  { %4258 = vtanh.f32 %v5743_v42 }
 0x6c3   :  { %4260 = vtanh.f32 %v5751_v6 }
 0x6c4   :  { %v4251_v44 = vpop.eup %4250 }
 0x6c5   :  { %1628 = vrot.lane.b32.xlu0 %v4249_v59, %s4746_s21  ;;  %v4253_v18 = vpop.eup %4252  ;;  %1636 = vrot.lane.b32.xlu1 %v4251_v44, %s4746_s21  ;;  %v3852_v59 = vmul.f32 -1.442695, %v5582_v20  ;;  %v3851_v44 = vmul.f32 -1.442695, %v5605_v61 }
 0x6c6   :  { %v4255_v8 = vpop.eup %4254 }
 0x6c7   :  { %4262 = vpow2.f32 %v3852_v59 }
 0x6c8   :  { %4264 = vpow2.f32 %v3853_v56 }
 0x6c9   :  { %1624 = vrot.lane.b32.xlu0 %v4253_v18, %s4746_s21  ;;  %1638 = vrot.lane.b32.xlu1 %v4255_v8, %s4746_s21  ;;  %v3855_v18 = vmul.f32 -1.442695, %v5598_v55  ;;  %4266 = vpow2.f32 %v3851_v44  ;;  %v3854_v8 = vmul.f32 -1.442695, %v5618_v43  ;;  %v3860_v55 = vmul.f32 -1.442695, %v5658_v26 }
 0x6ca   :  { %v4257_v35 = vpop.eup %4256  ;;  %v3861_v43 = vmul.f32 -1.442695, %v5670_v22  ;;  %v3862_v44 = vmul.f32 -1.442695, %v5682_v23  ;;  %v3858_v23 = vmul.f32 -1.442695, %v5731_v27 }
 0x6cb   :  { %4268 = vpow2.f32 %v3855_v18  ;;  %v3859_v18 = vmul.f32 -1.442695, %v5694_v52 }
 0x6cc   :  { %4270 = vpow2.f32 %v3854_v8 }
 0x6cd   :  { %1626 = vrot.lane.b32.xlu0 %v4257_v35, %s4746_s21  ;;  %v3856_v35 = vmul.f32 -1.442695, %v5623_v48 }
 0x6cf   :  { %v4259_v0 = vpop.eup %4258  ;;  %4272 = vpow2.f32 %v3856_v35 }
 0x6d0   :  { %1640 = vrot.lane.b32.xlu1 %v4259_v0, %s4746_s21  ;;  %v4261_v29 = vpop.eup %4260 }
 0x6d4   :  { %1642 = vrot.lane.b32.xlu1 %v4261_v29, %s4746_s21  ;;  %v4263_v0 = vpop.eup %4262 }
 0x6d5   :  { %v4265_v29 = vpop.eup %4264  ;;  %v1469_v20 = vadd.f32 1.0, %v4263_v0 }
 0x6d6   :  { %v4267_v19 = vpop.eup %4266  ;;  %v1470_v16 = vadd.f32 1.0, %v4265_v29 }
 0x6d7   :  { %v1468_v10 = vadd.f32 1.0, %v4267_v19  ;;  %4274 = vrcp.f32 %v1469_v20  ;;  %v3857_v19 = vmul.f32 -1.442695, %v5714_v47 }
 0x6d8   :  { %v4269_v32 = vpop.eup %4268  ;;  %4276 = vrcp.f32 %v1470_v16 }
 0x6d9   :  { %v1472_v61 = vadd.f32 1.0, %v4269_v32  ;;  %v4271_v59 = vpop.eup %4270  ;;  %4278 = vrcp.f32 %v1468_v10  ;;  %v3863_v32 = vmul.f32 -1.442695, %v5707_v11  ;;  %v3864_v10 = vmul.f32 -1.442695, %v5726_v2 }
 0x6da   :  { %v1471_v56 = vadd.f32 1.0, %v4271_v59  ;;  %v3865_v2 = vmul.f32 -1.442695, %v5743_v42 }
 0x6db   :  { %4280 = vrcp.f32 %v1472_v61 }
 0x6dc   :  { %v4273_v48 = vpop.eup %4272  ;;  %4282 = vpow2.f32 %v3860_v55 }
 0x6dd   :  { %4284 = vpow2.f32 %v3861_v43  ;;  %v1473_v8 = vadd.f32 1.0, %v4273_v48  ;;  %v3866_v43 = vmul.f32 -1.442695, %v5751_v6 }
 0x6de   :  { %4286 = vrcp.f32 %v1471_v56 }
 0x6df   :  { %4288 = vpow2.f32 %v3862_v44 }
 0x6e0   :  { %4290 = vpow2.f32 %v3859_v18 }
 0x6e1   :  { %4292 = vrcp.f32 %v1473_v8 }
 0x6e2   :  { %4294 = vpow2.f32 %v3863_v32 }
 0x6e3   :  { %4296 = vpow2.f32 %v3857_v19 }
 0x6e4   :  { %v5775_v26 = vpop.eup %4274  ;;  %4298 = vpow2.f32 %v3864_v10 }
 0x6e5   :  { %v5778_v35 = vpop.eup %4276  ;;  %4300 = vpow2.f32 %v3858_v23 }
 0x6e6   :  { %v5783_v29 = vpop.eup %4278  ;;  %4302 = vpow2.f32 %v3865_v2 }
 0x6e7   :  { %4304 = vpow2.f32 %v3866_v43 }
 0x6e8   :  { %v5786_v47 = vpop.eup %4280 }
 0x6e9   :  { %v4283_v16 = vpop.eup %4282 }
 0x6ea   :  { %v4285_v59 = vpop.eup %4284  ;;  %v1477_v48 = vadd.f32 1.0, %v4283_v16 }
 0x6eb   :  { %v5794_v56 = vpop.eup %4286  ;;  %v1478_v44 = vadd.f32 1.0, %v4285_v59 }
 0x6ec   :  { %v4289_v42 = vpop.eup %4288  ;;  %4306 = vrcp.f32 %v1477_v48 }
 0x6ed   :  { %v4291_v8 = vpop.eup %4290  ;;  %v1479_v10 = vadd.f32 1.0, %v4289_v42  ;;  %4308 = vrcp.f32 %v1478_v44 }
 0x6ee   :  { %v5798_v19 = vpop.eup %4292 }
 0x6ef   :  { %v4295_v6 = vpop.eup %4294  ;;  %4310 = vrcp.f32 %v1479_v10 }
 0x722   :  { %v1615_v22 = vpop.permute.xlu1 %1614 }
 0x723   :  { %v1617_v52 = vpop.permute.xlu0 %1616  ;;  %v1661_v0 = vmul.f32 %v5775_v26, %v1615_v22  ;;  %v1476_v22 = vadd.f32 1.0, %v4291_v8 }
 0x724   :  { %v1662_v11 = vmul.f32 %v5778_v35, %v1617_v52  ;;  %v4297_v52 = vpop.eup %4296 }
 0x725   :  { %1694 = vrot.lane.b32.xlu1 %v1661_v0, %s4747_s10  ;;  %v4299_v2 = vpop.eup %4298  ;;  %4312 = vrcp.f32 %v1476_v22 }
 0x726   :  { %1696 = vrot.lane.b32.xlu0 %v1662_v11, %s4747_s10  ;;  %v1621_v20 = vpop.permute.xlu1 %1620  ;;  %v1480_v11 = vadd.f32 1.0, %v4295_v6  ;;  %v4301_v16 = vpop.eup %4300 }
 0x727   :  { %v1613_v27 = vpop.permute.xlu0 %1612  ;;  %v1664_v61 = vmul.f32 %v5786_v47, %v1621_v20  ;;  %v1474_v20 = vadd.f32 1.0, %v4297_v52  ;;  %v1475_v59 = vadd.f32 1.0, %v4301_v16 }
 0x728   :  { %v1660_v55 = vmul.f32 %v5783_v29, %v1613_v27  ;;  %v1481_v27 = vadd.f32 1.0, %v4299_v2  ;;  %4314 = vrcp.f32 %v1480_v11 }
 0x729   :  { %1700 = vrot.lane.b32.xlu1 %v1664_v61, %s4747_s10  ;;  %v4303_v61 = vpop.eup %4302  ;;  %4316 = vrcp.f32 %v1474_v20 }
 0x72a   :  { %1692 = vrot.lane.b32.xlu0 %v1660_v55, %s4747_s10  ;;  %v4305_v55 = vpop.eup %4304  ;;  %v1482_v43 = vadd.f32 1.0, %v4303_v61  ;;  %4318 = vrcp.f32 %v1481_v27  ;;  %v1631_v42 = vpop.permute.xlu1 %1630 }
 0x72b   :  { %v1619_v18 = vpop.permute.xlu0 %1618  ;;  %v5803_v48 = vpop.eup %4306  ;;  %4320 = vrcp.f32 %v1475_v59  ;;  %v1483_v10 = vadd.f32 1.0, %v4305_v55 }
 0x72c   :  { %v1663_v32 = vmul.f32 %v5794_v56, %v1619_v18  ;;  %v5805_v44 = vpop.eup %4308  ;;  %v1669_v18 = vmul.f32 %v5803_v48, %v1631_v42  ;;  %4322 = vrcp.f32 %v1482_v43 }
 0x72d   :  { %v5810_v6 = vpop.eup %4310  ;;  %4324 = vrcp.f32 %v1483_v10 }
 0x72e   :  { %1698 = vrot.lane.b32.xlu0 %v1663_v32, %s4747_s10  ;;  %1710 = vrot.lane.b32.xlu1 %v1669_v18, %s4747_s10 }
 0x72f   :  { %v1623_v23 = vpop.permute.xlu0 %1622  ;;  %v1635_v22 = vpop.permute.xlu1 %1634 }
 0x730   :  { %v1665_v0 = vmul.f32 %v5798_v19, %v1623_v23  ;;  %v1671_v52 = vmul.f32 %v5810_v6, %v1635_v22 }
 0x732   :  { %1702 = vrot.lane.b32.xlu0 %v1665_v0, %s4747_s10  ;;  %v5813_v23 = vpop.eup %4312  ;;  %1714 = vrot.lane.b32.xlu1 %v1671_v52, %s4747_s10 }
 0x733   :  { %v1633_v8 = vpop.permute.xlu0 %1632 }
 0x734   :  { %v1670_v32 = vmul.f32 %v5805_v44, %v1633_v8 }
 0x735   :  { %v5818_v2 = vpop.eup %4314 }
 0x736   :  { %1712 = vrot.lane.b32.xlu0 %v1670_v32, %s4747_s10  ;;  %v5821_v16 = vpop.eup %4316 }
 0x737   :  { %v1629_v0 = vpop.permute.xlu0 %1628  ;;  %v1637_v20 = vpop.permute.xlu1 %1636 }
 0x738   :  { %v1668_v11 = vmul.f32 %v5813_v23, %v1629_v0  ;;  %v1672_v27 = vmul.f32 %v5818_v2, %v1637_v20  ;;  %v5826_v55 = vpop.eup %4318 }
 0x739   :  { %v5829_v42 = vpop.eup %4320 }
 0x73a   :  { %1708 = vrot.lane.b32.xlu0 %v1668_v11, %s4747_s10  ;;  %1716 = vrot.lane.b32.xlu1 %v1672_v27, %s4747_s10  ;;  %v5834_v10 = vpop.eup %4322  ;;  %v1549_v27 = vrot.slane %v5424_v25, 7 }
 0x73b   :  { %v1625_v61 = vpop.permute.xlu0 %1624  ;;  %v1639_v43 = vpop.permute.xlu1 %1638 }
 0x73c   :  { %v1666_v59 = vmul.f32 %v5821_v16, %v1625_v61  ;;  %v1673_v18 = vmul.f32 %v5826_v55, %v1639_v43  ;;  %v5839_v0 = vpop.eup %4324  ;;  %v1550_v61 = vrot.slane %v5438_v34, 7 }
 0x73e   :  { %1704 = vrot.lane.b32.xlu0 %v1666_v59, %s4747_s10  ;;  %1718 = vrot.lane.b32.xlu1 %v1673_v18, %s4747_s10  ;;  %v1581_v59 = vmul.f32 %v5775_v26, %v1549_v27  ;;  %v1582_v43 = vmul.f32 %v5778_v35, %v1550_v61 }
 0x73f   :  { %v1627_v8 = vpop.permute.xlu0 %1626 }
 0x740   :  { %v1667_v32 = vmul.f32 %v5829_v42, %v1627_v8  ;;  %v1552_v8 = vrot.slane %v5443_v46, 7  ;;  %v1551_v46 = vrot.slane %v5428_v49, 7 }
 0x742   :  { %v1641_v22 = vpop.permute.xlu1 %1640  ;;  %1706 = vrot.lane.b32.xlu0 %v1667_v32, %s4747_s10  ;;  %v1584_v25 = vmul.f32 %v5786_v47, %v1552_v8 }
 0x743   :  { %v1674_v52 = vmul.f32 %v5834_v10, %v1641_v22 }
 0x745   :  { %1720 = vrot.lane.b32.xlu1 %v1674_v52, %s4747_s10  ;;  %v1548_v52 = vrot.slane %v5433_v24, 7  ;;  %v1583_v24 = vmul.f32 %v5794_v56, %v1551_v46 }
 0x746   :  { %v1643_v11 = vpop.permute.xlu1 %1642 }
 0x747   :  { %v1675_v20 = vmul.f32 %v5839_v0, %v1643_v11  ;;  %v1580_v34 = vmul.f32 %v5783_v29, %v1548_v52 }
 0x749   :  { %1722 = vrot.lane.b32.xlu1 %v1675_v20, %s4747_s10 }
 0x797   :  { %v1695_v18 = vpop.permute.xlu1 %1694 }
 0x798   :  { %v1697_v32 = vpop.permute.xlu0 %1696  ;;  %v5848_v22 = vadd.f32 %v1695_v18, %v1581_v59 }
 0x799   :  { %v5851_v17 = vadd.f32 %v1697_v32, %v1582_v43  ;;  %v1553_v43 = vrot.slane %v5448_v3, 7  ;;  %v1557_v3 = vrot.slane %v5467_v30, 7 }
 0x79a   :  { %4326 = vtanh.f32 %v5848_v22 }
 0x79b   :  { %4328 = vtanh.f32 %v5851_v17  ;;  %v1701_v11 = vpop.permute.xlu1 %1700  ;;  %v1585_v8 = vmul.f32 %v5798_v19, %v1553_v43  ;;  %v1589_v46 = vmul.f32 %v5803_v48, %v1557_v3 }
 0x79c   :  { %v1693_v20 = vpop.permute.xlu0 %1692  ;;  %v5857_v27 = vadd.f32 %v1701_v11, %v1584_v25 }
 0x79d   :  { %v5860_v61 = vadd.f32 %v1693_v20, %v1580_v34  ;;  %v1558_v20 = vrot.slane %v5474_v53, 7 }
 0x79e   :  { %4330 = vtanh.f32 %v5857_v27 }
 0x79f   :  { %4332 = vtanh.f32 %v5860_v61  ;;  %v1590_v43 = vmul.f32 %v5805_v44, %v1558_v20 }
 0x7a0   :  { %v1699_v59 = vpop.permute.xlu0 %1698 }
 0x7a1   :  { %v5866_v18 = vadd.f32 %v1699_v59, %v1583_v24  ;;  %v1711_v59 = vpop.permute.xlu1 %1710 }
 0x7a3   :  { %4334 = vtanh.f32 %v5866_v18 }
 0x7a4   :  { %v1703_v32 = vpop.permute.xlu0 %1702 }
 0x7a5   :  { %v5870_v52 = vadd.f32 %v1703_v32, %v1585_v8  ;;  %v1559_v8 = vrot.slane %v5483_v36, 7  ;;  %v5882_v32 = vadd.f32 %v1711_v59, %v1589_v46  ;;  %v1560_v36 = vrot.slane %v5489_v7, 7 }
 0x7a6   :  { %v1561_v7 = vrot.slane %v5495_v50, 7 }
 0x7a7   :  { %v4327_v49 = vpop.eup %4326  ;;  %4336 = vtanh.f32 %v5870_v52  ;;  %v1591_v53 = vmul.f32 %v5810_v6, %v1559_v8  ;;  %v1592_v59 = vmul.f32 %v5818_v2, %v1560_v36  ;;  %v1562_v36 = vrot.slane %v5502_v12, 7 }
 0x7a8   :  { %v4329_v25 = vpop.eup %4328  ;;  %1790 = vrot.lane.b32.xlu1 %v4327_v49, %s4748_s17  ;;  %v1713_v49 = vpop.permute.xlu0 %1712  ;;  %4338 = vtanh.f32 %v5882_v32 }
 0x7a9   :  { %1792 = vrot.lane.b32.xlu0 %v4329_v25, %s4748_s17  ;;  %v1556_v25 = vrot.slane %v5463_v60, 7  ;;  %v5886_v30 = vadd.f32 %v1713_v49, %v1590_v43  ;;  %v1554_v60 = vrot.slane %v5455_v37, 7  ;;  %v1593_v37 = vmul.f32 %v5826_v55, %v1561_v7 }
 0x7aa   :  { %v1563_v7 = vrot.slane %v5508_v45, 7 }
 0x7ab   :  { %v4331_v34 = vpop.eup %4330  ;;  %4340 = vtanh.f32 %v5886_v30  ;;  %v1588_v3 = vmul.f32 %v5813_v23, %v1556_v25  ;;  %v1586_v8 = vmul.f32 %v5821_v16, %v1554_v60 }
 0x7ac   :  { %v4333_v11 = vpop.eup %4332  ;;  %1796 = vrot.lane.b32.xlu1 %v4331_v34, %s4748_s17  ;;  %v1709_v46 = vpop.permute.xlu0 %1708  ;;  %v1595_v12 = vmul.f32 %v5839_v0, %v1563_v7 }
 0x7ad   :  { %1788 = vrot.lane.b32.xlu0 %v4333_v11, %s4748_s17  ;;  %v1715_v11 = vpop.permute.xlu1 %1714 }
 0x7ae   :  { %v5893_v20 = vadd.f32 %v1715_v11, %v1591_v53  ;;  %v1555_v53 = vrot.slane %v5477_v40, 7  ;;  %v1594_v40 = vmul.f32 %v5834_v10, %v1562_v36 }
 0x7b0   :  { %v4335_v24 = vpop.eup %4334  ;;  %4342 = vtanh.f32 %v5893_v20  ;;  %v1705_v25 = vpop.permute.xlu0 %1704 }
 0x7b1   :  { %1794 = vrot.lane.b32.xlu0 %v4335_v24, %s4748_s17  ;;  %v5897_v24 = vadd.f32 %v1709_v46, %v1588_v3  ;;  %v1717_v43 = vpop.permute.xlu1 %1716  ;;  %v1587_v3 = vmul.f32 %v5829_v42, %v1555_v53 }
 0x7b2   :  { %v5904_v49 = vadd.f32 %v1717_v43, %v1592_v59 }
 0x7b3   :  { %7113 = vst [vmem:[#allocation5_spill] sm:$0xff] %v5897_v24  ;;  %4344 = vtanh.f32 %v5897_v24 }
 0x7b4   :  { %v4337_v34 = vpop.eup %4336  ;;  %7114 = vst [vmem:[#allocation4_spill] sm:$0xff] %v5904_v49  ;;  %4346 = vtanh.f32 %v5904_v49  ;;  %v1707_v50 = vpop.permute.xlu0 %1706 }
 0x7b5   :  { %1798 = vrot.lane.b32.xlu0 %v4337_v34, %s4748_s17  ;;  %v5907_v34 = vadd.f32 %v1705_v25, %v1586_v8  ;;  %v1719_v11 = vpop.permute.xlu1 %1718  ;;  %v5916_v60 = vadd.f32 %v1707_v50, %v1587_v3  ;;  %v4339_v59 = vpop.eup %4338 }
 0x7b6   :  { %v5914_v46 = vadd.f32 %v1719_v11, %v1593_v37  ;;  %1806 = vrot.lane.b32.xlu1 %v4339_v59, %s4748_s17 }
 0x7b7   :  { %7115 = vst [vmem:[#allocation6_spill] sm:$0xff] %v5907_v34  ;;  %4348 = vtanh.f32 %v5907_v34  ;;  %7117 = vst [vmem:[#allocation8_spill] sm:$0xff] %v5916_v60 }
 0x7b8   :  { %7116 = vst [vmem:[#allocation7_spill] sm:$0xff] %v5914_v46  ;;  %4350 = vtanh.f32 %v5914_v46  ;;  %v4341_v8 = vpop.eup %4340 }
 0x7b9   :  { %v1721_v43 = vpop.permute.xlu1 %1720  ;;  %4352 = vtanh.f32 %v5916_v60  ;;  %1808 = vrot.lane.b32.xlu0 %v4341_v8, %s4748_s17 }
 0x7ba   :  { %v5922_v25 = vadd.f32 %v1721_v43, %v1594_v40 }
 0x7bc   :  { %7118 = vst [vmem:[#allocation9_spill] sm:$0xff] %v5922_v25  ;;  %4354 = vtanh.f32 %v5922_v25 }
 0x7bd   :  { %v4343_v53 = vpop.eup %4342  ;;  %v1723_v37 = vpop.permute.xlu1 %1722 }
 0x7be   :  { %v5928_v3 = vadd.f32 %v1723_v37, %v1595_v12  ;;  %1810 = vrot.lane.b32.xlu1 %v4343_v53, %s4748_s17 }
 0x7c0   :  { %v4345_v11 = vpop.eup %4344  ;;  %7119 = vst [vmem:[#allocation10_spill] sm:$0xff] %v5928_v3  ;;  %4356 = vtanh.f32 %v5928_v3 }
 0x7c1   :  { %1804 = vrot.lane.b32.xlu0 %v4345_v11, %s4748_s17  ;;  %v4347_v45 = vpop.eup %4346 }
 0x7c2   :  { %1812 = vrot.lane.b32.xlu1 %v4347_v45, %s4748_s17 }
 0x7c4   :  { %v4349_v36 = vpop.eup %4348 }
 0x7c5   :  { %1800 = vrot.lane.b32.xlu0 %v4349_v36, %s4748_s17  ;;  %v4351_v50 = vpop.eup %4350 }
 0x7c6   :  { %v4353_v40 = vpop.eup %4352  ;;  %1814 = vrot.lane.b32.xlu1 %v4351_v50, %s4748_s17 }
 0x7c9   :  { %1802 = vrot.lane.b32.xlu0 %v4353_v40, %s4748_s17  ;;  %v4355_v59 = vpop.eup %4354 }
 0x7ca   :  { %1816 = vrot.lane.b32.xlu1 %v4355_v59, %s4748_s17 }
 0x7cd   :  { %v4357_v43 = vpop.eup %4356 }
 0x7ce   :  { %1818 = vrot.lane.b32.xlu1 %v4357_v43, %s4748_s17 }
 0x81a   :  { %v1791_v12 = vpop.permute.xlu1 %1790 }
 0x81b   :  { %v1793_v8 = vpop.permute.xlu0 %1792  ;;  %v1837_v40 = vmul.f32 %v5775_v26, %v1791_v12 }
 0x81d   :  { %v1853_v34 = vpack.c.bf16 %v1837_v40, %v1837_v40 }
 0x81e   :  { %v1797_v37 = vpop.permute.xlu1 %1796 }
 0x81f   :  { %v1789_v7 = vpop.permute.xlu0 %1788 }
 0x820   :  { %v1836_v36 = vmul.f32 %v5783_v29, %v1789_v7 }
 0x822   :  { %v1852_v59 = vpack.c.bf16 %v1836_v36, %v1836_v36 }
 0x823   :  { %v1795_v53 = vpop.permute.xlu0 %1794 }
 0x824   :  { %v1839_v25 = vmul.f32 %v5794_v56, %v1795_v53  ;;  %v1840_v56 = vmul.f32 %v5786_v47, %v1797_v37 }
 0x826   :  { %v1855_v12 = vpack.c.bf16 %v1839_v25, %v1839_v25  ;;  %v1856_v37 = vpack.c.bf16 %v1840_v56, %v1840_v56 }
 0x827   :  { %v1799_v11 = vpop.permute.xlu0 %1798 }
 0x828   :  { %v1807_v45 = vpop.permute.xlu1 %1806 }
 0x829   :  { %v1845_v4 = vmul.f32 %v5803_v48, %v1807_v45  ;;  %v1884_v48 = vunpack.c.l.b16 %v1852_v59 }
 0x82b   :  { %v1809_v50 = vpop.permute.xlu0 %1808  ;;  %v1861_v1 = vpack.c.bf16 %v1845_v4, %v1845_v4 }
 0x82c   :  { %v1846_v60 = vmul.f32 %v5805_v44, %v1809_v50  ;;  %v1841_v44 = vmul.f32 %v5798_v19, %v1799_v11 }
 0x82d   :  { %v1893_v49 = vunpack.c.l.b16 %v1861_v1 }
 0x82e   :  { %v1862_v36 = vpack.c.bf16 %v1846_v60, %v1846_v60  ;;  %v1887_v60 = vunpack.c.l.b16 %v1855_v12  ;;  %v1857_v19 = vpack.c.bf16 %v1841_v44, %v1841_v44 }
 0x830   :  { %v1811_v57 = vpop.permute.xlu1 %1810  ;;  %v1894_v59 = vunpack.c.l.b16 %v1862_v36 }
 0x831   :  { %v1847_v3 = vmul.f32 %v5810_v6, %v1811_v57  ;;  %v1838_v57 = vmul.f32 %v5778_v35, %v1793_v8  ;;  %v1885_v6 = vunpack.c.l.b16 %v1853_v34 }
 0x833   :  { %v1805_v43 = vpop.permute.xlu0 %1804  ;;  %v1863_v45 = vpack.c.bf16 %v1847_v3, %v1847_v3  ;;  %v1900_v3 = vrot.slane %v1884_v48, 2  ;;  %v1854_v47 = vpack.c.bf16 %v1838_v57, %v1838_v57  ;;  %v1901_v8 = vrot.slane %v1885_v6, 1 }
 0x834   :  { %v1844_v46 = vmul.f32 %v5813_v23, %v1805_v43  ;;  %v1813_v29 = vpop.permute.xlu1 %1812  ;;  %v1915_v23 = vrot.slane %v1893_v49, 1  ;;  %v1888_v57 = vunpack.c.l.b16 %v1856_v37 }
 0x835   :  { %v1848_v26 = vmul.f32 %v5818_v2, %v1813_v29  ;;  %v1895_v40 = vunpack.c.l.b16 %v1863_v45  ;;  %v1902_v48 = vsel %vm656_vm2, %v1901_v8, %v1900_v3  ;;  %v1904_v45 = vrot.slane %v1887_v60, 7 }
 0x836   :  { %v1860_v7 = vpack.c.bf16 %v1844_v46, %v1844_v46  ;;  %v1886_v36 = vunpack.c.l.b16 %v1854_v47 }
 0x837   :  { %v1801_v4 = vpop.permute.xlu0 %1800  ;;  %v1864_v53 = vpack.c.bf16 %v1848_v26, %v1848_v26  ;;  %v1918_v29 = vrot.slane %v1895_v40, 7  ;;  %v1889_v26 = vunpack.c.l.b16 %v1857_v19 }
 0x838   :  { %v1892_v24 = vunpack.c.l.b16 %v1860_v7  ;;  %v1815_v50 = vpop.permute.xlu1 %1814  ;;  %v1842_v46 = vmul.f32 %v5821_v16, %v1801_v4 }
 0x839   :  { %v1849_v2 = vmul.f32 %v5826_v55, %v1815_v50  ;;  %v1908_v3 = vrot.slane %v1889_v26, 5 }
 0x83a   :  { %v1914_v1 = vrot.slane %v1892_v24, 2  ;;  %v1896_v24 = vunpack.c.l.b16 %v1864_v53  ;;  %v1858_v16 = vpack.c.bf16 %v1842_v46, %v1842_v46 }
 0x83b   :  { %v1803_v25 = vpop.permute.xlu0 %1802  ;;  %v1865_v49 = vpack.c.bf16 %v1849_v2, %v1849_v2 }
 0x83c   :  { %v1916_v35 = vsel %vm656_vm2, %v1915_v23, %v1914_v1  ;;  %v1843_v34 = vmul.f32 %v5829_v42, %v1803_v25  ;;  %v1817_v43 = vpop.permute.xlu1 %1816  ;;  %v1920_v6 = vrot.slane %v1896_v24, 6  ;;  %v1890_v56 = vunpack.c.l.b16 %v1858_v16 }
 0x83d   :  { %v1917_v11 = vsel %vm659_vm3, %v1894_v59, %v1916_v35  ;;  %v1850_v55 = vmul.f32 %v5834_v10, %v1817_v43  ;;  %v1897_v4 = vunpack.c.l.b16 %v1865_v49  ;;  %v1903_v10 = vsel %vm659_vm3, %v1886_v36, %v1902_v48 }
 0x83e   :  { %v1859_v7 = vpack.c.bf16 %v1843_v34, %v1843_v34  ;;  %v1919_v42 = vsel %vm662_vm4, %v1918_v29, %v1917_v11  ;;  %v1905_v46 = vsel %vm662_vm4, %v1904_v45, %v1903_v10  ;;  %v1906_v25 = vrot.slane %v1888_v57, 6  ;;  %v4743_v29 = vld [vmem:[%s7011_s1] sm:$0xff]  }
 0x83f   :  { %v1866_v12 = vpack.c.bf16 %v1850_v55, %v1850_v55  ;;  %v1921_v50 = vsel %vm665_vm5, %v1920_v6, %v1919_v42  ;;  %v1922_v40 = vrot.slane %v1897_v4, 5  ;;  %v1910_v60 = vrot.slane %v1890_v56, 4 }
 0x840   :  { %v1819_v44 = vpop.permute.xlu1 %1818  ;;  %v1891_v53 = vunpack.c.l.b16 %v1859_v7  ;;  %v1907_v8 = vsel %vm665_vm5, %v1906_v25, %v1905_v46  ;;  %v7120_v42 = vunpack.c.l.bf16 %v5556_v41  ;;  %v7121_v57 = vunpack.c.l.bf16 %v5594_v33 }
 0x841   :  { %v1898_v23 = vunpack.c.l.b16 %v1866_v12  ;;  %v1851_v1 = vmul.f32 %v5839_v0, %v1819_v44  ;;  %v1923_v35 = vsel %vm668_vm6, %v1922_v40, %v1921_v50  ;;  %v1909_v0 = vsel %vm668_vm6, %v1908_v3, %v1907_v8 }
 0x842   :  { %v1912_v34 = vrot.slane %v1891_v53, 3  ;;  %v1911_v49 = vsel %vm671_vm7, %v1910_v60, %v1909_v0  ;;  %v7122_v56 = vunpack.c.l.bf16 %v5611_v58  ;;  %v7124_v33 = vunpack.c.l.bf16 %v5561_v38 }
 0x843   :  { %v1867_v2 = vpack.c.bf16 %v1851_v1, %v1851_v1  ;;  %v1924_v59 = vrot.slane %v1898_v23, 4  ;;  %v7123_v23 = vunpack.c.l.bf16 %v5576_v21  ;;  %v7125_v58 = vunpack.c.l.bf16 %v5570_v62 }
 0x844   :  { %v1913_v24 = vsel %vm674_vm8, %v1912_v34, %v1911_v49  ;;  %v7126_v40 = vunpack.c.l.bf16 %v5630_v39  ;;  %v7129_v39 = vunpack.c.l.bf16 %v5651_v63 }
 0x845   :  { %v1899_v47 = vunpack.c.l.b16 %v1867_v2  ;;  %v1925_v37 = vsel %vm671_vm7, %v1924_v59, %v1923_v35  ;;  %v7127_v59 = vunpack.c.l.bf16 %v5644_v28 }
 0x847   :  { %v1926_v19 = vrot.slane %v1899_v47, 3  ;;  %v7128_v47 = vunpack.c.l.bf16 %v5636_v14 }
 0x849   :  { %v1927_v11 = vsel %vm674_vm8, %v1926_v19, %v1925_v37  ;;  %v7130_v37 = vunpack.c.l.bf16 %v5663_v15  ;;  %v7133_v15 = vunpack.c.l.bf16 %v5700_v5 }
 0x84a   :  { %v1928_v16 = vpack.c.b16 %v1927_v11, %v1913_v24  ;;  %v7131_v11 = vunpack.c.l.bf16 %v5675_v51  ;;  %v7134_v51 = vunpack.c.l.bf16 %v5719_v54 }
 0x84c   :  { %1929 = vrot.lane.b32.xlu0 %v1928_v16, %s4749_s18 }
 0x8be   :  { %v1930_v43 = vpop.permute.xlu0 %1929 }
 0x8bf   :  { %3951 = vmatmul.mubr.msk.bf16.vlgmr.msra.gmra.mxu1 %vm16_vm0, %v1930_v43  ;;  %v7132_v43 = vunpack.c.l.bf16 %v5690_v13 }
 0x8c0   :  { %3961 = vmatpush3.bf16.msra.mxu1 %v4743_v29  ;;  %3962 = vmatprep.mubr.msk.bf16.mxu1 %vm4745_vm1, %v7090_v31 }
 0x97f   :  { %v1968_v55 = vpop.f32.mrf.mxu1 }
 0x980   :  { %v1978_v45 = vrot.slane %v1968_v55, 6  ;;  %v1981_v4 = vrot.slane %v1968_v55, 2  ;;  %v1977_v36 = vrot.slane %v1968_v55, 5  ;;  %v5982_v6 = vadd.f32 %v1968_v55, %v7121_v57 }
 0x981   :  { %v3952_v7 = vpop.f32.mrf.mxu1  ;;  %v1979_v31 = vrot.slane %v1968_v55, 7  ;;  %v1980_v41 = vrot.slane %v1968_v55, 1  ;;  %v1982_v19 = vrot.slane %v1968_v55, 3  ;;  %v1983_v14 = vrot.slane %v1968_v55, 4 }
 0x982   :  { %v5978_v12 = vadd.f32 %v1978_v45, %v7120_v42  ;;  %v5986_v44 = vadd.f32 %v1981_v4, %v7122_v56  ;;  %v5991_v53 = vadd.f32 %v1977_v36, %v7123_v23  ;;  %v7135_v4 = vunpack.c.l.bf16 %v5737_v9 }
 0x983   :  { %v1971_v48 = vpop.f32.mrf.mxu1  ;;  %v5997_v1 = vadd.f32 %v1979_v31, %v7124_v33  ;;  %v6002_v10 = vadd.f32 %v1980_v41, %v7125_v58  ;;  %v6037_v16 = vadd.f32 %v1982_v19, %v7131_v11  ;;  %v6047_v7 = vadd.f32 %v1983_v14, %v7133_v15 }
 0x984   :  { %4358 = vtanh.f32 %v5978_v12  ;;  %v1985_v38 = vrot.slane %v1971_v48, 6  ;;  %v1986_v62 = vrot.slane %v1971_v48, 7  ;;  %v1984_v60 = vrot.slane %v1971_v48, 5 }
 0x985   :  { %v3953_v26 = vpop.f32.mrf.mxu1  ;;  %4360 = vtanh.f32 %v5982_v6  ;;  %v6016_v35 = vadd.f32 %v1971_v48, %v7127_v59  ;;  %v1987_v34 = vrot.slane %v1971_v48, 1  ;;  %v1988_v28 = vrot.slane %v1971_v48, 2 }
 0x986   :  { %4362 = vtanh.f32 %v5986_v44  ;;  %v6012_v2 = vadd.f32 %v1985_v38, %v7126_v40  ;;  %v6021_v8 = vadd.f32 %v1986_v62, %v7128_v47  ;;  %v6026_v49 = vadd.f32 %v1984_v60, %v7129_v39 }
 0x987   :  { %4364 = vtanh.f32 %v5991_v53  ;;  %v6032_v24 = vadd.f32 %v1987_v34, %v7130_v37  ;;  %v1989_v63 = vrot.slane %v1971_v48, 3  ;;  %v6042_v29 = vadd.f32 %v1988_v28, %v7132_v43 }
 0x988   :  { %4366 = vtanh.f32 %v5997_v1  ;;  %v1990_v55 = vrot.slane %v1971_v48, 4  ;;  %v3869_v23 = vmul.f32 -1.442695, %v5978_v12  ;;  %v3871_v41 = vmul.f32 -1.442695, %v5982_v6 }
 0x989   :  { %4368 = vtanh.f32 %v6002_v10  ;;  %v6052_v45 = vadd.f32 %v1989_v63, %v7134_v51  ;;  %v3873_v33 = vmul.f32 -1.442695, %v5986_v44  ;;  %v3868_v58 = vmul.f32 -1.442695, %v5991_v53 }
 0x98a   :  { %4370 = vtanh.f32 %v6012_v2  ;;  %v6059_v5 = vadd.f32 %v1990_v55, %v7135_v4  ;;  %v3877_v44 = vmul.f32 -1.442695, %v6012_v2  ;;  %v3879_v60 = vmul.f32 -1.442695, %v6016_v35 }
 0x98b   :  { %4372 = vtanh.f32 %v6016_v35  ;;  %v3876_v34 = vmul.f32 -1.442695, %v6026_v49  ;;  %v3880_v47 = vmul.f32 -1.442695, %v6032_v24  ;;  %v3874_v2 = vmul.f32 -1.442695, %v6037_v16 }
 0x98c   :  { %4374 = vtanh.f32 %v6021_v8  ;;  %v3881_v35 = vmul.f32 -1.442695, %v6042_v29  ;;  %v3882_v11 = vmul.f32 -1.442695, %v6052_v45  ;;  %v3883_v55 = vmul.f32 -1.442695, %v6059_v5 }
 0x98d   :  { %4376 = vtanh.f32 %v6026_v49  ;;  %v3875_v49 = vmul.f32 -1.442695, %v6047_v7 }
 0x98e   :  { %4378 = vtanh.f32 %v6032_v24 }
 0x98f   :  { %4380 = vtanh.f32 %v6037_v16 }
 0x990   :  { %4382 = vtanh.f32 %v6042_v29 }
 0x991   :  { %v4359_v21 = vpop.eup %4358  ;;  %4384 = vtanh.f32 %v6047_v7 }
 0x992   :  { %2217 = vrot.lane.b32.xlu0 %v4359_v21, %s4746_s21  ;;  %v4361_v50 = vpop.eup %4360  ;;  %4386 = vtanh.f32 %v6052_v45  ;;  %v3870_v21 = vmul.f32 -1.442695, %v5997_v1  ;;  %v3878_v1 = vmul.f32 -1.442695, %v6021_v8 }
 0x993   :  { %2221 = vrot.lane.b32.xlu1 %v4361_v50, %s4746_s21  ;;  %v4363_v46 = vpop.eup %4362  ;;  %4388 = vtanh.f32 %v6059_v5  ;;  %v3872_v50 = vmul.f32 -1.442695, %v6002_v10 }
 0x994   :  { %v4365_v3 = vpop.eup %4364  ;;  %4390 = vpow2.f32 %v3869_v23 }
 0x995   :  { %v4367_v25 = vpop.eup %4366  ;;  %4392 = vpow2.f32 %v3871_v41 }
 0x996   :  { %2225 = vrot.lane.b32.xlu0 %v4363_v46, %s4746_s21  ;;  %v4369_v0 = vpop.eup %4368  ;;  %4394 = vpow2.f32 %v3873_v33 }
 0x997   :  { %2215 = vrot.lane.b32.xlu1 %v4365_v3, %s4746_s21  ;;  %v4371_v26 = vpop.eup %4370  ;;  %4396 = vpow2.f32 %v3868_v58 }
 0x998   :  { %v4373_v13 = vpop.eup %4372  ;;  %4398 = vpow2.f32 %v3870_v21 }
 0x999   :  { %v4375_v48 = vpop.eup %4374  ;;  %4400 = vpow2.f32 %v3872_v50 }
 0x99a   :  { %2233 = vrot.lane.b32.xlu0 %v4371_v26, %s4746_s21  ;;  %v4377_v54 = vpop.eup %4376 }
 0x99b   :  { %2219 = vrot.lane.b32.xlu1 %v4367_v25, %s4746_s21  ;;  %v4379_v42 = vpop.eup %4378 }
 0x99c   :  { %v4381_v36 = vpop.eup %4380 }
 0x99d   :  { %v4383_v9 = vpop.eup %4382 }
 0x99e   :  { %2235 = vrot.lane.b32.xlu0 %v4375_v48, %s4746_s21  ;;  %v4385_v57 = vpop.eup %4384 }
 0x99f   :  { %2223 = vrot.lane.b32.xlu1 %v4369_v0, %s4746_s21  ;;  %v4387_v56 = vpop.eup %4386 }
 0x9a0   :  { %v4389_v31 = vpop.eup %4388 }
 0x9a1   :  { %v4391_v46 = vpop.eup %4390 }
 0x9a2   :  { %2239 = vrot.lane.b32.xlu0 %v4379_v42, %s4746_s21  ;;  %v4393_v38 = vpop.eup %4392  ;;  %v2072_v3 = vadd.f32 1.0, %v4391_v46 }
 0x9a3   :  { %2237 = vrot.lane.b32.xlu1 %v4373_v13, %s4746_s21  ;;  %v4395_v12 = vpop.eup %4394  ;;  %v2074_v62 = vadd.f32 1.0, %v4393_v38 }
 0x9a4   :  { %v4397_v6 = vpop.eup %4396  ;;  %v2076_v40 = vadd.f32 1.0, %v4395_v12  ;;  %4402 = vrcp.f32 %v2072_v3 }
 0x9a5   :  { %v2071_v53 = vadd.f32 1.0, %v4397_v6  ;;  %4404 = vrcp.f32 %v2074_v62  ;;  %v4399_v25 = vpop.eup %4398 }
 0x9a6   :  { %2241 = vrot.lane.b32.xlu0 %v4383_v9, %s4746_s21  ;;  %4406 = vrcp.f32 %v2076_v40  ;;  %v2073_v10 = vadd.f32 1.0, %v4399_v25  ;;  %v4401_v59 = vpop.eup %4400 }
 0x9a7   :  { %2231 = vrot.lane.b32.xlu1 %v4377_v54, %s4746_s21  ;;  %4408 = vpow2.f32 %v3877_v44  ;;  %v2075_v0 = vadd.f32 1.0, %v4401_v59 }
 0x9a8   :  { %4410 = vrcp.f32 %v2071_v53 }
 0x9a9   :  { %4412 = vpow2.f32 %v3879_v60 }
 0x9aa   :  { %2243 = vrot.lane.b32.xlu0 %v4387_v56, %s4746_s21  ;;  %4414 = vpow2.f32 %v3878_v1 }
 0x9ab   :  { %2227 = vrot.lane.b32.xlu1 %v4381_v36, %s4746_s21  ;;  %4416 = vrcp.f32 %v2073_v10 }
 0x9ac   :  { %4418 = vpow2.f32 %v3876_v34 }
 0x9ad   :  { %4420 = vpow2.f32 %v3880_v47 }
 0x9ae   :  { %2245 = vrot.lane.b32.xlu0 %v4389_v31, %s4746_s21  ;;  %4422 = vrcp.f32 %v2075_v0 }
 0x9af   :  { %2229 = vrot.lane.b32.xlu1 %v4385_v57, %s4746_s21  ;;  %4424 = vpow2.f32 %v3874_v2 }
 0x9b0   :  { %4426 = vpow2.f32 %v3881_v35 }
 0x9b1   :  { %v6084_v19 = vpop.eup %4402  ;;  %4428 = vpow2.f32 %v3875_v49 }
 0x9b2   :  { %v6088_v28 = vpop.eup %4404  ;;  %4430 = vpow2.f32 %v3882_v11 }
 0x9b3   :  { %v6093_v14 = vpop.eup %4406  ;;  %4432 = vpow2.f32 %v3883_v55 }
 0x9b4   :  { %v4409_v63 = vpop.eup %4408 }
 0x9b5   :  { %v6098_v29 = vpop.eup %4410  ;;  %v2080_v26 = vadd.f32 1.0, %v4409_v63 }
 0x9b6   :  { %v4413_v7 = vpop.eup %4412 }
 0x9b7   :  { %v4415_v45 = vpop.eup %4414  ;;  %v2082_v4 = vadd.f32 1.0, %v4413_v7  ;;  %4434 = vrcp.f32 %v2080_v26 }
 0x9b8   :  { %v6104_v13 = vpop.eup %4416  ;;  %v2081_v36 = vadd.f32 1.0, %v4415_v45 }
 0x9b9   :  { %v4419_v54 = vpop.eup %4418  ;;  %4436 = vrcp.f32 %v2082_v4 }
 0x9ba   :  { %v4421_v5 = vpop.eup %4420  ;;  %v2079_v57 = vadd.f32 1.0, %v4419_v54  ;;  %4438 = vrcp.f32 %v2081_v36  ;;  %v2154_v54 = vrot.slane %v5866_v18, 7 }
 0x9bb   :  { %v6108_v9 = vpop.eup %4422  ;;  %v2083_v41 = vadd.f32 1.0, %v4421_v5  ;;  %v2156_v5 = vrot.slane %v5870_v52, 7 }
 0x9bc   :  { %v4425_v31 = vpop.eup %4424  ;;  %4440 = vrcp.f32 %v2079_v57  ;;  %v2186_v57 = vmul.f32 %v6088_v28, %v2154_v54 }
 0x9bd   :  { %v4427_v33 = vpop.eup %4426  ;;  %v2077_v58 = vadd.f32 1.0, %v4425_v31  ;;  %4442 = vrcp.f32 %v2083_v41 }
 0x9be   :  { %v4429_v21 = vpop.eup %4428  ;;  %v2084_v50 = vadd.f32 1.0, %v4427_v33 }
 0x9bf   :  { %v4431_v46 = vpop.eup %4430  ;;  %v2078_v38 = vadd.f32 1.0, %v4429_v21  ;;  %4444 = vrcp.f32 %v2077_v58  ;;  %v2153_v21 = vrot.slane %v5851_v17, 7 }
 0x9c0   :  { %v4433_v3 = vpop.eup %4432  ;;  %v2085_v12 = vadd.f32 1.0, %v4431_v46  ;;  %4446 = vrcp.f32 %v2084_v50 }
 0x9c1   :  { %4448 = vrcp.f32 %v2078_v38  ;;  %v2086_v25 = vadd.f32 1.0, %v4433_v3  ;;  %v2155_v38 = vrot.slane %v5857_v27, 7 }
 0x9c2   :  { %4450 = vrcp.f32 %v2085_v12 }
 0x9c3   :  { %4452 = vrcp.f32 %v2086_v25  ;;  %v2187_v12 = vmul.f32 %v6108_v9, %v2155_v38  ;;  %v7141_v38 = vld [vmem:[#allocation9_spill] sm:$0xff] }
 0x9c4   :  { %v6112_v62 = vpop.eup %4434 }
 0x9c6   :  { %v6115_v44 = vpop.eup %4436 }
 0x9c7   :  { %v6119_v1 = vpop.eup %4438 }
 0x9c9   :  { %v6123_v34 = vpop.eup %4440 }
 0x9ca   :  { %v6127_v2 = vpop.eup %4442 }
 0xa04   :  { %v2218_v8 = vpop.permute.xlu0 %2217 }
 0xa05   :  { %v2264_v39 = vmul.f32 %v6084_v19, %v2218_v8  ;;  %v2222_v37 = vpop.permute.xlu1 %2221 }
 0xa06   :  { %v2266_v24 = vmul.f32 %v6088_v28, %v2222_v37 }
 0xa07   :  { %2297 = vrot.lane.b32.xlu0 %v2264_v39, %s4747_s10  ;;  %v6131_v39 = vpop.eup %4444 }
 0xa08   :  { %v2226_v16 = vpop.permute.xlu0 %2225  ;;  %2301 = vrot.lane.b32.xlu1 %v2266_v24, %s4747_s10  ;;  %v6135_v24 = vpop.eup %4446 }
 0xa09   :  { %v2268_v43 = vmul.f32 %v6093_v14, %v2226_v16  ;;  %v2216_v15 = vpop.permute.xlu1 %2215  ;;  %v6139_v63 = vpop.eup %4448 }
 0xa0a   :  { %v2263_v51 = vmul.f32 %v6098_v29, %v2216_v15  ;;  %v6143_v7 = vpop.eup %4450 }
 0xa0b   :  { %2305 = vrot.lane.b32.xlu0 %v2268_v43, %s4747_s10  ;;  %v6148_v26 = vpop.eup %4452 }
 0xa0c   :  { %2295 = vrot.lane.b32.xlu1 %v2263_v51, %s4747_s10  ;;  %v2234_v6 = vpop.permute.xlu0 %2233 }
 0xa0d   :  { %v2220_v48 = vpop.permute.xlu1 %2219  ;;  %v2272_v40 = vmul.f32 %v6112_v62, %v2234_v6 }
 0xa0e   :  { %v2265_v42 = vmul.f32 %v6104_v13, %v2220_v48  ;;  %v2152_v48 = vrot.slane %v5848_v22, 7  ;;  %v2188_v22 = vmul.f32 %v6093_v14, %v2156_v5 }
 0xa0f   :  { %2313 = vrot.lane.b32.xlu0 %v2272_v40, %s4747_s10 }
 0xa10   :  { %2299 = vrot.lane.b32.xlu1 %v2265_v42, %s4747_s10  ;;  %v2236_v10 = vpop.permute.xlu0 %2235  ;;  %v2184_v42 = vmul.f32 %v6084_v19, %v2152_v48  ;;  %v7138_v48 = vld [vmem:[#allocation6_spill] sm:$0xff] }
 0xa11   :  { %v2224_v56 = vpop.permute.xlu1 %2223  ;;  %v2273_v59 = vmul.f32 %v6119_v1, %v2236_v10  ;;  %v2162_v10 = vrot.slane %v5893_v20, 7  ;;  %v2157_v54 = vrot.slane %v7138_v48, 7 }
 0xa12   :  { %v2267_v23 = vmul.f32 %v6108_v9, %v2224_v56 }
 0xa13   :  { %2315 = vrot.lane.b32.xlu0 %v2273_v59, %s4747_s10 }
 0xa14   :  { %2303 = vrot.lane.b32.xlu1 %v2267_v23, %s4747_s10  ;;  %v2240_v35 = vpop.permute.xlu0 %2239  ;;  %v2151_v23 = vrot.slane %v5860_v61, 7  ;;  %v2185_v61 = vmul.f32 %v6104_v13, %v2153_v21 }
 0xa15   :  { %v2238_v53 = vpop.permute.xlu1 %2237  ;;  %v2275_v8 = vmul.f32 %v6127_v2, %v2240_v35  ;;  %v2161_v35 = vrot.slane %v5886_v30, 7 }
 0xa16   :  { %v2274_v60 = vmul.f32 %v6115_v44, %v2238_v53  ;;  %v2183_v18 = vmul.f32 %v6098_v29, %v2151_v23 }
 0xa17   :  { %2319 = vrot.lane.b32.xlu0 %v2275_v8, %s4747_s10 }
 0xa18   :  { %2317 = vrot.lane.b32.xlu1 %v2274_v60, %s4747_s10  ;;  %v2242_v11 = vpop.permute.xlu0 %2241  ;;  %v2160_v60 = vrot.slane %v5882_v32, 7  ;;  %v2193_v32 = vmul.f32 %v6119_v1, %v2161_v35 }
 0xa19   :  { %v2232_v47 = vpop.permute.xlu1 %2231  ;;  %v2276_v16 = vmul.f32 %v6135_v24, %v2242_v11  ;;  %v7136_v11 = vld [vmem:[#allocation5_spill] sm:$0xff] }
 0xa1a   :  { %v2271_v0 = vmul.f32 %v6123_v34, %v2232_v47  ;;  %v2192_v59 = vmul.f32 %v6112_v62, %v2160_v60 }
 0xa1b   :  { %2321 = vrot.lane.b32.xlu0 %v2276_v16, %s4747_s10  ;;  %v2159_v16 = vrot.slane %v7136_v11, 7 }
 0xa1c   :  { %2311 = vrot.lane.b32.xlu1 %v2271_v0, %s4747_s10  ;;  %v2244_v55 = vpop.permute.xlu0 %2243 }
 0xa1d   :  { %v2228_v49 = vpop.permute.xlu1 %2227  ;;  %v2277_v51 = vmul.f32 %v6143_v7, %v2244_v55  ;;  %v7137_v55 = vld [vmem:[#allocation4_spill] sm:$0xff] }
 0xa1e   :  { %v2269_v37 = vmul.f32 %v6131_v39, %v2228_v49  ;;  %v2194_v49 = vmul.f32 %v6115_v44, %v2162_v10 }
 0xa1f   :  { %2323 = vrot.lane.b32.xlu0 %v2277_v51, %s4747_s10  ;;  %v2163_v51 = vrot.slane %v7137_v55, 7 }
 0xa20   :  { %2307 = vrot.lane.b32.xlu1 %v2269_v37, %s4747_s10  ;;  %v2246_v45 = vpop.permute.xlu0 %2245 }
 0xa21   :  { %v2230_v43 = vpop.permute.xlu1 %2229  ;;  %v2278_v4 = vmul.f32 %v6148_v26, %v2246_v45  ;;  %v2191_v45 = vmul.f32 %v6123_v34, %v2159_v16 }
 0xa22   :  { %v2270_v15 = vmul.f32 %v6139_v63, %v2230_v43 }
 0xa23   :  { %2325 = vrot.lane.b32.xlu0 %v2278_v4, %s4747_s10 }
 0xa24   :  { %2309 = vrot.lane.b32.xlu1 %v2270_v15, %s4747_s10 }
 0xa79   :  { %v2298_v36 = vpop.permute.xlu0 %2297 }
 0xa7a   :  { %v6157_v56 = vadd.f32 %v2298_v36, %v2184_v42  ;;  %v2302_v31 = vpop.permute.xlu1 %2301  ;;  %v2195_v42 = vmul.f32 %v6127_v2, %v2163_v51 }
 0xa7b   :  { %v6160_v41 = vadd.f32 %v2302_v31, %v2186_v57  ;;  %v7139_v57 = vld [vmem:[#allocation7_spill] sm:$0xff] }
 0xa7c   :  { %4454 = vtanh.f32 %v6157_v56  ;;  %v2164_v31 = vrot.slane %v7139_v57, 7 }
 0xa7d   :  { %v2306_v33 = vpop.permute.xlu0 %2305  ;;  %4456 = vtanh.f32 %v6160_v41 }
 0xa7e   :  { %v6166_v58 = vadd.f32 %v2306_v33, %v2188_v22  ;;  %v2296_v52 = vpop.permute.xlu1 %2295  ;;  %v2189_v22 = vmul.f32 %v6131_v39, %v2157_v54  ;;  %v2196_v21 = vmul.f32 %v6135_v24, %v2164_v31 }
 0xa7f   :  { %v6169_v50 = vadd.f32 %v2296_v52, %v2183_v18  ;;  %v7140_v18 = vld [vmem:[#allocation8_spill] sm:$0xff] }
 0xa80   :  { %4458 = vtanh.f32 %v6166_v58  ;;  %v2158_v52 = vrot.slane %v7140_v18, 7 }
 0xa81   :  { %4460 = vtanh.f32 %v6169_v50  ;;  %v2314_v47 = vpop.permute.xlu0 %2313 }
 0xa82   :  { %v2300_v46 = vpop.permute.xlu1 %2299  ;;  %v6190_v8 = vadd.f32 %v2314_v47, %v2192_v59  ;;  %v7142_v59 = vld [vmem:[#allocation10_spill] sm:$0xff] }
 0xa83   :  { %v6175_v3 = vadd.f32 %v2300_v46, %v2185_v61  ;;  %v2166_v47 = vrot.slane %v7142_v59, 7 }
 0xa85   :  { %4462 = vtanh.f32 %v6175_v3  ;;  %v2316_v43 = vpop.permute.xlu0 %2315 }
 0xa86   :  { %v2304_v6 = vpop.permute.xlu1 %2303  ;;  %v6200_v30 = vadd.f32 %v2316_v43, %v2193_v32 }
 0xa87   :  { %v6179_v40 = vadd.f32 %v2304_v6, %v2187_v12  ;;  %v2165_v12 = vrot.slane %v7141_v38, 7 }
 0xa89   :  { %v4455_v17 = vpop.eup %4454  ;;  %4464 = vtanh.f32 %v6179_v40  ;;  %v2320_v5 = vpop.permute.xlu0 %2319 }
 0xa8a   :  { %2393 = vrot.lane.b32.xlu0 %v4455_v17, %s4748_s17  ;;  %v4457_v53 = vpop.eup %4456  ;;  %v2318_v37 = vpop.permute.xlu1 %2317  ;;  %4466 = vtanh.f32 %v6190_v8  ;;  %v6211_v23 = vadd.f32 %v2320_v5, %v2195_v42  ;;  %v2190_v17 = vmul.f32 %v6139_v63, %v2158_v52 }
 0xa8b   :  { %2397 = vrot.lane.b32.xlu1 %v4457_v53, %s4748_s17  ;;  %v6197_v20 = vadd.f32 %v2318_v37, %v2194_v49  ;;  %v2198_v49 = vmul.f32 %v6148_v26, %v2166_v47 }
 0xa8d   :  { %v4459_v25 = vpop.eup %4458  ;;  %4468 = vtanh.f32 %v6197_v20  ;;  %v2322_v46 = vpop.permute.xlu0 %2321 }
 0xa8e   :  { %2401 = vrot.lane.b32.xlu0 %v4459_v25, %s4748_s17  ;;  %v4461_v27 = vpop.eup %4460  ;;  %v2312_v4 = vpop.permute.xlu1 %2311  ;;  %4470 = vtanh.f32 %v6200_v30  ;;  %v6221_v6 = vadd.f32 %v2322_v46, %v2196_v21  ;;  %v2197_v25 = vmul.f32 %v6143_v7, %v2165_v12 }
 0xa8f   :  { %2391 = vrot.lane.b32.xlu1 %v4461_v27, %s4748_s17  ;;  %v6208_v36 = vadd.f32 %v2312_v4, %v2191_v45 }
 0xa91   :  { %4472 = vtanh.f32 %v6208_v36  ;;  %v2324_v10 = vpop.permute.xlu0 %2323 }
 0xa92   :  { %v4463_v0 = vpop.eup %4462  ;;  %v2308_v33 = vpop.permute.xlu1 %2307  ;;  %4474 = vtanh.f32 %v6211_v23 }
 0xa93   :  { %2395 = vrot.lane.b32.xlu1 %v4463_v0, %s4748_s17  ;;  %v6218_v61 = vadd.f32 %v2308_v33, %v2189_v22  ;;  %v6230_v0 = vadd.f32 %v2324_v10, %v2197_v25 }
 0xa95   :  { %4476 = vtanh.f32 %v6218_v61  ;;  %v2326_v11 = vpop.permute.xlu0 %2325 }
 0xa96   :  { %v4465_v15 = vpop.eup %4464  ;;  %v2310_v53 = vpop.permute.xlu1 %2309  ;;  %4478 = vtanh.f32 %v6221_v6  ;;  %v6237_v16 = vadd.f32 %v2326_v11, %v2198_v49 }
 0xa97   :  { %2399 = vrot.lane.b32.xlu1 %v4465_v15, %s4748_s17  ;;  %v6227_v27 = vadd.f32 %v2310_v53, %v2190_v17  ;;  %v4467_v60 = vpop.eup %4466 }
 0xa98   :  { %2409 = vrot.lane.b32.xlu0 %v4467_v60, %s4748_s17 }
 0xa99   :  { %4480 = vtanh.f32 %v6227_v27 }
 0xa9a   :  { %v4469_v35 = vpop.eup %4468  ;;  %4482 = vtanh.f32 %v6230_v0 }
 0xa9b   :  { %2413 = vrot.lane.b32.xlu1 %v4469_v35, %s4748_s17  ;;  %v4471_v37 = vpop.eup %4470  ;;  %4484 = vtanh.f32 %v6237_v16 }
 0xa9c   :  { %2411 = vrot.lane.b32.xlu0 %v4471_v37, %s4748_s17 }
 0xa9e   :  { %v4473_v32 = vpop.eup %4472 }
 0xa9f   :  { %2407 = vrot.lane.b32.xlu1 %v4473_v32, %s4748_s17  ;;  %v4475_v43 = vpop.eup %4474 }
 0xaa0   :  { %2415 = vrot.lane.b32.xlu0 %v4475_v43, %s4748_s17 }
 0xaa2   :  { %v4477_v15 = vpop.eup %4476 }
 0xaa3   :  { %2403 = vrot.lane.b32.xlu1 %v4477_v15, %s4748_s17  ;;  %v4479_v55 = vpop.eup %4478 }
 0xaa4   :  { %2417 = vrot.lane.b32.xlu0 %v4479_v55, %s4748_s17 }
 0xaa6   :  { %v4481_v51 = vpop.eup %4480 }
 0xaa7   :  { %2405 = vrot.lane.b32.xlu1 %v4481_v51, %s4748_s17  ;;  %v4483_v45 = vpop.eup %4482 }
 0xaa8   :  { %2419 = vrot.lane.b32.xlu0 %v4483_v45, %s4748_s17  ;;  %v4485_v4 = vpop.eup %4484 }
 0xaac   :  { %2421 = vrot.lane.b32.xlu0 %v4485_v4, %s4748_s17 }
 0xafc   :  { %v2394_v42 = vpop.permute.xlu0 %2393 }
 0xafd   :  { %v2398_v48 = vpop.permute.xlu1 %2397  ;;  %v2440_v46 = vmul.f32 %v6084_v19, %v2394_v42 }
 0xafe   :  { %v2442_v37 = vmul.f32 %v6088_v28, %v2398_v48 }
 0xb00   :  { %v2402_v57 = vpop.permute.xlu0 %2401 }
 0xb01   :  { %v2392_v54 = vpop.permute.xlu1 %2391  ;;  %v2444_v51 = vmul.f32 %v6093_v14, %v2402_v57 }
 0xb02   :  { %v2439_v18 = vmul.f32 %v6098_v29, %v2392_v54 }
 0xb04   :  { %v2487_v53 = vpack.c.bf16 %v2439_v18, %v2439_v18 }
 0xb05   :  { %v2396_v5 = vpop.permute.xlu1 %2395 }
 0xb06   :  { %v2441_v21 = vmul.f32 %v6104_v13, %v2396_v5  ;;  %v2519_v11 = vunpack.c.l.b16 %v2487_v53  ;;  %v2490_v5 = vpack.c.bf16 %v2442_v37, %v2442_v37 }
 0xb08   :  { %v2489_v60 = vpack.c.bf16 %v2441_v21, %v2441_v21  ;;  %v2535_v28 = vrot.slane %v2519_v11, 3  ;;  %v2522_v53 = vunpack.c.l.b16 %v2490_v5 }
 0xb09   :  { %v2400_v31 = vpop.permute.xlu1 %2399 }
 0xb0a   :  { %v2410_v22 = vpop.permute.xlu0 %2409  ;;  %v2443_v10 = vmul.f32 %v6108_v9, %v2400_v31  ;;  %v2521_v43 = vunpack.c.l.b16 %v2489_v60 }
 0xb0b   :  { %v2448_v33 = vmul.f32 %v6112_v62, %v2410_v22  ;;  %v2488_v62 = vpack.c.bf16 %v2440_v46, %v2440_v46 }
 0xb0c   :  { %v2491_v15 = vpack.c.bf16 %v2443_v10, %v2443_v10  ;;  %v2538_v22 = vrot.slane %v2521_v43, 1 }
 0xb0d   :  { %v2414_v52 = vpop.permute.xlu1 %2413  ;;  %v2496_v12 = vpack.c.bf16 %v2448_v33, %v2448_v33  ;;  %v2520_v9 = vunpack.c.l.b16 %v2488_v62 }
 0xb0e   :  { %v2412_v38 = vpop.permute.xlu0 %2411  ;;  %v2450_v49 = vmul.f32 %v6115_v44, %v2414_v52  ;;  %v2523_v33 = vunpack.c.l.b16 %v2491_v15 }
 0xb0f   :  { %v2449_v17 = vmul.f32 %v6119_v1, %v2412_v38  ;;  %v2528_v29 = vunpack.c.l.b16 %v2496_v12  ;;  %v2536_v38 = vrot.slane %v2520_v9, 2  ;;  %v2492_v12 = vpack.c.bf16 %v2444_v51, %v2444_v51 }
 0xb10   :  { %v2498_v44 = vpack.c.bf16 %v2450_v49, %v2450_v49 }
 0xb11   :  { %v2408_v25 = vpop.permute.xlu1 %2407  ;;  %v2497_v59 = vpack.c.bf16 %v2449_v17, %v2449_v17  ;;  %v2550_v54 = vrot.slane %v2528_v29, 2  ;;  %v2537_v60 = vsel %vm656_vm2, %v2536_v38, %v2535_v28  ;;  %v6305_v38 = vld [vmem:[%s7012_s0] sm:$0x4] }
 0xb12   :  { %v2447_v47 = vmul.f32 %v6123_v34, %v2408_v25  ;;  %v2416_v35 = vpop.permute.xlu0 %2415  ;;  %v2530_v17 = vunpack.c.l.b16 %v2498_v44  ;;  %v2539_v62 = vsel %vm659_vm3, %v2538_v22, %v2537_v60 }
 0xb13   :  { %v2451_v13 = vmul.f32 %v6127_v2, %v2416_v35  ;;  %v2529_v1 = vunpack.c.l.b16 %v2497_v59  ;;  %v2541_v35 = vrot.slane %v2523_v33, 7  ;;  %v6285_v33 = vld [vmem:[%s7012_s0 + $0x4] sm:$0x4] }
 0xb14   :  { %v2495_v19 = vpack.c.bf16 %v2447_v47, %v2447_v47 }
 0xb15   :  { %v2404_v32 = vpop.permute.xlu1 %2403  ;;  %v2499_v34 = vpack.c.bf16 %v2451_v13, %v2451_v13  ;;  %v2552_v48 = vrot.slane %v2529_v1, 1  ;;  %v2540_v1 = vsel %vm662_vm4, %v2522_v53, %v2539_v62  ;;  %v7061_v53 = vunpack.c.l.bf16 %v6305_v38 }
 0xb16   :  { %v2527_v55 = vunpack.c.l.b16 %v2495_v19  ;;  %v2418_v45 = vpop.permute.xlu0 %2417  ;;  %v2445_v4 = vmul.f32 %v6131_v39, %v2404_v32  ;;  %v2542_v15 = vsel %vm665_vm5, %v2541_v35, %v2540_v1 }
 0xb17   :  { %v2452_v2 = vmul.f32 %v6135_v24, %v2418_v45  ;;  %v2531_v21 = vunpack.c.l.b16 %v2499_v34 }
 0xb18   :  { %v2549_v42 = vrot.slane %v2527_v55, 3  ;;  %v2493_v57 = vpack.c.bf16 %v2445_v4, %v2445_v4 }
 0xb19   :  { %v2406_v31 = vpop.permute.xlu1 %2405  ;;  %v2500_v52 = vpack.c.bf16 %v2452_v2, %v2452_v2  ;;  %v2555_v29 = vrot.slane %v2531_v21, 7  ;;  %v7070_v21 = vunpack.c.l.bf16 %v6285_v33 }
 0xb1a   :  { %v2551_v18 = vsel %vm656_vm2, %v2550_v54, %v2549_v42  ;;  %v2420_v46 = vpop.permute.xlu0 %2419  ;;  %v2446_v39 = vmul.f32 %v6139_v63, %v2406_v31  ;;  %v2525_v49 = vunpack.c.l.b16 %v2493_v57  ;;  %v2524_v63 = vunpack.c.l.b16 %v2492_v12 }
 0xb1b   :  { %v2553_v14 = vsel %vm659_vm3, %v2552_v48, %v2551_v18  ;;  %v2453_v24 = vmul.f32 %v6143_v7, %v2420_v46  ;;  %v2532_v10 = vunpack.c.l.b16 %v2500_v52  ;;  %v6292_v52 = vld [vmem:[%s7012_s0 + $0x10] sm:$0x4]  ;;  %v6299_v46 = vld [vmem:[%s7012_s0 + $0x18] sm:$0x4] }
 0xb1c   :  { %v2494_v25 = vpack.c.bf16 %v2446_v39, %v2446_v39  ;;  %v2554_v59 = vsel %vm662_vm4, %v2530_v17, %v2553_v14  ;;  %v2545_v55 = vrot.slane %v2525_v49, 5  ;;  %v2543_v51 = vrot.slane %v2524_v63, 6 }
 0xb1d   :  { %v2501_v47 = vpack.c.bf16 %v2453_v24, %v2453_v24  ;;  %v2556_v7 = vsel %vm665_vm5, %v2555_v29, %v2554_v59  ;;  %v2557_v32 = vrot.slane %v2532_v10, 6  ;;  %v7076_v39 = vunpack.c.l.bf16 %v6292_v52  ;;  %v6323_v10 = vld [vmem:[%s7012_s0 + $0x8] sm:$0x4]  ;;  %v6340_v29 = vld [vmem:[%s7012_s0 + $0xc] sm:$0x4] }
 0xb1e   :  { %v2422_v13 = vpop.permute.xlu0 %2421  ;;  %v2526_v37 = vunpack.c.l.b16 %v2494_v25  ;;  %v2544_v54 = vsel %vm668_vm6, %v2543_v51, %v2542_v15  ;;  %v7074_v17 = vunpack.c.l.bf16 %v6299_v46  ;;  %v7073_v49 = vunpack.c.l.bf16 %v6340_v29 }
 0xb1f   :  { %v2533_v19 = vunpack.c.l.b16 %v2501_v47  ;;  %v2454_v11 = vmul.f32 %v6148_v26, %v2422_v13  ;;  %v2558_v34 = vsel %vm668_vm6, %v2557_v32, %v2556_v7  ;;  %v2546_v26 = vsel %vm671_vm7, %v2545_v55, %v2544_v54  ;;  %v6365_v32 = vld [vmem:[%s7012_s0 + $0x20] sm:$0x4] }
 0xb20   :  { %v2547_v45 = vrot.slane %v2526_v37, 4  ;;  %v7072_v47 = vunpack.c.l.bf16 %v6323_v10 }
 0xb21   :  { %v2502_v43 = vpack.c.bf16 %v2454_v11, %v2454_v11  ;;  %v2559_v9 = vrot.slane %v2533_v19, 5  ;;  %v6353_v19 = vld [vmem:[%s7012_s0 + $0x14] sm:$0x4] }
 0xb22   :  { %v2548_v2 = vsel %vm674_vm8, %v2547_v45, %v2546_v26  ;;  %v7075_v37 = vunpack.c.l.bf16 %v6353_v19 }
 0xb23   :  { %v2534_v4 = vunpack.c.l.b16 %v2502_v43  ;;  %v2560_v42 = vsel %vm671_vm7, %v2559_v9, %v2558_v34  ;;  %v6370_v43 = vld [vmem:[%s7012_s0 + $0x24] sm:$0x4]  ;;  %v7064_v9 = vunpack.c.l.bf16 %v6365_v32  ;;  %v6383_v34 = vld [vmem:[%s7012_s0 + $0x30] sm:$0x4] }
 0xb24   :  { %v7063_v45 = vunpack.c.l.bf16 %v6370_v43 }
 0xb25   :  { %v2561_v44 = vrot.slane %v2534_v4, 4 }
 0xb27   :  { %v2562_v5 = vsel %vm674_vm8, %v2561_v44, %v2560_v42  ;;  %v6391_v44 = vld [vmem:[%s7012_s0 + $0x28] sm:$0x4]  ;;  %v7067_v42 = vunpack.c.l.bf16 %v6383_v34 }
 0xb28   :  { %v2563_v28 = vpack.c.b16 %v2562_v5, %v2548_v2  ;;  %v6403_v5 = vld [vmem:[%s7012_s0 + $0x1c] sm:$0x4] }
 0xb2a   :  { %2564 = vrot.lane.b32.xlu1 %v2563_v28, %s4749_s18  ;;  %v7062_v28 = vunpack.c.l.bf16 %v6391_v44 }
 0xb9c   :  { %v2565_v48 = vpop.permute.xlu1 %2564 }
 0xb9d   :  { %3957 = vmatmul.mubr.msk.bf16.vlgmr.msra.gmra.mxu0 %vm16_vm0, %v2565_v48 }
 0xc5d   :  { %v6280_v31 = vpop.f32.mrf.mxu0 }
 0xc5e   :  { %v2613_v14 = vrot.slane %v6280_v31, 5  ;;  %v2617_v24 = vrot.slane %v6280_v31, 2  ;;  %v2612_v25 = vrot.slane %v6280_v31, 4  ;;  %v6318_v60 = vadd.f32 %v6280_v31, %v7076_v39 }
 0xc5f   :  { %v3958_v22 = vpop.f32.mrf.mxu0  ;;  %v2614_v62 = vrot.slane %v6280_v31, 6  ;;  %v2615_v13 = vrot.slane %v6280_v31, 7  ;;  %v2616_v11 = vrot.slane %v6280_v31, 1 }
 0xc60   :  { %v6309_v12 = vadd.f32 %v2613_v14, %v7070_v21  ;;  %v6328_v59 = vadd.f32 %v2617_v24, %v7074_v17  ;;  %v6334_v35 = vadd.f32 %v2612_v25, %v7061_v53  ;;  %v6415_v14 = vld [vmem:[%s7012_s0 + $0x2c] sm:$0x4]  ;;  %v7071_v24 = vunpack.c.l.bf16 %v6403_v5 }
 0xc61   :  { %v6287_v18 = vpop.f32.mrf.mxu0  ;;  %v6347_v63 = vadd.f32 %v2614_v62, %v7072_v47  ;;  %v6359_v7 = vadd.f32 %v2615_v13, %v7073_v49  ;;  %v6375_v15 = vadd.f32 %v2616_v11, %v7075_v37  ;;  %v2618_v25 = vrot.slane %v6280_v31, 3  ;;  %v6436_v31 = vld [vmem:[%s7012_s0 + $0x34] sm:$0x4] }
 0xc62   :  { %4486 = vtanh.f32 %v6309_v12  ;;  %v2619_v51 = vrot.slane %v6287_v18, 4  ;;  %v2620_v4 = vrot.slane %v6287_v18, 5  ;;  %v2621_v48 = vrot.slane %v6287_v18, 6 }
 0xc63   :  { %v3959_v57 = vpop.f32.mrf.mxu0  ;;  %4488 = vtanh.f32 %v6318_v60  ;;  %v6422_v62 = vadd.f32 %v6287_v18, %v7067_v42  ;;  %v7065_v13 = vunpack.c.l.bf16 %v6415_v14  ;;  %v2622_v11 = vrot.slane %v6287_v18, 7 }
 0xc64   :  { %4490 = vtanh.f32 %v6328_v59  ;;  %v6398_v2 = vadd.f32 %v2619_v51, %v7064_v9  ;;  %v6409_v22 = vadd.f32 %v2620_v4, %v7063_v45  ;;  %v6440_v51 = vadd.f32 %v2618_v25, %v7071_v24 }
 0xc65   :  { %4492 = vtanh.f32 %v6334_v35  ;;  %v7066_v4 = vunpack.c.l.bf16 %v6436_v31  ;;  %v2624_v53 = vrot.slane %v6287_v18, 2  ;;  %v2625_v9 = vrot.slane %v6287_v18, 3 }
 0xc66   :  { %4494 = vtanh.f32 %v6347_v63 }
 0xc67   :  { %4496 = vtanh.f32 %v6359_v7 }
 0xc68   :  { %4498 = vtanh.f32 %v6375_v15 }
 0xc69   :  { %4500 = vtanh.f32 %v6398_v2 }
 0xc6a   :  { %4502 = vtanh.f32 %v6409_v22 }
 0xc6b   :  { %4504 = vtanh.f32 %v6422_v62 }
 0xc6f   :  { %v4487_v1 = vpop.eup %4486 }
 0xc70   :  { %2852 = vrot.lane.b32.xlu1 %v4487_v1, %s4746_s21  ;;  %v4489_v55 = vpop.eup %4488  ;;  %v6429_v1 = vadd.f32 %v2621_v48, %v7062_v28  ;;  %v6454_v48 = vld [vmem:[%s7012_s0 + $0x38] sm:$0x4] }
 0xc71   :  { %2858 = vrot.lane.b32.xlu0 %v4489_v55, %s4746_s21  ;;  %v4491_v54 = vpop.eup %4490  ;;  %v7069_v25 = vunpack.c.l.bf16 %v6454_v48 }
 0xc72   :  { %v4493_v26 = vpop.eup %4492  ;;  %4506 = vtanh.f32 %v6429_v1 }
 0xc73   :  { %v4495_v57 = vpop.eup %4494  ;;  %4508 = vtanh.f32 %v6440_v51 }
 0xc74   :  { %2862 = vrot.lane.b32.xlu1 %v4491_v54, %s4746_s21  ;;  %v4497_v55 = vpop.eup %4496  ;;  %v2623_v54 = vrot.slane %v6287_v18, 1 }
 0xc75   :  { %2850 = vrot.lane.b32.xlu0 %v4493_v26, %s4746_s21  ;;  %v6447_v26 = vadd.f32 %v2622_v11, %v7065_v13  ;;  %v6474_v13 = vadd.f32 %v2624_v53, %v7069_v25 }
 0xc76   :  { %v6461_v11 = vadd.f32 %v2623_v54, %v7066_v4 }
 0xc77   :  { %4510 = vtanh.f32 %v6447_v26 }
 0xc78   :  { %4512 = vtanh.f32 %v6461_v11 }
 0xc79   :  { %2854 = vrot.lane.b32.xlu0 %v4495_v57, %s4746_s21  ;;  %v4499_v57 = vpop.eup %4498  ;;  %4514 = vtanh.f32 %v6474_v13 }
 0xc7a   :  { %v4501_v28 = vpop.eup %4500 }
 0xc7b   :  { %v4503_v54 = vpop.eup %4502 }
 0xc7c   :  { %2868 = vrot.lane.b32.xlu1 %v4503_v54, %s4746_s21 }
 0xc7d   :  { %2856 = vrot.lane.b32.xlu0 %v4497_v55, %s4746_s21  ;;  %v6468_v55 = vld [vmem:[%s7012_s0 + $0x3c] sm:$0x4]  ;;  %s4750_s0 = smov 112  }
 0xc7e   :  { %v7068_v45 = vunpack.c.l.bf16 %v6468_v55 }
 0xc80   :  { %v6481_v4 = vadd.f32 %v2625_v9, %v7068_v45  ;;  %v3891_v45 = vmul.f32 -1.442695, %v6328_v59 }
 0xc81   :  { %2860 = vrot.lane.b32.xlu0 %v4499_v57, %s4746_s21  ;;  %v4505_v57 = vpop.eup %4504 }
 0xc82   :  { %v4507_v42 = vpop.eup %4506  ;;  %4516 = vtanh.f32 %v6481_v4 }
 0xc83   :  { %2870 = vrot.lane.b32.xlu1 %v4507_v42, %s4746_s21  ;;  %v4509_v18 = vpop.eup %4508  ;;  %v3889_v42 = vmul.f32 -1.442695, %v6318_v60 }
 0xc84   :  { %v4511_v53 = vpop.eup %4510 }
 0xc85   :  { %2866 = vrot.lane.b32.xlu0 %v4501_v28, %s4746_s21  ;;  %v4513_v28 = vpop.eup %4512 }
 0xc86   :  { %v4515_v9 = vpop.eup %4514 }
 0xc87   :  { %2872 = vrot.lane.b32.xlu1 %v4511_v53, %s4746_s21  ;;  %v3887_v53 = vmul.f32 -1.442695, %v6347_v63 }
 0xc89   :  { %2874 = vrot.lane.b32.xlu0 %v4505_v57, %s4746_s21  ;;  %v3886_v57 = vmul.f32 -1.442695, %v6309_v12 }
 0xc8b   :  { %2876 = vrot.lane.b32.xlu1 %v4513_v28, %s4746_s21  ;;  %4518 = vpow2.f32 %v3886_v57  ;;  %v3888_v28 = vmul.f32 -1.442695, %v6359_v7  ;;  %v3893_v57 = vmul.f32 -1.442695, %v6398_v2 }
 0xc8c   :  { %4520 = vpow2.f32 %v3889_v42 }
 0xc8d   :  { %2864 = vrot.lane.b32.xlu0 %v4509_v18, %s4746_s21  ;;  %v3885_v18 = vmul.f32 -1.442695, %v6334_v35  ;;  %4522 = vpow2.f32 %v3891_v45  ;;  %v3894_v45 = vmul.f32 -1.442695, %v6409_v22 }
 0xc8f   :  { %2878 = vrot.lane.b32.xlu1 %v4515_v9, %s4746_s21  ;;  %v4517_v54 = vpop.eup %4516  ;;  %4524 = vpow2.f32 %v3885_v18  ;;  %v3897_v18 = vmul.f32 -1.442695, %v6422_v62  ;;  %v3898_v62 = vmul.f32 -1.442695, %v6461_v11 }
 0xc90   :  { %4526 = vpow2.f32 %v3887_v53 }
 0xc91   :  { %4528 = vpow2.f32 %v3888_v28  ;;  %v3892_v28 = vmul.f32 -1.442695, %v6440_v51 }
 0xc93   :  { %2880 = vrot.lane.b32.xlu1 %v4517_v54, %s4746_s21  ;;  %v3890_v54 = vmul.f32 -1.442695, %v6375_v15  ;;  %v3895_v15 = vmul.f32 -1.442695, %v6429_v1 }
 0xc95   :  { %4530 = vpow2.f32 %v3890_v54 }
 0xc98   :  { %v4519_v9 = vpop.eup %4518 }
 0xc99   :  { %v4521_v12 = vpop.eup %4520  ;;  %v2707_v25 = vadd.f32 1.0, %v4519_v9 }
 0xc9a   :  { %v4523_v60 = vpop.eup %4522  ;;  %v2710_v59 = vadd.f32 1.0, %v4521_v12 }
 0xc9b   :  { %v2712_v42 = vadd.f32 1.0, %v4523_v60  ;;  %4532 = vrcp.f32 %v2707_v25  ;;  %v3896_v25 = vmul.f32 -1.442695, %v6447_v26 }
 0xc9c   :  { %v4525_v35 = vpop.eup %4524  ;;  %4534 = vpow2.f32 %v3893_v57 }
 0xc9d   :  { %v2706_v63 = vadd.f32 1.0, %v4525_v35  ;;  %4536 = vrcp.f32 %v2710_v59  ;;  %v4527_v7 = vpop.eup %4526  ;;  %v3899_v35 = vmul.f32 -1.442695, %v6474_v13 }
 0xc9e   :  { %4538 = vrcp.f32 %v2712_v42  ;;  %v2708_v53 = vadd.f32 1.0, %v4527_v7  ;;  %v4529_v2 = vpop.eup %4528 }
 0xc9f   :  { %4540 = vpow2.f32 %v3894_v45  ;;  %v2709_v22 = vadd.f32 1.0, %v4529_v2 }
 0xca0   :  { %4542 = vrcp.f32 %v2706_v63  ;;  %v3900_v63 = vmul.f32 -1.442695, %v6481_v4 }
 0xca1   :  { %4544 = vpow2.f32 %v3897_v18 }
 0xca2   :  { %4546 = vpow2.f32 %v3895_v15  ;;  %v4531_v9 = vpop.eup %4530 }
 0xca3   :  { %4548 = vrcp.f32 %v2708_v53  ;;  %v2711_v57 = vadd.f32 1.0, %v4531_v9 }
 0xca4   :  { %4550 = vpow2.f32 %v3892_v28 }
 0xca5   :  { %4552 = vpow2.f32 %v3896_v25 }
 0xca6   :  { %4554 = vrcp.f32 %v2709_v22 }
 0xca7   :  { %4556 = vpow2.f32 %v3898_v62 }
 0xca8   :  { %v6505_v54 = vpop.eup %4532  ;;  %4558 = vrcp.f32 %v2711_v57 }
 0xca9   :  { %v4535_v60 = vpop.eup %4534  ;;  %4560 = vpow2.f32 %v3899_v35 }
 0xcaa   :  { %v6509_v51 = vpop.eup %4536  ;;  %v2714_v15 = vadd.f32 1.0, %v4535_v60  ;;  %4562 = vpow2.f32 %v3900_v63 }
 0xcab   :  { %v6512_v26 = vpop.eup %4538 }
 0xcac   :  { %v4541_v45 = vpop.eup %4540  ;;  %4564 = vrcp.f32 %v2714_v15 }
 0xcad   :  { %v6519_v18 = vpop.eup %4542  ;;  %v2715_v28 = vadd.f32 1.0, %v4541_v45 }
 0xcae   :  { %v4545_v2 = vpop.eup %4544 }
 0xcaf   :  { %v4547_v25 = vpop.eup %4546  ;;  %v2718_v22 = vadd.f32 1.0, %v4545_v2  ;;  %4566 = vrcp.f32 %v2715_v28 }
 0xcb0   :  { %v6524_v4 = vpop.eup %4548 }
 0xcb1   :  { %v4551_v62 = vpop.eup %4550  ;;  %4568 = vrcp.f32 %v2718_v22 }
 0xcb2   :  { %v4553_v60 = vpop.eup %4552 }
 0xcb3   :  { %v6528_v57 = vpop.eup %4554 }
 0xce2   :  { %v2853_v12 = vpop.permute.xlu1 %2852 }
 0xce3   :  { %v2899_v1 = vmul.f32 %v6505_v54, %v2853_v12  ;;  %v2859_v59 = vpop.permute.xlu0 %2858  ;;  %v2716_v12 = vadd.f32 1.0, %v4547_v25 }
 0xce4   :  { %v2902_v42 = vmul.f32 %v6509_v51, %v2859_v59  ;;  %v2713_v59 = vadd.f32 1.0, %v4551_v62 }
 0xce5   :  { %2932 = vrot.lane.b32.xlu1 %v2899_v1, %s4747_s10  ;;  %4570 = vrcp.f32 %v2716_v12 }
 0xce6   :  { %v2863_v11 = vpop.permute.xlu1 %2862  ;;  %2938 = vrot.lane.b32.xlu0 %v2902_v42, %s4747_s10  ;;  %v2717_v42 = vadd.f32 1.0, %v4553_v60  ;;  %4572 = vrcp.f32 %v2713_v59 }
 0xce7   :  { %v2904_v7 = vmul.f32 %v6512_v26, %v2863_v11  ;;  %v2851_v53 = vpop.permute.xlu0 %2850  ;;  %v4557_v11 = vpop.eup %4556 }
 0xce8   :  { %v2898_v13 = vmul.f32 %v6519_v18, %v2851_v53  ;;  %v6532_v63 = vpop.eup %4558  ;;  %v2719_v15 = vadd.f32 1.0, %v4557_v11  ;;  %4574 = vrcp.f32 %v2717_v42 }
 0xce9   :  { %2942 = vrot.lane.b32.xlu1 %v2904_v7, %s4747_s10  ;;  %v4561_v2 = vpop.eup %4560 }
 0xcea   :  { %2930 = vrot.lane.b32.xlu0 %v2898_v13, %s4747_s10  ;;  %v4563_v28 = vpop.eup %4562  ;;  %v2720_v25 = vadd.f32 1.0, %v4561_v2  ;;  %4576 = vrcp.f32 %v2719_v15 }
 0xceb   :  { %v2855_v9 = vpop.permute.xlu0 %2854  ;;  %v6536_v13 = vpop.eup %4564  ;;  %v2721_v59 = vadd.f32 1.0, %v4563_v28 }
 0xcec   :  { %v2900_v1 = vmul.f32 %v6524_v4, %v2855_v9  ;;  %v6538_v9 = vpop.eup %4566  ;;  %4578 = vrcp.f32 %v2720_v25 }
 0xced   :  { %v6543_v60 = vpop.eup %4568  ;;  %4580 = vrcp.f32 %v2721_v59 }
 0xcee   :  { %2934 = vrot.lane.b32.xlu0 %v2900_v1, %s4747_s10  ;;  %v2869_v62 = vpop.permute.xlu1 %2868 }
 0xcef   :  { %v2857_v35 = vpop.permute.xlu0 %2856  ;;  %v2907_v1 = vmul.f32 %v6538_v9, %v2869_v62 }
 0xcf0   :  { %v2901_v45 = vmul.f32 %v6528_v57, %v2857_v35 }
 0xcf1   :  { %2948 = vrot.lane.b32.xlu1 %v2907_v1, %s4747_s10 }
 0xcf2   :  { %2936 = vrot.lane.b32.xlu0 %v2901_v45, %s4747_s10  ;;  %v6546_v42 = vpop.eup %4570 }
 0xcf3   :  { %v2861_v7 = vpop.permute.xlu0 %2860  ;;  %v6551_v15 = vpop.eup %4572 }
 0xcf4   :  { %v2903_v53 = vmul.f32 %v6532_v63, %v2861_v7 }
 0xcf5   :  { %v2871_v45 = vpop.permute.xlu1 %2870  ;;  %v6554_v2 = vpop.eup %4574 }
 0xcf6   :  { %2940 = vrot.lane.b32.xlu0 %v2903_v53, %s4747_s10  ;;  %v2908_v7 = vmul.f32 %v6546_v42, %v2871_v45 }
 0xcf7   :  { %v2867_v22 = vpop.permute.xlu0 %2866  ;;  %v6560_v62 = vpop.eup %4576 }
 0xcf8   :  { %v2906_v12 = vmul.f32 %v6536_v13, %v2867_v22  ;;  %2950 = vrot.lane.b32.xlu1 %v2908_v7, %s4747_s10 }
 0xcf9   :  { %v2873_v28 = vpop.permute.xlu1 %2872  ;;  %v6564_v59 = vpop.eup %4578 }
 0xcfa   :  { %2946 = vrot.lane.b32.xlu0 %v2906_v12, %s4747_s10  ;;  %v2909_v22 = vmul.f32 %v6554_v2, %v2873_v28  ;;  %v2787_v28 = vrot.slane %v6157_v56, 7 }
 0xcfb   :  { %v2875_v35 = vpop.permute.xlu0 %2874 }
 0xcfc   :  { %v2910_v11 = vmul.f32 %v6543_v60, %v2875_v35  ;;  %2952 = vrot.lane.b32.xlu1 %v2909_v22, %s4747_s10  ;;  %v2790_v22 = vrot.slane %v6179_v40, 7 }
 0xcfd   :  { %v2877_v12 = vpop.permute.xlu1 %2876 }
 0xcfe   :  { %2954 = vrot.lane.b32.xlu0 %v2910_v11, %s4747_s10  ;;  %v2911_v1 = vmul.f32 %v6560_v62, %v2877_v12  ;;  %v6568_v11 = vpop.eup %4580 }
 0xcff   :  { %v2865_v53 = vpop.permute.xlu0 %2864 }
 0xd00   :  { %v2905_v25 = vmul.f32 %v6551_v15, %v2865_v53  ;;  %2956 = vrot.lane.b32.xlu1 %v2911_v1, %s4747_s10 }
 0xd01   :  { %v2879_v35 = vpop.permute.xlu1 %2878 }
 0xd02   :  { %2944 = vrot.lane.b32.xlu0 %v2905_v25, %s4747_s10  ;;  %v2912_v45 = vmul.f32 %v6564_v59, %v2879_v35  ;;  %v2819_v25 = vmul.f32 %v6505_v54, %v2787_v28  ;;  %v2792_v35 = vrot.slane %v6218_v61, 7  ;;  %v2788_v61 = vrot.slane %v6175_v3, 7 }
 0xd03   :  { %v2791_v3 = vrot.slane %v6166_v58, 7 }
 0xd04   :  { %2958 = vrot.lane.b32.xlu1 %v2912_v45, %s4747_s10  ;;  %v2822_v45 = vmul.f32 %v6509_v51, %v2790_v22  ;;  %v2824_v56 = vmul.f32 %v6512_v26, %v2792_v35 }
 0xd05   :  { %v2881_v7 = vpop.permute.xlu1 %2880 }
 0xd06   :  { %v2913_v53 = vmul.f32 %v6568_v11, %v2881_v7  ;;  %v2786_v7 = vrot.slane %v6169_v50, 7  ;;  %v2820_v50 = vmul.f32 %v6524_v4, %v2788_v61 }
 0xd08   :  { %2960 = vrot.lane.b32.xlu1 %v2913_v53, %s4747_s10  ;;  %v2818_v40 = vmul.f32 %v6519_v18, %v2786_v7 }
 0xd57   :  { %v2933_v12 = vpop.permute.xlu1 %2932 }
 0xd58   :  { %v6575_v1 = vadd.f32 %v2933_v12, %v2819_v25  ;;  %v2939_v21 = vpop.permute.xlu0 %2938  ;;  %v2789_v12 = vrot.slane %v6160_v41, 7 }
 0xd59   :  { %v6581_v24 = vadd.f32 %v2939_v21, %v2822_v45 }
 0xd5a   :  { %4582 = vtanh.f32 %v6575_v1  ;;  %v2821_v45 = vmul.f32 %v6528_v57, %v2789_v12  ;;  %v2795_v12 = vrot.slane %v6190_v8, 7 }
 0xd5b   :  { %v2943_v53 = vpop.permute.xlu1 %2942  ;;  %4584 = vtanh.f32 %v6581_v24 }
 0xd5c   :  { %v6586_v28 = vadd.f32 %v2943_v53, %v2824_v56  ;;  %v2931_v25 = vpop.permute.xlu0 %2930 }
 0xd5d   :  { %v6589_v22 = vadd.f32 %v2931_v25, %v2818_v40  ;;  %v2823_v40 = vmul.f32 %v6532_v63, %v2791_v3  ;;  %v2798_v3 = vrot.slane %v6211_v23, 7  ;;  %v2793_v23 = vrot.slane %v6227_v27, 7 }
 0xd5e   :  { %4586 = vtanh.f32 %v6586_v28 }
 0xd5f   :  { %7143 = vst [vmem:[#allocation5_spill] sm:$0xff] %v6589_v22  ;;  %4588 = vtanh.f32 %v6589_v22 }
 0xd60   :  { %v2935_v21 = vpop.permute.xlu0 %2934 }
 0xd61   :  { %v6595_v35 = vadd.f32 %v2935_v21, %v2820_v50  ;;  %v2794_v21 = vrot.slane %v6208_v36, 7  ;;  %v2796_v36 = vrot.slane %v6200_v30, 7  ;;  %v2797_v30 = vrot.slane %v6197_v20, 7 }
 0xd63   :  { %4590 = vtanh.f32 %v6595_v35 }
 0xd64   :  { %v2937_v7 = vpop.permute.xlu0 %2936 }
 0xd65   :  { %v6600_v53 = vadd.f32 %v2937_v7, %v2821_v45  ;;  %v2826_v45 = vmul.f32 %v6536_v13, %v2794_v21  ;;  %v2827_v7 = vmul.f32 %v6538_v9, %v2795_v12  ;;  %v2828_v21 = vmul.f32 %v6546_v42, %v2796_v36 }
 0xd67   :  { %v4583_v56 = vpop.eup %4582  ;;  %4592 = vtanh.f32 %v6600_v53 }
 0xd68   :  { %3028 = vrot.lane.b32.xlu1 %v4583_v56, %s4748_s17  ;;  %v4585_v25 = vpop.eup %4584  ;;  %v2941_v41 = vpop.permute.xlu0 %2940 }
 0xd69   :  { %v6605_v61 = vadd.f32 %v2941_v41, %v2823_v40  ;;  %3034 = vrot.lane.b32.xlu0 %v4585_v25, %s4748_s17  ;;  %v2949_v40 = vpop.permute.xlu1 %2948 }
 0xd6a   :  { %v6619_v8 = vadd.f32 %v2949_v40, %v2827_v7  ;;  %v2829_v40 = vmul.f32 %v6554_v2, %v2797_v30 }
 0xd6b   :  { %v4587_v50 = vpop.eup %4586  ;;  %4594 = vtanh.f32 %v6605_v61 }
 0xd6c   :  { %3038 = vrot.lane.b32.xlu1 %v4587_v50, %s4748_s17  ;;  %v4589_v58 = vpop.eup %4588  ;;  %v2947_v56 = vpop.permute.xlu0 %2946  ;;  %7145 = vst [vmem:[#allocation6_spill] sm:$0xff] %v6619_v8  ;;  %v2830_v50 = vmul.f32 %v6543_v60, %v2798_v3  ;;  %v2825_v3 = vmul.f32 %v6551_v15, %v2793_v23 }
 0xd6d   :  { %3026 = vrot.lane.b32.xlu0 %v4589_v58, %s4748_s17  ;;  %v6616_v25 = vadd.f32 %v2947_v56, %v2826_v45  ;;  %v2951_v58 = vpop.permute.xlu1 %2950 }
 0xd6e   :  { %v6630_v7 = vadd.f32 %v2951_v58, %v2828_v21  ;;  %v2800_v58 = vrot.slane %v6230_v0, 7 }
 0xd6f   :  { %7144 = vst [vmem:[#allocation4_spill] sm:$0xff] %v6616_v25  ;;  %4596 = vtanh.f32 %v6616_v25 }
 0xd70   :  { %v4591_v41 = vpop.eup %4590  ;;  %4598 = vtanh.f32 %v6619_v8  ;;  %v2955_v12 = vpop.permute.xlu0 %2954  ;;  %7146 = vst [vmem:[#allocation7_spill] sm:$0xff] %v6630_v7 }
 0xd71   :  { %3030 = vrot.lane.b32.xlu0 %v4591_v41, %s4748_s17  ;;  %v6627_v45 = vadd.f32 %v2955_v12, %v2830_v50  ;;  %v2953_v27 = vpop.permute.xlu1 %2952  ;;  %v2799_v50 = vrot.slane %v6221_v6, 7  ;;  %v2832_v6 = vmul.f32 %v6564_v59, %v2800_v58 }
 0xd72   :  { %v6640_v20 = vadd.f32 %v2953_v27, %v2829_v40 }
 0xd73   :  { %4600 = vtanh.f32 %v6627_v45  ;;  %v2831_v12 = vmul.f32 %v6560_v62, %v2799_v50 }
 0xd74   :  { %v4593_v56 = vpop.eup %4592  ;;  %4602 = vtanh.f32 %v6630_v7  ;;  %v2945_v36 = vpop.permute.xlu0 %2944  ;;  %7147 = vst [vmem:[#allocation8_spill] sm:$0xff] %v6640_v20 }
 0xd75   :  { %3032 = vrot.lane.b32.xlu0 %v4593_v56, %s4748_s17  ;;  %v6637_v41 = vadd.f32 %v2945_v36, %v2825_v3  ;;  %v2957_v23 = vpop.permute.xlu1 %2956  ;;  %v2801_v36 = vrot.slane %v6237_v16, 7 }
 0xd76   :  { %v6647_v30 = vadd.f32 %v2957_v23, %v2831_v12 }
 0xd77   :  { %4604 = vtanh.f32 %v6637_v41  ;;  %v2833_v0 = vmul.f32 %v6568_v11, %v2801_v36 }
 0xd78   :  { %v4595_v21 = vpop.eup %4594  ;;  %4606 = vtanh.f32 %v6640_v20 }
 0xd79   :  { %3036 = vrot.lane.b32.xlu0 %v4595_v21, %s4748_s17  ;;  %4608 = vtanh.f32 %v6647_v30  ;;  %v2959_v40 = vpop.permute.xlu1 %2958 }
 0xd7a   :  { %v6653_v27 = vadd.f32 %v2959_v40, %v2832_v6 }
 0xd7c   :  { %v4597_v56 = vpop.eup %4596  ;;  %7148 = vst [vmem:[#allocation9_spill] sm:$0xff] %v6653_v27  ;;  %4610 = vtanh.f32 %v6653_v27 }
 0xd7d   :  { %v4599_v3 = vpop.eup %4598  ;;  %3042 = vrot.lane.b32.xlu0 %v4597_v56, %s4748_s17  ;;  %v2961_v12 = vpop.permute.xlu1 %2960 }
 0xd7e   :  { %3044 = vrot.lane.b32.xlu1 %v4599_v3, %s4748_s17  ;;  %v6659_v23 = vadd.f32 %v2961_v12, %v2833_v0 }
 0xd80   :  { %v4601_v50 = vpop.eup %4600  ;;  %7149 = vst [vmem:[#allocation10_spill] sm:$0xff] %v6659_v23  ;;  %4612 = vtanh.f32 %v6659_v23 }
 0xd81   :  { %v4603_v21 = vpop.eup %4602  ;;  %3050 = vrot.lane.b32.xlu0 %v4601_v50, %s4748_s17 }
 0xd82   :  { %3046 = vrot.lane.b32.xlu1 %v4603_v21, %s4748_s17 }
 0xd84   :  { %v4605_v58 = vpop.eup %4604 }
 0xd85   :  { %v4607_v16 = vpop.eup %4606  ;;  %3040 = vrot.lane.b32.xlu0 %v4605_v58, %s4748_s17 }
 0xd86   :  { %3048 = vrot.lane.b32.xlu1 %v4607_v16, %s4748_s17  ;;  %v4609_v56 = vpop.eup %4608 }
 0xd89   :  { %v4611_v6 = vpop.eup %4610 }
 0xd8a   :  { %3052 = vrot.lane.b32.xlu1 %v4609_v56, %s4748_s17 }
 0xd8d   :  { %v4613_v3 = vpop.eup %4612 }
 0xd8e   :  { %3054 = vrot.lane.b32.xlu1 %v4611_v6, %s4748_s17 }
 0xd92   :  { %3056 = vrot.lane.b32.xlu1 %v4613_v3, %s4748_s17 }
 0xdda   :  { %v3029_v0 = vpop.permute.xlu1 %3028 }
 0xddb   :  { %v3035_v40 = vpop.permute.xlu0 %3034  ;;  %v3075_v3 = vmul.f32 %v6505_v54, %v3029_v0 }
 0xdde   :  { %v3039_v12 = vpop.permute.xlu1 %3038 }
 0xddf   :  { %v3027_v36 = vpop.permute.xlu0 %3026 }
 0xde0   :  { %v3074_v56 = vmul.f32 %v6519_v18, %v3027_v36 }
 0xde2   :  { %v3090_v20 = vpack.c.bf16 %v3074_v56, %v3074_v56 }
 0xde3   :  { %v3031_v50 = vpop.permute.xlu0 %3030 }
 0xde4   :  { %v3076_v6 = vmul.f32 %v6524_v4, %v3031_v50  ;;  %v3122_v54 = vunpack.c.l.b16 %v3090_v20 }
 0xde6   :  { %v3092_v27 = vpack.c.bf16 %v3076_v6, %v3076_v6 }
 0xde7   :  { %v3033_v21 = vpop.permute.xlu0 %3032 }
 0xde8   :  { %v3077_v22 = vmul.f32 %v6528_v57, %v3033_v21  ;;  %v3124_v21 = vunpack.c.l.b16 %v3092_v27 }
 0xdeb   :  { %v3037_v47 = vpop.permute.xlu0 %3036 }
 0xdec   :  { %v3079_v18 = vmul.f32 %v6532_v63, %v3037_v47 }
 0xdef   :  { %v3043_v49 = vpop.permute.xlu0 %3042 }
 0xdf0   :  { %v3045_v58 = vpop.permute.xlu1 %3044  ;;  %v3082_v16 = vmul.f32 %v6536_v13, %v3043_v49 }
 0xdf1   :  { %v3083_v17 = vmul.f32 %v6538_v9, %v3045_v58  ;;  %v3091_v9 = vpack.c.bf16 %v3075_v3, %v3075_v3  ;;  %v3093_v58 = vpack.c.bf16 %v3077_v22, %v3077_v22 }
 0xdf2   :  { %v3098_v37 = vpack.c.bf16 %v3082_v16, %v3082_v16  ;;  %v3095_v16 = vpack.c.bf16 %v3079_v18, %v3079_v18 }
 0xdf3   :  { %v3099_v39 = vpack.c.bf16 %v3083_v17, %v3083_v17  ;;  %v3051_v23 = vpop.permute.xlu0 %3050 }
 0xdf4   :  { %v3047_v7 = vpop.permute.xlu1 %3046  ;;  %v3130_v8 = vunpack.c.l.b16 %v3098_v37  ;;  %v3086_v57 = vmul.f32 %v6543_v60, %v3051_v23  ;;  %v3080_v60 = vmul.f32 %v6512_v26, %v3039_v12  ;;  %v3141_v23 = vrot.slane %v3124_v21, 2 }
 0xdf5   :  { %v3084_v25 = vmul.f32 %v6546_v42, %v3047_v7  ;;  %v3131_v49 = vunpack.c.l.b16 %v3099_v39  ;;  %v3078_v7 = vmul.f32 %v6509_v51, %v3035_v40  ;;  %v3123_v39 = vunpack.c.l.b16 %v3091_v9 }
 0xdf6   :  { %v3152_v4 = vrot.slane %v3130_v8, 4  ;;  %v3138_v8 = vrot.slane %v3122_v54, 4  ;;  %v3102_v27 = vpack.c.bf16 %v3086_v57, %v3086_v57 }
 0xdf7   :  { %v3100_v13 = vpack.c.bf16 %v3084_v25, %v3084_v25  ;;  %v3041_v0 = vpop.permute.xlu0 %3040  ;;  %v3153_v42 = vrot.slane %v3131_v49, 3  ;;  %v3125_v25 = vunpack.c.l.b16 %v3093_v58  ;;  %v3139_v3 = vrot.slane %v3123_v39, 3 }
 0xdf8   :  { %v3049_v36 = vpop.permute.xlu1 %3048 }
 0xdf9   :  { %v3085_v17 = vmul.f32 %v6554_v2, %v3049_v36  ;;  %v3132_v50 = vunpack.c.l.b16 %v3100_v13  ;;  %v3154_v47 = vsel %vm656_vm2, %v3153_v42, %v3152_v4  ;;  %v3081_v2 = vmul.f32 %v6551_v15, %v3041_v0 }
 0xdfa   :  { %v3143_v51 = vrot.slane %v3125_v25, 1  ;;  %v3127_v13 = vunpack.c.l.b16 %v3095_v16  ;;  %v3140_v15 = vsel %vm656_vm2, %v3139_v3, %v3138_v8  ;;  %v3096_v36 = vpack.c.bf16 %v3080_v60, %v3080_v60 }
 0xdfb   :  { %v3101_v37 = vpack.c.bf16 %v3085_v17, %v3085_v17  ;;  %v3155_v20 = vrot.slane %v3132_v50, 2  ;;  %v3097_v18 = vpack.c.bf16 %v3081_v2, %v3081_v2  ;;  %v3134_v17 = vunpack.c.l.b16 %v3102_v27 }
 0xdfc   :  { %v3053_v22 = vpop.permute.xlu1 %3052  ;;  %v3142_v26 = vsel %vm659_vm3, %v3141_v23, %v3140_v15  ;;  %v3146_v0 = vrot.slane %v3127_v13, 7 }
 0xdfd   :  { %v3133_v56 = vunpack.c.l.b16 %v3101_v37  ;;  %v3087_v63 = vmul.f32 %v6560_v62, %v3053_v22  ;;  %v3156_v40 = vsel %vm659_vm3, %v3155_v20, %v3154_v47  ;;  %v3094_v62 = vpack.c.bf16 %v3078_v7, %v3078_v7 }
 0xdfe   :  { %v3144_v50 = vsel %vm662_vm4, %v3143_v51, %v3142_v26  ;;  %v3129_v42 = vunpack.c.l.b16 %v3097_v18  ;;  %v3128_v7 = vunpack.c.l.b16 %v3096_v36 }
 0xdff   :  { %v3103_v6 = vpack.c.bf16 %v3087_v63, %v3087_v63  ;;  %v3157_v9 = vrot.slane %v3133_v56, 1  ;;  %v3126_v37 = vunpack.c.l.b16 %v3094_v62  ;;  %v7150_v62 = vunpack.c.l.bf16 %v6292_v52 }
 0xe00   :  { %v3055_v49 = vpop.permute.xlu1 %3054  ;;  %v3150_v2 = vrot.slane %v3129_v42, 5  ;;  %v3148_v60 = vrot.slane %v3128_v7, 6  ;;  %v7153_v52 = vunpack.c.l.bf16 %v6340_v29  ;;  %v7156_v29 = vunpack.c.l.bf16 %v6285_v33 }
 0xe01   :  { %v3088_v58 = vmul.f32 %v6564_v59, %v3055_v49  ;;  %v3135_v12 = vunpack.c.l.b16 %v3103_v6  ;;  %v3158_v4 = vsel %vm662_vm4, %v3157_v9, %v3156_v40  ;;  %v3145_v22 = vsel %vm665_vm5, %v3126_v37, %v3144_v50 }
 0xe02   :  { %v3159_v39 = vsel %vm665_vm5, %v3134_v17, %v3158_v4  ;;  %v3147_v47 = vsel %vm668_vm6, %v3146_v0, %v3145_v22  ;;  %v7151_v17 = vunpack.c.l.bf16 %v6353_v19  ;;  %v7152_v4 = vunpack.c.l.bf16 %v6299_v46 }
 0xe03   :  { %v3104_v54 = vpack.c.bf16 %v3088_v58, %v3088_v58  ;;  %v3160_v25 = vrot.slane %v3135_v12, 7  ;;  %v7154_v19 = vunpack.c.l.bf16 %v6323_v10 }
 0xe04   :  { %v3057_v57 = vpop.permute.xlu1 %3056 }
 0xe05   :  { %v3136_v21 = vunpack.c.l.b16 %v3104_v54  ;;  %v3089_v59 = vmul.f32 %v6568_v11, %v3057_v57  ;;  %v3161_v63 = vsel %vm668_vm6, %v3160_v25, %v3159_v39  ;;  %v3149_v11 = vsel %vm671_vm7, %v3148_v60, %v3147_v47 }
 0xe06   :  { %v3151_v23 = vsel %vm674_vm8, %v3150_v2, %v3149_v11  ;;  %v7159_v60 = vunpack.c.l.bf16 %v6454_v48  ;;  %v7160_v11 = vunpack.c.l.bf16 %v6415_v14  ;;  %v7163_v14 = vunpack.c.l.bf16 %v6468_v55 }
 0xe07   :  { %v3105_v16 = vpack.c.bf16 %v3089_v59, %v3089_v59  ;;  %v3162_v56 = vrot.slane %v3136_v21, 6  ;;  %v7155_v21 = vunpack.c.l.bf16 %v6403_v5 }
 0xe09   :  { %v3137_v8 = vunpack.c.l.b16 %v3105_v16  ;;  %v3163_v27 = vsel %vm671_vm7, %v3162_v56, %v3161_v63  ;;  %v7157_v16 = vunpack.c.l.bf16 %v6383_v34  ;;  %v7158_v63 = vunpack.c.l.bf16 %v6436_v31 }
 0xe0b   :  { %v3164_v20 = vrot.slane %v3137_v8, 5 }
 0xe0d   :  { %v3165_v6 = vsel %vm674_vm8, %v3164_v20, %v3163_v27 }
 0xe0e   :  { %v3166_v3 = vpack.c.b16 %v3165_v6, %v3151_v23  ;;  %v7161_v6 = vunpack.c.l.bf16 %v6365_v32  ;;  %v7164_v32 = vunpack.c.l.bf16 %v6391_v44 }
 0xe10   :  { %3167 = vrot.lane.b32.xlu0 %v3166_v3, %s4749_s18 }
 0xe82   :  { %v3168_v51 = vpop.permute.xlu0 %3167 }
 0xe83   :  { %3963 = vmatmul.mubr.msk.bf16.vlgmr.msra.gmra.mxu1 %vm16_vm0, %v3168_v51  ;;  %v7162_v51 = vunpack.c.l.bf16 %v6370_v43 }
 0xf43   :  { %v6700_v40 = vpop.f32.mrf.mxu1 }
 0xf44   :  { %v3219_v58 = vrot.slane %v6700_v40, 7  ;;  %v3220_v18 = vrot.slane %v6700_v40, 1  ;;  %v3218_v36 = vrot.slane %v6700_v40, 6  ;;  %v6712_v26 = vadd.f32 %v6700_v40, %v7151_v17 }
 0xf45   :  { %v3964_v49 = vpop.f32.mrf.mxu1  ;;  %v3217_v12 = vrot.slane %v6700_v40, 5  ;;  %v3221_v50 = vrot.slane %v6700_v40, 2  ;;  %v3216_v46 = vrot.slane %v6700_v40, 4 }
 0xf46   :  { %v6706_v15 = vadd.f32 %v3219_v58, %v7150_v62  ;;  %v6717_v54 = vadd.f32 %v3220_v18, %v7152_v4  ;;  %v6723_v57 = vadd.f32 %v3218_v36, %v7153_v52  ;;  %v3215_v58 = vrot.slane %v6700_v40, 3 }
 0xf47   :  { %v3209_v13 = vpop.f32.mrf.mxu1  ;;  %v6728_v0 = vadd.f32 %v3217_v12, %v7154_v19  ;;  %v6734_v42 = vadd.f32 %v3221_v50, %v7155_v21  ;;  %v6740_v59 = vadd.f32 %v3216_v46, %v7156_v29  ;;  %v3907_v52 = vmul.f32 -1.442695, %v6712_v26 }
 0xf48   :  { %4614 = vtanh.f32 %v6706_v15  ;;  %v3226_v7 = vrot.slane %v3209_v13, 7  ;;  %v3227_v25 = vrot.slane %v3209_v13, 1  ;;  %v3225_v47 = vrot.slane %v3209_v13, 6 }
 0xf49   :  { %v3965_v9 = vpop.f32.mrf.mxu1  ;;  %4616 = vtanh.f32 %v6712_v26  ;;  %v6754_v2 = vadd.f32 %v3209_v13, %v7158_v63  ;;  %v3222_v8 = vrot.slane %v3209_v13, 3  ;;  %v3223_v27 = vrot.slane %v3209_v13, 4 }
 0xf4a   :  { %4618 = vtanh.f32 %v6717_v54  ;;  %v6750_v22 = vadd.f32 %v3226_v7, %v7157_v16  ;;  %v6760_v20 = vadd.f32 %v3227_v25, %v7159_v60  ;;  %v6765_v23 = vadd.f32 %v3225_v47, %v7160_v11 }
 0xf4b   :  { %4620 = vtanh.f32 %v6723_v57  ;;  %v3228_v31 = vrot.slane %v3209_v13, 2  ;;  %v6771_v3 = vadd.f32 %v3222_v8, %v7161_v6  ;;  %v3224_v48 = vrot.slane %v3209_v13, 5 }
 0xf4c   :  { %4622 = vtanh.f32 %v6728_v0  ;;  %v6776_v49 = vadd.f32 %v3223_v27, %v7162_v51  ;;  %v7165_v13 = vunpack.c.l.bf16 %v6305_v38  ;;  %v3906_v50 = vmul.f32 -1.442695, %v6706_v15 }
 0xf4d   :  { %4624 = vtanh.f32 %v6734_v42  ;;  %v6781_v9 = vadd.f32 %v3228_v31, %v7163_v14  ;;  %v6787_v18 = vadd.f32 %v3224_v48, %v7164_v32  ;;  %v3905_v19 = vmul.f32 -1.442695, %v6723_v57 }
 0xf4e   :  { %4626 = vtanh.f32 %v6740_v59  ;;  %v6793_v62 = vadd.f32 %v3215_v58, %v7165_v13  ;;  %v3908_v46 = vmul.f32 -1.442695, %v6717_v54  ;;  %v3904_v21 = vmul.f32 -1.442695, %v6728_v0 }
 0xf4f   :  { %4628 = vtanh.f32 %v6750_v22  ;;  %v3909_v29 = vmul.f32 -1.442695, %v6734_v42  ;;  %v3914_v25 = vmul.f32 -1.442695, %v6750_v22  ;;  %v3915_v42 = vmul.f32 -1.442695, %v6754_v2 }
 0xf50   :  { %4630 = vtanh.f32 %v6754_v2  ;;  %v3913_v63 = vmul.f32 -1.442695, %v6765_v23  ;;  %v3910_v8 = vmul.f32 -1.442695, %v6771_v3  ;;  %v3911_v22 = vmul.f32 -1.442695, %v6776_v49 }
 0xf51   :  { %4632 = vtanh.f32 %v6760_v20  ;;  %v3912_v11 = vmul.f32 -1.442695, %v6787_v18  ;;  %v3902_v14 = vmul.f32 -1.442695, %v6793_v62 }
 0xf52   :  { %4634 = vtanh.f32 %v6765_v23 }
 0xf53   :  { %4636 = vtanh.f32 %v6771_v3 }
 0xf54   :  { %4638 = vtanh.f32 %v6776_v49 }
 0xf55   :  { %v4615_v10 = vpop.eup %4614  ;;  %4640 = vtanh.f32 %v6781_v9 }
 0xf56   :  { %v4617_v37 = vpop.eup %4616  ;;  %3461 = vrot.lane.b32.xlu0 %v4615_v10, %s4746_s21  ;;  %4642 = vtanh.f32 %v6787_v18  ;;  %v3903_v10 = vmul.f32 -1.442695, %v6740_v59 }
 0xf57   :  { %3463 = vrot.lane.b32.xlu1 %v4617_v37, %s4746_s21  ;;  %v4619_v5 = vpop.eup %4618  ;;  %4644 = vtanh.f32 %v6793_v62 }
 0xf58   :  { %v4621_v39 = vpop.eup %4620  ;;  %4646 = vpow2.f32 %v3906_v50 }
 0xf59   :  { %v4623_v33 = vpop.eup %4622  ;;  %4648 = vpow2.f32 %v3907_v52 }
 0xf5a   :  { %3465 = vrot.lane.b32.xlu0 %v4619_v5, %s4746_s21  ;;  %v4625_v56 = vpop.eup %4624  ;;  %4650 = vpow2.f32 %v3905_v19 }
 0xf5b   :  { %3459 = vrot.lane.b32.xlu1 %v4621_v39, %s4746_s21  ;;  %v4627_v34 = vpop.eup %4626  ;;  %4652 = vpow2.f32 %v3908_v46 }
 0xf5c   :  { %v4629_v43 = vpop.eup %4628  ;;  %4654 = vpow2.f32 %v3904_v21 }
 0xf5d   :  { %v4631_v55 = vpop.eup %4630  ;;  %4656 = vpow2.f32 %v3909_v29 }
 0xf5e   :  { %3457 = vrot.lane.b32.xlu0 %v4623_v33, %s4746_s21  ;;  %v4633_v40 = vpop.eup %4632  ;;  %4658 = vpow2.f32 %v3903_v10 }
 0xf5f   :  { %3467 = vrot.lane.b32.xlu1 %v4625_v56, %s4746_s21  ;;  %v4635_v44 = vpop.eup %4634  ;;  %v3916_v56 = vmul.f32 -1.442695, %v6760_v20 }
 0xf60   :  { %v4637_v36 = vpop.eup %4636 }
 0xf61   :  { %v4639_v17 = vpop.eup %4638 }
 0xf62   :  { %3479 = vrot.lane.b32.xlu0 %v4631_v55, %s4746_s21  ;;  %v4641_v38 = vpop.eup %4640 }
 0xf63   :  { %3455 = vrot.lane.b32.xlu1 %v4627_v34, %s4746_s21  ;;  %v4643_v12 = vpop.eup %4642  ;;  %v3917_v34 = vmul.f32 -1.442695, %v6781_v9 }
 0xf64   :  { %v4645_v4 = vpop.eup %4644 }
 0xf65   :  { %v4647_v37 = vpop.eup %4646 }
 0xf66   :  { %3475 = vrot.lane.b32.xlu0 %v4635_v44, %s4746_s21  ;;  %v4649_v15 = vpop.eup %4648  ;;  %v3313_v5 = vadd.f32 1.0, %v4647_v37 }
 0xf67   :  { %3477 = vrot.lane.b32.xlu1 %v4629_v43, %s4746_s21  ;;  %v4651_v26 = vpop.eup %4650  ;;  %v3314_v7 = vadd.f32 1.0, %v4649_v15 }
 0xf68   :  { %v4653_v57 = vpop.eup %4652  ;;  %v3312_v39 = vadd.f32 1.0, %v4651_v26  ;;  %4660 = vrcp.f32 %v3313_v5 }
 0xf69   :  { %v4655_v54 = vpop.eup %4654  ;;  %v3315_v33 = vadd.f32 1.0, %v4653_v57  ;;  %4662 = vrcp.f32 %v3314_v7 }
 0xf6a   :  { %3471 = vrot.lane.b32.xlu0 %v4639_v17, %s4746_s21  ;;  %v4657_v0 = vpop.eup %4656  ;;  %v3311_v16 = vadd.f32 1.0, %v4655_v54  ;;  %4664 = vrcp.f32 %v3312_v39 }
 0xf6b   :  { %3481 = vrot.lane.b32.xlu1 %v4633_v40, %s4746_s21  ;;  %v3316_v59 = vadd.f32 1.0, %v4657_v0  ;;  %4666 = vrcp.f32 %v3315_v33  ;;  %v4659_v47 = vpop.eup %4658 }
 0xf6c   :  { %4668 = vpow2.f32 %v3914_v25  ;;  %v3310_v60 = vadd.f32 1.0, %v4659_v47 }
 0xf6d   :  { %4670 = vpow2.f32 %v3915_v42 }
 0xf6e   :  { %3473 = vrot.lane.b32.xlu0 %v4643_v12, %s4746_s21  ;;  %4672 = vrcp.f32 %v3311_v16 }
 0xf6f   :  { %3469 = vrot.lane.b32.xlu1 %v4637_v36, %s4746_s21  ;;  %4674 = vrcp.f32 %v3316_v59 }
 0xf70   :  { %4676 = vpow2.f32 %v3916_v56 }
 0xf71   :  { %4678 = vpow2.f32 %v3913_v63 }
 0xf72   :  { %3453 = vrot.lane.b32.xlu0 %v4645_v4, %s4746_s21  ;;  %4680 = vpow2.f32 %v3910_v8 }
 0xf73   :  { %3483 = vrot.lane.b32.xlu1 %v4641_v38, %s4746_s21  ;;  %4682 = vrcp.f32 %v3310_v60 }
 0xf74   :  { %4684 = vpow2.f32 %v3911_v22 }
 0xf75   :  { %v6819_v2 = vpop.eup %4660  ;;  %4686 = vpow2.f32 %v3917_v34 }
 0xf76   :  { %v6822_v27 = vpop.eup %4662  ;;  %4688 = vpow2.f32 %v3912_v11 }
 0xf77   :  { %v6827_v3 = vpop.eup %4664  ;;  %4690 = vpow2.f32 %v3902_v14 }
 0xf78   :  { %v6830_v48 = vpop.eup %4666 }
 0xf79   :  { %v4669_v49 = vpop.eup %4668 }
 0xf7a   :  { %v4671_v32 = vpop.eup %4670  ;;  %v3321_v55 = vadd.f32 1.0, %v4669_v49 }
 0xf7b   :  { %v6836_v43 = vpop.eup %4672  ;;  %v3322_v62 = vadd.f32 1.0, %v4671_v32 }
 0xf7c   :  { %v6839_v13 = vpop.eup %4674  ;;  %4692 = vrcp.f32 %v3321_v55 }
 0xf7d   :  { %v4677_v44 = vpop.eup %4676  ;;  %4694 = vrcp.f32 %v3322_v62 }
 0xf7e   :  { %v4679_v38 = vpop.eup %4678  ;;  %v3323_v50 = vadd.f32 1.0, %v4677_v44  ;;  %v3394_v44 = vrot.slane %v6605_v61, 7  ;;  %v3391_v61 = vrot.slane %v6595_v35, 7  ;;  %v3390_v35 = vrot.slane %v6575_v1, 7 }
 0xf7f   :  { %v4681_v4 = vpop.eup %4680  ;;  %v3320_v19 = vadd.f32 1.0, %v4679_v38  ;;  %v3395_v38 = vrot.slane %v6586_v28, 7 }
 0xf80   :  { %v6846_v52 = vpop.eup %4682  ;;  %v3317_v10 = vadd.f32 1.0, %v4681_v4  ;;  %4696 = vrcp.f32 %v3323_v50  ;;  %v3392_v50 = vrot.slane %v6600_v53, 7  ;;  %v3423_v53 = vmul.f32 %v6836_v43, %v3391_v61  ;;  %v7169_v61 = vld [vmem:[#allocation4_spill] sm:$0xff] }
 0xf81   :  { %v4685_v21 = vpop.eup %4684  ;;  %4698 = vrcp.f32 %v3320_v19 }
 0xf82   :  { %v4687_v37 = vpop.eup %4686  ;;  %v3318_v15 = vadd.f32 1.0, %v4685_v21  ;;  %4700 = vrcp.f32 %v3317_v10 }
 0xf83   :  { %v4689_v26 = vpop.eup %4688  ;;  %v3324_v5 = vadd.f32 1.0, %v4687_v37 }
 0xf84   :  { %v3319_v57 = vadd.f32 1.0, %v4689_v26  ;;  %4702 = vrcp.f32 %v3318_v15  ;;  %v4691_v7 = vpop.eup %4690 }
 0xf85   :  { %4704 = vrcp.f32 %v3324_v5  ;;  %v3309_v54 = vadd.f32 1.0, %v4691_v7 }
 0xf86   :  { %4706 = vrcp.f32 %v3319_v57 }
 0xf87   :  { %4708 = vrcp.f32 %v3309_v54 }
 0xf89   :  { %v6850_v39 = vpop.eup %4692 }
 0xf8a   :  { %v6852_v0 = vpop.eup %4694 }
 0xf8d   :  { %v6857_v59 = vpop.eup %4696 }
 0xf8e   :  { %v6860_v47 = vpop.eup %4698 }
 0xf8f   :  { %v6865_v22 = vpop.eup %4700 }
 0xfc8   :  { %v3462_v20 = vpop.permute.xlu0 %3461 }
 0xfc9   :  { %v3464_v23 = vpop.permute.xlu1 %3463  ;;  %v3505_v31 = vmul.f32 %v6819_v2, %v3462_v20  ;;  %v6868_v20 = vpop.eup %4702 }
 0xfca   :  { %v3506_v6 = vmul.f32 %v6822_v27, %v3464_v23 }
 0xfcb   :  { %3541 = vrot.lane.b32.xlu0 %v3505_v31, %s4747_s10 }
 0xfcc   :  { %3543 = vrot.lane.b32.xlu1 %v3506_v6, %s4747_s10  ;;  %v3466_v51 = vpop.permute.xlu0 %3465  ;;  %v6873_v6 = vpop.eup %4704 }
 0xfcd   :  { %v3460_v9 = vpop.permute.xlu1 %3459  ;;  %v3507_v58 = vmul.f32 %v6830_v48, %v3466_v51  ;;  %v6876_v49 = vpop.eup %4706 }
 0xfce   :  { %v3504_v18 = vmul.f32 %v6827_v3, %v3460_v9  ;;  %v6882_v32 = vpop.eup %4708 }
 0xfcf   :  { %3545 = vrot.lane.b32.xlu0 %v3507_v58, %s4747_s10 }
 0xfd0   :  { %3539 = vrot.lane.b32.xlu1 %v3504_v18, %s4747_s10  ;;  %v3458_v40 = vpop.permute.xlu0 %3457 }
 0xfd1   :  { %v3468_v36 = vpop.permute.xlu1 %3467  ;;  %v3503_v17 = vmul.f32 %v6836_v43, %v3458_v40  ;;  %v3393_v40 = vrot.slane %v6581_v24, 7  ;;  %v3424_v24 = vmul.f32 %v6827_v3, %v3392_v50 }
 0xfd2   :  { %v3508_v12 = vmul.f32 %v6839_v13, %v3468_v36  ;;  %v3426_v36 = vmul.f32 %v6822_v27, %v3394_v44 }
 0xfd3   :  { %3537 = vrot.lane.b32.xlu0 %v3503_v17, %s4747_s10  ;;  %v3425_v62 = vmul.f32 %v6819_v2, %v3393_v40 }
 0xfd4   :  { %3547 = vrot.lane.b32.xlu1 %v3508_v12, %s4747_s10  ;;  %v3480_v25 = vpop.permute.xlu0 %3479 }
 0xfd5   :  { %v3456_v46 = vpop.permute.xlu1 %3455  ;;  %v3514_v16 = vmul.f32 %v6852_v0, %v3480_v25 }
 0xfd6   :  { %v3502_v29 = vmul.f32 %v6846_v52, %v3456_v46  ;;  %v3427_v46 = vmul.f32 %v6830_v48, %v3395_v38 }
 0xfd7   :  { %3559 = vrot.lane.b32.xlu0 %v3514_v16, %s4747_s10 }
 0xfd8   :  { %3535 = vrot.lane.b32.xlu1 %v3502_v29, %s4747_s10  ;;  %v3476_v63 = vpop.permute.xlu0 %3475  ;;  %v3396_v29 = vrot.slane %v6637_v41, 7 }
 0xfd9   :  { %v3478_v33 = vpop.permute.xlu1 %3477  ;;  %v3512_v60 = vmul.f32 %v6860_v47, %v3476_v63 }
 0xfda   :  { %v3513_v42 = vmul.f32 %v6850_v39, %v3478_v33  ;;  %v3428_v28 = vmul.f32 %v6839_v13, %v3396_v29  ;;  %v3397_v29 = vrot.slane %v7169_v61, 7 }
 0xfdb   :  { %3555 = vrot.lane.b32.xlu0 %v3512_v60, %s4747_s10 }
 0xfdc   :  { %3557 = vrot.lane.b32.xlu1 %v3513_v42, %s4747_s10  ;;  %v3472_v11 = vpop.permute.xlu0 %3471 }
 0xfdd   :  { %v3482_v56 = vpop.permute.xlu1 %3481  ;;  %v3510_v31 = vmul.f32 %v6868_v20, %v3472_v11 }
 0xfde   :  { %v3515_v8 = vmul.f32 %v6857_v59, %v3482_v56 }
 0xfdf   :  { %3551 = vrot.lane.b32.xlu0 %v3510_v31, %s4747_s10 }
 0xfe0   :  { %3561 = vrot.lane.b32.xlu1 %v3515_v8, %s4747_s10  ;;  %v3474_v14 = vpop.permute.xlu0 %3473  ;;  %v3422_v8 = vmul.f32 %v6846_v52, %v3390_v35 }
 0xfe1   :  { %v3470_v34 = vpop.permute.xlu1 %3469  ;;  %v3511_v58 = vmul.f32 %v6876_v49, %v3474_v14  ;;  %v3401_v14 = vrot.slane %v6627_v45, 7  ;;  %v7167_v45 = vld [vmem:[#allocation8_spill] sm:$0xff] }
 0xfe2   :  { %v3509_v23 = vmul.f32 %v6865_v22, %v3470_v34 }
 0xfe3   :  { %3553 = vrot.lane.b32.xlu0 %v3511_v58, %s4747_s10 }
 0xfe4   :  { %3549 = vrot.lane.b32.xlu1 %v3509_v23, %s4747_s10  ;;  %v3454_v18 = vpop.permute.xlu0 %3453 }
 0xfe5   :  { %v3484_v51 = vpop.permute.xlu1 %3483  ;;  %v3501_v55 = vmul.f32 %v6882_v32, %v3454_v18  ;;  %v3433_v18 = vmul.f32 %v6850_v39, %v3401_v14 }
 0xfe6   :  { %v3516_v9 = vmul.f32 %v6873_v6, %v3484_v51 }
 0xfe7   :  { %3533 = vrot.lane.b32.xlu0 %v3501_v55, %s4747_s10 }
 0xfe8   :  { %3563 = vrot.lane.b32.xlu1 %v3516_v9, %s4747_s10  ;;  %v3402_v9 = vrot.slane %v6647_v30, 7 }
 0xfea   :  { %v3434_v40 = vmul.f32 %v6852_v0, %v3402_v9 }
0x103d   :  { %v3542_v17 = vpop.permute.xlu0 %3541 }
0x103e   :  { %v3544_v12 = vpop.permute.xlu1 %3543  ;;  %v3585_v4 = vadd.f32 %v3542_v17, %v3425_v62  ;;  %v7166_v62 = vld [vmem:[#allocation9_spill] sm:$0xff] }
0x103f   :  { %v3586_v19 = vadd.f32 %v3544_v12, %v3426_v36  ;;  %v3403_v36 = vrot.slane %v7166_v62, 7  ;;  %v3400_v12 = vrot.slane %v7167_v45, 7 }
0x1040   :  { %4710 = vtanh.f32 %v3585_v4  ;;  %v3771_v26 = vrot.slane %v3585_v4, 4 }
0x1041   :  { %4712 = vtanh.f32 %v3586_v19  ;;  %v3546_v21 = vpop.permute.xlu0 %3545  ;;  %v3773_v54 = vrot.slane %v3586_v19, 3  ;;  %v3435_v30 = vmul.f32 %v6857_v59, %v3403_v36  ;;  %v3432_v19 = vmul.f32 %v6860_v47, %v3400_v12 }
0x1042   :  { %v3540_v10 = vpop.permute.xlu1 %3539  ;;  %v3587_v37 = vadd.f32 %v3546_v21, %v3427_v46 }
0x1043   :  { %v3584_v15 = vadd.f32 %v3540_v10, %v3424_v24  ;;  %v7168_v24 = vld [vmem:[#allocation6_spill] sm:$0xff] }
0x1044   :  { %4714 = vtanh.f32 %v3587_v37  ;;  %v3775_v57 = vrot.slane %v3587_v37, 2  ;;  %v3398_v21 = vrot.slane %v7168_v24, 7 }
0x1045   :  { %4716 = vtanh.f32 %v3584_v15  ;;  %v3770_v5 = vrot.slane %v3584_v15, 5  ;;  %v3538_v7 = vpop.permute.xlu0 %3537 }
0x1046   :  { %v3548_v33 = vpop.permute.xlu1 %3547  ;;  %v6898_v25 = vadd.f32 %v3538_v7, %v3423_v53  ;;  %v3429_v53 = vmul.f32 %v6865_v22, %v3397_v29 }
0x1047   :  { %v3772_v41 = vsel %vm656_vm2, %v3771_v26, %v3770_v5  ;;  %v3588_v42 = vadd.f32 %v3548_v33, %v3428_v28  ;;  %v3430_v28 = vmul.f32 %v6868_v20, %v3398_v21 }
0x1048   :  { %v3774_v16 = vsel %vm659_vm3, %v3773_v54, %v3772_v41  ;;  %4718 = vtanh.f32 %v6898_v25  ;;  %v7170_v54 = vld [vmem:[#allocation10_spill] sm:$0xff] }
0x1049   :  { %v3776_v56 = vsel %vm662_vm4, %v3775_v57, %v3774_v16  ;;  %4720 = vtanh.f32 %v3588_v42  ;;  %v3777_v63 = vrot.slane %v3588_v42, 1  ;;  %v3560_v17 = vpop.permute.xlu0 %3559  ;;  %v3404_v33 = vrot.slane %v7170_v54, 7  ;;  %v7171_v16 = vld [vmem:[#allocation7_spill] sm:$0xff] }
0x104a   :  { %v3536_v60 = vpop.permute.xlu1 %3535  ;;  %v3594_v4 = vadd.f32 %v3560_v17, %v3434_v40 }
0x104b   :  { %v3778_v34 = vsel %vm665_vm5, %v3777_v63, %v3776_v56  ;;  %v6907_v11 = vadd.f32 %v3536_v60, %v3422_v8  ;;  %v3399_v56 = vrot.slane %v7171_v16, 7 }
0x104c   :  { %v3787_v35 = vrot.slane %v3594_v4, 3 }
0x104d   :  { %v4711_v23 = vpop.eup %4710  ;;  %4722 = vtanh.f32 %v6907_v11  ;;  %v3556_v10 = vpop.permute.xlu0 %3555 }
0x104e   :  { %v4713_v1 = vpop.eup %4712  ;;  %3637 = vrot.lane.b32.xlu0 %v4711_v23, %s4748_s17  ;;  %v3558_v44 = vpop.permute.xlu1 %3557  ;;  %v3592_v15 = vadd.f32 %v3556_v10, %v3432_v19  ;;  %v3436_v23 = vmul.f32 %v6873_v6, %v3404_v33 }
0x104f   :  { %3639 = vrot.lane.b32.xlu1 %v4713_v1, %s4748_s17  ;;  %v3593_v38 = vadd.f32 %v3558_v44, %v3433_v18 }
0x1050   :  { %v3784_v5 = vrot.slane %v3592_v15, 5 }
0x1051   :  { %v4715_v31 = vpop.eup %4714  ;;  %4724 = vtanh.f32 %v3593_v38  ;;  %v3785_v26 = vrot.slane %v3593_v38, 4  ;;  %v3552_v41 = vpop.permute.xlu0 %3551 }
0x1052   :  { %v4717_v51 = vpop.eup %4716  ;;  %3641 = vrot.lane.b32.xlu0 %v4715_v31, %s4748_s17  ;;  %4726 = vtanh.f32 %v3594_v4  ;;  %v3562_v46 = vpop.permute.xlu1 %3561  ;;  %v3590_v8 = vadd.f32 %v3552_v41, %v3430_v28 }
0x1053   :  { %3635 = vrot.lane.b32.xlu1 %v4717_v51, %s4748_s17  ;;  %v3595_v37 = vadd.f32 %v3562_v46, %v3435_v30  ;;  %v3786_v63 = vsel %vm656_vm2, %v3785_v26, %v3784_v5  ;;  %v3431_v51 = vmul.f32 %v6876_v49, %v3399_v56  ;;  %v3766_v30 = vrot.slane %v6907_v11, 7 }
0x1054   :  { %v3788_v1 = vsel %vm659_vm3, %v3787_v35, %v3786_v63  ;;  %v3780_v31 = vrot.slane %v3590_v8, 7  ;;  %v3768_v46 = vrot.slane %v6898_v25, 6 }
0x1055   :  { %v4719_v58 = vpop.eup %4718  ;;  %4728 = vtanh.f32 %v3595_v37  ;;  %v3789_v57 = vrot.slane %v3595_v37, 2 }
0x1056   :  { %v4721_v55 = vpop.eup %4720  ;;  %3633 = vrot.lane.b32.xlu0 %v4719_v58, %s4748_s17  ;;  %4730 = vtanh.f32 %v3592_v15  ;;  %v3550_v7 = vpop.permute.xlu1 %3549 }
0x1057   :  { %3643 = vrot.lane.b32.xlu1 %v4721_v55, %s4748_s17  ;;  %v3589_v42 = vadd.f32 %v3550_v7, %v3429_v53  ;;  %v3790_v9 = vsel %vm662_vm4, %v3789_v57, %v3788_v1  ;;  %v3554_v58 = vpop.permute.xlu0 %3553  ;;  %v7172_v55 = vld [vmem:[#allocation5_spill] sm:$0xff] }
0x1058   :  { %v3389_v40 = vrot.slane %v7172_v55, 7  ;;  %v3591_v44 = vadd.f32 %v3554_v58, %v3431_v51 }
0x1059   :  { %4732 = vtanh.f32 %v3589_v42  ;;  %v3779_v60 = vsel %vm668_vm6, %v3589_v42, %v3778_v34 }
0x105a   :  { %v4723_v50 = vpop.eup %4722  ;;  %4734 = vtanh.f32 %v3590_v8  ;;  %v3564_v14 = vpop.permute.xlu1 %3563  ;;  %v3781_v62 = vsel %vm671_vm7, %v3780_v31, %v3779_v60  ;;  %v3782_v17 = vrot.slane %v3591_v44, 6  ;;  %v3421_v38 = vmul.f32 %v6882_v32, %v3389_v40 }
0x105b   :  { %3631 = vrot.lane.b32.xlu1 %v4723_v50, %s4748_s17  ;;  %v3596_v18 = vadd.f32 %v3564_v14, %v3436_v23  ;;  %v3534_v12 = vpop.permute.xlu0 %3533 }
0x105c   :  { %v3581_v50 = vadd.f32 %v3534_v12, %v3421_v38  ;;  %v6947_v19 = vsel %vm674_vm8, %v3782_v17, %v3781_v62 }
0x105d   :  { %4736 = vtanh.f32 %v3596_v18  ;;  %v3791_v34 = vrot.slane %v3596_v18, 1 }
0x105e   :  { %v4725_v36 = vpop.eup %4724  ;;  %4738 = vtanh.f32 %v3591_v44  ;;  %v3767_v21 = vsel %vm671_vm7, %v3766_v30, %v3581_v50 }
0x105f   :  { %v4727_v45 = vpop.eup %4726  ;;  %3653 = vrot.lane.b32.xlu1 %v4725_v36, %s4748_s17  ;;  %v6942_v4 = vsel %vm665_vm5, %v3791_v34, %v3790_v9  ;;  %4740 = vtanh.f32 %v3581_v50  ;;  %v3769_v29 = vsel %vm674_vm8, %v3768_v46, %v3767_v21 }
0x1060   :  { %3655 = vrot.lane.b32.xlu0 %v4727_v45, %s4748_s17 }
0x1062   :  { %v4729_v24 = vpop.eup %4728 }
0x1063   :  { %v4731_v61 = vpop.eup %4730  ;;  %3657 = vrot.lane.b32.xlu1 %v4729_v24, %s4748_s17 }
0x1064   :  { %3651 = vrot.lane.b32.xlu0 %v4731_v61, %s4748_s17 }
0x1066   :  { %v4733_v11 = vpop.eup %4732 }
0x1067   :  { %v4735_v10 = vpop.eup %4734  ;;  %3645 = vrot.lane.b32.xlu1 %v4733_v11, %s4748_s17 }
0x1068   :  { %3647 = vrot.lane.b32.xlu0 %v4735_v10, %s4748_s17 }
0x106a   :  { %v4737_v37 = vpop.eup %4736 }
0x106b   :  { %v4739_v15 = vpop.eup %4738  ;;  %3659 = vrot.lane.b32.xlu1 %v4737_v37, %s4748_s17 }
0x106c   :  { %3649 = vrot.lane.b32.xlu0 %v4739_v15, %s4748_s17  ;;  %v4741_v25 = vpop.eup %4740 }
0x1070   :  { %3629 = vrot.lane.b32.xlu0 %v4741_v25, %s4748_s17 }
0x1074   :  { %3793 = vrot.lane.b32.xlu0 %v3769_v29, %s4750_s0 }
0x10c0   :  { %v3638_v26 = vpop.permute.xlu0 %3637 }
0x10c1   :  { %v3640_v28 = vpop.permute.xlu1 %3639  ;;  %v3681_v35 = vmul.f32 %v6819_v2, %v3638_v26 }
0x10c2   :  { %v3682_v16 = vmul.f32 %v6822_v27, %v3640_v28 }
0x10c3   :  { %v3714_v63 = vrot.slane %v3681_v35, 4 }
0x10c4   :  { %v3642_v57 = vpop.permute.xlu0 %3641  ;;  %v3716_v1 = vrot.slane %v3682_v16, 3 }
0x10c5   :  { %v3636_v53 = vpop.permute.xlu1 %3635  ;;  %v3683_v8 = vmul.f32 %v6830_v48, %v3642_v57 }
0x10c6   :  { %v3680_v33 = vmul.f32 %v6827_v3, %v3636_v53 }
0x10c7   :  { %v3718_v14 = vrot.slane %v3683_v8, 2 }
0x10c8   :  { %v3634_v54 = vpop.permute.xlu0 %3633  ;;  %v3713_v41 = vrot.slane %v3680_v33, 5 }
0x10c9   :  { %v3644_v5 = vpop.permute.xlu1 %3643 }
0x10ca   :  { %v3715_v60 = vsel %vm656_vm2, %v3714_v63, %v3713_v41  ;;  %v3684_v31 = vmul.f32 %v6839_v13, %v3644_v5 }
0x10cb   :  { %v3717_v3 = vsel %vm659_vm3, %v3716_v1, %v3715_v60 }
0x10cc   :  { %v3720_v2 = vrot.slane %v3684_v31, 1  ;;  %v3719_v18 = vsel %vm662_vm4, %v3718_v14, %v3717_v3 }
0x10cd   :  { %v3632_v7 = vpop.permute.xlu1 %3631 }
0x10ce   :  { %v3721_v44 = vsel %vm665_vm5, %v3720_v2, %v3719_v18  ;;  %v3678_v34 = vmul.f32 %v6846_v52, %v3632_v7 }
0x10d0   :  { %v3709_v52 = vrot.slane %v3678_v34, 7 }
0x10d1   :  { %v3654_v42 = vpop.permute.xlu1 %3653 }
0x10d2   :  { %v3656_v56 = vpop.permute.xlu0 %3655  ;;  %v3689_v40 = vmul.f32 %v6850_v39, %v3654_v42 }
0x10d4   :  { %v3728_v12 = vrot.slane %v3689_v40, 4 }
0x10d5   :  { %v3658_v23 = vpop.permute.xlu1 %3657 }
0x10d6   :  { %v3652_v51 = vpop.permute.xlu0 %3651 }
0x10d7   :  { %v3688_v27 = vmul.f32 %v6860_v47, %v3652_v51  ;;  %v3679_v47 = vmul.f32 %v6836_v43, %v3634_v54 }
0x10d9   :  { %v3646_v9 = vpop.permute.xlu1 %3645  ;;  %v3727_v36 = vrot.slane %v3688_v27, 5  ;;  %v3711_v61 = vrot.slane %v3679_v47, 6 }
0x10da   :  { %v3648_v58 = vpop.permute.xlu0 %3647  ;;  %v3685_v48 = vmul.f32 %v6865_v22, %v3646_v9  ;;  %v3691_v22 = vmul.f32 %v6857_v59, %v3658_v23 }
0x10db   :  { %v3686_v55 = vmul.f32 %v6868_v20, %v3648_v58  ;;  %v3690_v20 = vmul.f32 %v6852_v0, %v3656_v56  ;;  %v3729_v24 = vsel %vm656_vm2, %v3728_v12, %v3727_v36 }
0x10dc   :  { %v3722_v17 = vsel %vm668_vm6, %v3685_v48, %v3721_v44  ;;  %v3732_v0 = vrot.slane %v3691_v22, 2 }
0x10dd   :  { %v3723_v13 = vrot.slane %v3686_v55, 7  ;;  %v3660_v45 = vpop.permute.xlu1 %3659  ;;  %v3730_v43 = vrot.slane %v3690_v20, 3 }
0x10de   :  { %v3650_v62 = vpop.permute.xlu0 %3649  ;;  %v3692_v30 = vmul.f32 %v6873_v6, %v3660_v45 }
0x10df   :  { %v3687_v38 = vmul.f32 %v6876_v49, %v3650_v62  ;;  %v3724_v46 = vsel %vm671_vm7, %v3723_v13, %v3722_v17  ;;  %v3731_v6 = vsel %vm659_vm3, %v3730_v43, %v3729_v24 }
0x10e0   :  { %v3734_v29 = vrot.slane %v3692_v30, 1 }
0x10e1   :  { %v3725_v39 = vrot.slane %v3687_v38, 6 }
0x10e2   :  { %v3630_v50 = vpop.permute.xlu0 %3629 }
0x10e3   :  { %v3677_v21 = vmul.f32 %v6882_v32, %v3630_v50  ;;  %v3726_v49 = vsel %vm674_vm8, %v3725_v39, %v3724_v46  ;;  %v3733_v32 = vsel %vm662_vm4, %v3732_v0, %v3731_v6 }
0x10e4   :  { %3738 = vrot.lane.b32.xlu0 %v3726_v49, %s4749_s18  ;;  %v3735_v37 = vsel %vm665_vm5, %v3734_v29, %v3733_v32 }
0x10e5   :  { %v3710_v59 = vsel %vm671_vm7, %v3709_v52, %v3677_v21 }
0x10e6   :  { %v3794_v11 = vpop.permute.xlu0 %3793  ;;  %v3712_v10 = vsel %vm674_vm8, %v3711_v61, %v3710_v59 }
0x10e7   :  { %3802 = vst.msk [vmem:[#allocation3 - $0x5] sm:$0xe0] %vm3745_vm9, %v3794_v11  ;;  %3736 = vrot.lane.b32.xlu1 %v3712_v10, %s4749_s18 }
0x10e8   :  { %3797 = vrot.lane.b32.xlu0 %v6942_v4, %s4750_s0 }
0x10eb   :  { %3740 = vrot.lane.b32.xlu1 %v3735_v37, %s4749_s18 }
0x10ef   :  { %3795 = vrot.lane.b32.xlu1 %v6947_v19, %s4750_s0 }
0x1156   :  { %v3739_v15 = vpop.permute.xlu0 %3738 }
0x1157   :  { %3747 = vst.msk [vmem:[#allocation2 + $0x3] sm:$0xff] %vm16_vm0, %v3739_v15  ;;  %3809 = vst.msk [vmem:[%s7013_s2 + $0x3] sm:$0xff] %vm16_vm0, %v3739_v15 }
0x1159   :  { %v3737_v25 = vpop.permute.xlu1 %3736 }
0x115a   :  { %3746 = vst.msk [vmem:[#allocation2 - $0x5] sm:$0xe0] %vm3745_vm9, %v3737_v25  ;;  %3808 = vst.msk [vmem:[%s7013_s2 - $0x5] sm:$0xe0] %vm3745_vm9, %v3737_v25  ;;  %v3798_v4 = vpop.permute.xlu0 %3797 }
0x115b   :  { %3804 = vst.msk [vmem:[#allocation3 + $0xb] sm:$0x1f] %vm3748_vm10, %v3798_v4 }
0x115d   :  { %v3741_v19 = vpop.permute.xlu1 %3740 }
0x115e   :  { %3749 = vst.msk [vmem:[#allocation2 + $0xb] sm:$0x1f] %vm3748_vm10, %v3741_v19  ;;  %3810 = vst.msk [vmem:[%s7013_s2 + $0xb] sm:$0x1f] %vm3748_vm10, %v3741_v19 }
0x1161   :  { %v3796_v28 = vpop.permute.xlu1 %3795 }
0x1162   :  { %3803 = vst.msk [vmem:[#allocation3 + $0x3] sm:$0xff] %vm16_vm0, %v3796_v28 }

</bundles_post_ra>
